<compile_context>
chip_gen: v7x
topology: tpu7x:2x2x1
jax: 0.10.0
libtpu: 0.0.40
codegen_flags: <defaults>
</compile_context>

<pallas_src>
import functools

import jax
import jax.numpy as jnp
from jax import lax
from jax.experimental import pallas as pl
from jax.experimental.pallas import tpu as pltpu


# ----------------------------------------------------------------------------
# Fully fused Encoder kernel (all 4 blocks, one grid step per batch sample)
# ----------------------------------------------------------------------------
def _encoder_kernel(x_ref, *refs, Hs, Ws):
    # x_ref : (1, H0, W0, Cin)                       NHWC input block
    # refs  : 16 weight/bias refs  (w1, b1, w2, b2) per block,
    #         4 output refs        (1, H*(W+2), C) wide-layout s1, s2, s3, m,
    #         8 VMEM scratch refs  (conv1 pad, conv2 pad) per block.
    wb = refs[:16]
    outs = refs[16:20]
    pads = refs[20:28]

    def conv3x3_relu(pad_ref, w_ref, b_ref, M, WP):
        # Whole-image implicit GEMM over the flattened zero-padded image:
        # each 3x3 tap is a contiguous (M, Cin) sublane slice; 9 MXU matmuls
        # accumulated in f32, then bias + ReLU.
        acc = None
        for kh in range(3):
            for kw in range(3):
                tap = pad_ref[pl.ds(kh * WP + kw, M), :]          # (M, Cin)
                part = jnp.dot(tap, w_ref[kh, kw],
                               preferred_element_type=jnp.float32)
                acc = part if acc is None else acc + part
        return jnp.maximum(acc + b_ref[...], 0.0)                  # (M, Cout)

    # ---- Block 1 input: scatter NHWC rows into the fully-zeroed pad buffer.
    H, W = Hs[0], Ws[0]
    WP = W + 2
    pa0 = pads[0]
    pa0[...] = jnp.zeros_like(pa0)
    for h in range(H):
        pa0[pl.ds((h + 1) * WP + 1, W), :] = x_ref[0, h]

    for blk in range(4):
        H, W = Hs[blk], Ws[blk]
        WP = W + 2
        M = H * WP
        pa, pb = pads[2 * blk], pads[2 * blk + 1]
        w1, b1, w2, b2 = wb[4 * blk: 4 * blk + 4]
        out_ref = outs[blk]
        C2 = pb.shape[-1]

        # Zero only the halo bands of conv2's padded buffer: the interior and
        # the 2-element inter-row gaps are fully overwritten below by the
        # masked wide write of conv1's output.
        pb[pl.ds(0, WP + 1), :] = jnp.zeros((WP + 1, C2), jnp.float32)
        pb[pl.ds((H + 1) * WP + 1, WP + 1), :] = jnp.zeros((WP + 1, C2),
                                                           jnp.float32)

        # Flat index j is a real pixel iff (j % WP) < W (2 garbage cols / row).
        col = lax.broadcasted_iota(jnp.int32, (M, 1), 0) % WP
        valid = col < W

        # conv1 + ReLU -> masked wide write into conv2's padded buffer (the
        # zeroed garbage columns become the left/right 'same' padding).
        a1 = conv3x3_relu(pa, w1, b1, M, WP)
        pb[pl.ds(WP + 1, M), :] = jnp.where(valid, a1, 0.0)

        # conv2 + ReLU -> single bulk store straight into the output block
        # (wide layout; no scratch copy-out loop).
        a2 = conv3x3_relu(pb, w2, b2, M, WP)
        out_ref[0] = a2

        if blk < 3:
            # 2x2 / stride-2 max pool: 4 stride-2 sublane reads + 3 maxes per
            # pooled row, scattered DIRECTLY into the next block's conv1 pad
            # buffer (pooled activations never touch HBM).
            Wn = Ws[blk + 1]
            WPn = Wn + 2
            pnext = pads[2 * (blk + 1)]
            pnext[...] = jnp.zeros_like(pnext)
            av = out_ref.at[0]                         # (M, C) view, no copy
            for oh in range(Hs[blk + 1]):
                r0 = (2 * oh) * WP
                r1 = r0 + WP
                a = av[pl.ds(r0, Wn, stride=2), :]       # row 2oh, even cols
                b = av[pl.ds(r0 + 1, Wn, stride=2), :]   # row 2oh, odd cols
                c = av[pl.ds(r1, Wn, stride=2), :]       # row 2oh+1, even
                d = av[pl.ds(r1 + 1, Wn, stride=2), :]   # row 2oh+1, odd
                pnext[pl.ds((oh + 1) * WPn + 1, Wn), :] = jnp.maximum(
                    jnp.maximum(a, b), jnp.maximum(c, d))


def _encoder_pallas(x_nhwc, params):
    """x_nhwc: (N, H0, W0, Cin) f32. Returns wide-layout (N, H*(W+2), C)
    outputs (s1, s2, s3, m)."""
    N, H0, W0, Cin0 = x_nhwc.shape

    Hs, Ws, Cins, Couts = [], [], [], []
    H, W, cin = H0, W0, Cin0
    for i in range(4):
        (w1, _b1), _ = params[i]
        Hs.append(H)
        Ws.append(W)
        Cins.append(cin)
        Couts.append(w1.shape[-1])
        cin = w1.shape[-1]
        if i < 3:
            H //= 2
            W //= 2

    flat = []
    for (w1, b1), (w2, b2) in params:
        flat += [w1, b1, w2, b2]

    in_specs = [pl.BlockSpec((1, H0, W0, Cin0), lambda n: (n, 0, 0, 0))]
    for arr in flat:
        if arr.ndim == 4:
            in_specs.append(pl.BlockSpec(arr.shape, lambda n: (0, 0, 0, 0)))
        else:
            in_specs.append(pl.BlockSpec(arr.shape, lambda n: (0, 0)))

    out_shape, out_specs, scratch = [], [], []
    for i in range(4):
        M = Hs[i] * (Ws[i] + 2)
        out_shape.append(jax.ShapeDtypeStruct((N, M, Couts[i]), jnp.float32))
        out_specs.append(pl.BlockSpec((1, M, Couts[i]), lambda n: (n, 0, 0)))
    for i in range(4):
        npad = (Hs[i] + 2) * (Ws[i] + 2) + 2
        scratch.append(pltpu.VMEM((npad, Cins[i]), jnp.float32))   # conv1 pad
        scratch.append(pltpu.VMEM((npad, Couts[i]), jnp.float32))  # conv2 pad

    kern = functools.partial(_encoder_kernel, Hs=tuple(Hs), Ws=tuple(Ws))

    return pl.pallas_call(
        kern,
        out_shape=tuple(out_shape),
        grid=(N,),
        in_specs=in_specs,
        out_specs=tuple(out_specs),
        scratch_shapes=scratch,
        compiler_params=pltpu.CompilerParams(
            dimension_semantics=("parallel",)),   # batch over TCs on v7x
    )(x_nhwc, *flat)


# ----------------------------------------------------------------------------
# Encoder (matches the PyTorch module's forward semantics, NCHW in / NCHW out)
# ----------------------------------------------------------------------------
@jax.jit
def encoder_forward(x_nchw, params):
    x = jnp.transpose(x_nchw, (0, 2, 3, 1)).astype(jnp.float32)   # NCHW->NHWC
    s1w, s2w, s3w, mw = _encoder_pallas(x, params)
    _, _, H0, W0 = x_nchw.shape

    def unwide(a, H, W):
        # (N, H*(W+2), C) wide layout -> strip garbage cols -> NCHW.
        n, _, c = a.shape
        a = a.reshape(n, H, W + 2, c)[:, :, :W, :]
        return jnp.transpose(a, (0, 3, 1, 2))

    s1 = unwide(s1w, H0, W0)
    s2 = unwide(s2w, H0 // 2, W0 // 2)
    s3 = unwide(s3w, H0 // 4, W0 // 4)
    m = unwide(mw, H0 // 8, W0 // 8)
    return m, s1, s2, s3


# ----------------------------------------------------------------------------
# Deterministic parameter init (mimics PyTorch Conv2d uniform init shapes)
# ----------------------------------------------------------------------------
def init_params(key, input_channels, channels):
    def conv_init(k, cin, cout):
        kw_key, b_key = jax.random.split(k)
        bound = 1.0 / (9.0 * cin) ** 0.5
        w = jax.random.uniform(kw_key, (3, 3, cin, cout), jnp.float32,
                               -bound, bound)
        b = jax.random.uniform(b_key, (1, cout), jnp.float32, -bound, bound)
        return w, b

    params = []
    cin = input_channels
    for cout in channels:
        key, k1, k2 = jax.random.split(key, 3)
        params.append((conv_init(k1, cin, cout), conv_init(k2, cout, cout)))
        cin = cout
    return params


# ----------------------------------------------------------------------------
# Pure-JAX reference (for correctness check)
# ----------------------------------------------------------------------------
def _ref_conv_relu(x, w, b):
    y = lax.conv_general_dilated(
        x, w, window_strides=(1, 1), padding='SAME',
        dimension_numbers=('NHWC', 'HWIO', 'NHWC'))
    return jnp.maximum(y + b.reshape(1, 1, 1, -1), 0.0)


def _ref_pool(x):
    N, H, W, C = x.shape
    return x.reshape(N, H // 2, 2, W // 2, 2, C).max(axis=(2, 4))


def _ref_forward(x_nchw, params):
    x = jnp.transpose(x_nchw, (0, 2, 3, 1)).astype(jnp.float32)
    skips = []
    for i, ((w1, b1), (w2, b2)) in enumerate(params):
        x = _ref_conv_relu(x, w1, b1)
        x = _ref_conv_relu(x, w2, b2)
        skips.append(x)
        if i < 3:
            x = _ref_pool(x)
    to_nchw = lambda a: jnp.transpose(a, (0, 3, 1, 2))
    return to_nchw(x), to_nchw(skips[0]), to_nchw(skips[1]), to_nchw(skips[2])


if __name__ == "__main__":
    key = jax.random.PRNGKey(0)
    k_x, k_p = jax.random.split(key)

    batch, input_channels, spatial = 2, 4, 16
    channels = [8, 16, 32, 64]

    x = jax.random.normal(k_x, (batch, input_channels, spatial, spatial),
                          jnp.float32)                      # NCHW, like PyTorch
    params = init_params(k_p, input_channels, channels)

    outs = encoder_forward(x, params)
    outs = jax.block_until_ready(outs)

    refs = _ref_forward(x, params)
    for got, ref in zip(outs, refs):
        assert got.shape == ref.shape, (got.shape, ref.shape)
        assert jnp.allclose(got, ref, rtol=1e-3, atol=1e-3), \
            float(jnp.max(jnp.abs(got - ref)))

    print("KERNEL_OK")
</pallas_src>

<mosaic_0001>
module attributes {stable_mosaic.version = 11 : i64} {
  func.func @_encoder_kernel(%arg0: i32, %arg1: memref<1x16x16x4xf32, #tpu.memory_space<vmem>>, %arg2: memref<3x3x4x8xf32, #tpu.memory_space<vmem>>, %arg3: memref<1x8xf32, #tpu.memory_space<vmem>>, %arg4: memref<3x3x8x8xf32, #tpu.memory_space<vmem>>, %arg5: memref<1x8xf32, #tpu.memory_space<vmem>>, %arg6: memref<3x3x8x16xf32, #tpu.memory_space<vmem>>, %arg7: memref<1x16xf32, #tpu.memory_space<vmem>>, %arg8: memref<3x3x16x16xf32, #tpu.memory_space<vmem>>, %arg9: memref<1x16xf32, #tpu.memory_space<vmem>>, %arg10: memref<3x3x16x32xf32, #tpu.memory_space<vmem>>, %arg11: memref<1x32xf32, #tpu.memory_space<vmem>>, %arg12: memref<3x3x32x32xf32, #tpu.memory_space<vmem>>, %arg13: memref<1x32xf32, #tpu.memory_space<vmem>>, %arg14: memref<3x3x32x64xf32, #tpu.memory_space<vmem>>, %arg15: memref<1x64xf32, #tpu.memory_space<vmem>>, %arg16: memref<3x3x64x64xf32, #tpu.memory_space<vmem>>, %arg17: memref<1x64xf32, #tpu.memory_space<vmem>>, %arg18: memref<1x288x8xf32, #tpu.memory_space<vmem>>, %arg19: memref<1x80x16xf32, #tpu.memory_space<vmem>>, %arg20: memref<1x24x32xf32, #tpu.memory_space<vmem>>, %arg21: memref<1x8x64xf32, #tpu.memory_space<vmem>>, %arg22: memref<326x4xf32, #tpu.memory_space<vmem>>, %arg23: memref<326x8xf32, #tpu.memory_space<vmem>>, %arg24: memref<102x8xf32, #tpu.memory_space<vmem>>, %arg25: memref<102x16xf32, #tpu.memory_space<vmem>>, %arg26: memref<38x16xf32, #tpu.memory_space<vmem>>, %arg27: memref<38x32xf32, #tpu.memory_space<vmem>>, %arg28: memref<18x32xf32, #tpu.memory_space<vmem>>, %arg29: memref<18x64xf32, #tpu.memory_space<vmem>>) attributes {dimension_semantics = [#tpu.dimension_semantics<parallel>], iteration_bounds = array<i64: 2>, scalar_prefetch = 0 : i64, scratch_operands = 8 : i64, tpu.core_type = #tpu.core_type<tc>, window_params = [{transform_indices = @transform_0, window_bounds = array<i64: 1, 16, 16, 4>}, {pipeline_mode = #tpu.pipeline_mode<synchronous>, transform_indices = @transform_1, window_bounds = array<i64: 3, 3, 4, 8>}, {pipeline_mode = #tpu.pipeline_mode<synchronous>, transform_indices = @transform_2, window_bounds = array<i64: 1, 8>}, {pipeline_mode = #tpu.pipeline_mode<synchronous>, transform_indices = @transform_3, window_bounds = array<i64: 3, 3, 8, 8>}, {pipeline_mode = #tpu.pipeline_mode<synchronous>, transform_indices = @transform_4, window_bounds = array<i64: 1, 8>}, {pipeline_mode = #tpu.pipeline_mode<synchronous>, transform_indices = @transform_5, window_bounds = array<i64: 3, 3, 8, 16>}, {pipeline_mode = #tpu.pipeline_mode<synchronous>, transform_indices = @transform_6, window_bounds = array<i64: 1, 16>}, {pipeline_mode = #tpu.pipeline_mode<synchronous>, transform_indices = @transform_7, window_bounds = array<i64: 3, 3, 16, 16>}, {pipeline_mode = #tpu.pipeline_mode<synchronous>, transform_indices = @transform_8, window_bounds = array<i64: 1, 16>}, {pipeline_mode = #tpu.pipeline_mode<synchronous>, transform_indices = @transform_9, window_bounds = array<i64: 3, 3, 16, 32>}, {pipeline_mode = #tpu.pipeline_mode<synchronous>, transform_indices = @transform_10, window_bounds = array<i64: 1, 32>}, {pipeline_mode = #tpu.pipeline_mode<synchronous>, transform_indices = @transform_11, window_bounds = array<i64: 3, 3, 32, 32>}, {pipeline_mode = #tpu.pipeline_mode<synchronous>, transform_indices = @transform_12, window_bounds = array<i64: 1, 32>}, {pipeline_mode = #tpu.pipeline_mode<synchronous>, transform_indices = @transform_13, window_bounds = array<i64: 3, 3, 32, 64>}, {pipeline_mode = #tpu.pipeline_mode<synchronous>, transform_indices = @transform_14, window_bounds = array<i64: 1, 64>}, {pipeline_mode = #tpu.pipeline_mode<synchronous>, transform_indices = @transform_15, window_bounds = array<i64: 3, 3, 64, 64>}, {pipeline_mode = #tpu.pipeline_mode<synchronous>, transform_indices = @transform_16, window_bounds = array<i64: 1, 64>}, {transform_indices = @transform_17, window_bounds = array<i64: 1, 288, 8>}, {transform_indices = @transform_18, window_bounds = array<i64: 1, 80, 16>}, {transform_indices = @transform_19, window_bounds = array<i64: 1, 24, 32>}, {transform_indices = @transform_20, window_bounds = array<i64: 1, 8, 64>}]} {
    %cst = arith.constant 0.000000e+00 : f32
    %0 = vector.broadcast %cst : f32 to vector<326x4xf32>
    %c0 = arith.constant 0 : index
    %c0_0 = arith.constant 0 : index
    %1 = vector.load %arg22[%c0, %c0_0] : memref<326x4xf32, #tpu.memory_space<vmem>>, vector<326x4xf32>
    tpu.vector_store %arg22[%c0, %c0_0], %0 {strides = array<i32>} : memref<326x4xf32, #tpu.memory_space<vmem>>, vector<326x4xf32>,
    %c0_1 = arith.constant 0 : index
    %c0_2 = arith.constant 0 : index
    %c0_3 = arith.constant 0 : index
    %c0_4 = arith.constant 0 : index
    %2 = vector.load %arg1[%c0_1, %c0_2, %c0_3, %c0_4] : memref<1x16x16x4xf32, #tpu.memory_space<vmem>>, vector<1x1x16x4xf32>
    %3 = vector.shape_cast %2 : vector<1x1x16x4xf32> to vector<16x4xf32>
    %c19 = arith.constant 19 : index
    %c0_5 = arith.constant 0 : index
    %4 = vector.load %arg22[%c19, %c0_5] : memref<326x4xf32, #tpu.memory_space<vmem>>, vector<16x4xf32>
    tpu.vector_store %arg22[%c19, %c0_5], %3 {strides = array<i32>} : memref<326x4xf32, #tpu.memory_space<vmem>>, vector<16x4xf32>,
    %c0_6 = arith.constant 0 : index
    %c1 = arith.constant 1 : index
    %c0_7 = arith.constant 0 : index
    %c0_8 = arith.constant 0 : index
    %5 = vector.load %arg1[%c0_6, %c1, %c0_7, %c0_8] : memref<1x16x16x4xf32, #tpu.memory_space<vmem>>, vector<1x1x16x4xf32>
    %6 = vector.shape_cast %5 : vector<1x1x16x4xf32> to vector<16x4xf32>
    %c37 = arith.constant 37 : index
    %c0_9 = arith.constant 0 : index
    %7 = vector.load %arg22[%c37, %c0_9] : memref<326x4xf32, #tpu.memory_space<vmem>>, vector<16x4xf32>
    tpu.vector_store %arg22[%c37, %c0_9], %6 {strides = array<i32>} : memref<326x4xf32, #tpu.memory_space<vmem>>, vector<16x4xf32>,
    %c0_10 = arith.constant 0 : index
    %c2 = arith.constant 2 : index
    %c0_11 = arith.constant 0 : index
    %c0_12 = arith.constant 0 : index
    %8 = vector.load %arg1[%c0_10, %c2, %c0_11, %c0_12] : memref<1x16x16x4xf32, #tpu.memory_space<vmem>>, vector<1x1x16x4xf32>
    %9 = vector.shape_cast %8 : vector<1x1x16x4xf32> to vector<16x4xf32>
    %c55 = arith.constant 55 : index
    %c0_13 = arith.constant 0 : index
    %10 = vector.load %arg22[%c55, %c0_13] : memref<326x4xf32, #tpu.memory_space<vmem>>, vector<16x4xf32>
    tpu.vector_store %arg22[%c55, %c0_13], %9 {strides = array<i32>} : memref<326x4xf32, #tpu.memory_space<vmem>>, vector<16x4xf32>,
    %c0_14 = arith.constant 0 : index
    %c3 = arith.constant 3 : index
    %c0_15 = arith.constant 0 : index
    %c0_16 = arith.constant 0 : index
    %11 = vector.load %arg1[%c0_14, %c3, %c0_15, %c0_16] : memref<1x16x16x4xf32, #tpu.memory_space<vmem>>, vector<1x1x16x4xf32>
    %12 = vector.shape_cast %11 : vector<1x1x16x4xf32> to vector<16x4xf32>
    %c73 = arith.constant 73 : index
    %c0_17 = arith.constant 0 : index
    %13 = vector.load %arg22[%c73, %c0_17] : memref<326x4xf32, #tpu.memory_space<vmem>>, vector<16x4xf32>
    tpu.vector_store %arg22[%c73, %c0_17], %12 {strides = array<i32>} : memref<326x4xf32, #tpu.memory_space<vmem>>, vector<16x4xf32>,
    %c0_18 = arith.constant 0 : index
    %c4 = arith.constant 4 : index
    %c0_19 = arith.constant 0 : index
    %c0_20 = arith.constant 0 : index
    %14 = vector.load %arg1[%c0_18, %c4, %c0_19, %c0_20] : memref<1x16x16x4xf32, #tpu.memory_space<vmem>>, vector<1x1x16x4xf32>
    %15 = vector.shape_cast %14 : vector<1x1x16x4xf32> to vector<16x4xf32>
    %c91 = arith.constant 91 : index
    %c0_21 = arith.constant 0 : index
    %16 = vector.load %arg22[%c91, %c0_21] : memref<326x4xf32, #tpu.memory_space<vmem>>, vector<16x4xf32>
    tpu.vector_store %arg22[%c91, %c0_21], %15 {strides = array<i32>} : memref<326x4xf32, #tpu.memory_space<vmem>>, vector<16x4xf32>,
    %c0_22 = arith.constant 0 : index
    %c5 = arith.constant 5 : index
    %c0_23 = arith.constant 0 : index
    %c0_24 = arith.constant 0 : index
    %17 = vector.load %arg1[%c0_22, %c5, %c0_23, %c0_24] : memref<1x16x16x4xf32, #tpu.memory_space<vmem>>, vector<1x1x16x4xf32>
    %18 = vector.shape_cast %17 : vector<1x1x16x4xf32> to vector<16x4xf32>
    %c109 = arith.constant 109 : index
    %c0_25 = arith.constant 0 : index
    %19 = vector.load %arg22[%c109, %c0_25] : memref<326x4xf32, #tpu.memory_space<vmem>>, vector<16x4xf32>
    tpu.vector_store %arg22[%c109, %c0_25], %18 {strides = array<i32>} : memref<326x4xf32, #tpu.memory_space<vmem>>, vector<16x4xf32>,
    %c0_26 = arith.constant 0 : index
    %c6 = arith.constant 6 : index
    %c0_27 = arith.constant 0 : index
    %c0_28 = arith.constant 0 : index
    %20 = vector.load %arg1[%c0_26, %c6, %c0_27, %c0_28] : memref<1x16x16x4xf32, #tpu.memory_space<vmem>>, vector<1x1x16x4xf32>
    %21 = vector.shape_cast %20 : vector<1x1x16x4xf32> to vector<16x4xf32>
    %c127 = arith.constant 127 : index
    %c0_29 = arith.constant 0 : index
    %22 = vector.load %arg22[%c127, %c0_29] : memref<326x4xf32, #tpu.memory_space<vmem>>, vector<16x4xf32>
    tpu.vector_store %arg22[%c127, %c0_29], %21 {strides = array<i32>} : memref<326x4xf32, #tpu.memory_space<vmem>>, vector<16x4xf32>,
    %c0_30 = arith.constant 0 : index
    %c7 = arith.constant 7 : index
    %c0_31 = arith.constant 0 : index
    %c0_32 = arith.constant 0 : index
    %23 = vector.load %arg1[%c0_30, %c7, %c0_31, %c0_32] : memref<1x16x16x4xf32, #tpu.memory_space<vmem>>, vector<1x1x16x4xf32>
    %24 = vector.shape_cast %23 : vector<1x1x16x4xf32> to vector<16x4xf32>
    %c145 = arith.constant 145 : index
    %c0_33 = arith.constant 0 : index
    %25 = vector.load %arg22[%c145, %c0_33] : memref<326x4xf32, #tpu.memory_space<vmem>>, vector<16x4xf32>
    tpu.vector_store %arg22[%c145, %c0_33], %24 {strides = array<i32>} : memref<326x4xf32, #tpu.memory_space<vmem>>, vector<16x4xf32>,
    %c0_34 = arith.constant 0 : index
    %c8 = arith.constant 8 : index
    %c0_35 = arith.constant 0 : index
    %c0_36 = arith.constant 0 : index
    %26 = vector.load %arg1[%c0_34, %c8, %c0_35, %c0_36] : memref<1x16x16x4xf32, #tpu.memory_space<vmem>>, vector<1x1x16x4xf32>
    %27 = vector.shape_cast %26 : vector<1x1x16x4xf32> to vector<16x4xf32>
    %c163 = arith.constant 163 : index
    %c0_37 = arith.constant 0 : index
    %28 = vector.load %arg22[%c163, %c0_37] : memref<326x4xf32, #tpu.memory_space<vmem>>, vector<16x4xf32>
    tpu.vector_store %arg22[%c163, %c0_37], %27 {strides = array<i32>} : memref<326x4xf32, #tpu.memory_space<vmem>>, vector<16x4xf32>,
    %c0_38 = arith.constant 0 : index
    %c9 = arith.constant 9 : index
    %c0_39 = arith.constant 0 : index
    %c0_40 = arith.constant 0 : index
    %29 = vector.load %arg1[%c0_38, %c9, %c0_39, %c0_40] : memref<1x16x16x4xf32, #tpu.memory_space<vmem>>, vector<1x1x16x4xf32>
    %30 = vector.shape_cast %29 : vector<1x1x16x4xf32> to vector<16x4xf32>
    %c181 = arith.constant 181 : index
    %c0_41 = arith.constant 0 : index
    %31 = vector.load %arg22[%c181, %c0_41] : memref<326x4xf32, #tpu.memory_space<vmem>>, vector<16x4xf32>
    tpu.vector_store %arg22[%c181, %c0_41], %30 {strides = array<i32>} : memref<326x4xf32, #tpu.memory_space<vmem>>, vector<16x4xf32>,
    %c0_42 = arith.constant 0 : index
    %c10 = arith.constant 10 : index
    %c0_43 = arith.constant 0 : index
    %c0_44 = arith.constant 0 : index
    %32 = vector.load %arg1[%c0_42, %c10, %c0_43, %c0_44] : memref<1x16x16x4xf32, #tpu.memory_space<vmem>>, vector<1x1x16x4xf32>
    %33 = vector.shape_cast %32 : vector<1x1x16x4xf32> to vector<16x4xf32>
    %c199 = arith.constant 199 : index
    %c0_45 = arith.constant 0 : index
    %34 = vector.load %arg22[%c199, %c0_45] : memref<326x4xf32, #tpu.memory_space<vmem>>, vector<16x4xf32>
    tpu.vector_store %arg22[%c199, %c0_45], %33 {strides = array<i32>} : memref<326x4xf32, #tpu.memory_space<vmem>>, vector<16x4xf32>,
    %c0_46 = arith.constant 0 : index
    %c11 = arith.constant 11 : index
    %c0_47 = arith.constant 0 : index
    %c0_48 = arith.constant 0 : index
    %35 = vector.load %arg1[%c0_46, %c11, %c0_47, %c0_48] : memref<1x16x16x4xf32, #tpu.memory_space<vmem>>, vector<1x1x16x4xf32>
    %36 = vector.shape_cast %35 : vector<1x1x16x4xf32> to vector<16x4xf32>
    %c217 = arith.constant 217 : index
    %c0_49 = arith.constant 0 : index
    %37 = vector.load %arg22[%c217, %c0_49] : memref<326x4xf32, #tpu.memory_space<vmem>>, vector<16x4xf32>
    tpu.vector_store %arg22[%c217, %c0_49], %36 {strides = array<i32>} : memref<326x4xf32, #tpu.memory_space<vmem>>, vector<16x4xf32>,
    %c0_50 = arith.constant 0 : index
    %c12 = arith.constant 12 : index
    %c0_51 = arith.constant 0 : index
    %c0_52 = arith.constant 0 : index
    %38 = vector.load %arg1[%c0_50, %c12, %c0_51, %c0_52] : memref<1x16x16x4xf32, #tpu.memory_space<vmem>>, vector<1x1x16x4xf32>
    %39 = vector.shape_cast %38 : vector<1x1x16x4xf32> to vector<16x4xf32>
    %c235 = arith.constant 235 : index
    %c0_53 = arith.constant 0 : index
    %40 = vector.load %arg22[%c235, %c0_53] : memref<326x4xf32, #tpu.memory_space<vmem>>, vector<16x4xf32>
    tpu.vector_store %arg22[%c235, %c0_53], %39 {strides = array<i32>} : memref<326x4xf32, #tpu.memory_space<vmem>>, vector<16x4xf32>,
    %c0_54 = arith.constant 0 : index
    %c13 = arith.constant 13 : index
    %c0_55 = arith.constant 0 : index
    %c0_56 = arith.constant 0 : index
    %41 = vector.load %arg1[%c0_54, %c13, %c0_55, %c0_56] : memref<1x16x16x4xf32, #tpu.memory_space<vmem>>, vector<1x1x16x4xf32>
    %42 = vector.shape_cast %41 : vector<1x1x16x4xf32> to vector<16x4xf32>
    %c253 = arith.constant 253 : index
    %c0_57 = arith.constant 0 : index
    %43 = vector.load %arg22[%c253, %c0_57] : memref<326x4xf32, #tpu.memory_space<vmem>>, vector<16x4xf32>
    tpu.vector_store %arg22[%c253, %c0_57], %42 {strides = array<i32>} : memref<326x4xf32, #tpu.memory_space<vmem>>, vector<16x4xf32>,
    %c0_58 = arith.constant 0 : index
    %c14 = arith.constant 14 : index
    %c0_59 = arith.constant 0 : index
    %c0_60 = arith.constant 0 : index
    %44 = vector.load %arg1[%c0_58, %c14, %c0_59, %c0_60] : memref<1x16x16x4xf32, #tpu.memory_space<vmem>>, vector<1x1x16x4xf32>
    %45 = vector.shape_cast %44 : vector<1x1x16x4xf32> to vector<16x4xf32>
    %c271 = arith.constant 271 : index
    %c0_61 = arith.constant 0 : index
    %46 = vector.load %arg22[%c271, %c0_61] : memref<326x4xf32, #tpu.memory_space<vmem>>, vector<16x4xf32>
    tpu.vector_store %arg22[%c271, %c0_61], %45 {strides = array<i32>} : memref<326x4xf32, #tpu.memory_space<vmem>>, vector<16x4xf32>,
    %c0_62 = arith.constant 0 : index
    %c15 = arith.constant 15 : index
    %c0_63 = arith.constant 0 : index
    %c0_64 = arith.constant 0 : index
    %47 = vector.load %arg1[%c0_62, %c15, %c0_63, %c0_64] : memref<1x16x16x4xf32, #tpu.memory_space<vmem>>, vector<1x1x16x4xf32>
    %48 = vector.shape_cast %47 : vector<1x1x16x4xf32> to vector<16x4xf32>
    %c289 = arith.constant 289 : index
    %c0_65 = arith.constant 0 : index
    %49 = vector.load %arg22[%c289, %c0_65] : memref<326x4xf32, #tpu.memory_space<vmem>>, vector<16x4xf32>
    tpu.vector_store %arg22[%c289, %c0_65], %48 {strides = array<i32>} : memref<326x4xf32, #tpu.memory_space<vmem>>, vector<16x4xf32>,
    %cst_66 = arith.constant 0.000000e+00 : f32
    %50 = vector.broadcast %cst_66 : f32 to vector<19x8xf32>
    %c0_67 = arith.constant 0 : index
    %c0_68 = arith.constant 0 : index
    %51 = vector.load %arg23[%c0_67, %c0_68] : memref<326x8xf32, #tpu.memory_space<vmem>>, vector<19x8xf32>
    tpu.vector_store %arg23[%c0_67, %c0_68], %50 {strides = array<i32>} : memref<326x8xf32, #tpu.memory_space<vmem>>, vector<19x8xf32>,
    %cst_69 = arith.constant 0.000000e+00 : f32
    %52 = vector.broadcast %cst_69 : f32 to vector<19x8xf32>
    %c307 = arith.constant 307 : index
    %c0_70 = arith.constant 0 : index
    %53 = vector.load %arg23[%c307, %c0_70] : memref<326x8xf32, #tpu.memory_space<vmem>>, vector<19x8xf32>
    tpu.vector_store %arg23[%c307, %c0_70], %52 {strides = array<i32>} : memref<326x8xf32, #tpu.memory_space<vmem>>, vector<19x8xf32>,
    %54 = tpu.iota {dimensions = array<i32: 0>} : vector<288x1xi32>
    %c18_i32 = arith.constant 18 : i32
    %c0_i32 = arith.constant 0 : i32
    %55 = arith.cmpi eq, %c18_i32, %c0_i32 : i32
    %c1_i32 = arith.constant 1 : i32
    %56 = arith.select %55, %c1_i32, %c18_i32 : i32
    %57 = vector.broadcast %56 : i32 to vector<288x1xi32>
    %58 = arith.remsi %54, %57 : vector<288x1xi32>
    %c0_i32_71 = arith.constant 0 : i32
    %59 = vector.broadcast %c0_i32_71 : i32 to vector<288x1xi32>
    %60 = arith.cmpi ne, %58, %59 : vector<288x1xi32>
    %c0_i32_72 = arith.constant 0 : i32
    %61 = vector.broadcast %c0_i32_72 : i32 to vector<288x1xi32>
    %62 = arith.cmpi slt, %58, %61 : vector<288x1xi32>
    %c0_i32_73 = arith.constant 0 : i32
    %63 = arith.cmpi slt, %56, %c0_i32_73 : i32
    %64 = vector.broadcast %63 : i1 to vector<288x1xi1>
    %65 = vector.broadcast %64 : vector<288x1xi1> to vector<288x1xi1>
    %66 = arith.xori %62, %65 : vector<288x1xi1>
    %67 = arith.andi %66, %60 : vector<288x1xi1>
    %68 = vector.broadcast %56 : i32 to vector<288x1xi32>
    %69 = arith.addi %58, %68 : vector<288x1xi32>
    %70 = arith.select %67, %69, %58 : vector<288x1xi1>, vector<288x1xi32>
    %c16_i32 = arith.constant 16 : i32
    %71 = vector.broadcast %c16_i32 : i32 to vector<288x1xi32>
    %72 = arith.cmpi slt, %70, %71 : vector<288x1xi32>
    %c0_74 = arith.constant 0 : index
    %c0_75 = arith.constant 0 : index
    %73 = vector.load %arg22[%c0_74, %c0_75] : memref<326x4xf32, #tpu.memory_space<vmem>>, vector<288x4xf32>
    %c0_76 = arith.constant 0 : index
    %c0_77 = arith.constant 0 : index
    %c0_78 = arith.constant 0 : index
    %c0_79 = arith.constant 0 : index
    %74 = vector.load %arg2[%c0_76, %c0_77, %c0_78, %c0_79] : memref<3x3x4x8xf32, #tpu.memory_space<vmem>>, vector<1x1x4x8xf32>
    %75 = vector.shape_cast %74 : vector<1x1x4x8xf32> to vector<4x8xf32>
    %cst_80 = arith.constant dense<0.000000e+00> : vector<288x8xf32>
    %76 = tpu.matmul %73, %75, %cst_80 {dimension_numbers = #tpu.dot_dimension_numbers<[1], [0], [0], [1], [0, 0, 1, 1], [], []>} : vector<288x4xf32>, vector<4x8xf32>, vector<288x8xf32> -> vector<288x8xf32>
    %c1_81 = arith.constant 1 : index
    %c0_82 = arith.constant 0 : index
    %77 = vector.load %arg22[%c1_81, %c0_82] : memref<326x4xf32, #tpu.memory_space<vmem>>, vector<288x4xf32>
    %c0_83 = arith.constant 0 : index
    %c1_84 = arith.constant 1 : index
    %c0_85 = arith.constant 0 : index
    %c0_86 = arith.constant 0 : index
    %78 = vector.load %arg2[%c0_83, %c1_84, %c0_85, %c0_86] : memref<3x3x4x8xf32, #tpu.memory_space<vmem>>, vector<1x1x4x8xf32>
    %79 = vector.shape_cast %78 : vector<1x1x4x8xf32> to vector<4x8xf32>
    %cst_87 = arith.constant dense<0.000000e+00> : vector<288x8xf32>
    %80 = tpu.matmul %77, %79, %cst_87 {dimension_numbers = #tpu.dot_dimension_numbers<[1], [0], [0], [1], [0, 0, 1, 1], [], []>} : vector<288x4xf32>, vector<4x8xf32>, vector<288x8xf32> -> vector<288x8xf32>
    %81 = arith.addf %76, %80 : vector<288x8xf32>
    %c2_88 = arith.constant 2 : index
    %c0_89 = arith.constant 0 : index
    %82 = vector.load %arg22[%c2_88, %c0_89] : memref<326x4xf32, #tpu.memory_space<vmem>>, vector<288x4xf32>
    %c0_90 = arith.constant 0 : index
    %c2_91 = arith.constant 2 : index
    %c0_92 = arith.constant 0 : index
    %c0_93 = arith.constant 0 : index
    %83 = vector.load %arg2[%c0_90, %c2_91, %c0_92, %c0_93] : memref<3x3x4x8xf32, #tpu.memory_space<vmem>>, vector<1x1x4x8xf32>
    %84 = vector.shape_cast %83 : vector<1x1x4x8xf32> to vector<4x8xf32>
    %cst_94 = arith.constant dense<0.000000e+00> : vector<288x8xf32>
    %85 = tpu.matmul %82, %84, %cst_94 {dimension_numbers = #tpu.dot_dimension_numbers<[1], [0], [0], [1], [0, 0, 1, 1], [], []>} : vector<288x4xf32>, vector<4x8xf32>, vector<288x8xf32> -> vector<288x8xf32>
    %86 = arith.addf %81, %85 : vector<288x8xf32>
    %c18 = arith.constant 18 : index
    %c0_95 = arith.constant 0 : index
    %87 = vector.load %arg22[%c18, %c0_95] : memref<326x4xf32, #tpu.memory_space<vmem>>, vector<288x4xf32>
    %c1_96 = arith.constant 1 : index
    %c0_97 = arith.constant 0 : index
    %c0_98 = arith.constant 0 : index
    %c0_99 = arith.constant 0 : index
    %88 = vector.load %arg2[%c1_96, %c0_97, %c0_98, %c0_99] : memref<3x3x4x8xf32, #tpu.memory_space<vmem>>, vector<1x1x4x8xf32>
    %89 = vector.shape_cast %88 : vector<1x1x4x8xf32> to vector<4x8xf32>
    %cst_100 = arith.constant dense<0.000000e+00> : vector<288x8xf32>
    %90 = tpu.matmul %87, %89, %cst_100 {dimension_numbers = #tpu.dot_dimension_numbers<[1], [0], [0], [1], [0, 0, 1, 1], [], []>} : vector<288x4xf32>, vector<4x8xf32>, vector<288x8xf32> -> vector<288x8xf32>
    %91 = arith.addf %86, %90 : vector<288x8xf32>
    %c19_101 = arith.constant 19 : index
    %c0_102 = arith.constant 0 : index
    %92 = vector.load %arg22[%c19_101, %c0_102] : memref<326x4xf32, #tpu.memory_space<vmem>>, vector<288x4xf32>
    %c1_103 = arith.constant 1 : index
    %c1_104 = arith.constant 1 : index
    %c0_105 = arith.constant 0 : index
    %c0_106 = arith.constant 0 : index
    %93 = vector.load %arg2[%c1_103, %c1_104, %c0_105, %c0_106] : memref<3x3x4x8xf32, #tpu.memory_space<vmem>>, vector<1x1x4x8xf32>
    %94 = vector.shape_cast %93 : vector<1x1x4x8xf32> to vector<4x8xf32>
    %cst_107 = arith.constant dense<0.000000e+00> : vector<288x8xf32>
    %95 = tpu.matmul %92, %94, %cst_107 {dimension_numbers = #tpu.dot_dimension_numbers<[1], [0], [0], [1], [0, 0, 1, 1], [], []>} : vector<288x4xf32>, vector<4x8xf32>, vector<288x8xf32> -> vector<288x8xf32>
    %96 = arith.addf %91, %95 : vector<288x8xf32>
    %c20 = arith.constant 20 : index
    %c0_108 = arith.constant 0 : index
    %97 = vector.load %arg22[%c20, %c0_108] : memref<326x4xf32, #tpu.memory_space<vmem>>, vector<288x4xf32>
    %c1_109 = arith.constant 1 : index
    %c2_110 = arith.constant 2 : index
    %c0_111 = arith.constant 0 : index
    %c0_112 = arith.constant 0 : index
    %98 = vector.load %arg2[%c1_109, %c2_110, %c0_111, %c0_112] : memref<3x3x4x8xf32, #tpu.memory_space<vmem>>, vector<1x1x4x8xf32>
    %99 = vector.shape_cast %98 : vector<1x1x4x8xf32> to vector<4x8xf32>
    %cst_113 = arith.constant dense<0.000000e+00> : vector<288x8xf32>
    %100 = tpu.matmul %97, %99, %cst_113 {dimension_numbers = #tpu.dot_dimension_numbers<[1], [0], [0], [1], [0, 0, 1, 1], [], []>} : vector<288x4xf32>, vector<4x8xf32>, vector<288x8xf32> -> vector<288x8xf32>
    %101 = arith.addf %96, %100 : vector<288x8xf32>
    %c36 = arith.constant 36 : index
    %c0_114 = arith.constant 0 : index
    %102 = vector.load %arg22[%c36, %c0_114] : memref<326x4xf32, #tpu.memory_space<vmem>>, vector<288x4xf32>
    %c2_115 = arith.constant 2 : index
    %c0_116 = arith.constant 0 : index
    %c0_117 = arith.constant 0 : index
    %c0_118 = arith.constant 0 : index
    %103 = vector.load %arg2[%c2_115, %c0_116, %c0_117, %c0_118] : memref<3x3x4x8xf32, #tpu.memory_space<vmem>>, vector<1x1x4x8xf32>
    %104 = vector.shape_cast %103 : vector<1x1x4x8xf32> to vector<4x8xf32>
    %cst_119 = arith.constant dense<0.000000e+00> : vector<288x8xf32>
    %105 = tpu.matmul %102, %104, %cst_119 {dimension_numbers = #tpu.dot_dimension_numbers<[1], [0], [0], [1], [0, 0, 1, 1], [], []>} : vector<288x4xf32>, vector<4x8xf32>, vector<288x8xf32> -> vector<288x8xf32>
    %106 = arith.addf %101, %105 : vector<288x8xf32>
    %c37_120 = arith.constant 37 : index
    %c0_121 = arith.constant 0 : index
    %107 = vector.load %arg22[%c37_120, %c0_121] : memref<326x4xf32, #tpu.memory_space<vmem>>, vector<288x4xf32>
    %c2_122 = arith.constant 2 : index
    %c1_123 = arith.constant 1 : index
    %c0_124 = arith.constant 0 : index
    %c0_125 = arith.constant 0 : index
    %108 = vector.load %arg2[%c2_122, %c1_123, %c0_124, %c0_125] : memref<3x3x4x8xf32, #tpu.memory_space<vmem>>, vector<1x1x4x8xf32>
    %109 = vector.shape_cast %108 : vector<1x1x4x8xf32> to vector<4x8xf32>
    %cst_126 = arith.constant dense<0.000000e+00> : vector<288x8xf32>
    %110 = tpu.matmul %107, %109, %cst_126 {dimension_numbers = #tpu.dot_dimension_numbers<[1], [0], [0], [1], [0, 0, 1, 1], [], []>} : vector<288x4xf32>, vector<4x8xf32>, vector<288x8xf32> -> vector<288x8xf32>
    %111 = arith.addf %106, %110 : vector<288x8xf32>
    %c38 = arith.constant 38 : index
    %c0_127 = arith.constant 0 : index
    %112 = vector.load %arg22[%c38, %c0_127] : memref<326x4xf32, #tpu.memory_space<vmem>>, vector<288x4xf32>
    %c2_128 = arith.constant 2 : index
    %c2_129 = arith.constant 2 : index
    %c0_130 = arith.constant 0 : index
    %c0_131 = arith.constant 0 : index
    %113 = vector.load %arg2[%c2_128, %c2_129, %c0_130, %c0_131] : memref<3x3x4x8xf32, #tpu.memory_space<vmem>>, vector<1x1x4x8xf32>
    %114 = vector.shape_cast %113 : vector<1x1x4x8xf32> to vector<4x8xf32>
    %cst_132 = arith.constant dense<0.000000e+00> : vector<288x8xf32>
    %115 = tpu.matmul %112, %114, %cst_132 {dimension_numbers = #tpu.dot_dimension_numbers<[1], [0], [0], [1], [0, 0, 1, 1], [], []>} : vector<288x4xf32>, vector<4x8xf32>, vector<288x8xf32> -> vector<288x8xf32>
    %116 = arith.addf %111, %115 : vector<288x8xf32>
    %c0_133 = arith.constant 0 : index
    %c0_134 = arith.constant 0 : index
    %117 = vector.load %arg3[%c0_133, %c0_134] : memref<1x8xf32, #tpu.memory_space<vmem>>, vector<1x8xf32>
    %118 = vector.broadcast %117 : vector<1x8xf32> to vector<288x8xf32>
    %119 = arith.addf %116, %118 : vector<288x8xf32>
    %cst_135 = arith.constant 0.000000e+00 : f32
    %120 = vector.broadcast %cst_135 : f32 to vector<288x8xf32>
    %121 = arith.maximumf %119, %120 : vector<288x8xf32>
    %cst_136 = arith.constant 0.000000e+00 : f32
    %122 = vector.shape_cast %72 : vector<288x1xi1> to vector<288x1xi1>
    %123 = vector.broadcast %122 : vector<288x1xi1> to vector<288x8xi1>
    %124 = vector.broadcast %cst_136 : f32 to vector<288x8xf32>
    %125 = arith.select %123, %121, %124 : vector<288x8xi1>, vector<288x8xf32>
    %c19_137 = arith.constant 19 : index
    %c0_138 = arith.constant 0 : index
    %126 = vector.load %arg23[%c19_137, %c0_138] : memref<326x8xf32, #tpu.memory_space<vmem>>, vector<288x8xf32>
    tpu.vector_store %arg23[%c19_137, %c0_138], %125 {strides = array<i32>} : memref<326x8xf32, #tpu.memory_space<vmem>>, vector<288x8xf32>,
    %c0_139 = arith.constant 0 : index
    %c0_140 = arith.constant 0 : index
    %127 = vector.load %arg23[%c0_139, %c0_140] : memref<326x8xf32, #tpu.memory_space<vmem>>, vector<288x8xf32>
    %c0_141 = arith.constant 0 : index
    %c0_142 = arith.constant 0 : index
    %c0_143 = arith.constant 0 : index
    %c0_144 = arith.constant 0 : index
    %128 = vector.load %arg4[%c0_141, %c0_142, %c0_143, %c0_144] : memref<3x3x8x8xf32, #tpu.memory_space<vmem>>, vector<1x1x8x8xf32>
    %129 = vector.shape_cast %128 : vector<1x1x8x8xf32> to vector<8x8xf32>
    %cst_145 = arith.constant dense<0.000000e+00> : vector<288x8xf32>
    %130 = tpu.matmul %127, %129, %cst_145 {dimension_numbers = #tpu.dot_dimension_numbers<[1], [0], [0], [1], [0, 0, 1, 1], [], []>} : vector<288x8xf32>, vector<8x8xf32>, vector<288x8xf32> -> vector<288x8xf32>
    %c1_146 = arith.constant 1 : index
    %c0_147 = arith.constant 0 : index
    %131 = vector.load %arg23[%c1_146, %c0_147] : memref<326x8xf32, #tpu.memory_space<vmem>>, vector<288x8xf32>
    %c0_148 = arith.constant 0 : index
    %c1_149 = arith.constant 1 : index
    %c0_150 = arith.constant 0 : index
    %c0_151 = arith.constant 0 : index
    %132 = vector.load %arg4[%c0_148, %c1_149, %c0_150, %c0_151] : memref<3x3x8x8xf32, #tpu.memory_space<vmem>>, vector<1x1x8x8xf32>
    %133 = vector.shape_cast %132 : vector<1x1x8x8xf32> to vector<8x8xf32>
    %cst_152 = arith.constant dense<0.000000e+00> : vector<288x8xf32>
    %134 = tpu.matmul %131, %133, %cst_152 {dimension_numbers = #tpu.dot_dimension_numbers<[1], [0], [0], [1], [0, 0, 1, 1], [], []>} : vector<288x8xf32>, vector<8x8xf32>, vector<288x8xf32> -> vector<288x8xf32>
    %135 = arith.addf %130, %134 : vector<288x8xf32>
    %c2_153 = arith.constant 2 : index
    %c0_154 = arith.constant 0 : index
    %136 = vector.load %arg23[%c2_153, %c0_154] : memref<326x8xf32, #tpu.memory_space<vmem>>, vector<288x8xf32>
    %c0_155 = arith.constant 0 : index
    %c2_156 = arith.constant 2 : index
    %c0_157 = arith.constant 0 : index
    %c0_158 = arith.constant 0 : index
    %137 = vector.load %arg4[%c0_155, %c2_156, %c0_157, %c0_158] : memref<3x3x8x8xf32, #tpu.memory_space<vmem>>, vector<1x1x8x8xf32>
    %138 = vector.shape_cast %137 : vector<1x1x8x8xf32> to vector<8x8xf32>
    %cst_159 = arith.constant dense<0.000000e+00> : vector<288x8xf32>
    %139 = tpu.matmul %136, %138, %cst_159 {dimension_numbers = #tpu.dot_dimension_numbers<[1], [0], [0], [1], [0, 0, 1, 1], [], []>} : vector<288x8xf32>, vector<8x8xf32>, vector<288x8xf32> -> vector<288x8xf32>
    %140 = arith.addf %135, %139 : vector<288x8xf32>
    %c18_160 = arith.constant 18 : index
    %c0_161 = arith.constant 0 : index
    %141 = vector.load %arg23[%c18_160, %c0_161] : memref<326x8xf32, #tpu.memory_space<vmem>>, vector<288x8xf32>
    %c1_162 = arith.constant 1 : index
    %c0_163 = arith.constant 0 : index
    %c0_164 = arith.constant 0 : index
    %c0_165 = arith.constant 0 : index
    %142 = vector.load %arg4[%c1_162, %c0_163, %c0_164, %c0_165] : memref<3x3x8x8xf32, #tpu.memory_space<vmem>>, vector<1x1x8x8xf32>
    %143 = vector.shape_cast %142 : vector<1x1x8x8xf32> to vector<8x8xf32>
    %cst_166 = arith.constant dense<0.000000e+00> : vector<288x8xf32>
    %144 = tpu.matmul %141, %143, %cst_166 {dimension_numbers = #tpu.dot_dimension_numbers<[1], [0], [0], [1], [0, 0, 1, 1], [], []>} : vector<288x8xf32>, vector<8x8xf32>, vector<288x8xf32> -> vector<288x8xf32>
    %145 = arith.addf %140, %144 : vector<288x8xf32>
    %c19_167 = arith.constant 19 : index
    %c0_168 = arith.constant 0 : index
    %146 = vector.load %arg23[%c19_167, %c0_168] : memref<326x8xf32, #tpu.memory_space<vmem>>, vector<288x8xf32>
    %c1_169 = arith.constant 1 : index
    %c1_170 = arith.constant 1 : index
    %c0_171 = arith.constant 0 : index
    %c0_172 = arith.constant 0 : index
    %147 = vector.load %arg4[%c1_169, %c1_170, %c0_171, %c0_172] : memref<3x3x8x8xf32, #tpu.memory_space<vmem>>, vector<1x1x8x8xf32>
    %148 = vector.shape_cast %147 : vector<1x1x8x8xf32> to vector<8x8xf32>
    %cst_173 = arith.constant dense<0.000000e+00> : vector<288x8xf32>
    %149 = tpu.matmul %146, %148, %cst_173 {dimension_numbers = #tpu.dot_dimension_numbers<[1], [0], [0], [1], [0, 0, 1, 1], [], []>} : vector<288x8xf32>, vector<8x8xf32>, vector<288x8xf32> -> vector<288x8xf32>
    %150 = arith.addf %145, %149 : vector<288x8xf32>
    %c20_174 = arith.constant 20 : index
    %c0_175 = arith.constant 0 : index
    %151 = vector.load %arg23[%c20_174, %c0_175] : memref<326x8xf32, #tpu.memory_space<vmem>>, vector<288x8xf32>
    %c1_176 = arith.constant 1 : index
    %c2_177 = arith.constant 2 : index
    %c0_178 = arith.constant 0 : index
    %c0_179 = arith.constant 0 : index
    %152 = vector.load %arg4[%c1_176, %c2_177, %c0_178, %c0_179] : memref<3x3x8x8xf32, #tpu.memory_space<vmem>>, vector<1x1x8x8xf32>
    %153 = vector.shape_cast %152 : vector<1x1x8x8xf32> to vector<8x8xf32>
    %cst_180 = arith.constant dense<0.000000e+00> : vector<288x8xf32>
    %154 = tpu.matmul %151, %153, %cst_180 {dimension_numbers = #tpu.dot_dimension_numbers<[1], [0], [0], [1], [0, 0, 1, 1], [], []>} : vector<288x8xf32>, vector<8x8xf32>, vector<288x8xf32> -> vector<288x8xf32>
    %155 = arith.addf %150, %154 : vector<288x8xf32>
    %c36_181 = arith.constant 36 : index
    %c0_182 = arith.constant 0 : index
    %156 = vector.load %arg23[%c36_181, %c0_182] : memref<326x8xf32, #tpu.memory_space<vmem>>, vector<288x8xf32>
    %c2_183 = arith.constant 2 : index
    %c0_184 = arith.constant 0 : index
    %c0_185 = arith.constant 0 : index
    %c0_186 = arith.constant 0 : index
    %157 = vector.load %arg4[%c2_183, %c0_184, %c0_185, %c0_186] : memref<3x3x8x8xf32, #tpu.memory_space<vmem>>, vector<1x1x8x8xf32>
    %158 = vector.shape_cast %157 : vector<1x1x8x8xf32> to vector<8x8xf32>
    %cst_187 = arith.constant dense<0.000000e+00> : vector<288x8xf32>
    %159 = tpu.matmul %156, %158, %cst_187 {dimension_numbers = #tpu.dot_dimension_numbers<[1], [0], [0], [1], [0, 0, 1, 1], [], []>} : vector<288x8xf32>, vector<8x8xf32>, vector<288x8xf32> -> vector<288x8xf32>
    %160 = arith.addf %155, %159 : vector<288x8xf32>
    %c37_188 = arith.constant 37 : index
    %c0_189 = arith.constant 0 : index
    %161 = vector.load %arg23[%c37_188, %c0_189] : memref<326x8xf32, #tpu.memory_space<vmem>>, vector<288x8xf32>
    %c2_190 = arith.constant 2 : index
    %c1_191 = arith.constant 1 : index
    %c0_192 = arith.constant 0 : index
    %c0_193 = arith.constant 0 : index
    %162 = vector.load %arg4[%c2_190, %c1_191, %c0_192, %c0_193] : memref<3x3x8x8xf32, #tpu.memory_space<vmem>>, vector<1x1x8x8xf32>
    %163 = vector.shape_cast %162 : vector<1x1x8x8xf32> to vector<8x8xf32>
    %cst_194 = arith.constant dense<0.000000e+00> : vector<288x8xf32>
    %164 = tpu.matmul %161, %163, %cst_194 {dimension_numbers = #tpu.dot_dimension_numbers<[1], [0], [0], [1], [0, 0, 1, 1], [], []>} : vector<288x8xf32>, vector<8x8xf32>, vector<288x8xf32> -> vector<288x8xf32>
    %165 = arith.addf %160, %164 : vector<288x8xf32>
    %c38_195 = arith.constant 38 : index
    %c0_196 = arith.constant 0 : index
    %166 = vector.load %arg23[%c38_195, %c0_196] : memref<326x8xf32, #tpu.memory_space<vmem>>, vector<288x8xf32>
    %c2_197 = arith.constant 2 : index
    %c2_198 = arith.constant 2 : index
    %c0_199 = arith.constant 0 : index
    %c0_200 = arith.constant 0 : index
    %167 = vector.load %arg4[%c2_197, %c2_198, %c0_199, %c0_200] : memref<3x3x8x8xf32, #tpu.memory_space<vmem>>, vector<1x1x8x8xf32>
    %168 = vector.shape_cast %167 : vector<1x1x8x8xf32> to vector<8x8xf32>
    %cst_201 = arith.constant dense<0.000000e+00> : vector<288x8xf32>
    %169 = tpu.matmul %166, %168, %cst_201 {dimension_numbers = #tpu.dot_dimension_numbers<[1], [0], [0], [1], [0, 0, 1, 1], [], []>} : vector<288x8xf32>, vector<8x8xf32>, vector<288x8xf32> -> vector<288x8xf32>
    %170 = arith.addf %165, %169 : vector<288x8xf32>
    %c0_202 = arith.constant 0 : index
    %c0_203 = arith.constant 0 : index
    %171 = vector.load %arg5[%c0_202, %c0_203] : memref<1x8xf32, #tpu.memory_space<vmem>>, vector<1x8xf32>
    %172 = vector.broadcast %171 : vector<1x8xf32> to vector<288x8xf32>
    %173 = arith.addf %170, %172 : vector<288x8xf32>
    %cst_204 = arith.constant 0.000000e+00 : f32
    %174 = vector.broadcast %cst_204 : f32 to vector<288x8xf32>
    %175 = arith.maximumf %173, %174 : vector<288x8xf32>
    %c0_205 = arith.constant 0 : index
    %c0_206 = arith.constant 0 : index
    %c0_207 = arith.constant 0 : index
    %176 = vector.load %arg18[%c0_205, %c0_206, %c0_207] : memref<1x288x8xf32, #tpu.memory_space<vmem>>, vector<1x288x8xf32>
    %177 = vector.shape_cast %176 : vector<1x288x8xf32> to vector<288x8xf32>
    %178 = vector.shape_cast %175 : vector<288x8xf32> to vector<1x288x8xf32>
    tpu.vector_store %arg18[%c0_205, %c0_206, %c0_207], %178 {strides = array<i32>} : memref<1x288x8xf32, #tpu.memory_space<vmem>>, vector<1x288x8xf32>,
    %cst_208 = arith.constant 0.000000e+00 : f32
    %179 = vector.broadcast %cst_208 : f32 to vector<102x8xf32>
    %c0_209 = arith.constant 0 : index
    %c0_210 = arith.constant 0 : index
    %180 = vector.load %arg24[%c0_209, %c0_210] : memref<102x8xf32, #tpu.memory_space<vmem>>, vector<102x8xf32>
    tpu.vector_store %arg24[%c0_209, %c0_210], %179 {strides = array<i32>} : memref<102x8xf32, #tpu.memory_space<vmem>>, vector<102x8xf32>,
    %c0_i32_211 = arith.constant 0 : i32
    %c0_i32_212 = arith.constant 0 : i32
    %c0_i32_213 = arith.constant 0 : i32
    %181 = tpu.memref_slice %arg18[%c0_i32_211, %c0_i32_212, %c0_i32_213] : memref<1x288x8xf32, #tpu.memory_space<vmem>> -> memref<1x288x8xf32, #tpu.memory_space<vmem>>
    %182 = tpu.memref_squeeze %181 : memref<1x288x8xf32, #tpu.memory_space<vmem>> -> memref<288x8xf32, #tpu.memory_space<vmem>>
    %c0_214 = arith.constant 0 : index
    %c0_215 = arith.constant 0 : index
    %183 = tpu.strided_load %182[%c0_214, %c0_215] {strides = array<i32: 2, 1>} : memref<288x8xf32, #tpu.memory_space<vmem>>, vector<8x8xf32>
    %c0_i32_216 = arith.constant 0 : i32
    %c0_i32_217 = arith.constant 0 : i32
    %c0_i32_218 = arith.constant 0 : i32
    %184 = tpu.memref_slice %arg18[%c0_i32_216, %c0_i32_217, %c0_i32_218] : memref<1x288x8xf32, #tpu.memory_space<vmem>> -> memref<1x288x8xf32, #tpu.memory_space<vmem>>
    %185 = tpu.memref_squeeze %184 : memref<1x288x8xf32, #tpu.memory_space<vmem>> -> memref<288x8xf32, #tpu.memory_space<vmem>>
    %c1_219 = arith.constant 1 : index
    %c0_220 = arith.constant 0 : index
    %186 = tpu.strided_load %185[%c1_219, %c0_220] {strides = array<i32: 2, 1>} : memref<288x8xf32, #tpu.memory_space<vmem>>, vector<8x8xf32>
    %c0_i32_221 = arith.constant 0 : i32
    %c0_i32_222 = arith.constant 0 : i32
    %c0_i32_223 = arith.constant 0 : i32
    %187 = tpu.memref_slice %arg18[%c0_i32_221, %c0_i32_222, %c0_i32_223] : memref<1x288x8xf32, #tpu.memory_space<vmem>> -> memref<1x288x8xf32, #tpu.memory_space<vmem>>
    %188 = tpu.memref_squeeze %187 : memref<1x288x8xf32, #tpu.memory_space<vmem>> -> memref<288x8xf32, #tpu.memory_space<vmem>>
    %c18_224 = arith.constant 18 : index
    %c0_225 = arith.constant 0 : index
    %189 = tpu.strided_load %188[%c18_224, %c0_225] {strides = array<i32: 2, 1>} : memref<288x8xf32, #tpu.memory_space<vmem>>, vector<8x8xf32>
    %c0_i32_226 = arith.constant 0 : i32
    %c0_i32_227 = arith.constant 0 : i32
    %c0_i32_228 = arith.constant 0 : i32
    %190 = tpu.memref_slice %arg18[%c0_i32_226, %c0_i32_227, %c0_i32_228] : memref<1x288x8xf32, #tpu.memory_space<vmem>> -> memref<1x288x8xf32, #tpu.memory_space<vmem>>
    %191 = tpu.memref_squeeze %190 : memref<1x288x8xf32, #tpu.memory_space<vmem>> -> memref<288x8xf32, #tpu.memory_space<vmem>>
    %c19_229 = arith.constant 19 : index
    %c0_230 = arith.constant 0 : index
    %192 = tpu.strided_load %191[%c19_229, %c0_230] {strides = array<i32: 2, 1>} : memref<288x8xf32, #tpu.memory_space<vmem>>, vector<8x8xf32>
    %193 = arith.maximumf %183, %186 : vector<8x8xf32>
    %194 = arith.maximumf %189, %192 : vector<8x8xf32>
    %195 = arith.maximumf %193, %194 : vector<8x8xf32>
    %c11_231 = arith.constant 11 : index
    %c0_232 = arith.constant 0 : index
    %196 = vector.load %arg24[%c11_231, %c0_232] : memref<102x8xf32, #tpu.memory_space<vmem>>, vector<8x8xf32>
    tpu.vector_store %arg24[%c11_231, %c0_232], %195 {strides = array<i32>} : memref<102x8xf32, #tpu.memory_space<vmem>>, vector<8x8xf32>,
    %c0_i32_233 = arith.constant 0 : i32
    %c0_i32_234 = arith.constant 0 : i32
    %c0_i32_235 = arith.constant 0 : i32
    %197 = tpu.memref_slice %arg18[%c0_i32_233, %c0_i32_234, %c0_i32_235] : memref<1x288x8xf32, #tpu.memory_space<vmem>> -> memref<1x288x8xf32, #tpu.memory_space<vmem>>
    %198 = tpu.memref_squeeze %197 : memref<1x288x8xf32, #tpu.memory_space<vmem>> -> memref<288x8xf32, #tpu.memory_space<vmem>>
    %c36_236 = arith.constant 36 : index
    %c0_237 = arith.constant 0 : index
    %199 = tpu.strided_load %198[%c36_236, %c0_237] {strides = array<i32: 2, 1>} : memref<288x8xf32, #tpu.memory_space<vmem>>, vector<8x8xf32>
    %c0_i32_238 = arith.constant 0 : i32
    %c0_i32_239 = arith.constant 0 : i32
    %c0_i32_240 = arith.constant 0 : i32
    %200 = tpu.memref_slice %arg18[%c0_i32_238, %c0_i32_239, %c0_i32_240] : memref<1x288x8xf32, #tpu.memory_space<vmem>> -> memref<1x288x8xf32, #tpu.memory_space<vmem>>
    %201 = tpu.memref_squeeze %200 : memref<1x288x8xf32, #tpu.memory_space<vmem>> -> memref<288x8xf32, #tpu.memory_space<vmem>>
    %c37_241 = arith.constant 37 : index
    %c0_242 = arith.constant 0 : index
    %202 = tpu.strided_load %201[%c37_241, %c0_242] {strides = array<i32: 2, 1>} : memref<288x8xf32, #tpu.memory_space<vmem>>, vector<8x8xf32>
    %c0_i32_243 = arith.constant 0 : i32
    %c0_i32_244 = arith.constant 0 : i32
    %c0_i32_245 = arith.constant 0 : i32
    %203 = tpu.memref_slice %arg18[%c0_i32_243, %c0_i32_244, %c0_i32_245] : memref<1x288x8xf32, #tpu.memory_space<vmem>> -> memref<1x288x8xf32, #tpu.memory_space<vmem>>
    %204 = tpu.memref_squeeze %203 : memref<1x288x8xf32, #tpu.memory_space<vmem>> -> memref<288x8xf32, #tpu.memory_space<vmem>>
    %c54 = arith.constant 54 : index
    %c0_246 = arith.constant 0 : index
    %205 = tpu.strided_load %204[%c54, %c0_246] {strides = array<i32: 2, 1>} : memref<288x8xf32, #tpu.memory_space<vmem>>, vector<8x8xf32>
    %c0_i32_247 = arith.constant 0 : i32
    %c0_i32_248 = arith.constant 0 : i32
    %c0_i32_249 = arith.constant 0 : i32
    %206 = tpu.memref_slice %arg18[%c0_i32_247, %c0_i32_248, %c0_i32_249] : memref<1x288x8xf32, #tpu.memory_space<vmem>> -> memref<1x288x8xf32, #tpu.memory_space<vmem>>
    %207 = tpu.memref_squeeze %206 : memref<1x288x8xf32, #tpu.memory_space<vmem>> -> memref<288x8xf32, #tpu.memory_space<vmem>>
    %c55_250 = arith.constant 55 : index
    %c0_251 = arith.constant 0 : index
    %208 = tpu.strided_load %207[%c55_250, %c0_251] {strides = array<i32: 2, 1>} : memref<288x8xf32, #tpu.memory_space<vmem>>, vector<8x8xf32>
    %209 = arith.maximumf %199, %202 : vector<8x8xf32>
    %210 = arith.maximumf %205, %208 : vector<8x8xf32>
    %211 = arith.maximumf %209, %210 : vector<8x8xf32>
    %c21 = arith.constant 21 : index
    %c0_252 = arith.constant 0 : index
    %212 = vector.load %arg24[%c21, %c0_252] : memref<102x8xf32, #tpu.memory_space<vmem>>, vector<8x8xf32>
    tpu.vector_store %arg24[%c21, %c0_252], %211 {strides = array<i32>} : memref<102x8xf32, #tpu.memory_space<vmem>>, vector<8x8xf32>,
    %c0_i32_253 = arith.constant 0 : i32
    %c0_i32_254 = arith.constant 0 : i32
    %c0_i32_255 = arith.constant 0 : i32
    %213 = tpu.memref_slice %arg18[%c0_i32_253, %c0_i32_254, %c0_i32_255] : memref<1x288x8xf32, #tpu.memory_space<vmem>> -> memref<1x288x8xf32, #tpu.memory_space<vmem>>
    %214 = tpu.memref_squeeze %213 : memref<1x288x8xf32, #tpu.memory_space<vmem>> -> memref<288x8xf32, #tpu.memory_space<vmem>>
    %c72 = arith.constant 72 : index
    %c0_256 = arith.constant 0 : index
    %215 = tpu.strided_load %214[%c72, %c0_256] {strides = array<i32: 2, 1>} : memref<288x8xf32, #tpu.memory_space<vmem>>, vector<8x8xf32>
    %c0_i32_257 = arith.constant 0 : i32
    %c0_i32_258 = arith.constant 0 : i32
    %c0_i32_259 = arith.constant 0 : i32
    %216 = tpu.memref_slice %arg18[%c0_i32_257, %c0_i32_258, %c0_i32_259] : memref<1x288x8xf32, #tpu.memory_space<vmem>> -> memref<1x288x8xf32, #tpu.memory_space<vmem>>
    %217 = tpu.memref_squeeze %216 : memref<1x288x8xf32, #tpu.memory_space<vmem>> -> memref<288x8xf32, #tpu.memory_space<vmem>>
    %c73_260 = arith.constant 73 : index
    %c0_261 = arith.constant 0 : index
    %218 = tpu.strided_load %217[%c73_260, %c0_261] {strides = array<i32: 2, 1>} : memref<288x8xf32, #tpu.memory_space<vmem>>, vector<8x8xf32>
    %c0_i32_262 = arith.constant 0 : i32
    %c0_i32_263 = arith.constant 0 : i32
    %c0_i32_264 = arith.constant 0 : i32
    %219 = tpu.memref_slice %arg18[%c0_i32_262, %c0_i32_263, %c0_i32_264] : memref<1x288x8xf32, #tpu.memory_space<vmem>> -> memref<1x288x8xf32, #tpu.memory_space<vmem>>
    %220 = tpu.memref_squeeze %219 : memref<1x288x8xf32, #tpu.memory_space<vmem>> -> memref<288x8xf32, #tpu.memory_space<vmem>>
    %c90 = arith.constant 90 : index
    %c0_265 = arith.constant 0 : index
    %221 = tpu.strided_load %220[%c90, %c0_265] {strides = array<i32: 2, 1>} : memref<288x8xf32, #tpu.memory_space<vmem>>, vector<8x8xf32>
    %c0_i32_266 = arith.constant 0 : i32
    %c0_i32_267 = arith.constant 0 : i32
    %c0_i32_268 = arith.constant 0 : i32
    %222 = tpu.memref_slice %arg18[%c0_i32_266, %c0_i32_267, %c0_i32_268] : memref<1x288x8xf32, #tpu.memory_space<vmem>> -> memref<1x288x8xf32, #tpu.memory_space<vmem>>
    %223 = tpu.memref_squeeze %222 : memref<1x288x8xf32, #tpu.memory_space<vmem>> -> memref<288x8xf32, #tpu.memory_space<vmem>>
    %c91_269 = arith.constant 91 : index
    %c0_270 = arith.constant 0 : index
    %224 = tpu.strided_load %223[%c91_269, %c0_270] {strides = array<i32: 2, 1>} : memref<288x8xf32, #tpu.memory_space<vmem>>, vector<8x8xf32>
    %225 = arith.maximumf %215, %218 : vector<8x8xf32>
    %226 = arith.maximumf %221, %224 : vector<8x8xf32>
    %227 = arith.maximumf %225, %226 : vector<8x8xf32>
    %c31 = arith.constant 31 : index
    %c0_271 = arith.constant 0 : index
    %228 = vector.load %arg24[%c31, %c0_271] : memref<102x8xf32, #tpu.memory_space<vmem>>, vector<8x8xf32>
    tpu.vector_store %arg24[%c31, %c0_271], %227 {strides = array<i32>} : memref<102x8xf32, #tpu.memory_space<vmem>>, vector<8x8xf32>,
    %c0_i32_272 = arith.constant 0 : i32
    %c0_i32_273 = arith.constant 0 : i32
    %c0_i32_274 = arith.constant 0 : i32
    %229 = tpu.memref_slice %arg18[%c0_i32_272, %c0_i32_273, %c0_i32_274] : memref<1x288x8xf32, #tpu.memory_space<vmem>> -> memref<1x288x8xf32, #tpu.memory_space<vmem>>
    %230 = tpu.memref_squeeze %229 : memref<1x288x8xf32, #tpu.memory_space<vmem>> -> memref<288x8xf32, #tpu.memory_space<vmem>>
    %c108 = arith.constant 108 : index
    %c0_275 = arith.constant 0 : index
    %231 = tpu.strided_load %230[%c108, %c0_275] {strides = array<i32: 2, 1>} : memref<288x8xf32, #tpu.memory_space<vmem>>, vector<8x8xf32>
    %c0_i32_276 = arith.constant 0 : i32
    %c0_i32_277 = arith.constant 0 : i32
    %c0_i32_278 = arith.constant 0 : i32
    %232 = tpu.memref_slice %arg18[%c0_i32_276, %c0_i32_277, %c0_i32_278] : memref<1x288x8xf32, #tpu.memory_space<vmem>> -> memref<1x288x8xf32, #tpu.memory_space<vmem>>
    %233 = tpu.memref_squeeze %232 : memref<1x288x8xf32, #tpu.memory_space<vmem>> -> memref<288x8xf32, #tpu.memory_space<vmem>>
    %c109_279 = arith.constant 109 : index
    %c0_280 = arith.constant 0 : index
    %234 = tpu.strided_load %233[%c109_279, %c0_280] {strides = array<i32: 2, 1>} : memref<288x8xf32, #tpu.memory_space<vmem>>, vector<8x8xf32>
    %c0_i32_281 = arith.constant 0 : i32
    %c0_i32_282 = arith.constant 0 : i32
    %c0_i32_283 = arith.constant 0 : i32
    %235 = tpu.memref_slice %arg18[%c0_i32_281, %c0_i32_282, %c0_i32_283] : memref<1x288x8xf32, #tpu.memory_space<vmem>> -> memref<1x288x8xf32, #tpu.memory_space<vmem>>
    %236 = tpu.memref_squeeze %235 : memref<1x288x8xf32, #tpu.memory_space<vmem>> -> memref<288x8xf32, #tpu.memory_space<vmem>>
    %c126 = arith.constant 126 : index
    %c0_284 = arith.constant 0 : index
    %237 = tpu.strided_load %236[%c126, %c0_284] {strides = array<i32: 2, 1>} : memref<288x8xf32, #tpu.memory_space<vmem>>, vector<8x8xf32>
    %c0_i32_285 = arith.constant 0 : i32
    %c0_i32_286 = arith.constant 0 : i32
    %c0_i32_287 = arith.constant 0 : i32
    %238 = tpu.memref_slice %arg18[%c0_i32_285, %c0_i32_286, %c0_i32_287] : memref<1x288x8xf32, #tpu.memory_space<vmem>> -> memref<1x288x8xf32, #tpu.memory_space<vmem>>
    %239 = tpu.memref_squeeze %238 : memref<1x288x8xf32, #tpu.memory_space<vmem>> -> memref<288x8xf32, #tpu.memory_space<vmem>>
    %c127_288 = arith.constant 127 : index
    %c0_289 = arith.constant 0 : index
    %240 = tpu.strided_load %239[%c127_288, %c0_289] {strides = array<i32: 2, 1>} : memref<288x8xf32, #tpu.memory_space<vmem>>, vector<8x8xf32>
    %241 = arith.maximumf %231, %234 : vector<8x8xf32>
    %242 = arith.maximumf %237, %240 : vector<8x8xf32>
    %243 = arith.maximumf %241, %242 : vector<8x8xf32>
    %c41 = arith.constant 41 : index
    %c0_290 = arith.constant 0 : index
    %244 = vector.load %arg24[%c41, %c0_290] : memref<102x8xf32, #tpu.memory_space<vmem>>, vector<8x8xf32>
    tpu.vector_store %arg24[%c41, %c0_290], %243 {strides = array<i32>} : memref<102x8xf32, #tpu.memory_space<vmem>>, vector<8x8xf32>,
    %c0_i32_291 = arith.constant 0 : i32
    %c0_i32_292 = arith.constant 0 : i32
    %c0_i32_293 = arith.constant 0 : i32
    %245 = tpu.memref_slice %arg18[%c0_i32_291, %c0_i32_292, %c0_i32_293] : memref<1x288x8xf32, #tpu.memory_space<vmem>> -> memref<1x288x8xf32, #tpu.memory_space<vmem>>
    %246 = tpu.memref_squeeze %245 : memref<1x288x8xf32, #tpu.memory_space<vmem>> -> memref<288x8xf32, #tpu.memory_space<vmem>>
    %c144 = arith.constant 144 : index
    %c0_294 = arith.constant 0 : index
    %247 = tpu.strided_load %246[%c144, %c0_294] {strides = array<i32: 2, 1>} : memref<288x8xf32, #tpu.memory_space<vmem>>, vector<8x8xf32>
    %c0_i32_295 = arith.constant 0 : i32
    %c0_i32_296 = arith.constant 0 : i32
    %c0_i32_297 = arith.constant 0 : i32
    %248 = tpu.memref_slice %arg18[%c0_i32_295, %c0_i32_296, %c0_i32_297] : memref<1x288x8xf32, #tpu.memory_space<vmem>> -> memref<1x288x8xf32, #tpu.memory_space<vmem>>
    %249 = tpu.memref_squeeze %248 : memref<1x288x8xf32, #tpu.memory_space<vmem>> -> memref<288x8xf32, #tpu.memory_space<vmem>>
    %c145_298 = arith.constant 145 : index
    %c0_299 = arith.constant 0 : index
    %250 = tpu.strided_load %249[%c145_298, %c0_299] {strides = array<i32: 2, 1>} : memref<288x8xf32, #tpu.memory_space<vmem>>, vector<8x8xf32>
    %c0_i32_300 = arith.constant 0 : i32
    %c0_i32_301 = arith.constant 0 : i32
    %c0_i32_302 = arith.constant 0 : i32
    %251 = tpu.memref_slice %arg18[%c0_i32_300, %c0_i32_301, %c0_i32_302] : memref<1x288x8xf32, #tpu.memory_space<vmem>> -> memref<1x288x8xf32, #tpu.memory_space<vmem>>
    %252 = tpu.memref_squeeze %251 : memref<1x288x8xf32, #tpu.memory_space<vmem>> -> memref<288x8xf32, #tpu.memory_space<vmem>>
    %c162 = arith.constant 162 : index
    %c0_303 = arith.constant 0 : index
    %253 = tpu.strided_load %252[%c162, %c0_303] {strides = array<i32: 2, 1>} : memref<288x8xf32, #tpu.memory_space<vmem>>, vector<8x8xf32>
    %c0_i32_304 = arith.constant 0 : i32
    %c0_i32_305 = arith.constant 0 : i32
    %c0_i32_306 = arith.constant 0 : i32
    %254 = tpu.memref_slice %arg18[%c0_i32_304, %c0_i32_305, %c0_i32_306] : memref<1x288x8xf32, #tpu.memory_space<vmem>> -> memref<1x288x8xf32, #tpu.memory_space<vmem>>
    %255 = tpu.memref_squeeze %254 : memref<1x288x8xf32, #tpu.memory_space<vmem>> -> memref<288x8xf32, #tpu.memory_space<vmem>>
    %c163_307 = arith.constant 163 : index
    %c0_308 = arith.constant 0 : index
    %256 = tpu.strided_load %255[%c163_307, %c0_308] {strides = array<i32: 2, 1>} : memref<288x8xf32, #tpu.memory_space<vmem>>, vector<8x8xf32>
    %257 = arith.maximumf %247, %250 : vector<8x8xf32>
    %258 = arith.maximumf %253, %256 : vector<8x8xf32>
    %259 = arith.maximumf %257, %258 : vector<8x8xf32>
    %c51 = arith.constant 51 : index
    %c0_309 = arith.constant 0 : index
    %260 = vector.load %arg24[%c51, %c0_309] : memref<102x8xf32, #tpu.memory_space<vmem>>, vector<8x8xf32>
    tpu.vector_store %arg24[%c51, %c0_309], %259 {strides = array<i32>} : memref<102x8xf32, #tpu.memory_space<vmem>>, vector<8x8xf32>,
    %c0_i32_310 = arith.constant 0 : i32
    %c0_i32_311 = arith.constant 0 : i32
    %c0_i32_312 = arith.constant 0 : i32
    %261 = tpu.memref_slice %arg18[%c0_i32_310, %c0_i32_311, %c0_i32_312] : memref<1x288x8xf32, #tpu.memory_space<vmem>> -> memref<1x288x8xf32, #tpu.memory_space<vmem>>
    %262 = tpu.memref_squeeze %261 : memref<1x288x8xf32, #tpu.memory_space<vmem>> -> memref<288x8xf32, #tpu.memory_space<vmem>>
    %c180 = arith.constant 180 : index
    %c0_313 = arith.constant 0 : index
    %263 = tpu.strided_load %262[%c180, %c0_313] {strides = array<i32: 2, 1>} : memref<288x8xf32, #tpu.memory_space<vmem>>, vector<8x8xf32>
    %c0_i32_314 = arith.constant 0 : i32
    %c0_i32_315 = arith.constant 0 : i32
    %c0_i32_316 = arith.constant 0 : i32
    %264 = tpu.memref_slice %arg18[%c0_i32_314, %c0_i32_315, %c0_i32_316] : memref<1x288x8xf32, #tpu.memory_space<vmem>> -> memref<1x288x8xf32, #tpu.memory_space<vmem>>
    %265 = tpu.memref_squeeze %264 : memref<1x288x8xf32, #tpu.memory_space<vmem>> -> memref<288x8xf32, #tpu.memory_space<vmem>>
    %c181_317 = arith.constant 181 : index
    %c0_318 = arith.constant 0 : index
    %266 = tpu.strided_load %265[%c181_317, %c0_318] {strides = array<i32: 2, 1>} : memref<288x8xf32, #tpu.memory_space<vmem>>, vector<8x8xf32>
    %c0_i32_319 = arith.constant 0 : i32
    %c0_i32_320 = arith.constant 0 : i32
    %c0_i32_321 = arith.constant 0 : i32
    %267 = tpu.memref_slice %arg18[%c0_i32_319, %c0_i32_320, %c0_i32_321] : memref<1x288x8xf32, #tpu.memory_space<vmem>> -> memref<1x288x8xf32, #tpu.memory_space<vmem>>
    %268 = tpu.memref_squeeze %267 : memref<1x288x8xf32, #tpu.memory_space<vmem>> -> memref<288x8xf32, #tpu.memory_space<vmem>>
    %c198 = arith.constant 198 : index
    %c0_322 = arith.constant 0 : index
    %269 = tpu.strided_load %268[%c198, %c0_322] {strides = array<i32: 2, 1>} : memref<288x8xf32, #tpu.memory_space<vmem>>, vector<8x8xf32>
    %c0_i32_323 = arith.constant 0 : i32
    %c0_i32_324 = arith.constant 0 : i32
    %c0_i32_325 = arith.constant 0 : i32
    %270 = tpu.memref_slice %arg18[%c0_i32_323, %c0_i32_324, %c0_i32_325] : memref<1x288x8xf32, #tpu.memory_space<vmem>> -> memref<1x288x8xf32, #tpu.memory_space<vmem>>
    %271 = tpu.memref_squeeze %270 : memref<1x288x8xf32, #tpu.memory_space<vmem>> -> memref<288x8xf32, #tpu.memory_space<vmem>>
    %c199_326 = arith.constant 199 : index
    %c0_327 = arith.constant 0 : index
    %272 = tpu.strided_load %271[%c199_326, %c0_327] {strides = array<i32: 2, 1>} : memref<288x8xf32, #tpu.memory_space<vmem>>, vector<8x8xf32>
    %273 = arith.maximumf %263, %266 : vector<8x8xf32>
    %274 = arith.maximumf %269, %272 : vector<8x8xf32>
    %275 = arith.maximumf %273, %274 : vector<8x8xf32>
    %c61 = arith.constant 61 : index
    %c0_328 = arith.constant 0 : index
    %276 = vector.load %arg24[%c61, %c0_328] : memref<102x8xf32, #tpu.memory_space<vmem>>, vector<8x8xf32>
    tpu.vector_store %arg24[%c61, %c0_328], %275 {strides = array<i32>} : memref<102x8xf32, #tpu.memory_space<vmem>>, vector<8x8xf32>,
    %c0_i32_329 = arith.constant 0 : i32
    %c0_i32_330 = arith.constant 0 : i32
    %c0_i32_331 = arith.constant 0 : i32
    %277 = tpu.memref_slice %arg18[%c0_i32_329, %c0_i32_330, %c0_i32_331] : memref<1x288x8xf32, #tpu.memory_space<vmem>> -> memref<1x288x8xf32, #tpu.memory_space<vmem>>
    %278 = tpu.memref_squeeze %277 : memref<1x288x8xf32, #tpu.memory_space<vmem>> -> memref<288x8xf32, #tpu.memory_space<vmem>>
    %c216 = arith.constant 216 : index
    %c0_332 = arith.constant 0 : index
    %279 = tpu.strided_load %278[%c216, %c0_332] {strides = array<i32: 2, 1>} : memref<288x8xf32, #tpu.memory_space<vmem>>, vector<8x8xf32>
    %c0_i32_333 = arith.constant 0 : i32
    %c0_i32_334 = arith.constant 0 : i32
    %c0_i32_335 = arith.constant 0 : i32
    %280 = tpu.memref_slice %arg18[%c0_i32_333, %c0_i32_334, %c0_i32_335] : memref<1x288x8xf32, #tpu.memory_space<vmem>> -> memref<1x288x8xf32, #tpu.memory_space<vmem>>
    %281 = tpu.memref_squeeze %280 : memref<1x288x8xf32, #tpu.memory_space<vmem>> -> memref<288x8xf32, #tpu.memory_space<vmem>>
    %c217_336 = arith.constant 217 : index
    %c0_337 = arith.constant 0 : index
    %282 = tpu.strided_load %281[%c217_336, %c0_337] {strides = array<i32: 2, 1>} : memref<288x8xf32, #tpu.memory_space<vmem>>, vector<8x8xf32>
    %c0_i32_338 = arith.constant 0 : i32
    %c0_i32_339 = arith.constant 0 : i32
    %c0_i32_340 = arith.constant 0 : i32
    %283 = tpu.memref_slice %arg18[%c0_i32_338, %c0_i32_339, %c0_i32_340] : memref<1x288x8xf32, #tpu.memory_space<vmem>> -> memref<1x288x8xf32, #tpu.memory_space<vmem>>
    %284 = tpu.memref_squeeze %283 : memref<1x288x8xf32, #tpu.memory_space<vmem>> -> memref<288x8xf32, #tpu.memory_space<vmem>>
    %c234 = arith.constant 234 : index
    %c0_341 = arith.constant 0 : index
    %285 = tpu.strided_load %284[%c234, %c0_341] {strides = array<i32: 2, 1>} : memref<288x8xf32, #tpu.memory_space<vmem>>, vector<8x8xf32>
    %c0_i32_342 = arith.constant 0 : i32
    %c0_i32_343 = arith.constant 0 : i32
    %c0_i32_344 = arith.constant 0 : i32
    %286 = tpu.memref_slice %arg18[%c0_i32_342, %c0_i32_343, %c0_i32_344] : memref<1x288x8xf32, #tpu.memory_space<vmem>> -> memref<1x288x8xf32, #tpu.memory_space<vmem>>
    %287 = tpu.memref_squeeze %286 : memref<1x288x8xf32, #tpu.memory_space<vmem>> -> memref<288x8xf32, #tpu.memory_space<vmem>>
    %c235_345 = arith.constant 235 : index
    %c0_346 = arith.constant 0 : index
    %288 = tpu.strided_load %287[%c235_345, %c0_346] {strides = array<i32: 2, 1>} : memref<288x8xf32, #tpu.memory_space<vmem>>, vector<8x8xf32>
    %289 = arith.maximumf %279, %282 : vector<8x8xf32>
    %290 = arith.maximumf %285, %288 : vector<8x8xf32>
    %291 = arith.maximumf %289, %290 : vector<8x8xf32>
    %c71 = arith.constant 71 : index
    %c0_347 = arith.constant 0 : index
    %292 = vector.load %arg24[%c71, %c0_347] : memref<102x8xf32, #tpu.memory_space<vmem>>, vector<8x8xf32>
    tpu.vector_store %arg24[%c71, %c0_347], %291 {strides = array<i32>} : memref<102x8xf32, #tpu.memory_space<vmem>>, vector<8x8xf32>,
    %c0_i32_348 = arith.constant 0 : i32
    %c0_i32_349 = arith.constant 0 : i32
    %c0_i32_350 = arith.constant 0 : i32
    %293 = tpu.memref_slice %arg18[%c0_i32_348, %c0_i32_349, %c0_i32_350] : memref<1x288x8xf32, #tpu.memory_space<vmem>> -> memref<1x288x8xf32, #tpu.memory_space<vmem>>
    %294 = tpu.memref_squeeze %293 : memref<1x288x8xf32, #tpu.memory_space<vmem>> -> memref<288x8xf32, #tpu.memory_space<vmem>>
    %c252 = arith.constant 252 : index
    %c0_351 = arith.constant 0 : index
    %295 = tpu.strided_load %294[%c252, %c0_351] {strides = array<i32: 2, 1>} : memref<288x8xf32, #tpu.memory_space<vmem>>, vector<8x8xf32>
    %c0_i32_352 = arith.constant 0 : i32
    %c0_i32_353 = arith.constant 0 : i32
    %c0_i32_354 = arith.constant 0 : i32
    %296 = tpu.memref_slice %arg18[%c0_i32_352, %c0_i32_353, %c0_i32_354] : memref<1x288x8xf32, #tpu.memory_space<vmem>> -> memref<1x288x8xf32, #tpu.memory_space<vmem>>
    %297 = tpu.memref_squeeze %296 : memref<1x288x8xf32, #tpu.memory_space<vmem>> -> memref<288x8xf32, #tpu.memory_space<vmem>>
    %c253_355 = arith.constant 253 : index
    %c0_356 = arith.constant 0 : index
    %298 = tpu.strided_load %297[%c253_355, %c0_356] {strides = array<i32: 2, 1>} : memref<288x8xf32, #tpu.memory_space<vmem>>, vector<8x8xf32>
    %c0_i32_357 = arith.constant 0 : i32
    %c0_i32_358 = arith.constant 0 : i32
    %c0_i32_359 = arith.constant 0 : i32
    %299 = tpu.memref_slice %arg18[%c0_i32_357, %c0_i32_358, %c0_i32_359] : memref<1x288x8xf32, #tpu.memory_space<vmem>> -> memref<1x288x8xf32, #tpu.memory_space<vmem>>
    %300 = tpu.memref_squeeze %299 : memref<1x288x8xf32, #tpu.memory_space<vmem>> -> memref<288x8xf32, #tpu.memory_space<vmem>>
    %c270 = arith.constant 270 : index
    %c0_360 = arith.constant 0 : index
    %301 = tpu.strided_load %300[%c270, %c0_360] {strides = array<i32: 2, 1>} : memref<288x8xf32, #tpu.memory_space<vmem>>, vector<8x8xf32>
    %c0_i32_361 = arith.constant 0 : i32
    %c0_i32_362 = arith.constant 0 : i32
    %c0_i32_363 = arith.constant 0 : i32
    %302 = tpu.memref_slice %arg18[%c0_i32_361, %c0_i32_362, %c0_i32_363] : memref<1x288x8xf32, #tpu.memory_space<vmem>> -> memref<1x288x8xf32, #tpu.memory_space<vmem>>
    %303 = tpu.memref_squeeze %302 : memref<1x288x8xf32, #tpu.memory_space<vmem>> -> memref<288x8xf32, #tpu.memory_space<vmem>>
    %c271_364 = arith.constant 271 : index
    %c0_365 = arith.constant 0 : index
    %304 = tpu.strided_load %303[%c271_364, %c0_365] {strides = array<i32: 2, 1>} : memref<288x8xf32, #tpu.memory_space<vmem>>, vector<8x8xf32>
    %305 = arith.maximumf %295, %298 : vector<8x8xf32>
    %306 = arith.maximumf %301, %304 : vector<8x8xf32>
    %307 = arith.maximumf %305, %306 : vector<8x8xf32>
    %c81 = arith.constant 81 : index
    %c0_366 = arith.constant 0 : index
    %308 = vector.load %arg24[%c81, %c0_366] : memref<102x8xf32, #tpu.memory_space<vmem>>, vector<8x8xf32>
    tpu.vector_store %arg24[%c81, %c0_366], %307 {strides = array<i32>} : memref<102x8xf32, #tpu.memory_space<vmem>>, vector<8x8xf32>,
    %cst_367 = arith.constant 0.000000e+00 : f32
    %309 = vector.broadcast %cst_367 : f32 to vector<11x16xf32>
    %c0_368 = arith.constant 0 : index
    %c0_369 = arith.constant 0 : index
    %310 = vector.load %arg25[%c0_368, %c0_369] : memref<102x16xf32, #tpu.memory_space<vmem>>, vector<11x16xf32>
    tpu.vector_store %arg25[%c0_368, %c0_369], %309 {strides = array<i32>} : memref<102x16xf32, #tpu.memory_space<vmem>>, vector<11x16xf32>,
    %cst_370 = arith.constant 0.000000e+00 : f32
    %311 = vector.broadcast %cst_370 : f32 to vector<11x16xf32>
    %c91_371 = arith.constant 91 : index
    %c0_372 = arith.constant 0 : index
    %312 = vector.load %arg25[%c91_371, %c0_372] : memref<102x16xf32, #tpu.memory_space<vmem>>, vector<11x16xf32>
    tpu.vector_store %arg25[%c91_371, %c0_372], %311 {strides = array<i32>} : memref<102x16xf32, #tpu.memory_space<vmem>>, vector<11x16xf32>,
    %313 = tpu.iota {dimensions = array<i32: 0>} : vector<80x1xi32>
    %c10_i32 = arith.constant 10 : i32
    %c0_i32_373 = arith.constant 0 : i32
    %314 = arith.cmpi eq, %c10_i32, %c0_i32_373 : i32
    %c1_i32_374 = arith.constant 1 : i32
    %315 = arith.select %314, %c1_i32_374, %c10_i32 : i32
    %316 = vector.broadcast %315 : i32 to vector<80x1xi32>
    %317 = arith.remsi %313, %316 : vector<80x1xi32>
    %c0_i32_375 = arith.constant 0 : i32
    %318 = vector.broadcast %c0_i32_375 : i32 to vector<80x1xi32>
    %319 = arith.cmpi ne, %317, %318 : vector<80x1xi32>
    %c0_i32_376 = arith.constant 0 : i32
    %320 = vector.broadcast %c0_i32_376 : i32 to vector<80x1xi32>
    %321 = arith.cmpi slt, %317, %320 : vector<80x1xi32>
    %c0_i32_377 = arith.constant 0 : i32
    %322 = arith.cmpi slt, %315, %c0_i32_377 : i32
    %323 = vector.broadcast %322 : i1 to vector<80x1xi1>
    %324 = vector.broadcast %323 : vector<80x1xi1> to vector<80x1xi1>
    %325 = arith.xori %321, %324 : vector<80x1xi1>
    %326 = arith.andi %325, %319 : vector<80x1xi1>
    %327 = vector.broadcast %315 : i32 to vector<80x1xi32>
    %328 = arith.addi %317, %327 : vector<80x1xi32>
    %329 = arith.select %326, %328, %317 : vector<80x1xi1>, vector<80x1xi32>
    %c8_i32 = arith.constant 8 : i32
    %330 = vector.broadcast %c8_i32 : i32 to vector<80x1xi32>
    %331 = arith.cmpi slt, %329, %330 : vector<80x1xi32>
    %c0_378 = arith.constant 0 : index
    %c0_379 = arith.constant 0 : index
    %332 = vector.load %arg24[%c0_378, %c0_379] : memref<102x8xf32, #tpu.memory_space<vmem>>, vector<80x8xf32>
    %c0_380 = arith.constant 0 : index
    %c0_381 = arith.constant 0 : index
    %c0_382 = arith.constant 0 : index
    %c0_383 = arith.constant 0 : index
    %333 = vector.load %arg6[%c0_380, %c0_381, %c0_382, %c0_383] : memref<3x3x8x16xf32, #tpu.memory_space<vmem>>, vector<1x1x8x16xf32>
    %334 = vector.shape_cast %333 : vector<1x1x8x16xf32> to vector<8x16xf32>
    %cst_384 = arith.constant dense<0.000000e+00> : vector<80x16xf32>
    %335 = tpu.matmul %332, %334, %cst_384 {dimension_numbers = #tpu.dot_dimension_numbers<[1], [0], [0], [1], [0, 0, 1, 1], [], []>} : vector<80x8xf32>, vector<8x16xf32>, vector<80x16xf32> -> vector<80x16xf32>
    %c1_385 = arith.constant 1 : index
    %c0_386 = arith.constant 0 : index
    %336 = vector.load %arg24[%c1_385, %c0_386] : memref<102x8xf32, #tpu.memory_space<vmem>>, vector<80x8xf32>
    %c0_387 = arith.constant 0 : index
    %c1_388 = arith.constant 1 : index
    %c0_389 = arith.constant 0 : index
    %c0_390 = arith.constant 0 : index
    %337 = vector.load %arg6[%c0_387, %c1_388, %c0_389, %c0_390] : memref<3x3x8x16xf32, #tpu.memory_space<vmem>>, vector<1x1x8x16xf32>
    %338 = vector.shape_cast %337 : vector<1x1x8x16xf32> to vector<8x16xf32>
    %cst_391 = arith.constant dense<0.000000e+00> : vector<80x16xf32>
    %339 = tpu.matmul %336, %338, %cst_391 {dimension_numbers = #tpu.dot_dimension_numbers<[1], [0], [0], [1], [0, 0, 1, 1], [], []>} : vector<80x8xf32>, vector<8x16xf32>, vector<80x16xf32> -> vector<80x16xf32>
    %340 = arith.addf %335, %339 : vector<80x16xf32>
    %c2_392 = arith.constant 2 : index
    %c0_393 = arith.constant 0 : index
    %341 = vector.load %arg24[%c2_392, %c0_393] : memref<102x8xf32, #tpu.memory_space<vmem>>, vector<80x8xf32>
    %c0_394 = arith.constant 0 : index
    %c2_395 = arith.constant 2 : index
    %c0_396 = arith.constant 0 : index
    %c0_397 = arith.constant 0 : index
    %342 = vector.load %arg6[%c0_394, %c2_395, %c0_396, %c0_397] : memref<3x3x8x16xf32, #tpu.memory_space<vmem>>, vector<1x1x8x16xf32>
    %343 = vector.shape_cast %342 : vector<1x1x8x16xf32> to vector<8x16xf32>
    %cst_398 = arith.constant dense<0.000000e+00> : vector<80x16xf32>
    %344 = tpu.matmul %341, %343, %cst_398 {dimension_numbers = #tpu.dot_dimension_numbers<[1], [0], [0], [1], [0, 0, 1, 1], [], []>} : vector<80x8xf32>, vector<8x16xf32>, vector<80x16xf32> -> vector<80x16xf32>
    %345 = arith.addf %340, %344 : vector<80x16xf32>
    %c10_399 = arith.constant 10 : index
    %c0_400 = arith.constant 0 : index
    %346 = vector.load %arg24[%c10_399, %c0_400] : memref<102x8xf32, #tpu.memory_space<vmem>>, vector<80x8xf32>
    %c1_401 = arith.constant 1 : index
    %c0_402 = arith.constant 0 : index
    %c0_403 = arith.constant 0 : index
    %c0_404 = arith.constant 0 : index
    %347 = vector.load %arg6[%c1_401, %c0_402, %c0_403, %c0_404] : memref<3x3x8x16xf32, #tpu.memory_space<vmem>>, vector<1x1x8x16xf32>
    %348 = vector.shape_cast %347 : vector<1x1x8x16xf32> to vector<8x16xf32>
    %cst_405 = arith.constant dense<0.000000e+00> : vector<80x16xf32>
    %349 = tpu.matmul %346, %348, %cst_405 {dimension_numbers = #tpu.dot_dimension_numbers<[1], [0], [0], [1], [0, 0, 1, 1], [], []>} : vector<80x8xf32>, vector<8x16xf32>, vector<80x16xf32> -> vector<80x16xf32>
    %350 = arith.addf %345, %349 : vector<80x16xf32>
    %c11_406 = arith.constant 11 : index
    %c0_407 = arith.constant 0 : index
    %351 = vector.load %arg24[%c11_406, %c0_407] : memref<102x8xf32, #tpu.memory_space<vmem>>, vector<80x8xf32>
    %c1_408 = arith.constant 1 : index
    %c1_409 = arith.constant 1 : index
    %c0_410 = arith.constant 0 : index
    %c0_411 = arith.constant 0 : index
    %352 = vector.load %arg6[%c1_408, %c1_409, %c0_410, %c0_411] : memref<3x3x8x16xf32, #tpu.memory_space<vmem>>, vector<1x1x8x16xf32>
    %353 = vector.shape_cast %352 : vector<1x1x8x16xf32> to vector<8x16xf32>
    %cst_412 = arith.constant dense<0.000000e+00> : vector<80x16xf32>
    %354 = tpu.matmul %351, %353, %cst_412 {dimension_numbers = #tpu.dot_dimension_numbers<[1], [0], [0], [1], [0, 0, 1, 1], [], []>} : vector<80x8xf32>, vector<8x16xf32>, vector<80x16xf32> -> vector<80x16xf32>
    %355 = arith.addf %350, %354 : vector<80x16xf32>
    %c12_413 = arith.constant 12 : index
    %c0_414 = arith.constant 0 : index
    %356 = vector.load %arg24[%c12_413, %c0_414] : memref<102x8xf32, #tpu.memory_space<vmem>>, vector<80x8xf32>
    %c1_415 = arith.constant 1 : index
    %c2_416 = arith.constant 2 : index
    %c0_417 = arith.constant 0 : index
    %c0_418 = arith.constant 0 : index
    %357 = vector.load %arg6[%c1_415, %c2_416, %c0_417, %c0_418] : memref<3x3x8x16xf32, #tpu.memory_space<vmem>>, vector<1x1x8x16xf32>
    %358 = vector.shape_cast %357 : vector<1x1x8x16xf32> to vector<8x16xf32>
    %cst_419 = arith.constant dense<0.000000e+00> : vector<80x16xf32>
    %359 = tpu.matmul %356, %358, %cst_419 {dimension_numbers = #tpu.dot_dimension_numbers<[1], [0], [0], [1], [0, 0, 1, 1], [], []>} : vector<80x8xf32>, vector<8x16xf32>, vector<80x16xf32> -> vector<80x16xf32>
    %360 = arith.addf %355, %359 : vector<80x16xf32>
    %c20_420 = arith.constant 20 : index
    %c0_421 = arith.constant 0 : index
    %361 = vector.load %arg24[%c20_420, %c0_421] : memref<102x8xf32, #tpu.memory_space<vmem>>, vector<80x8xf32>
    %c2_422 = arith.constant 2 : index
    %c0_423 = arith.constant 0 : index
    %c0_424 = arith.constant 0 : index
    %c0_425 = arith.constant 0 : index
    %362 = vector.load %arg6[%c2_422, %c0_423, %c0_424, %c0_425] : memref<3x3x8x16xf32, #tpu.memory_space<vmem>>, vector<1x1x8x16xf32>
    %363 = vector.shape_cast %362 : vector<1x1x8x16xf32> to vector<8x16xf32>
    %cst_426 = arith.constant dense<0.000000e+00> : vector<80x16xf32>
    %364 = tpu.matmul %361, %363, %cst_426 {dimension_numbers = #tpu.dot_dimension_numbers<[1], [0], [0], [1], [0, 0, 1, 1], [], []>} : vector<80x8xf32>, vector<8x16xf32>, vector<80x16xf32> -> vector<80x16xf32>
    %365 = arith.addf %360, %364 : vector<80x16xf32>
    %c21_427 = arith.constant 21 : index
    %c0_428 = arith.constant 0 : index
    %366 = vector.load %arg24[%c21_427, %c0_428] : memref<102x8xf32, #tpu.memory_space<vmem>>, vector<80x8xf32>
    %c2_429 = arith.constant 2 : index
    %c1_430 = arith.constant 1 : index
    %c0_431 = arith.constant 0 : index
    %c0_432 = arith.constant 0 : index
    %367 = vector.load %arg6[%c2_429, %c1_430, %c0_431, %c0_432] : memref<3x3x8x16xf32, #tpu.memory_space<vmem>>, vector<1x1x8x16xf32>
    %368 = vector.shape_cast %367 : vector<1x1x8x16xf32> to vector<8x16xf32>
    %cst_433 = arith.constant dense<0.000000e+00> : vector<80x16xf32>
    %369 = tpu.matmul %366, %368, %cst_433 {dimension_numbers = #tpu.dot_dimension_numbers<[1], [0], [0], [1], [0, 0, 1, 1], [], []>} : vector<80x8xf32>, vector<8x16xf32>, vector<80x16xf32> -> vector<80x16xf32>
    %370 = arith.addf %365, %369 : vector<80x16xf32>
    %c22 = arith.constant 22 : index
    %c0_434 = arith.constant 0 : index
    %371 = vector.load %arg24[%c22, %c0_434] : memref<102x8xf32, #tpu.memory_space<vmem>>, vector<80x8xf32>
    %c2_435 = arith.constant 2 : index
    %c2_436 = arith.constant 2 : index
    %c0_437 = arith.constant 0 : index
    %c0_438 = arith.constant 0 : index
    %372 = vector.load %arg6[%c2_435, %c2_436, %c0_437, %c0_438] : memref<3x3x8x16xf32, #tpu.memory_space<vmem>>, vector<1x1x8x16xf32>
    %373 = vector.shape_cast %372 : vector<1x1x8x16xf32> to vector<8x16xf32>
    %cst_439 = arith.constant dense<0.000000e+00> : vector<80x16xf32>
    %374 = tpu.matmul %371, %373, %cst_439 {dimension_numbers = #tpu.dot_dimension_numbers<[1], [0], [0], [1], [0, 0, 1, 1], [], []>} : vector<80x8xf32>, vector<8x16xf32>, vector<80x16xf32> -> vector<80x16xf32>
    %375 = arith.addf %370, %374 : vector<80x16xf32>
    %c0_440 = arith.constant 0 : index
    %c0_441 = arith.constant 0 : index
    %376 = vector.load %arg7[%c0_440, %c0_441] : memref<1x16xf32, #tpu.memory_space<vmem>>, vector<1x16xf32>
    %377 = vector.broadcast %376 : vector<1x16xf32> to vector<80x16xf32>
    %378 = arith.addf %375, %377 : vector<80x16xf32>
    %cst_442 = arith.constant 0.000000e+00 : f32
    %379 = vector.broadcast %cst_442 : f32 to vector<80x16xf32>
    %380 = arith.maximumf %378, %379 : vector<80x16xf32>
    %cst_443 = arith.constant 0.000000e+00 : f32
    %381 = vector.shape_cast %331 : vector<80x1xi1> to vector<80x1xi1>
    %382 = vector.broadcast %381 : vector<80x1xi1> to vector<80x16xi1>
    %383 = vector.broadcast %cst_443 : f32 to vector<80x16xf32>
    %384 = arith.select %382, %380, %383 : vector<80x16xi1>, vector<80x16xf32>
    %c11_444 = arith.constant 11 : index
    %c0_445 = arith.constant 0 : index
    %385 = vector.load %arg25[%c11_444, %c0_445] : memref<102x16xf32, #tpu.memory_space<vmem>>, vector<80x16xf32>
    tpu.vector_store %arg25[%c11_444, %c0_445], %384 {strides = array<i32>} : memref<102x16xf32, #tpu.memory_space<vmem>>, vector<80x16xf32>,
    %c0_446 = arith.constant 0 : index
    %c0_447 = arith.constant 0 : index
    %386 = vector.load %arg25[%c0_446, %c0_447] : memref<102x16xf32, #tpu.memory_space<vmem>>, vector<80x16xf32>
    %c0_448 = arith.constant 0 : index
    %c0_449 = arith.constant 0 : index
    %c0_450 = arith.constant 0 : index
    %c0_451 = arith.constant 0 : index
    %387 = vector.load %arg8[%c0_448, %c0_449, %c0_450, %c0_451] : memref<3x3x16x16xf32, #tpu.memory_space<vmem>>, vector<1x1x16x16xf32>
    %388 = vector.shape_cast %387 : vector<1x1x16x16xf32> to vector<16x16xf32>
    %cst_452 = arith.constant dense<0.000000e+00> : vector<80x16xf32>
    %389 = tpu.matmul %386, %388, %cst_452 {dimension_numbers = #tpu.dot_dimension_numbers<[1], [0], [0], [1], [0, 0, 1, 1], [], []>} : vector<80x16xf32>, vector<16x16xf32>, vector<80x16xf32> -> vector<80x16xf32>
    %c1_453 = arith.constant 1 : index
    %c0_454 = arith.constant 0 : index
    %390 = vector.load %arg25[%c1_453, %c0_454] : memref<102x16xf32, #tpu.memory_space<vmem>>, vector<80x16xf32>
    %c0_455 = arith.constant 0 : index
    %c1_456 = arith.constant 1 : index
    %c0_457 = arith.constant 0 : index
    %c0_458 = arith.constant 0 : index
    %391 = vector.load %arg8[%c0_455, %c1_456, %c0_457, %c0_458] : memref<3x3x16x16xf32, #tpu.memory_space<vmem>>, vector<1x1x16x16xf32>
    %392 = vector.shape_cast %391 : vector<1x1x16x16xf32> to vector<16x16xf32>
    %cst_459 = arith.constant dense<0.000000e+00> : vector<80x16xf32>
    %393 = tpu.matmul %390, %392, %cst_459 {dimension_numbers = #tpu.dot_dimension_numbers<[1], [0], [0], [1], [0, 0, 1, 1], [], []>} : vector<80x16xf32>, vector<16x16xf32>, vector<80x16xf32> -> vector<80x16xf32>
    %394 = arith.addf %389, %393 : vector<80x16xf32>
    %c2_460 = arith.constant 2 : index
    %c0_461 = arith.constant 0 : index
    %395 = vector.load %arg25[%c2_460, %c0_461] : memref<102x16xf32, #tpu.memory_space<vmem>>, vector<80x16xf32>
    %c0_462 = arith.constant 0 : index
    %c2_463 = arith.constant 2 : index
    %c0_464 = arith.constant 0 : index
    %c0_465 = arith.constant 0 : index
    %396 = vector.load %arg8[%c0_462, %c2_463, %c0_464, %c0_465] : memref<3x3x16x16xf32, #tpu.memory_space<vmem>>, vector<1x1x16x16xf32>
    %397 = vector.shape_cast %396 : vector<1x1x16x16xf32> to vector<16x16xf32>
    %cst_466 = arith.constant dense<0.000000e+00> : vector<80x16xf32>
    %398 = tpu.matmul %395, %397, %cst_466 {dimension_numbers = #tpu.dot_dimension_numbers<[1], [0], [0], [1], [0, 0, 1, 1], [], []>} : vector<80x16xf32>, vector<16x16xf32>, vector<80x16xf32> -> vector<80x16xf32>
    %399 = arith.addf %394, %398 : vector<80x16xf32>
    %c10_467 = arith.constant 10 : index
    %c0_468 = arith.constant 0 : index
    %400 = vector.load %arg25[%c10_467, %c0_468] : memref<102x16xf32, #tpu.memory_space<vmem>>, vector<80x16xf32>
    %c1_469 = arith.constant 1 : index
    %c0_470 = arith.constant 0 : index
    %c0_471 = arith.constant 0 : index
    %c0_472 = arith.constant 0 : index
    %401 = vector.load %arg8[%c1_469, %c0_470, %c0_471, %c0_472] : memref<3x3x16x16xf32, #tpu.memory_space<vmem>>, vector<1x1x16x16xf32>
    %402 = vector.shape_cast %401 : vector<1x1x16x16xf32> to vector<16x16xf32>
    %cst_473 = arith.constant dense<0.000000e+00> : vector<80x16xf32>
    %403 = tpu.matmul %400, %402, %cst_473 {dimension_numbers = #tpu.dot_dimension_numbers<[1], [0], [0], [1], [0, 0, 1, 1], [], []>} : vector<80x16xf32>, vector<16x16xf32>, vector<80x16xf32> -> vector<80x16xf32>
    %404 = arith.addf %399, %403 : vector<80x16xf32>
    %c11_474 = arith.constant 11 : index
    %c0_475 = arith.constant 0 : index
    %405 = vector.load %arg25[%c11_474, %c0_475] : memref<102x16xf32, #tpu.memory_space<vmem>>, vector<80x16xf32>
    %c1_476 = arith.constant 1 : index
    %c1_477 = arith.constant 1 : index
    %c0_478 = arith.constant 0 : index
    %c0_479 = arith.constant 0 : index
    %406 = vector.load %arg8[%c1_476, %c1_477, %c0_478, %c0_479] : memref<3x3x16x16xf32, #tpu.memory_space<vmem>>, vector<1x1x16x16xf32>
    %407 = vector.shape_cast %406 : vector<1x1x16x16xf32> to vector<16x16xf32>
    %cst_480 = arith.constant dense<0.000000e+00> : vector<80x16xf32>
    %408 = tpu.matmul %405, %407, %cst_480 {dimension_numbers = #tpu.dot_dimension_numbers<[1], [0], [0], [1], [0, 0, 1, 1], [], []>} : vector<80x16xf32>, vector<16x16xf32>, vector<80x16xf32> -> vector<80x16xf32>
    %409 = arith.addf %404, %408 : vector<80x16xf32>
    %c12_481 = arith.constant 12 : index
    %c0_482 = arith.constant 0 : index
    %410 = vector.load %arg25[%c12_481, %c0_482] : memref<102x16xf32, #tpu.memory_space<vmem>>, vector<80x16xf32>
    %c1_483 = arith.constant 1 : index
    %c2_484 = arith.constant 2 : index
    %c0_485 = arith.constant 0 : index
    %c0_486 = arith.constant 0 : index
    %411 = vector.load %arg8[%c1_483, %c2_484, %c0_485, %c0_486] : memref<3x3x16x16xf32, #tpu.memory_space<vmem>>, vector<1x1x16x16xf32>
    %412 = vector.shape_cast %411 : vector<1x1x16x16xf32> to vector<16x16xf32>
    %cst_487 = arith.constant dense<0.000000e+00> : vector<80x16xf32>
    %413 = tpu.matmul %410, %412, %cst_487 {dimension_numbers = #tpu.dot_dimension_numbers<[1], [0], [0], [1], [0, 0, 1, 1], [], []>} : vector<80x16xf32>, vector<16x16xf32>, vector<80x16xf32> -> vector<80x16xf32>
    %414 = arith.addf %409, %413 : vector<80x16xf32>
    %c20_488 = arith.constant 20 : index
    %c0_489 = arith.constant 0 : index
    %415 = vector.load %arg25[%c20_488, %c0_489] : memref<102x16xf32, #tpu.memory_space<vmem>>, vector<80x16xf32>
    %c2_490 = arith.constant 2 : index
    %c0_491 = arith.constant 0 : index
    %c0_492 = arith.constant 0 : index
    %c0_493 = arith.constant 0 : index
    %416 = vector.load %arg8[%c2_490, %c0_491, %c0_492, %c0_493] : memref<3x3x16x16xf32, #tpu.memory_space<vmem>>, vector<1x1x16x16xf32>
    %417 = vector.shape_cast %416 : vector<1x1x16x16xf32> to vector<16x16xf32>
    %cst_494 = arith.constant dense<0.000000e+00> : vector<80x16xf32>
    %418 = tpu.matmul %415, %417, %cst_494 {dimension_numbers = #tpu.dot_dimension_numbers<[1], [0], [0], [1], [0, 0, 1, 1], [], []>} : vector<80x16xf32>, vector<16x16xf32>, vector<80x16xf32> -> vector<80x16xf32>
    %419 = arith.addf %414, %418 : vector<80x16xf32>
    %c21_495 = arith.constant 21 : index
    %c0_496 = arith.constant 0 : index
    %420 = vector.load %arg25[%c21_495, %c0_496] : memref<102x16xf32, #tpu.memory_space<vmem>>, vector<80x16xf32>
    %c2_497 = arith.constant 2 : index
    %c1_498 = arith.constant 1 : index
    %c0_499 = arith.constant 0 : index
    %c0_500 = arith.constant 0 : index
    %421 = vector.load %arg8[%c2_497, %c1_498, %c0_499, %c0_500] : memref<3x3x16x16xf32, #tpu.memory_space<vmem>>, vector<1x1x16x16xf32>
    %422 = vector.shape_cast %421 : vector<1x1x16x16xf32> to vector<16x16xf32>
    %cst_501 = arith.constant dense<0.000000e+00> : vector<80x16xf32>
    %423 = tpu.matmul %420, %422, %cst_501 {dimension_numbers = #tpu.dot_dimension_numbers<[1], [0], [0], [1], [0, 0, 1, 1], [], []>} : vector<80x16xf32>, vector<16x16xf32>, vector<80x16xf32> -> vector<80x16xf32>
    %424 = arith.addf %419, %423 : vector<80x16xf32>
    %c22_502 = arith.constant 22 : index
    %c0_503 = arith.constant 0 : index
    %425 = vector.load %arg25[%c22_502, %c0_503] : memref<102x16xf32, #tpu.memory_space<vmem>>, vector<80x16xf32>
    %c2_504 = arith.constant 2 : index
    %c2_505 = arith.constant 2 : index
    %c0_506 = arith.constant 0 : index
    %c0_507 = arith.constant 0 : index
    %426 = vector.load %arg8[%c2_504, %c2_505, %c0_506, %c0_507] : memref<3x3x16x16xf32, #tpu.memory_space<vmem>>, vector<1x1x16x16xf32>
    %427 = vector.shape_cast %426 : vector<1x1x16x16xf32> to vector<16x16xf32>
    %cst_508 = arith.constant dense<0.000000e+00> : vector<80x16xf32>
    %428 = tpu.matmul %425, %427, %cst_508 {dimension_numbers = #tpu.dot_dimension_numbers<[1], [0], [0], [1], [0, 0, 1, 1], [], []>} : vector<80x16xf32>, vector<16x16xf32>, vector<80x16xf32> -> vector<80x16xf32>
    %429 = arith.addf %424, %428 : vector<80x16xf32>
    %c0_509 = arith.constant 0 : index
    %c0_510 = arith.constant 0 : index
    %430 = vector.load %arg9[%c0_509, %c0_510] : memref<1x16xf32, #tpu.memory_space<vmem>>, vector<1x16xf32>
    %431 = vector.broadcast %430 : vector<1x16xf32> to vector<80x16xf32>
    %432 = arith.addf %429, %431 : vector<80x16xf32>
    %cst_511 = arith.constant 0.000000e+00 : f32
    %433 = vector.broadcast %cst_511 : f32 to vector<80x16xf32>
    %434 = arith.maximumf %432, %433 : vector<80x16xf32>
    %c0_512 = arith.constant 0 : index
    %c0_513 = arith.constant 0 : index
    %c0_514 = arith.constant 0 : index
    %435 = vector.load %arg19[%c0_512, %c0_513, %c0_514] : memref<1x80x16xf32, #tpu.memory_space<vmem>>, vector<1x80x16xf32>
    %436 = vector.shape_cast %435 : vector<1x80x16xf32> to vector<80x16xf32>
    %437 = vector.shape_cast %434 : vector<80x16xf32> to vector<1x80x16xf32>
    tpu.vector_store %arg19[%c0_512, %c0_513, %c0_514], %437 {strides = array<i32>} : memref<1x80x16xf32, #tpu.memory_space<vmem>>, vector<1x80x16xf32>,
    %cst_515 = arith.constant 0.000000e+00 : f32
    %438 = vector.broadcast %cst_515 : f32 to vector<38x16xf32>
    %c0_516 = arith.constant 0 : index
    %c0_517 = arith.constant 0 : index
    %439 = vector.load %arg26[%c0_516, %c0_517] : memref<38x16xf32, #tpu.memory_space<vmem>>, vector<38x16xf32>
    tpu.vector_store %arg26[%c0_516, %c0_517], %438 {strides = array<i32>} : memref<38x16xf32, #tpu.memory_space<vmem>>, vector<38x16xf32>,
    %c0_i32_518 = arith.constant 0 : i32
    %c0_i32_519 = arith.constant 0 : i32
    %c0_i32_520 = arith.constant 0 : i32
    %440 = tpu.memref_slice %arg19[%c0_i32_518, %c0_i32_519, %c0_i32_520] : memref<1x80x16xf32, #tpu.memory_space<vmem>> -> memref<1x80x16xf32, #tpu.memory_space<vmem>>
    %441 = tpu.memref_squeeze %440 : memref<1x80x16xf32, #tpu.memory_space<vmem>> -> memref<80x16xf32, #tpu.memory_space<vmem>>
    %c0_521 = arith.constant 0 : index
    %c0_522 = arith.constant 0 : index
    %442 = tpu.strided_load %441[%c0_521, %c0_522] {strides = array<i32: 2, 1>} : memref<80x16xf32, #tpu.memory_space<vmem>>, vector<4x16xf32>
    %c0_i32_523 = arith.constant 0 : i32
    %c0_i32_524 = arith.constant 0 : i32
    %c0_i32_525 = arith.constant 0 : i32
    %443 = tpu.memref_slice %arg19[%c0_i32_523, %c0_i32_524, %c0_i32_525] : memref<1x80x16xf32, #tpu.memory_space<vmem>> -> memref<1x80x16xf32, #tpu.memory_space<vmem>>
    %444 = tpu.memref_squeeze %443 : memref<1x80x16xf32, #tpu.memory_space<vmem>> -> memref<80x16xf32, #tpu.memory_space<vmem>>
    %c1_526 = arith.constant 1 : index
    %c0_527 = arith.constant 0 : index
    %445 = tpu.strided_load %444[%c1_526, %c0_527] {strides = array<i32: 2, 1>} : memref<80x16xf32, #tpu.memory_space<vmem>>, vector<4x16xf32>
    %c0_i32_528 = arith.constant 0 : i32
    %c0_i32_529 = arith.constant 0 : i32
    %c0_i32_530 = arith.constant 0 : i32
    %446 = tpu.memref_slice %arg19[%c0_i32_528, %c0_i32_529, %c0_i32_530] : memref<1x80x16xf32, #tpu.memory_space<vmem>> -> memref<1x80x16xf32, #tpu.memory_space<vmem>>
    %447 = tpu.memref_squeeze %446 : memref<1x80x16xf32, #tpu.memory_space<vmem>> -> memref<80x16xf32, #tpu.memory_space<vmem>>
    %c10_531 = arith.constant 10 : index
    %c0_532 = arith.constant 0 : index
    %448 = tpu.strided_load %447[%c10_531, %c0_532] {strides = array<i32: 2, 1>} : memref<80x16xf32, #tpu.memory_space<vmem>>, vector<4x16xf32>
    %c0_i32_533 = arith.constant 0 : i32
    %c0_i32_534 = arith.constant 0 : i32
    %c0_i32_535 = arith.constant 0 : i32
    %449 = tpu.memref_slice %arg19[%c0_i32_533, %c0_i32_534, %c0_i32_535] : memref<1x80x16xf32, #tpu.memory_space<vmem>> -> memref<1x80x16xf32, #tpu.memory_space<vmem>>
    %450 = tpu.memref_squeeze %449 : memref<1x80x16xf32, #tpu.memory_space<vmem>> -> memref<80x16xf32, #tpu.memory_space<vmem>>
    %c11_536 = arith.constant 11 : index
    %c0_537 = arith.constant 0 : index
    %451 = tpu.strided_load %450[%c11_536, %c0_537] {strides = array<i32: 2, 1>} : memref<80x16xf32, #tpu.memory_space<vmem>>, vector<4x16xf32>
    %452 = arith.maximumf %442, %445 : vector<4x16xf32>
    %453 = arith.maximumf %448, %451 : vector<4x16xf32>
    %454 = arith.maximumf %452, %453 : vector<4x16xf32>
    %c7_538 = arith.constant 7 : index
    %c0_539 = arith.constant 0 : index
    %455 = vector.load %arg26[%c7_538, %c0_539] : memref<38x16xf32, #tpu.memory_space<vmem>>, vector<4x16xf32>
    tpu.vector_store %arg26[%c7_538, %c0_539], %454 {strides = array<i32>} : memref<38x16xf32, #tpu.memory_space<vmem>>, vector<4x16xf32>,
    %c0_i32_540 = arith.constant 0 : i32
    %c0_i32_541 = arith.constant 0 : i32
    %c0_i32_542 = arith.constant 0 : i32
    %456 = tpu.memref_slice %arg19[%c0_i32_540, %c0_i32_541, %c0_i32_542] : memref<1x80x16xf32, #tpu.memory_space<vmem>> -> memref<1x80x16xf32, #tpu.memory_space<vmem>>
    %457 = tpu.memref_squeeze %456 : memref<1x80x16xf32, #tpu.memory_space<vmem>> -> memref<80x16xf32, #tpu.memory_space<vmem>>
    %c20_543 = arith.constant 20 : index
    %c0_544 = arith.constant 0 : index
    %458 = tpu.strided_load %457[%c20_543, %c0_544] {strides = array<i32: 2, 1>} : memref<80x16xf32, #tpu.memory_space<vmem>>, vector<4x16xf32>
    %c0_i32_545 = arith.constant 0 : i32
    %c0_i32_546 = arith.constant 0 : i32
    %c0_i32_547 = arith.constant 0 : i32
    %459 = tpu.memref_slice %arg19[%c0_i32_545, %c0_i32_546, %c0_i32_547] : memref<1x80x16xf32, #tpu.memory_space<vmem>> -> memref<1x80x16xf32, #tpu.memory_space<vmem>>
    %460 = tpu.memref_squeeze %459 : memref<1x80x16xf32, #tpu.memory_space<vmem>> -> memref<80x16xf32, #tpu.memory_space<vmem>>
    %c21_548 = arith.constant 21 : index
    %c0_549 = arith.constant 0 : index
    %461 = tpu.strided_load %460[%c21_548, %c0_549] {strides = array<i32: 2, 1>} : memref<80x16xf32, #tpu.memory_space<vmem>>, vector<4x16xf32>
    %c0_i32_550 = arith.constant 0 : i32
    %c0_i32_551 = arith.constant 0 : i32
    %c0_i32_552 = arith.constant 0 : i32
    %462 = tpu.memref_slice %arg19[%c0_i32_550, %c0_i32_551, %c0_i32_552] : memref<1x80x16xf32, #tpu.memory_space<vmem>> -> memref<1x80x16xf32, #tpu.memory_space<vmem>>
    %463 = tpu.memref_squeeze %462 : memref<1x80x16xf32, #tpu.memory_space<vmem>> -> memref<80x16xf32, #tpu.memory_space<vmem>>
    %c30 = arith.constant 30 : index
    %c0_553 = arith.constant 0 : index
    %464 = tpu.strided_load %463[%c30, %c0_553] {strides = array<i32: 2, 1>} : memref<80x16xf32, #tpu.memory_space<vmem>>, vector<4x16xf32>
    %c0_i32_554 = arith.constant 0 : i32
    %c0_i32_555 = arith.constant 0 : i32
    %c0_i32_556 = arith.constant 0 : i32
    %465 = tpu.memref_slice %arg19[%c0_i32_554, %c0_i32_555, %c0_i32_556] : memref<1x80x16xf32, #tpu.memory_space<vmem>> -> memref<1x80x16xf32, #tpu.memory_space<vmem>>
    %466 = tpu.memref_squeeze %465 : memref<1x80x16xf32, #tpu.memory_space<vmem>> -> memref<80x16xf32, #tpu.memory_space<vmem>>
    %c31_557 = arith.constant 31 : index
    %c0_558 = arith.constant 0 : index
    %467 = tpu.strided_load %466[%c31_557, %c0_558] {strides = array<i32: 2, 1>} : memref<80x16xf32, #tpu.memory_space<vmem>>, vector<4x16xf32>
    %468 = arith.maximumf %458, %461 : vector<4x16xf32>
    %469 = arith.maximumf %464, %467 : vector<4x16xf32>
    %470 = arith.maximumf %468, %469 : vector<4x16xf32>
    %c13_559 = arith.constant 13 : index
    %c0_560 = arith.constant 0 : index
    %471 = vector.load %arg26[%c13_559, %c0_560] : memref<38x16xf32, #tpu.memory_space<vmem>>, vector<4x16xf32>
    tpu.vector_store %arg26[%c13_559, %c0_560], %470 {strides = array<i32>} : memref<38x16xf32, #tpu.memory_space<vmem>>, vector<4x16xf32>,
    %c0_i32_561 = arith.constant 0 : i32
    %c0_i32_562 = arith.constant 0 : i32
    %c0_i32_563 = arith.constant 0 : i32
    %472 = tpu.memref_slice %arg19[%c0_i32_561, %c0_i32_562, %c0_i32_563] : memref<1x80x16xf32, #tpu.memory_space<vmem>> -> memref<1x80x16xf32, #tpu.memory_space<vmem>>
    %473 = tpu.memref_squeeze %472 : memref<1x80x16xf32, #tpu.memory_space<vmem>> -> memref<80x16xf32, #tpu.memory_space<vmem>>
    %c40 = arith.constant 40 : index
    %c0_564 = arith.constant 0 : index
    %474 = tpu.strided_load %473[%c40, %c0_564] {strides = array<i32: 2, 1>} : memref<80x16xf32, #tpu.memory_space<vmem>>, vector<4x16xf32>
    %c0_i32_565 = arith.constant 0 : i32
    %c0_i32_566 = arith.constant 0 : i32
    %c0_i32_567 = arith.constant 0 : i32
    %475 = tpu.memref_slice %arg19[%c0_i32_565, %c0_i32_566, %c0_i32_567] : memref<1x80x16xf32, #tpu.memory_space<vmem>> -> memref<1x80x16xf32, #tpu.memory_space<vmem>>
    %476 = tpu.memref_squeeze %475 : memref<1x80x16xf32, #tpu.memory_space<vmem>> -> memref<80x16xf32, #tpu.memory_space<vmem>>
    %c41_568 = arith.constant 41 : index
    %c0_569 = arith.constant 0 : index
    %477 = tpu.strided_load %476[%c41_568, %c0_569] {strides = array<i32: 2, 1>} : memref<80x16xf32, #tpu.memory_space<vmem>>, vector<4x16xf32>
    %c0_i32_570 = arith.constant 0 : i32
    %c0_i32_571 = arith.constant 0 : i32
    %c0_i32_572 = arith.constant 0 : i32
    %478 = tpu.memref_slice %arg19[%c0_i32_570, %c0_i32_571, %c0_i32_572] : memref<1x80x16xf32, #tpu.memory_space<vmem>> -> memref<1x80x16xf32, #tpu.memory_space<vmem>>
    %479 = tpu.memref_squeeze %478 : memref<1x80x16xf32, #tpu.memory_space<vmem>> -> memref<80x16xf32, #tpu.memory_space<vmem>>
    %c50 = arith.constant 50 : index
    %c0_573 = arith.constant 0 : index
    %480 = tpu.strided_load %479[%c50, %c0_573] {strides = array<i32: 2, 1>} : memref<80x16xf32, #tpu.memory_space<vmem>>, vector<4x16xf32>
    %c0_i32_574 = arith.constant 0 : i32
    %c0_i32_575 = arith.constant 0 : i32
    %c0_i32_576 = arith.constant 0 : i32
    %481 = tpu.memref_slice %arg19[%c0_i32_574, %c0_i32_575, %c0_i32_576] : memref<1x80x16xf32, #tpu.memory_space<vmem>> -> memref<1x80x16xf32, #tpu.memory_space<vmem>>
    %482 = tpu.memref_squeeze %481 : memref<1x80x16xf32, #tpu.memory_space<vmem>> -> memref<80x16xf32, #tpu.memory_space<vmem>>
    %c51_577 = arith.constant 51 : index
    %c0_578 = arith.constant 0 : index
    %483 = tpu.strided_load %482[%c51_577, %c0_578] {strides = array<i32: 2, 1>} : memref<80x16xf32, #tpu.memory_space<vmem>>, vector<4x16xf32>
    %484 = arith.maximumf %474, %477 : vector<4x16xf32>
    %485 = arith.maximumf %480, %483 : vector<4x16xf32>
    %486 = arith.maximumf %484, %485 : vector<4x16xf32>
    %c19_579 = arith.constant 19 : index
    %c0_580 = arith.constant 0 : index
    %487 = vector.load %arg26[%c19_579, %c0_580] : memref<38x16xf32, #tpu.memory_space<vmem>>, vector<4x16xf32>
    tpu.vector_store %arg26[%c19_579, %c0_580], %486 {strides = array<i32>} : memref<38x16xf32, #tpu.memory_space<vmem>>, vector<4x16xf32>,
    %c0_i32_581 = arith.constant 0 : i32
    %c0_i32_582 = arith.constant 0 : i32
    %c0_i32_583 = arith.constant 0 : i32
    %488 = tpu.memref_slice %arg19[%c0_i32_581, %c0_i32_582, %c0_i32_583] : memref<1x80x16xf32, #tpu.memory_space<vmem>> -> memref<1x80x16xf32, #tpu.memory_space<vmem>>
    %489 = tpu.memref_squeeze %488 : memref<1x80x16xf32, #tpu.memory_space<vmem>> -> memref<80x16xf32, #tpu.memory_space<vmem>>
    %c60 = arith.constant 60 : index
    %c0_584 = arith.constant 0 : index
    %490 = tpu.strided_load %489[%c60, %c0_584] {strides = array<i32: 2, 1>} : memref<80x16xf32, #tpu.memory_space<vmem>>, vector<4x16xf32>
    %c0_i32_585 = arith.constant 0 : i32
    %c0_i32_586 = arith.constant 0 : i32
    %c0_i32_587 = arith.constant 0 : i32
    %491 = tpu.memref_slice %arg19[%c0_i32_585, %c0_i32_586, %c0_i32_587] : memref<1x80x16xf32, #tpu.memory_space<vmem>> -> memref<1x80x16xf32, #tpu.memory_space<vmem>>
    %492 = tpu.memref_squeeze %491 : memref<1x80x16xf32, #tpu.memory_space<vmem>> -> memref<80x16xf32, #tpu.memory_space<vmem>>
    %c61_588 = arith.constant 61 : index
    %c0_589 = arith.constant 0 : index
    %493 = tpu.strided_load %492[%c61_588, %c0_589] {strides = array<i32: 2, 1>} : memref<80x16xf32, #tpu.memory_space<vmem>>, vector<4x16xf32>
    %c0_i32_590 = arith.constant 0 : i32
    %c0_i32_591 = arith.constant 0 : i32
    %c0_i32_592 = arith.constant 0 : i32
    %494 = tpu.memref_slice %arg19[%c0_i32_590, %c0_i32_591, %c0_i32_592] : memref<1x80x16xf32, #tpu.memory_space<vmem>> -> memref<1x80x16xf32, #tpu.memory_space<vmem>>
    %495 = tpu.memref_squeeze %494 : memref<1x80x16xf32, #tpu.memory_space<vmem>> -> memref<80x16xf32, #tpu.memory_space<vmem>>
    %c70 = arith.constant 70 : index
    %c0_593 = arith.constant 0 : index
    %496 = tpu.strided_load %495[%c70, %c0_593] {strides = array<i32: 2, 1>} : memref<80x16xf32, #tpu.memory_space<vmem>>, vector<4x16xf32>
    %c0_i32_594 = arith.constant 0 : i32
    %c0_i32_595 = arith.constant 0 : i32
    %c0_i32_596 = arith.constant 0 : i32
    %497 = tpu.memref_slice %arg19[%c0_i32_594, %c0_i32_595, %c0_i32_596] : memref<1x80x16xf32, #tpu.memory_space<vmem>> -> memref<1x80x16xf32, #tpu.memory_space<vmem>>
    %498 = tpu.memref_squeeze %497 : memref<1x80x16xf32, #tpu.memory_space<vmem>> -> memref<80x16xf32, #tpu.memory_space<vmem>>
    %c71_597 = arith.constant 71 : index
    %c0_598 = arith.constant 0 : index
    %499 = tpu.strided_load %498[%c71_597, %c0_598] {strides = array<i32: 2, 1>} : memref<80x16xf32, #tpu.memory_space<vmem>>, vector<4x16xf32>
    %500 = arith.maximumf %490, %493 : vector<4x16xf32>
    %501 = arith.maximumf %496, %499 : vector<4x16xf32>
    %502 = arith.maximumf %500, %501 : vector<4x16xf32>
    %c25 = arith.constant 25 : index
    %c0_599 = arith.constant 0 : index
    %503 = vector.load %arg26[%c25, %c0_599] : memref<38x16xf32, #tpu.memory_space<vmem>>, vector<4x16xf32>
    tpu.vector_store %arg26[%c25, %c0_599], %502 {strides = array<i32>} : memref<38x16xf32, #tpu.memory_space<vmem>>, vector<4x16xf32>,
    %cst_600 = arith.constant 0.000000e+00 : f32
    %504 = vector.broadcast %cst_600 : f32 to vector<7x32xf32>
    %c0_601 = arith.constant 0 : index
    %c0_602 = arith.constant 0 : index
    %505 = vector.load %arg27[%c0_601, %c0_602] : memref<38x32xf32, #tpu.memory_space<vmem>>, vector<7x32xf32>
    tpu.vector_store %arg27[%c0_601, %c0_602], %504 {strides = array<i32>} : memref<38x32xf32, #tpu.memory_space<vmem>>, vector<7x32xf32>,
    %cst_603 = arith.constant 0.000000e+00 : f32
    %506 = vector.broadcast %cst_603 : f32 to vector<7x32xf32>
    %c31_604 = arith.constant 31 : index
    %c0_605 = arith.constant 0 : index
    %507 = vector.load %arg27[%c31_604, %c0_605] : memref<38x32xf32, #tpu.memory_space<vmem>>, vector<7x32xf32>
    tpu.vector_store %arg27[%c31_604, %c0_605], %506 {strides = array<i32>} : memref<38x32xf32, #tpu.memory_space<vmem>>, vector<7x32xf32>,
    %508 = tpu.iota {dimensions = array<i32: 0>} : vector<24x1xi32>
    %c6_i32 = arith.constant 6 : i32
    %c0_i32_606 = arith.constant 0 : i32
    %509 = arith.cmpi eq, %c6_i32, %c0_i32_606 : i32
    %c1_i32_607 = arith.constant 1 : i32
    %510 = arith.select %509, %c1_i32_607, %c6_i32 : i32
    %511 = vector.broadcast %510 : i32 to vector<24x1xi32>
    %512 = arith.remsi %508, %511 : vector<24x1xi32>
    %c0_i32_608 = arith.constant 0 : i32
    %513 = vector.broadcast %c0_i32_608 : i32 to vector<24x1xi32>
    %514 = arith.cmpi ne, %512, %513 : vector<24x1xi32>
    %c0_i32_609 = arith.constant 0 : i32
    %515 = vector.broadcast %c0_i32_609 : i32 to vector<24x1xi32>
    %516 = arith.cmpi slt, %512, %515 : vector<24x1xi32>
    %c0_i32_610 = arith.constant 0 : i32
    %517 = arith.cmpi slt, %510, %c0_i32_610 : i32
    %518 = vector.broadcast %517 : i1 to vector<24x1xi1>
    %519 = vector.broadcast %518 : vector<24x1xi1> to vector<24x1xi1>
    %520 = arith.xori %516, %519 : vector<24x1xi1>
    %521 = arith.andi %520, %514 : vector<24x1xi1>
    %522 = vector.broadcast %510 : i32 to vector<24x1xi32>
    %523 = arith.addi %512, %522 : vector<24x1xi32>
    %524 = arith.select %521, %523, %512 : vector<24x1xi1>, vector<24x1xi32>
    %c4_i32 = arith.constant 4 : i32
    %525 = vector.broadcast %c4_i32 : i32 to vector<24x1xi32>
    %526 = arith.cmpi slt, %524, %525 : vector<24x1xi32>
    %c0_611 = arith.constant 0 : index
    %c0_612 = arith.constant 0 : index
    %527 = vector.load %arg26[%c0_611, %c0_612] : memref<38x16xf32, #tpu.memory_space<vmem>>, vector<24x16xf32>
    %c0_613 = arith.constant 0 : index
    %c0_614 = arith.constant 0 : index
    %c0_615 = arith.constant 0 : index
    %c0_616 = arith.constant 0 : index
    %528 = vector.load %arg10[%c0_613, %c0_614, %c0_615, %c0_616] : memref<3x3x16x32xf32, #tpu.memory_space<vmem>>, vector<1x1x16x32xf32>
    %529 = vector.shape_cast %528 : vector<1x1x16x32xf32> to vector<16x32xf32>
    %cst_617 = arith.constant dense<0.000000e+00> : vector<24x32xf32>
    %530 = tpu.matmul %527, %529, %cst_617 {dimension_numbers = #tpu.dot_dimension_numbers<[1], [0], [0], [1], [0, 0, 1, 1], [], []>} : vector<24x16xf32>, vector<16x32xf32>, vector<24x32xf32> -> vector<24x32xf32>
    %c1_618 = arith.constant 1 : index
    %c0_619 = arith.constant 0 : index
    %531 = vector.load %arg26[%c1_618, %c0_619] : memref<38x16xf32, #tpu.memory_space<vmem>>, vector<24x16xf32>
    %c0_620 = arith.constant 0 : index
    %c1_621 = arith.constant 1 : index
    %c0_622 = arith.constant 0 : index
    %c0_623 = arith.constant 0 : index
    %532 = vector.load %arg10[%c0_620, %c1_621, %c0_622, %c0_623] : memref<3x3x16x32xf32, #tpu.memory_space<vmem>>, vector<1x1x16x32xf32>
    %533 = vector.shape_cast %532 : vector<1x1x16x32xf32> to vector<16x32xf32>
    %cst_624 = arith.constant dense<0.000000e+00> : vector<24x32xf32>
    %534 = tpu.matmul %531, %533, %cst_624 {dimension_numbers = #tpu.dot_dimension_numbers<[1], [0], [0], [1], [0, 0, 1, 1], [], []>} : vector<24x16xf32>, vector<16x32xf32>, vector<24x32xf32> -> vector<24x32xf32>
    %535 = arith.addf %530, %534 : vector<24x32xf32>
    %c2_625 = arith.constant 2 : index
    %c0_626 = arith.constant 0 : index
    %536 = vector.load %arg26[%c2_625, %c0_626] : memref<38x16xf32, #tpu.memory_space<vmem>>, vector<24x16xf32>
    %c0_627 = arith.constant 0 : index
    %c2_628 = arith.constant 2 : index
    %c0_629 = arith.constant 0 : index
    %c0_630 = arith.constant 0 : index
    %537 = vector.load %arg10[%c0_627, %c2_628, %c0_629, %c0_630] : memref<3x3x16x32xf32, #tpu.memory_space<vmem>>, vector<1x1x16x32xf32>
    %538 = vector.shape_cast %537 : vector<1x1x16x32xf32> to vector<16x32xf32>
    %cst_631 = arith.constant dense<0.000000e+00> : vector<24x32xf32>
    %539 = tpu.matmul %536, %538, %cst_631 {dimension_numbers = #tpu.dot_dimension_numbers<[1], [0], [0], [1], [0, 0, 1, 1], [], []>} : vector<24x16xf32>, vector<16x32xf32>, vector<24x32xf32> -> vector<24x32xf32>
    %540 = arith.addf %535, %539 : vector<24x32xf32>
    %c6_632 = arith.constant 6 : index
    %c0_633 = arith.constant 0 : index
    %541 = vector.load %arg26[%c6_632, %c0_633] : memref<38x16xf32, #tpu.memory_space<vmem>>, vector<24x16xf32>
    %c1_634 = arith.constant 1 : index
    %c0_635 = arith.constant 0 : index
    %c0_636 = arith.constant 0 : index
    %c0_637 = arith.constant 0 : index
    %542 = vector.load %arg10[%c1_634, %c0_635, %c0_636, %c0_637] : memref<3x3x16x32xf32, #tpu.memory_space<vmem>>, vector<1x1x16x32xf32>
    %543 = vector.shape_cast %542 : vector<1x1x16x32xf32> to vector<16x32xf32>
    %cst_638 = arith.constant dense<0.000000e+00> : vector<24x32xf32>
    %544 = tpu.matmul %541, %543, %cst_638 {dimension_numbers = #tpu.dot_dimension_numbers<[1], [0], [0], [1], [0, 0, 1, 1], [], []>} : vector<24x16xf32>, vector<16x32xf32>, vector<24x32xf32> -> vector<24x32xf32>
    %545 = arith.addf %540, %544 : vector<24x32xf32>
    %c7_639 = arith.constant 7 : index
    %c0_640 = arith.constant 0 : index
    %546 = vector.load %arg26[%c7_639, %c0_640] : memref<38x16xf32, #tpu.memory_space<vmem>>, vector<24x16xf32>
    %c1_641 = arith.constant 1 : index
    %c1_642 = arith.constant 1 : index
    %c0_643 = arith.constant 0 : index
    %c0_644 = arith.constant 0 : index
    %547 = vector.load %arg10[%c1_641, %c1_642, %c0_643, %c0_644] : memref<3x3x16x32xf32, #tpu.memory_space<vmem>>, vector<1x1x16x32xf32>
    %548 = vector.shape_cast %547 : vector<1x1x16x32xf32> to vector<16x32xf32>
    %cst_645 = arith.constant dense<0.000000e+00> : vector<24x32xf32>
    %549 = tpu.matmul %546, %548, %cst_645 {dimension_numbers = #tpu.dot_dimension_numbers<[1], [0], [0], [1], [0, 0, 1, 1], [], []>} : vector<24x16xf32>, vector<16x32xf32>, vector<24x32xf32> -> vector<24x32xf32>
    %550 = arith.addf %545, %549 : vector<24x32xf32>
    %c8_646 = arith.constant 8 : index
    %c0_647 = arith.constant 0 : index
    %551 = vector.load %arg26[%c8_646, %c0_647] : memref<38x16xf32, #tpu.memory_space<vmem>>, vector<24x16xf32>
    %c1_648 = arith.constant 1 : index
    %c2_649 = arith.constant 2 : index
    %c0_650 = arith.constant 0 : index
    %c0_651 = arith.constant 0 : index
    %552 = vector.load %arg10[%c1_648, %c2_649, %c0_650, %c0_651] : memref<3x3x16x32xf32, #tpu.memory_space<vmem>>, vector<1x1x16x32xf32>
    %553 = vector.shape_cast %552 : vector<1x1x16x32xf32> to vector<16x32xf32>
    %cst_652 = arith.constant dense<0.000000e+00> : vector<24x32xf32>
    %554 = tpu.matmul %551, %553, %cst_652 {dimension_numbers = #tpu.dot_dimension_numbers<[1], [0], [0], [1], [0, 0, 1, 1], [], []>} : vector<24x16xf32>, vector<16x32xf32>, vector<24x32xf32> -> vector<24x32xf32>
    %555 = arith.addf %550, %554 : vector<24x32xf32>
    %c12_653 = arith.constant 12 : index
    %c0_654 = arith.constant 0 : index
    %556 = vector.load %arg26[%c12_653, %c0_654] : memref<38x16xf32, #tpu.memory_space<vmem>>, vector<24x16xf32>
    %c2_655 = arith.constant 2 : index
    %c0_656 = arith.constant 0 : index
    %c0_657 = arith.constant 0 : index
    %c0_658 = arith.constant 0 : index
    %557 = vector.load %arg10[%c2_655, %c0_656, %c0_657, %c0_658] : memref<3x3x16x32xf32, #tpu.memory_space<vmem>>, vector<1x1x16x32xf32>
    %558 = vector.shape_cast %557 : vector<1x1x16x32xf32> to vector<16x32xf32>
    %cst_659 = arith.constant dense<0.000000e+00> : vector<24x32xf32>
    %559 = tpu.matmul %556, %558, %cst_659 {dimension_numbers = #tpu.dot_dimension_numbers<[1], [0], [0], [1], [0, 0, 1, 1], [], []>} : vector<24x16xf32>, vector<16x32xf32>, vector<24x32xf32> -> vector<24x32xf32>
    %560 = arith.addf %555, %559 : vector<24x32xf32>
    %c13_660 = arith.constant 13 : index
    %c0_661 = arith.constant 0 : index
    %561 = vector.load %arg26[%c13_660, %c0_661] : memref<38x16xf32, #tpu.memory_space<vmem>>, vector<24x16xf32>
    %c2_662 = arith.constant 2 : index
    %c1_663 = arith.constant 1 : index
    %c0_664 = arith.constant 0 : index
    %c0_665 = arith.constant 0 : index
    %562 = vector.load %arg10[%c2_662, %c1_663, %c0_664, %c0_665] : memref<3x3x16x32xf32, #tpu.memory_space<vmem>>, vector<1x1x16x32xf32>
    %563 = vector.shape_cast %562 : vector<1x1x16x32xf32> to vector<16x32xf32>
    %cst_666 = arith.constant dense<0.000000e+00> : vector<24x32xf32>
    %564 = tpu.matmul %561, %563, %cst_666 {dimension_numbers = #tpu.dot_dimension_numbers<[1], [0], [0], [1], [0, 0, 1, 1], [], []>} : vector<24x16xf32>, vector<16x32xf32>, vector<24x32xf32> -> vector<24x32xf32>
    %565 = arith.addf %560, %564 : vector<24x32xf32>
    %c14_667 = arith.constant 14 : index
    %c0_668 = arith.constant 0 : index
    %566 = vector.load %arg26[%c14_667, %c0_668] : memref<38x16xf32, #tpu.memory_space<vmem>>, vector<24x16xf32>
    %c2_669 = arith.constant 2 : index
    %c2_670 = arith.constant 2 : index
    %c0_671 = arith.constant 0 : index
    %c0_672 = arith.constant 0 : index
    %567 = vector.load %arg10[%c2_669, %c2_670, %c0_671, %c0_672] : memref<3x3x16x32xf32, #tpu.memory_space<vmem>>, vector<1x1x16x32xf32>
    %568 = vector.shape_cast %567 : vector<1x1x16x32xf32> to vector<16x32xf32>
    %cst_673 = arith.constant dense<0.000000e+00> : vector<24x32xf32>
    %569 = tpu.matmul %566, %568, %cst_673 {dimension_numbers = #tpu.dot_dimension_numbers<[1], [0], [0], [1], [0, 0, 1, 1], [], []>} : vector<24x16xf32>, vector<16x32xf32>, vector<24x32xf32> -> vector<24x32xf32>
    %570 = arith.addf %565, %569 : vector<24x32xf32>
    %c0_674 = arith.constant 0 : index
    %c0_675 = arith.constant 0 : index
    %571 = vector.load %arg11[%c0_674, %c0_675] : memref<1x32xf32, #tpu.memory_space<vmem>>, vector<1x32xf32>
    %572 = vector.broadcast %571 : vector<1x32xf32> to vector<24x32xf32>
    %573 = arith.addf %570, %572 : vector<24x32xf32>
    %cst_676 = arith.constant 0.000000e+00 : f32
    %574 = vector.broadcast %cst_676 : f32 to vector<24x32xf32>
    %575 = arith.maximumf %573, %574 : vector<24x32xf32>
    %cst_677 = arith.constant 0.000000e+00 : f32
    %576 = vector.shape_cast %526 : vector<24x1xi1> to vector<24x1xi1>
    %577 = vector.broadcast %576 : vector<24x1xi1> to vector<24x32xi1>
    %578 = vector.broadcast %cst_677 : f32 to vector<24x32xf32>
    %579 = arith.select %577, %575, %578 : vector<24x32xi1>, vector<24x32xf32>
    %c7_678 = arith.constant 7 : index
    %c0_679 = arith.constant 0 : index
    %580 = vector.load %arg27[%c7_678, %c0_679] : memref<38x32xf32, #tpu.memory_space<vmem>>, vector<24x32xf32>
    tpu.vector_store %arg27[%c7_678, %c0_679], %579 {strides = array<i32>} : memref<38x32xf32, #tpu.memory_space<vmem>>, vector<24x32xf32>,
    %c0_680 = arith.constant 0 : index
    %c0_681 = arith.constant 0 : index
    %581 = vector.load %arg27[%c0_680, %c0_681] : memref<38x32xf32, #tpu.memory_space<vmem>>, vector<24x32xf32>
    %c0_682 = arith.constant 0 : index
    %c0_683 = arith.constant 0 : index
    %c0_684 = arith.constant 0 : index
    %c0_685 = arith.constant 0 : index
    %582 = vector.load %arg12[%c0_682, %c0_683, %c0_684, %c0_685] : memref<3x3x32x32xf32, #tpu.memory_space<vmem>>, vector<1x1x32x32xf32>
    %583 = vector.shape_cast %582 : vector<1x1x32x32xf32> to vector<32x32xf32>
    %cst_686 = arith.constant dense<0.000000e+00> : vector<24x32xf32>
    %584 = tpu.matmul %581, %583, %cst_686 {dimension_numbers = #tpu.dot_dimension_numbers<[1], [0], [0], [1], [0, 0, 1, 1], [], []>} : vector<24x32xf32>, vector<32x32xf32>, vector<24x32xf32> -> vector<24x32xf32>
    %c1_687 = arith.constant 1 : index
    %c0_688 = arith.constant 0 : index
    %585 = vector.load %arg27[%c1_687, %c0_688] : memref<38x32xf32, #tpu.memory_space<vmem>>, vector<24x32xf32>
    %c0_689 = arith.constant 0 : index
    %c1_690 = arith.constant 1 : index
    %c0_691 = arith.constant 0 : index
    %c0_692 = arith.constant 0 : index
    %586 = vector.load %arg12[%c0_689, %c1_690, %c0_691, %c0_692] : memref<3x3x32x32xf32, #tpu.memory_space<vmem>>, vector<1x1x32x32xf32>
    %587 = vector.shape_cast %586 : vector<1x1x32x32xf32> to vector<32x32xf32>
    %cst_693 = arith.constant dense<0.000000e+00> : vector<24x32xf32>
    %588 = tpu.matmul %585, %587, %cst_693 {dimension_numbers = #tpu.dot_dimension_numbers<[1], [0], [0], [1], [0, 0, 1, 1], [], []>} : vector<24x32xf32>, vector<32x32xf32>, vector<24x32xf32> -> vector<24x32xf32>
    %589 = arith.addf %584, %588 : vector<24x32xf32>
    %c2_694 = arith.constant 2 : index
    %c0_695 = arith.constant 0 : index
    %590 = vector.load %arg27[%c2_694, %c0_695] : memref<38x32xf32, #tpu.memory_space<vmem>>, vector<24x32xf32>
    %c0_696 = arith.constant 0 : index
    %c2_697 = arith.constant 2 : index
    %c0_698 = arith.constant 0 : index
    %c0_699 = arith.constant 0 : index
    %591 = vector.load %arg12[%c0_696, %c2_697, %c0_698, %c0_699] : memref<3x3x32x32xf32, #tpu.memory_space<vmem>>, vector<1x1x32x32xf32>
    %592 = vector.shape_cast %591 : vector<1x1x32x32xf32> to vector<32x32xf32>
    %cst_700 = arith.constant dense<0.000000e+00> : vector<24x32xf32>
    %593 = tpu.matmul %590, %592, %cst_700 {dimension_numbers = #tpu.dot_dimension_numbers<[1], [0], [0], [1], [0, 0, 1, 1], [], []>} : vector<24x32xf32>, vector<32x32xf32>, vector<24x32xf32> -> vector<24x32xf32>
    %594 = arith.addf %589, %593 : vector<24x32xf32>
    %c6_701 = arith.constant 6 : index
    %c0_702 = arith.constant 0 : index
    %595 = vector.load %arg27[%c6_701, %c0_702] : memref<38x32xf32, #tpu.memory_space<vmem>>, vector<24x32xf32>
    %c1_703 = arith.constant 1 : index
    %c0_704 = arith.constant 0 : index
    %c0_705 = arith.constant 0 : index
    %c0_706 = arith.constant 0 : index
    %596 = vector.load %arg12[%c1_703, %c0_704, %c0_705, %c0_706] : memref<3x3x32x32xf32, #tpu.memory_space<vmem>>, vector<1x1x32x32xf32>
    %597 = vector.shape_cast %596 : vector<1x1x32x32xf32> to vector<32x32xf32>
    %cst_707 = arith.constant dense<0.000000e+00> : vector<24x32xf32>
    %598 = tpu.matmul %595, %597, %cst_707 {dimension_numbers = #tpu.dot_dimension_numbers<[1], [0], [0], [1], [0, 0, 1, 1], [], []>} : vector<24x32xf32>, vector<32x32xf32>, vector<24x32xf32> -> vector<24x32xf32>
    %599 = arith.addf %594, %598 : vector<24x32xf32>
    %c7_708 = arith.constant 7 : index
    %c0_709 = arith.constant 0 : index
    %600 = vector.load %arg27[%c7_708, %c0_709] : memref<38x32xf32, #tpu.memory_space<vmem>>, vector<24x32xf32>
    %c1_710 = arith.constant 1 : index
    %c1_711 = arith.constant 1 : index
    %c0_712 = arith.constant 0 : index
    %c0_713 = arith.constant 0 : index
    %601 = vector.load %arg12[%c1_710, %c1_711, %c0_712, %c0_713] : memref<3x3x32x32xf32, #tpu.memory_space<vmem>>, vector<1x1x32x32xf32>
    %602 = vector.shape_cast %601 : vector<1x1x32x32xf32> to vector<32x32xf32>
    %cst_714 = arith.constant dense<0.000000e+00> : vector<24x32xf32>
    %603 = tpu.matmul %600, %602, %cst_714 {dimension_numbers = #tpu.dot_dimension_numbers<[1], [0], [0], [1], [0, 0, 1, 1], [], []>} : vector<24x32xf32>, vector<32x32xf32>, vector<24x32xf32> -> vector<24x32xf32>
    %604 = arith.addf %599, %603 : vector<24x32xf32>
    %c8_715 = arith.constant 8 : index
    %c0_716 = arith.constant 0 : index
    %605 = vector.load %arg27[%c8_715, %c0_716] : memref<38x32xf32, #tpu.memory_space<vmem>>, vector<24x32xf32>
    %c1_717 = arith.constant 1 : index
    %c2_718 = arith.constant 2 : index
    %c0_719 = arith.constant 0 : index
    %c0_720 = arith.constant 0 : index
    %606 = vector.load %arg12[%c1_717, %c2_718, %c0_719, %c0_720] : memref<3x3x32x32xf32, #tpu.memory_space<vmem>>, vector<1x1x32x32xf32>
    %607 = vector.shape_cast %606 : vector<1x1x32x32xf32> to vector<32x32xf32>
    %cst_721 = arith.constant dense<0.000000e+00> : vector<24x32xf32>
    %608 = tpu.matmul %605, %607, %cst_721 {dimension_numbers = #tpu.dot_dimension_numbers<[1], [0], [0], [1], [0, 0, 1, 1], [], []>} : vector<24x32xf32>, vector<32x32xf32>, vector<24x32xf32> -> vector<24x32xf32>
    %609 = arith.addf %604, %608 : vector<24x32xf32>
    %c12_722 = arith.constant 12 : index
    %c0_723 = arith.constant 0 : index
    %610 = vector.load %arg27[%c12_722, %c0_723] : memref<38x32xf32, #tpu.memory_space<vmem>>, vector<24x32xf32>
    %c2_724 = arith.constant 2 : index
    %c0_725 = arith.constant 0 : index
    %c0_726 = arith.constant 0 : index
    %c0_727 = arith.constant 0 : index
    %611 = vector.load %arg12[%c2_724, %c0_725, %c0_726, %c0_727] : memref<3x3x32x32xf32, #tpu.memory_space<vmem>>, vector<1x1x32x32xf32>
    %612 = vector.shape_cast %611 : vector<1x1x32x32xf32> to vector<32x32xf32>
    %cst_728 = arith.constant dense<0.000000e+00> : vector<24x32xf32>
    %613 = tpu.matmul %610, %612, %cst_728 {dimension_numbers = #tpu.dot_dimension_numbers<[1], [0], [0], [1], [0, 0, 1, 1], [], []>} : vector<24x32xf32>, vector<32x32xf32>, vector<24x32xf32> -> vector<24x32xf32>
    %614 = arith.addf %609, %613 : vector<24x32xf32>
    %c13_729 = arith.constant 13 : index
    %c0_730 = arith.constant 0 : index
    %615 = vector.load %arg27[%c13_729, %c0_730] : memref<38x32xf32, #tpu.memory_space<vmem>>, vector<24x32xf32>
    %c2_731 = arith.constant 2 : index
    %c1_732 = arith.constant 1 : index
    %c0_733 = arith.constant 0 : index
    %c0_734 = arith.constant 0 : index
    %616 = vector.load %arg12[%c2_731, %c1_732, %c0_733, %c0_734] : memref<3x3x32x32xf32, #tpu.memory_space<vmem>>, vector<1x1x32x32xf32>
    %617 = vector.shape_cast %616 : vector<1x1x32x32xf32> to vector<32x32xf32>
    %cst_735 = arith.constant dense<0.000000e+00> : vector<24x32xf32>
    %618 = tpu.matmul %615, %617, %cst_735 {dimension_numbers = #tpu.dot_dimension_numbers<[1], [0], [0], [1], [0, 0, 1, 1], [], []>} : vector<24x32xf32>, vector<32x32xf32>, vector<24x32xf32> -> vector<24x32xf32>
    %619 = arith.addf %614, %618 : vector<24x32xf32>
    %c14_736 = arith.constant 14 : index
    %c0_737 = arith.constant 0 : index
    %620 = vector.load %arg27[%c14_736, %c0_737] : memref<38x32xf32, #tpu.memory_space<vmem>>, vector<24x32xf32>
    %c2_738 = arith.constant 2 : index
    %c2_739 = arith.constant 2 : index
    %c0_740 = arith.constant 0 : index
    %c0_741 = arith.constant 0 : index
    %621 = vector.load %arg12[%c2_738, %c2_739, %c0_740, %c0_741] : memref<3x3x32x32xf32, #tpu.memory_space<vmem>>, vector<1x1x32x32xf32>
    %622 = vector.shape_cast %621 : vector<1x1x32x32xf32> to vector<32x32xf32>
    %cst_742 = arith.constant dense<0.000000e+00> : vector<24x32xf32>
    %623 = tpu.matmul %620, %622, %cst_742 {dimension_numbers = #tpu.dot_dimension_numbers<[1], [0], [0], [1], [0, 0, 1, 1], [], []>} : vector<24x32xf32>, vector<32x32xf32>, vector<24x32xf32> -> vector<24x32xf32>
    %624 = arith.addf %619, %623 : vector<24x32xf32>
    %c0_743 = arith.constant 0 : index
    %c0_744 = arith.constant 0 : index
    %625 = vector.load %arg13[%c0_743, %c0_744] : memref<1x32xf32, #tpu.memory_space<vmem>>, vector<1x32xf32>
    %626 = vector.broadcast %625 : vector<1x32xf32> to vector<24x32xf32>
    %627 = arith.addf %624, %626 : vector<24x32xf32>
    %cst_745 = arith.constant 0.000000e+00 : f32
    %628 = vector.broadcast %cst_745 : f32 to vector<24x32xf32>
    %629 = arith.maximumf %627, %628 : vector<24x32xf32>
    %c0_746 = arith.constant 0 : index
    %c0_747 = arith.constant 0 : index
    %c0_748 = arith.constant 0 : index
    %630 = vector.load %arg20[%c0_746, %c0_747, %c0_748] : memref<1x24x32xf32, #tpu.memory_space<vmem>>, vector<1x24x32xf32>
    %631 = vector.shape_cast %630 : vector<1x24x32xf32> to vector<24x32xf32>
    %632 = vector.shape_cast %629 : vector<24x32xf32> to vector<1x24x32xf32>
    tpu.vector_store %arg20[%c0_746, %c0_747, %c0_748], %632 {strides = array<i32>} : memref<1x24x32xf32, #tpu.memory_space<vmem>>, vector<1x24x32xf32>,
    %cst_749 = arith.constant 0.000000e+00 : f32
    %633 = vector.broadcast %cst_749 : f32 to vector<18x32xf32>
    %c0_750 = arith.constant 0 : index
    %c0_751 = arith.constant 0 : index
    %634 = vector.load %arg28[%c0_750, %c0_751] : memref<18x32xf32, #tpu.memory_space<vmem>>, vector<18x32xf32>
    tpu.vector_store %arg28[%c0_750, %c0_751], %633 {strides = array<i32>} : memref<18x32xf32, #tpu.memory_space<vmem>>, vector<18x32xf32>,
    %c0_i32_752 = arith.constant 0 : i32
    %c0_i32_753 = arith.constant 0 : i32
    %c0_i32_754 = arith.constant 0 : i32
    %635 = tpu.memref_slice %arg20[%c0_i32_752, %c0_i32_753, %c0_i32_754] : memref<1x24x32xf32, #tpu.memory_space<vmem>> -> memref<1x24x32xf32, #tpu.memory_space<vmem>>
    %636 = tpu.memref_squeeze %635 : memref<1x24x32xf32, #tpu.memory_space<vmem>> -> memref<24x32xf32, #tpu.memory_space<vmem>>
    %c0_755 = arith.constant 0 : index
    %c0_756 = arith.constant 0 : index
    %637 = tpu.strided_load %636[%c0_755, %c0_756] {strides = array<i32: 2, 1>} : memref<24x32xf32, #tpu.memory_space<vmem>>, vector<2x32xf32>
    %c0_i32_757 = arith.constant 0 : i32
    %c0_i32_758 = arith.constant 0 : i32
    %c0_i32_759 = arith.constant 0 : i32
    %638 = tpu.memref_slice %arg20[%c0_i32_757, %c0_i32_758, %c0_i32_759] : memref<1x24x32xf32, #tpu.memory_space<vmem>> -> memref<1x24x32xf32, #tpu.memory_space<vmem>>
    %639 = tpu.memref_squeeze %638 : memref<1x24x32xf32, #tpu.memory_space<vmem>> -> memref<24x32xf32, #tpu.memory_space<vmem>>
    %c1_760 = arith.constant 1 : index
    %c0_761 = arith.constant 0 : index
    %640 = tpu.strided_load %639[%c1_760, %c0_761] {strides = array<i32: 2, 1>} : memref<24x32xf32, #tpu.memory_space<vmem>>, vector<2x32xf32>
    %c0_i32_762 = arith.constant 0 : i32
    %c0_i32_763 = arith.constant 0 : i32
    %c0_i32_764 = arith.constant 0 : i32
    %641 = tpu.memref_slice %arg20[%c0_i32_762, %c0_i32_763, %c0_i32_764] : memref<1x24x32xf32, #tpu.memory_space<vmem>> -> memref<1x24x32xf32, #tpu.memory_space<vmem>>
    %642 = tpu.memref_squeeze %641 : memref<1x24x32xf32, #tpu.memory_space<vmem>> -> memref<24x32xf32, #tpu.memory_space<vmem>>
    %c6_765 = arith.constant 6 : index
    %c0_766 = arith.constant 0 : index
    %643 = tpu.strided_load %642[%c6_765, %c0_766] {strides = array<i32: 2, 1>} : memref<24x32xf32, #tpu.memory_space<vmem>>, vector<2x32xf32>
    %c0_i32_767 = arith.constant 0 : i32
    %c0_i32_768 = arith.constant 0 : i32
    %c0_i32_769 = arith.constant 0 : i32
    %644 = tpu.memref_slice %arg20[%c0_i32_767, %c0_i32_768, %c0_i32_769] : memref<1x24x32xf32, #tpu.memory_space<vmem>> -> memref<1x24x32xf32, #tpu.memory_space<vmem>>
    %645 = tpu.memref_squeeze %644 : memref<1x24x32xf32, #tpu.memory_space<vmem>> -> memref<24x32xf32, #tpu.memory_space<vmem>>
    %c7_770 = arith.constant 7 : index
    %c0_771 = arith.constant 0 : index
    %646 = tpu.strided_load %645[%c7_770, %c0_771] {strides = array<i32: 2, 1>} : memref<24x32xf32, #tpu.memory_space<vmem>>, vector<2x32xf32>
    %647 = arith.maximumf %637, %640 : vector<2x32xf32>
    %648 = arith.maximumf %643, %646 : vector<2x32xf32>
    %649 = arith.maximumf %647, %648 : vector<2x32xf32>
    %c5_772 = arith.constant 5 : index
    %c0_773 = arith.constant 0 : index
    %650 = vector.load %arg28[%c5_772, %c0_773] : memref<18x32xf32, #tpu.memory_space<vmem>>, vector<2x32xf32>
    tpu.vector_store %arg28[%c5_772, %c0_773], %649 {strides = array<i32>} : memref<18x32xf32, #tpu.memory_space<vmem>>, vector<2x32xf32>,
    %c0_i32_774 = arith.constant 0 : i32
    %c0_i32_775 = arith.constant 0 : i32
    %c0_i32_776 = arith.constant 0 : i32
    %651 = tpu.memref_slice %arg20[%c0_i32_774, %c0_i32_775, %c0_i32_776] : memref<1x24x32xf32, #tpu.memory_space<vmem>> -> memref<1x24x32xf32, #tpu.memory_space<vmem>>
    %652 = tpu.memref_squeeze %651 : memref<1x24x32xf32, #tpu.memory_space<vmem>> -> memref<24x32xf32, #tpu.memory_space<vmem>>
    %c12_777 = arith.constant 12 : index
    %c0_778 = arith.constant 0 : index
    %653 = tpu.strided_load %652[%c12_777, %c0_778] {strides = array<i32: 2, 1>} : memref<24x32xf32, #tpu.memory_space<vmem>>, vector<2x32xf32>
    %c0_i32_779 = arith.constant 0 : i32
    %c0_i32_780 = arith.constant 0 : i32
    %c0_i32_781 = arith.constant 0 : i32
    %654 = tpu.memref_slice %arg20[%c0_i32_779, %c0_i32_780, %c0_i32_781] : memref<1x24x32xf32, #tpu.memory_space<vmem>> -> memref<1x24x32xf32, #tpu.memory_space<vmem>>
    %655 = tpu.memref_squeeze %654 : memref<1x24x32xf32, #tpu.memory_space<vmem>> -> memref<24x32xf32, #tpu.memory_space<vmem>>
    %c13_782 = arith.constant 13 : index
    %c0_783 = arith.constant 0 : index
    %656 = tpu.strided_load %655[%c13_782, %c0_783] {strides = array<i32: 2, 1>} : memref<24x32xf32, #tpu.memory_space<vmem>>, vector<2x32xf32>
    %c0_i32_784 = arith.constant 0 : i32
    %c0_i32_785 = arith.constant 0 : i32
    %c0_i32_786 = arith.constant 0 : i32
    %657 = tpu.memref_slice %arg20[%c0_i32_784, %c0_i32_785, %c0_i32_786] : memref<1x24x32xf32, #tpu.memory_space<vmem>> -> memref<1x24x32xf32, #tpu.memory_space<vmem>>
    %658 = tpu.memref_squeeze %657 : memref<1x24x32xf32, #tpu.memory_space<vmem>> -> memref<24x32xf32, #tpu.memory_space<vmem>>
    %c18_787 = arith.constant 18 : index
    %c0_788 = arith.constant 0 : index
    %659 = tpu.strided_load %658[%c18_787, %c0_788] {strides = array<i32: 2, 1>} : memref<24x32xf32, #tpu.memory_space<vmem>>, vector<2x32xf32>
    %c0_i32_789 = arith.constant 0 : i32
    %c0_i32_790 = arith.constant 0 : i32
    %c0_i32_791 = arith.constant 0 : i32
    %660 = tpu.memref_slice %arg20[%c0_i32_789, %c0_i32_790, %c0_i32_791] : memref<1x24x32xf32, #tpu.memory_space<vmem>> -> memref<1x24x32xf32, #tpu.memory_space<vmem>>
    %661 = tpu.memref_squeeze %660 : memref<1x24x32xf32, #tpu.memory_space<vmem>> -> memref<24x32xf32, #tpu.memory_space<vmem>>
    %c19_792 = arith.constant 19 : index
    %c0_793 = arith.constant 0 : index
    %662 = tpu.strided_load %661[%c19_792, %c0_793] {strides = array<i32: 2, 1>} : memref<24x32xf32, #tpu.memory_space<vmem>>, vector<2x32xf32>
    %663 = arith.maximumf %653, %656 : vector<2x32xf32>
    %664 = arith.maximumf %659, %662 : vector<2x32xf32>
    %665 = arith.maximumf %663, %664 : vector<2x32xf32>
    %c9_794 = arith.constant 9 : index
    %c0_795 = arith.constant 0 : index
    %666 = vector.load %arg28[%c9_794, %c0_795] : memref<18x32xf32, #tpu.memory_space<vmem>>, vector<2x32xf32>
    tpu.vector_store %arg28[%c9_794, %c0_795], %665 {strides = array<i32>} : memref<18x32xf32, #tpu.memory_space<vmem>>, vector<2x32xf32>,
    %cst_796 = arith.constant 0.000000e+00 : f32
    %667 = vector.broadcast %cst_796 : f32 to vector<5x64xf32>
    %c0_797 = arith.constant 0 : index
    %c0_798 = arith.constant 0 : index
    %668 = vector.load %arg29[%c0_797, %c0_798] : memref<18x64xf32, #tpu.memory_space<vmem>>, vector<5x64xf32>
    tpu.vector_store %arg29[%c0_797, %c0_798], %667 {strides = array<i32>} : memref<18x64xf32, #tpu.memory_space<vmem>>, vector<5x64xf32>,
    %cst_799 = arith.constant 0.000000e+00 : f32
    %669 = vector.broadcast %cst_799 : f32 to vector<5x64xf32>
    %c13_800 = arith.constant 13 : index
    %c0_801 = arith.constant 0 : index
    %670 = vector.load %arg29[%c13_800, %c0_801] : memref<18x64xf32, #tpu.memory_space<vmem>>, vector<5x64xf32>
    tpu.vector_store %arg29[%c13_800, %c0_801], %669 {strides = array<i32>} : memref<18x64xf32, #tpu.memory_space<vmem>>, vector<5x64xf32>,
    %671 = tpu.iota {dimensions = array<i32: 0>} : vector<8x1xi32>
    %c4_i32_802 = arith.constant 4 : i32
    %c0_i32_803 = arith.constant 0 : i32
    %672 = arith.cmpi eq, %c4_i32_802, %c0_i32_803 : i32
    %c1_i32_804 = arith.constant 1 : i32
    %673 = arith.select %672, %c1_i32_804, %c4_i32_802 : i32
    %674 = vector.broadcast %673 : i32 to vector<8x1xi32>
    %675 = arith.remsi %671, %674 : vector<8x1xi32>
    %c0_i32_805 = arith.constant 0 : i32
    %676 = vector.broadcast %c0_i32_805 : i32 to vector<8x1xi32>
    %677 = arith.cmpi ne, %675, %676 : vector<8x1xi32>
    %c0_i32_806 = arith.constant 0 : i32
    %678 = vector.broadcast %c0_i32_806 : i32 to vector<8x1xi32>
    %679 = arith.cmpi slt, %675, %678 : vector<8x1xi32>
    %c0_i32_807 = arith.constant 0 : i32
    %680 = arith.cmpi slt, %673, %c0_i32_807 : i32
    %681 = vector.broadcast %680 : i1 to vector<8x1xi1>
    %682 = vector.broadcast %681 : vector<8x1xi1> to vector<8x1xi1>
    %683 = arith.xori %679, %682 : vector<8x1xi1>
    %684 = arith.andi %683, %677 : vector<8x1xi1>
    %685 = vector.broadcast %673 : i32 to vector<8x1xi32>
    %686 = arith.addi %675, %685 : vector<8x1xi32>
    %687 = arith.select %684, %686, %675 : vector<8x1xi1>, vector<8x1xi32>
    %c2_i32 = arith.constant 2 : i32
    %688 = vector.broadcast %c2_i32 : i32 to vector<8x1xi32>
    %689 = arith.cmpi slt, %687, %688 : vector<8x1xi32>
    %c0_808 = arith.constant 0 : index
    %c0_809 = arith.constant 0 : index
    %690 = vector.load %arg28[%c0_808, %c0_809] : memref<18x32xf32, #tpu.memory_space<vmem>>, vector<8x32xf32>
    %c0_810 = arith.constant 0 : index
    %c0_811 = arith.constant 0 : index
    %c0_812 = arith.constant 0 : index
    %c0_813 = arith.constant 0 : index
    %691 = vector.load %arg14[%c0_810, %c0_811, %c0_812, %c0_813] : memref<3x3x32x64xf32, #tpu.memory_space<vmem>>, vector<1x1x32x64xf32>
    %692 = vector.shape_cast %691 : vector<1x1x32x64xf32> to vector<32x64xf32>
    %cst_814 = arith.constant dense<0.000000e+00> : vector<8x64xf32>
    %693 = tpu.matmul %690, %692, %cst_814 {dimension_numbers = #tpu.dot_dimension_numbers<[1], [0], [0], [1], [0, 0, 1, 1], [], []>} : vector<8x32xf32>, vector<32x64xf32>, vector<8x64xf32> -> vector<8x64xf32>
    %c1_815 = arith.constant 1 : index
    %c0_816 = arith.constant 0 : index
    %694 = vector.load %arg28[%c1_815, %c0_816] : memref<18x32xf32, #tpu.memory_space<vmem>>, vector<8x32xf32>
    %c0_817 = arith.constant 0 : index
    %c1_818 = arith.constant 1 : index
    %c0_819 = arith.constant 0 : index
    %c0_820 = arith.constant 0 : index
    %695 = vector.load %arg14[%c0_817, %c1_818, %c0_819, %c0_820] : memref<3x3x32x64xf32, #tpu.memory_space<vmem>>, vector<1x1x32x64xf32>
    %696 = vector.shape_cast %695 : vector<1x1x32x64xf32> to vector<32x64xf32>
    %cst_821 = arith.constant dense<0.000000e+00> : vector<8x64xf32>
    %697 = tpu.matmul %694, %696, %cst_821 {dimension_numbers = #tpu.dot_dimension_numbers<[1], [0], [0], [1], [0, 0, 1, 1], [], []>} : vector<8x32xf32>, vector<32x64xf32>, vector<8x64xf32> -> vector<8x64xf32>
    %698 = arith.addf %693, %697 : vector<8x64xf32>
    %c2_822 = arith.constant 2 : index
    %c0_823 = arith.constant 0 : index
    %699 = vector.load %arg28[%c2_822, %c0_823] : memref<18x32xf32, #tpu.memory_space<vmem>>, vector<8x32xf32>
    %c0_824 = arith.constant 0 : index
    %c2_825 = arith.constant 2 : index
    %c0_826 = arith.constant 0 : index
    %c0_827 = arith.constant 0 : index
    %700 = vector.load %arg14[%c0_824, %c2_825, %c0_826, %c0_827] : memref<3x3x32x64xf32, #tpu.memory_space<vmem>>, vector<1x1x32x64xf32>
    %701 = vector.shape_cast %700 : vector<1x1x32x64xf32> to vector<32x64xf32>
    %cst_828 = arith.constant dense<0.000000e+00> : vector<8x64xf32>
    %702 = tpu.matmul %699, %701, %cst_828 {dimension_numbers = #tpu.dot_dimension_numbers<[1], [0], [0], [1], [0, 0, 1, 1], [], []>} : vector<8x32xf32>, vector<32x64xf32>, vector<8x64xf32> -> vector<8x64xf32>
    %703 = arith.addf %698, %702 : vector<8x64xf32>
    %c4_829 = arith.constant 4 : index
    %c0_830 = arith.constant 0 : index
    %704 = vector.load %arg28[%c4_829, %c0_830] : memref<18x32xf32, #tpu.memory_space<vmem>>, vector<8x32xf32>
    %c1_831 = arith.constant 1 : index
    %c0_832 = arith.constant 0 : index
    %c0_833 = arith.constant 0 : index
    %c0_834 = arith.constant 0 : index
    %705 = vector.load %arg14[%c1_831, %c0_832, %c0_833, %c0_834] : memref<3x3x32x64xf32, #tpu.memory_space<vmem>>, vector<1x1x32x64xf32>
    %706 = vector.shape_cast %705 : vector<1x1x32x64xf32> to vector<32x64xf32>
    %cst_835 = arith.constant dense<0.000000e+00> : vector<8x64xf32>
    %707 = tpu.matmul %704, %706, %cst_835 {dimension_numbers = #tpu.dot_dimension_numbers<[1], [0], [0], [1], [0, 0, 1, 1], [], []>} : vector<8x32xf32>, vector<32x64xf32>, vector<8x64xf32> -> vector<8x64xf32>
    %708 = arith.addf %703, %707 : vector<8x64xf32>
    %c5_836 = arith.constant 5 : index
    %c0_837 = arith.constant 0 : index
    %709 = vector.load %arg28[%c5_836, %c0_837] : memref<18x32xf32, #tpu.memory_space<vmem>>, vector<8x32xf32>
    %c1_838 = arith.constant 1 : index
    %c1_839 = arith.constant 1 : index
    %c0_840 = arith.constant 0 : index
    %c0_841 = arith.constant 0 : index
    %710 = vector.load %arg14[%c1_838, %c1_839, %c0_840, %c0_841] : memref<3x3x32x64xf32, #tpu.memory_space<vmem>>, vector<1x1x32x64xf32>
    %711 = vector.shape_cast %710 : vector<1x1x32x64xf32> to vector<32x64xf32>
    %cst_842 = arith.constant dense<0.000000e+00> : vector<8x64xf32>
    %712 = tpu.matmul %709, %711, %cst_842 {dimension_numbers = #tpu.dot_dimension_numbers<[1], [0], [0], [1], [0, 0, 1, 1], [], []>} : vector<8x32xf32>, vector<32x64xf32>, vector<8x64xf32> -> vector<8x64xf32>
    %713 = arith.addf %708, %712 : vector<8x64xf32>
    %c6_843 = arith.constant 6 : index
    %c0_844 = arith.constant 0 : index
    %714 = vector.load %arg28[%c6_843, %c0_844] : memref<18x32xf32, #tpu.memory_space<vmem>>, vector<8x32xf32>
    %c1_845 = arith.constant 1 : index
    %c2_846 = arith.constant 2 : index
    %c0_847 = arith.constant 0 : index
    %c0_848 = arith.constant 0 : index
    %715 = vector.load %arg14[%c1_845, %c2_846, %c0_847, %c0_848] : memref<3x3x32x64xf32, #tpu.memory_space<vmem>>, vector<1x1x32x64xf32>
    %716 = vector.shape_cast %715 : vector<1x1x32x64xf32> to vector<32x64xf32>
    %cst_849 = arith.constant dense<0.000000e+00> : vector<8x64xf32>
    %717 = tpu.matmul %714, %716, %cst_849 {dimension_numbers = #tpu.dot_dimension_numbers<[1], [0], [0], [1], [0, 0, 1, 1], [], []>} : vector<8x32xf32>, vector<32x64xf32>, vector<8x64xf32> -> vector<8x64xf32>
    %718 = arith.addf %713, %717 : vector<8x64xf32>
    %c8_850 = arith.constant 8 : index
    %c0_851 = arith.constant 0 : index
    %719 = vector.load %arg28[%c8_850, %c0_851] : memref<18x32xf32, #tpu.memory_space<vmem>>, vector<8x32xf32>
    %c2_852 = arith.constant 2 : index
    %c0_853 = arith.constant 0 : index
    %c0_854 = arith.constant 0 : index
    %c0_855 = arith.constant 0 : index
    %720 = vector.load %arg14[%c2_852, %c0_853, %c0_854, %c0_855] : memref<3x3x32x64xf32, #tpu.memory_space<vmem>>, vector<1x1x32x64xf32>
    %721 = vector.shape_cast %720 : vector<1x1x32x64xf32> to vector<32x64xf32>
    %cst_856 = arith.constant dense<0.000000e+00> : vector<8x64xf32>
    %722 = tpu.matmul %719, %721, %cst_856 {dimension_numbers = #tpu.dot_dimension_numbers<[1], [0], [0], [1], [0, 0, 1, 1], [], []>} : vector<8x32xf32>, vector<32x64xf32>, vector<8x64xf32> -> vector<8x64xf32>
    %723 = arith.addf %718, %722 : vector<8x64xf32>
    %c9_857 = arith.constant 9 : index
    %c0_858 = arith.constant 0 : index
    %724 = vector.load %arg28[%c9_857, %c0_858] : memref<18x32xf32, #tpu.memory_space<vmem>>, vector<8x32xf32>
    %c2_859 = arith.constant 2 : index
    %c1_860 = arith.constant 1 : index
    %c0_861 = arith.constant 0 : index
    %c0_862 = arith.constant 0 : index
    %725 = vector.load %arg14[%c2_859, %c1_860, %c0_861, %c0_862] : memref<3x3x32x64xf32, #tpu.memory_space<vmem>>, vector<1x1x32x64xf32>
    %726 = vector.shape_cast %725 : vector<1x1x32x64xf32> to vector<32x64xf32>
    %cst_863 = arith.constant dense<0.000000e+00> : vector<8x64xf32>
    %727 = tpu.matmul %724, %726, %cst_863 {dimension_numbers = #tpu.dot_dimension_numbers<[1], [0], [0], [1], [0, 0, 1, 1], [], []>} : vector<8x32xf32>, vector<32x64xf32>, vector<8x64xf32> -> vector<8x64xf32>
    %728 = arith.addf %723, %727 : vector<8x64xf32>
    %c10_864 = arith.constant 10 : index
    %c0_865 = arith.constant 0 : index
    %729 = vector.load %arg28[%c10_864, %c0_865] : memref<18x32xf32, #tpu.memory_space<vmem>>, vector<8x32xf32>
    %c2_866 = arith.constant 2 : index
    %c2_867 = arith.constant 2 : index
    %c0_868 = arith.constant 0 : index
    %c0_869 = arith.constant 0 : index
    %730 = vector.load %arg14[%c2_866, %c2_867, %c0_868, %c0_869] : memref<3x3x32x64xf32, #tpu.memory_space<vmem>>, vector<1x1x32x64xf32>
    %731 = vector.shape_cast %730 : vector<1x1x32x64xf32> to vector<32x64xf32>
    %cst_870 = arith.constant dense<0.000000e+00> : vector<8x64xf32>
    %732 = tpu.matmul %729, %731, %cst_870 {dimension_numbers = #tpu.dot_dimension_numbers<[1], [0], [0], [1], [0, 0, 1, 1], [], []>} : vector<8x32xf32>, vector<32x64xf32>, vector<8x64xf32> -> vector<8x64xf32>
    %733 = arith.addf %728, %732 : vector<8x64xf32>
    %c0_871 = arith.constant 0 : index
    %c0_872 = arith.constant 0 : index
    %734 = vector.load %arg15[%c0_871, %c0_872] : memref<1x64xf32, #tpu.memory_space<vmem>>, vector<1x64xf32>
    %735 = vector.broadcast %734 : vector<1x64xf32> to vector<8x64xf32>
    %736 = arith.addf %733, %735 : vector<8x64xf32>
    %cst_873 = arith.constant 0.000000e+00 : f32
    %737 = vector.broadcast %cst_873 : f32 to vector<8x64xf32>
    %738 = arith.maximumf %736, %737 : vector<8x64xf32>
    %cst_874 = arith.constant 0.000000e+00 : f32
    %739 = vector.shape_cast %689 : vector<8x1xi1> to vector<8x1xi1>
    %740 = vector.broadcast %739 : vector<8x1xi1> to vector<8x64xi1>
    %741 = vector.broadcast %cst_874 : f32 to vector<8x64xf32>
    %742 = arith.select %740, %738, %741 : vector<8x64xi1>, vector<8x64xf32>
    %c5_875 = arith.constant 5 : index
    %c0_876 = arith.constant 0 : index
    %743 = vector.load %arg29[%c5_875, %c0_876] : memref<18x64xf32, #tpu.memory_space<vmem>>, vector<8x64xf32>
    tpu.vector_store %arg29[%c5_875, %c0_876], %742 {strides = array<i32>} : memref<18x64xf32, #tpu.memory_space<vmem>>, vector<8x64xf32>,
    %c0_877 = arith.constant 0 : index
    %c0_878 = arith.constant 0 : index
    %744 = vector.load %arg29[%c0_877, %c0_878] : memref<18x64xf32, #tpu.memory_space<vmem>>, vector<8x64xf32>
    %c0_879 = arith.constant 0 : index
    %c0_880 = arith.constant 0 : index
    %c0_881 = arith.constant 0 : index
    %c0_882 = arith.constant 0 : index
    %745 = vector.load %arg16[%c0_879, %c0_880, %c0_881, %c0_882] : memref<3x3x64x64xf32, #tpu.memory_space<vmem>>, vector<1x1x64x64xf32>
    %746 = vector.shape_cast %745 : vector<1x1x64x64xf32> to vector<64x64xf32>
    %cst_883 = arith.constant dense<0.000000e+00> : vector<8x64xf32>
    %747 = tpu.matmul %744, %746, %cst_883 {dimension_numbers = #tpu.dot_dimension_numbers<[1], [0], [0], [1], [0, 0, 1, 1], [], []>} : vector<8x64xf32>, vector<64x64xf32>, vector<8x64xf32> -> vector<8x64xf32>
    %c1_884 = arith.constant 1 : index
    %c0_885 = arith.constant 0 : index
    %748 = vector.load %arg29[%c1_884, %c0_885] : memref<18x64xf32, #tpu.memory_space<vmem>>, vector<8x64xf32>
    %c0_886 = arith.constant 0 : index
    %c1_887 = arith.constant 1 : index
    %c0_888 = arith.constant 0 : index
    %c0_889 = arith.constant 0 : index
    %749 = vector.load %arg16[%c0_886, %c1_887, %c0_888, %c0_889] : memref<3x3x64x64xf32, #tpu.memory_space<vmem>>, vector<1x1x64x64xf32>
    %750 = vector.shape_cast %749 : vector<1x1x64x64xf32> to vector<64x64xf32>
    %cst_890 = arith.constant dense<0.000000e+00> : vector<8x64xf32>
    %751 = tpu.matmul %748, %750, %cst_890 {dimension_numbers = #tpu.dot_dimension_numbers<[1], [0], [0], [1], [0, 0, 1, 1], [], []>} : vector<8x64xf32>, vector<64x64xf32>, vector<8x64xf32> -> vector<8x64xf32>
    %752 = arith.addf %747, %751 : vector<8x64xf32>
    %c2_891 = arith.constant 2 : index
    %c0_892 = arith.constant 0 : index
    %753 = vector.load %arg29[%c2_891, %c0_892] : memref<18x64xf32, #tpu.memory_space<vmem>>, vector<8x64xf32>
    %c0_893 = arith.constant 0 : index
    %c2_894 = arith.constant 2 : index
    %c0_895 = arith.constant 0 : index
    %c0_896 = arith.constant 0 : index
    %754 = vector.load %arg16[%c0_893, %c2_894, %c0_895, %c0_896] : memref<3x3x64x64xf32, #tpu.memory_space<vmem>>, vector<1x1x64x64xf32>
    %755 = vector.shape_cast %754 : vector<1x1x64x64xf32> to vector<64x64xf32>
    %cst_897 = arith.constant dense<0.000000e+00> : vector<8x64xf32>
    %756 = tpu.matmul %753, %755, %cst_897 {dimension_numbers = #tpu.dot_dimension_numbers<[1], [0], [0], [1], [0, 0, 1, 1], [], []>} : vector<8x64xf32>, vector<64x64xf32>, vector<8x64xf32> -> vector<8x64xf32>
    %757 = arith.addf %752, %756 : vector<8x64xf32>
    %c4_898 = arith.constant 4 : index
    %c0_899 = arith.constant 0 : index
    %758 = vector.load %arg29[%c4_898, %c0_899] : memref<18x64xf32, #tpu.memory_space<vmem>>, vector<8x64xf32>
    %c1_900 = arith.constant 1 : index
    %c0_901 = arith.constant 0 : index
    %c0_902 = arith.constant 0 : index
    %c0_903 = arith.constant 0 : index
    %759 = vector.load %arg16[%c1_900, %c0_901, %c0_902, %c0_903] : memref<3x3x64x64xf32, #tpu.memory_space<vmem>>, vector<1x1x64x64xf32>
    %760 = vector.shape_cast %759 : vector<1x1x64x64xf32> to vector<64x64xf32>
    %cst_904 = arith.constant dense<0.000000e+00> : vector<8x64xf32>
    %761 = tpu.matmul %758, %760, %cst_904 {dimension_numbers = #tpu.dot_dimension_numbers<[1], [0], [0], [1], [0, 0, 1, 1], [], []>} : vector<8x64xf32>, vector<64x64xf32>, vector<8x64xf32> -> vector<8x64xf32>
    %762 = arith.addf %757, %761 : vector<8x64xf32>
    %c5_905 = arith.constant 5 : index
    %c0_906 = arith.constant 0 : index
    %763 = vector.load %arg29[%c5_905, %c0_906] : memref<18x64xf32, #tpu.memory_space<vmem>>, vector<8x64xf32>
    %c1_907 = arith.constant 1 : index
    %c1_908 = arith.constant 1 : index
    %c0_909 = arith.constant 0 : index
    %c0_910 = arith.constant 0 : index
    %764 = vector.load %arg16[%c1_907, %c1_908, %c0_909, %c0_910] : memref<3x3x64x64xf32, #tpu.memory_space<vmem>>, vector<1x1x64x64xf32>
    %765 = vector.shape_cast %764 : vector<1x1x64x64xf32> to vector<64x64xf32>
    %cst_911 = arith.constant dense<0.000000e+00> : vector<8x64xf32>
    %766 = tpu.matmul %763, %765, %cst_911 {dimension_numbers = #tpu.dot_dimension_numbers<[1], [0], [0], [1], [0, 0, 1, 1], [], []>} : vector<8x64xf32>, vector<64x64xf32>, vector<8x64xf32> -> vector<8x64xf32>
    %767 = arith.addf %762, %766 : vector<8x64xf32>
    %c6_912 = arith.constant 6 : index
    %c0_913 = arith.constant 0 : index
    %768 = vector.load %arg29[%c6_912, %c0_913] : memref<18x64xf32, #tpu.memory_space<vmem>>, vector<8x64xf32>
    %c1_914 = arith.constant 1 : index
    %c2_915 = arith.constant 2 : index
    %c0_916 = arith.constant 0 : index
    %c0_917 = arith.constant 0 : index
    %769 = vector.load %arg16[%c1_914, %c2_915, %c0_916, %c0_917] : memref<3x3x64x64xf32, #tpu.memory_space<vmem>>, vector<1x1x64x64xf32>
    %770 = vector.shape_cast %769 : vector<1x1x64x64xf32> to vector<64x64xf32>
    %cst_918 = arith.constant dense<0.000000e+00> : vector<8x64xf32>
    %771 = tpu.matmul %768, %770, %cst_918 {dimension_numbers = #tpu.dot_dimension_numbers<[1], [0], [0], [1], [0, 0, 1, 1], [], []>} : vector<8x64xf32>, vector<64x64xf32>, vector<8x64xf32> -> vector<8x64xf32>
    %772 = arith.addf %767, %771 : vector<8x64xf32>
    %c8_919 = arith.constant 8 : index
    %c0_920 = arith.constant 0 : index
    %773 = vector.load %arg29[%c8_919, %c0_920] : memref<18x64xf32, #tpu.memory_space<vmem>>, vector<8x64xf32>
    %c2_921 = arith.constant 2 : index
    %c0_922 = arith.constant 0 : index
    %c0_923 = arith.constant 0 : index
    %c0_924 = arith.constant 0 : index
    %774 = vector.load %arg16[%c2_921, %c0_922, %c0_923, %c0_924] : memref<3x3x64x64xf32, #tpu.memory_space<vmem>>, vector<1x1x64x64xf32>
    %775 = vector.shape_cast %774 : vector<1x1x64x64xf32> to vector<64x64xf32>
    %cst_925 = arith.constant dense<0.000000e+00> : vector<8x64xf32>
    %776 = tpu.matmul %773, %775, %cst_925 {dimension_numbers = #tpu.dot_dimension_numbers<[1], [0], [0], [1], [0, 0, 1, 1], [], []>} : vector<8x64xf32>, vector<64x64xf32>, vector<8x64xf32> -> vector<8x64xf32>
    %777 = arith.addf %772, %776 : vector<8x64xf32>
    %c9_926 = arith.constant 9 : index
    %c0_927 = arith.constant 0 : index
    %778 = vector.load %arg29[%c9_926, %c0_927] : memref<18x64xf32, #tpu.memory_space<vmem>>, vector<8x64xf32>
    %c2_928 = arith.constant 2 : index
    %c1_929 = arith.constant 1 : index
    %c0_930 = arith.constant 0 : index
    %c0_931 = arith.constant 0 : index
    %779 = vector.load %arg16[%c2_928, %c1_929, %c0_930, %c0_931] : memref<3x3x64x64xf32, #tpu.memory_space<vmem>>, vector<1x1x64x64xf32>
    %780 = vector.shape_cast %779 : vector<1x1x64x64xf32> to vector<64x64xf32>
    %cst_932 = arith.constant dense<0.000000e+00> : vector<8x64xf32>
    %781 = tpu.matmul %778, %780, %cst_932 {dimension_numbers = #tpu.dot_dimension_numbers<[1], [0], [0], [1], [0, 0, 1, 1], [], []>} : vector<8x64xf32>, vector<64x64xf32>, vector<8x64xf32> -> vector<8x64xf32>
    %782 = arith.addf %777, %781 : vector<8x64xf32>
    %c10_933 = arith.constant 10 : index
    %c0_934 = arith.constant 0 : index
    %783 = vector.load %arg29[%c10_933, %c0_934] : memref<18x64xf32, #tpu.memory_space<vmem>>, vector<8x64xf32>
    %c2_935 = arith.constant 2 : index
    %c2_936 = arith.constant 2 : index
    %c0_937 = arith.constant 0 : index
    %c0_938 = arith.constant 0 : index
    %784 = vector.load %arg16[%c2_935, %c2_936, %c0_937, %c0_938] : memref<3x3x64x64xf32, #tpu.memory_space<vmem>>, vector<1x1x64x64xf32>
    %785 = vector.shape_cast %784 : vector<1x1x64x64xf32> to vector<64x64xf32>
    %cst_939 = arith.constant dense<0.000000e+00> : vector<8x64xf32>
    %786 = tpu.matmul %783, %785, %cst_939 {dimension_numbers = #tpu.dot_dimension_numbers<[1], [0], [0], [1], [0, 0, 1, 1], [], []>} : vector<8x64xf32>, vector<64x64xf32>, vector<8x64xf32> -> vector<8x64xf32>
    %787 = arith.addf %782, %786 : vector<8x64xf32>
    %c0_940 = arith.constant 0 : index
    %c0_941 = arith.constant 0 : index
    %788 = vector.load %arg17[%c0_940, %c0_941] : memref<1x64xf32, #tpu.memory_space<vmem>>, vector<1x64xf32>
    %789 = vector.broadcast %788 : vector<1x64xf32> to vector<8x64xf32>
    %790 = arith.addf %787, %789 : vector<8x64xf32>
    %cst_942 = arith.constant 0.000000e+00 : f32
    %791 = vector.broadcast %cst_942 : f32 to vector<8x64xf32>
    %792 = arith.maximumf %790, %791 : vector<8x64xf32>
    %c0_943 = arith.constant 0 : index
    %c0_944 = arith.constant 0 : index
    %c0_945 = arith.constant 0 : index
    %793 = vector.load %arg21[%c0_943, %c0_944, %c0_945] : memref<1x8x64xf32, #tpu.memory_space<vmem>>, vector<1x8x64xf32>
    %794 = vector.shape_cast %793 : vector<1x8x64xf32> to vector<8x64xf32>
    %795 = vector.shape_cast %792 : vector<8x64xf32> to vector<1x8x64xf32>
    tpu.vector_store %arg21[%c0_943, %c0_944, %c0_945], %795 {strides = array<i32>} : memref<1x8x64xf32, #tpu.memory_space<vmem>>, vector<1x8x64xf32>,
    return
  }
  func.func @transform_0(%arg0: i32) -> (i32, i32, i32, i32) {
    %c0_i32 = arith.constant 0 : i32
    %c0_i32_0 = arith.constant 0 : i32
    %c0_i32_1 = arith.constant 0 : i32
    %c0_i32_2 = arith.constant 0 : i32
    return %arg0, %c0_i32, %c0_i32_0, %c0_i32_1 : i32, i32, i32, i32
  }
  func.func @transform_1(%arg0: i32) -> (i32, i32, i32, i32) {
    %c0_i32 = arith.constant 0 : i32
    %c0_i32_0 = arith.constant 0 : i32
    %c0_i32_1 = arith.constant 0 : i32
    %c0_i32_2 = arith.constant 0 : i32
    %c0_i32_3 = arith.constant 0 : i32
    return %c0_i32, %c0_i32_0, %c0_i32_1, %c0_i32_2 : i32, i32, i32, i32
  }
  func.func @transform_2(%arg0: i32) -> (i32, i32) {
    %c0_i32 = arith.constant 0 : i32
    %c0_i32_0 = arith.constant 0 : i32
    %c0_i32_1 = arith.constant 0 : i32
    return %c0_i32, %c0_i32_0 : i32, i32
  }
  func.func @transform_3(%arg0: i32) -> (i32, i32, i32, i32) {
    %c0_i32 = arith.constant 0 : i32
    %c0_i32_0 = arith.constant 0 : i32
    %c0_i32_1 = arith.constant 0 : i32
    %c0_i32_2 = arith.constant 0 : i32
    %c0_i32_3 = arith.constant 0 : i32
    return %c0_i32, %c0_i32_0, %c0_i32_1, %c0_i32_2 : i32, i32, i32, i32
  }
  func.func @transform_4(%arg0: i32) -> (i32, i32) {
    %c0_i32 = arith.constant 0 : i32
    %c0_i32_0 = arith.constant 0 : i32
    %c0_i32_1 = arith.constant 0 : i32
    return %c0_i32, %c0_i32_0 : i32, i32
  }
  func.func @transform_5(%arg0: i32) -> (i32, i32, i32, i32) {
    %c0_i32 = arith.constant 0 : i32
    %c0_i32_0 = arith.constant 0 : i32
    %c0_i32_1 = arith.constant 0 : i32
    %c0_i32_2 = arith.constant 0 : i32
    %c0_i32_3 = arith.constant 0 : i32
    return %c0_i32, %c0_i32_0, %c0_i32_1, %c0_i32_2 : i32, i32, i32, i32
  }
  func.func @transform_6(%arg0: i32) -> (i32, i32) {
    %c0_i32 = arith.constant 0 : i32
    %c0_i32_0 = arith.constant 0 : i32
    %c0_i32_1 = arith.constant 0 : i32
    return %c0_i32, %c0_i32_0 : i32, i32
  }
  func.func @transform_7(%arg0: i32) -> (i32, i32, i32, i32) {
    %c0_i32 = arith.constant 0 : i32
    %c0_i32_0 = arith.constant 0 : i32
    %c0_i32_1 = arith.constant 0 : i32
    %c0_i32_2 = arith.constant 0 : i32
    %c0_i32_3 = arith.constant 0 : i32
    return %c0_i32, %c0_i32_0, %c0_i32_1, %c0_i32_2 : i32, i32, i32, i32
  }
  func.func @transform_8(%arg0: i32) -> (i32, i32) {
    %c0_i32 = arith.constant 0 : i32
    %c0_i32_0 = arith.constant 0 : i32
    %c0_i32_1 = arith.constant 0 : i32
    return %c0_i32, %c0_i32_0 : i32, i32
  }
  func.func @transform_9(%arg0: i32) -> (i32, i32, i32, i32) {
    %c0_i32 = arith.constant 0 : i32
    %c0_i32_0 = arith.constant 0 : i32
    %c0_i32_1 = arith.constant 0 : i32
    %c0_i32_2 = arith.constant 0 : i32
    %c0_i32_3 = arith.constant 0 : i32
    return %c0_i32, %c0_i32_0, %c0_i32_1, %c0_i32_2 : i32, i32, i32, i32
  }
  func.func @transform_10(%arg0: i32) -> (i32, i32) {
    %c0_i32 = arith.constant 0 : i32
    %c0_i32_0 = arith.constant 0 : i32
    %c0_i32_1 = arith.constant 0 : i32
    return %c0_i32, %c0_i32_0 : i32, i32
  }
  func.func @transform_11(%arg0: i32) -> (i32, i32, i32, i32) {
    %c0_i32 = arith.constant 0 : i32
    %c0_i32_0 = arith.constant 0 : i32
    %c0_i32_1 = arith.constant 0 : i32
    %c0_i32_2 = arith.constant 0 : i32
    %c0_i32_3 = arith.constant 0 : i32
    return %c0_i32, %c0_i32_0, %c0_i32_1, %c0_i32_2 : i32, i32, i32, i32
  }
  func.func @transform_12(%arg0: i32) -> (i32, i32) {
    %c0_i32 = arith.constant 0 : i32
    %c0_i32_0 = arith.constant 0 : i32
    %c0_i32_1 = arith.constant 0 : i32
    return %c0_i32, %c0_i32_0 : i32, i32
  }
  func.func @transform_13(%arg0: i32) -> (i32, i32, i32, i32) {
    %c0_i32 = arith.constant 0 : i32
    %c0_i32_0 = arith.constant 0 : i32
    %c0_i32_1 = arith.constant 0 : i32
    %c0_i32_2 = arith.constant 0 : i32
    %c0_i32_3 = arith.constant 0 : i32
    return %c0_i32, %c0_i32_0, %c0_i32_1, %c0_i32_2 : i32, i32, i32, i32
  }
  func.func @transform_14(%arg0: i32) -> (i32, i32) {
    %c0_i32 = arith.constant 0 : i32
    %c0_i32_0 = arith.constant 0 : i32
    %c0_i32_1 = arith.constant 0 : i32
    return %c0_i32, %c0_i32_0 : i32, i32
  }
  func.func @transform_15(%arg0: i32) -> (i32, i32, i32, i32) {
    %c0_i32 = arith.constant 0 : i32
    %c0_i32_0 = arith.constant 0 : i32
    %c0_i32_1 = arith.constant 0 : i32
    %c0_i32_2 = arith.constant 0 : i32
    %c0_i32_3 = arith.constant 0 : i32
    return %c0_i32, %c0_i32_0, %c0_i32_1, %c0_i32_2 : i32, i32, i32, i32
  }
  func.func @transform_16(%arg0: i32) -> (i32, i32) {
    %c0_i32 = arith.constant 0 : i32
    %c0_i32_0 = arith.constant 0 : i32
    %c0_i32_1 = arith.constant 0 : i32
    return %c0_i32, %c0_i32_0 : i32, i32
  }
  func.func @transform_17(%arg0: i32) -> (i32, i32, i32) {
    %c0_i32 = arith.constant 0 : i32
    %c0_i32_0 = arith.constant 0 : i32
    %c0_i32_1 = arith.constant 0 : i32
    return %arg0, %c0_i32, %c0_i32_0 : i32, i32, i32
  }
  func.func @transform_18(%arg0: i32) -> (i32, i32, i32) {
    %c0_i32 = arith.constant 0 : i32
    %c0_i32_0 = arith.constant 0 : i32
    %c0_i32_1 = arith.constant 0 : i32
    return %arg0, %c0_i32, %c0_i32_0 : i32, i32, i32
  }
  func.func @transform_19(%arg0: i32) -> (i32, i32, i32) {
    %c0_i32 = arith.constant 0 : i32
    %c0_i32_0 = arith.constant 0 : i32
    %c0_i32_1 = arith.constant 0 : i32
    return %arg0, %c0_i32, %c0_i32_0 : i32, i32, i32
  }
  func.func @transform_20(%arg0: i32) -> (i32, i32, i32) {
    %c0_i32 = arith.constant 0 : i32
    %c0_i32_0 = arith.constant 0 : i32
    %c0_i32_1 = arith.constant 0 : i32
    return %arg0, %c0_i32, %c0_i32_0 : i32, i32, i32
  }
}

</mosaic_0001>

<bundles_post_ra>
// kernel: encoder_forward.1
= control target key start
LH: loop header
LB: loop body
LE: loop exit
PB: predicated region body
PF: predicated region fallthrough
CT: control target
= control target key end

     0   :  { %s25865_s0 = inlined_call_operand.vmem [shape: f32[2,16,16,4], index: 0, kind: input, shape index: {}]   ;;  %s25866_s1 = inlined_call_operand.vmem [shape: f32[3,3,4,8], index: 1, kind: input, shape index: {}]   ;;  %s25867_s2 = inlined_call_operand.vmem [shape: f32[1,8], index: 2, kind: input, shape index: {}]   ;;  %s25868_s3 = inlined_call_operand.vmem [shape: f32[3,3,8,8], index: 3, kind: input, shape index: {}]   ;;  %s25869_s4 = inlined_call_operand.vmem [shape: f32[1,8], index: 4, kind: input, shape index: {}]   ;;  %s25870_s5 = inlined_call_operand.hbm [shape: f32[3,3,8,16], index: 5, kind: input, shape index: {}]   ;;  %s25871_s6 = inlined_call_operand.vmem [shape: f32[1,16], index: 6, kind: input, shape index: {}]   ;;  %s25872_s7 = inlined_call_operand.hbm [shape: f32[3,3,16,16], index: 7, kind: input, shape index: {}]   ;;  %s25873_s8 = inlined_call_operand.vmem [shape: f32[1,16], index: 8, kind: input, shape index: {}]   ;;  %s25874_s9 = inlined_call_operand.hbm [shape: f32[3,3,16,32], index: 9, kind: input, shape index: {}]   ;;  %s25875_s10 = inlined_call_operand.vmem [shape: f32[1,32], index: 10, kind: input, shape index: {}]   ;;  %s25876_s11 = inlined_call_operand.hbm [shape: f32[3,3,32,32], index: 11, kind: input, shape index: {}]   ;;  %s25877_s12 = inlined_call_operand.vmem [shape: f32[1,32], index: 12, kind: input, shape index: {}]   ;;  %s25878_s13 = inlined_call_operand.hbm [shape: f32[3,3,32,64], index: 13, kind: input, shape index: {}]   ;;  %s25879_s14 = inlined_call_operand.vmem [shape: f32[1,64], index: 14, kind: input, shape index: {}]   ;;  %s25880_s15 = inlined_call_operand.vmem [shape: f32[3,3,64,64], index: 15, kind: input, shape index: {}]   ;;  %s25881_s16 = inlined_call_operand.vmem [shape: f32[1,64], index: 16, kind: input, shape index: {}]   ;;  %s25882_s17 = inlined_call_operand.vmem [shape: f32[2,288,8], index: 17, kind: output, shape index: {0}]   ;;  %s25883_s18 = inlined_call_operand.vmem [shape: f32[2,80,16], index: 18, kind: output, shape index: {1}]   ;;  %s25884_s19 = inlined_call_operand.vmem [shape: f32[2,24,32], index: 19, kind: output, shape index: {2}]   ;;  %s25885_s20 = inlined_call_operand.vmem [shape: f32[2,8,64], index: 20, kind: output, shape index: {3}]  }
   0x1   :  { %25930 = sst [smem:[#allocation37_spill]] %s25865_s0 }
   0x2   :  { %25931 = sst [smem:[#allocation38_spill]] %s25866_s1 }
   0x3   :  { %25932 = sst [smem:[#allocation39_spill]] %s25867_s2 }
   0x4   :  { %25933 = sst [smem:[#allocation40_spill]] %s25868_s3 }
   0x5   :  { %25934 = sst [smem:[#allocation41_spill]] %s25869_s4 }
   0x6   :  { %25935 = sst [smem:[#allocation42_spill]] %s25879_s14 }
   0x7   :  { %25936 = sst [smem:[#allocation43_spill]] %s25880_s15 }
   0x8   :  { %25937 = sst [smem:[#allocation44_spill]] %s25881_s16 }
   0x9   :  { %25938 = sst [smem:[#allocation45_spill]] %s25885_s20 }
   0xa   :  { %26 = vsyncpa [#allocation11], 0 }
   0xb   :  { %27 = vsyncpa [#allocation13], 0 }
   0xc   :  { %28 = vsyncpa [#allocation16], 0  ;;  %s21982_s1 = smov 0  }
   0xd LB: > { %25939 = sst [smem:[#allocation21_spill]] %s21865_s1  ;;  %s21988_s22 = sadd.s32 4294967295, %s21865_s1   ;;  %s21865_s1 = sphi %s21982_s1, %s34_s1  }
   0xe   : > { %p16444_p0 = scmp.ge.s32.totalorder %s21865_s1, 1  ;;  %p505_p1 = scmp.lt.s32.totalorder %s21865_s1, 3 }
   0xf   : > { %p25890_p2 = scmp.eq.s32.totalorder %s21988_s22, 0  ;;  %s21867_s24 = smov [#allocation12]  }
  0x10   : > { %p21993_p3 = pnand %p16444_p0, %p505_p1  ;;  %s545_s2 = sshll.u32 %s21867_s24, 4  ;;  %s21997_s2 = int_to_ptr.vmem [resolvable:$true] %s545_s2 }
  0x11   : > { %s21868_s25 = smov [#allocation15]   ;;  %s21869_s27 = smov [#allocation10]  }
  0x12   : > { %s25940_s23 = scalar_select %p21993_p3, 1, 0 }
  0x13   : > { %p21663_p4 = pneg %p21993_p3  ;;  %s577_s3 = sshll.u32 %s21868_s25, 4  ;;  %s22001_s3 = int_to_ptr.vmem [resolvable:$true] %s577_s3 }
  0x14   : > { %s529_s28 = sshll.u32 %s21869_s27, 4  ;;  %s21870_s4 = smov [#allocation14]   ;;  %s22009_s28 = int_to_ptr.vmem [resolvable:$true] %s529_s28 }
  0x15   : > { %p22005_p5 = pnand %p25890_p2, %p21663_p4  ;;  %s22011_s29 = sshll.u32 %s21870_s4, 4  ;;  %s562_s29 = int_to_ptr.vmem [resolvable:$true] %s22011_s29 }
  0x16   : > { %s21707_s21 = scalar_lea.hbm %s25872_s7, 2304 }
  0x17   : > { %p21708_p6 = scmp.ne.s32.totalorder %s25872_s7, %s21707_s21  ;;  %p22021_p7 = pneg %p22005_p5 }
  0x18   : > { %p21714_p10 = scmp.lt.u32.totalorder %s21707_s21, %s25872_s7 }
  0x19   : > { %p21710_p8 = pnand %p22021_p7, %p21708_p6 }
  0x1b   : > { %p21711_p9 = pneg %p21710_p8 }
  0x1d   : > { %p21716_p11 = pnand %p21714_p10, %p21711_p9 }
  0x1f   : > { %21719 = shalt.err (!%p21716_p11)
}
  0x20   : > { %s21720_s30 = scalar_lea.vmem %s21997_s2, 2304  ;;  %p21728_p1 = scmp.lt.s32.totalorder %s21997_s2, %s21997_s2 }
  0x21   : > { %p21721_p12 = scmp.ne.s32.totalorder %s21997_s2, %s21720_s30  ;;  %p21729_p4 = scmp.lt.s32.totalorder %s21720_s30, %s21720_s30 }
  0x23   : > { %p21723_p13 = pnand %p21721_p12, %p22021_p7  ;;  %p21730_p6 = por %p21729_p4, %p21728_p1 }
  0x25   : > { %p21724_p0 = pneg %p21723_p13 }
  0x27   : > { %p21731_p8 = pnand %p21730_p6, %p21724_p0 }
  0x29   : > { %21734 = shalt.err (!%p21731_p8)
}
  0x2a   : > { %s21871_s0 = smov 128   ;;  %s21872_s21 = smov 8  }
  0x2b   : > { %21669 = dma.hbm_to_vmem [thread:$0]  (!%p22005_p5), %s25872_s7, 2304, %s21997_s2, [#allocation13], %s21871_s0, %s21871_s0, %s21872_s21  }
  0x2c   : > { %s21735_s30 = scalar_lea.hbm %s25876_s11, 4608 }
  0x2d   : > { %p21736_p9 = scmp.ne.s32.totalorder %s25876_s11, %s21735_s30  ;;  %p21742_p12 = scmp.lt.u32.totalorder %s21735_s30, %s25876_s11 }
  0x2f   : > { %p21738_p10 = pnand %p21736_p9, %p22021_p7 }
  0x31   : > { %p21739_p11 = pneg %p21738_p10 }
  0x33   : > { %p21744_p13 = pnand %p21742_p12, %p21739_p11 }
  0x35   : > { %21747 = shalt.err (!%p21744_p13)
}
  0x36   : > { %s21748_s2 = scalar_lea.vmem %s22001_s3, 4608  ;;  %p21756_p6 = scmp.lt.s32.totalorder %s22001_s3, %s22001_s3 }
  0x37   : > { %p21749_p0 = scmp.ne.s32.totalorder %s22001_s3, %s21748_s2  ;;  %p21757_p8 = scmp.lt.s32.totalorder %s21748_s2, %s21748_s2 }
  0x39   : > { %p21751_p1 = pnand %p21749_p0, %p22021_p7  ;;  %p21758_p9 = por %p21757_p8, %p21756_p6 }
  0x3b   : > { %p21752_p4 = pneg %p21751_p1 }
  0x3d   : > { %p21759_p10 = pnand %p21758_p9, %p21752_p4 }
  0x3f   : > { %21762 = shalt.err (!%p21759_p10)
}
  0x40   : > { %21675 = dma.hbm_to_vmem [thread:$0]  (!%p22005_p5), %s25876_s11, 4608, %s22001_s3, [#allocation16], %s21871_s0, %s21871_s0, %s21872_s21  }
  0x41   : > { %s21763_s24 = scalar_lea.hbm %s25870_s5, 1152 }
  0x42   : > { %p21764_p11 = scmp.ne.s32.totalorder %s25870_s5, %s21763_s24  ;;  %p21770_p0 = scmp.lt.u32.totalorder %s21763_s24, %s25870_s5 }
  0x44   : > { %p21766_p12 = pnand %p21764_p11, %p22021_p7 }
  0x46   : > { %p21767_p13 = pneg %p21766_p12 }
  0x48   : > { %p21772_p1 = pnand %p21770_p0, %p21767_p13 }
  0x4a   : > { %21775 = shalt.err (!%p21772_p1)
}
  0x4b   : > { %s21776_s3 = scalar_lea.vmem %s22009_s28, 1152  ;;  %p21784_p9 = scmp.lt.s32.totalorder %s22009_s28, %s22009_s28 }
  0x4c   : > { %p21777_p4 = scmp.ne.s32.totalorder %s22009_s28, %s21776_s3  ;;  %p21785_p10 = scmp.lt.s32.totalorder %s21776_s3, %s21776_s3 }
  0x4e   : > { %p21779_p6 = pnand %p21777_p4, %p22021_p7  ;;  %p21786_p11 = por %p21785_p10, %p21784_p9 }
  0x50   : > { %p21780_p8 = pneg %p21779_p6 }
  0x52   : > { %p21787_p12 = pnand %p21786_p11, %p21780_p8 }
  0x54   : > { %21790 = shalt.err (!%p21787_p12)
}
  0x55   : > { %21666 = dma.hbm_to_vmem [thread:$0]  (!%p22005_p5), %s25870_s5, 1152, %s22009_s28, [#allocation11], %s21871_s0, %s21871_s0, %s21872_s21  }
  0x56   : > { %s21791_s20 = scalar_lea.hbm %s25874_s9, 2304 }
  0x57   : > { %p21792_p13 = scmp.ne.s32.totalorder %s25874_s9, %s21791_s20  ;;  %p21798_p4 = scmp.lt.u32.totalorder %s21791_s20, %s25874_s9 }
  0x59   : > { %p21794_p0 = pnand %p21792_p13, %p22021_p7 }
  0x5b   : > { %p21795_p1 = pneg %p21794_p0 }
  0x5d   : > { %p21800_p6 = pnand %p21798_p4, %p21795_p1 }
  0x5f   : > { %21803 = shalt.err (!%p21800_p6)
}
  0x60   : > { %s21804_s30 = scalar_lea.vmem %s562_s29, 2304  ;;  %p21812_p11 = scmp.lt.s32.totalorder %s562_s29, %s562_s29 }
  0x61   : > { %p21805_p8 = scmp.ne.s32.totalorder %s562_s29, %s21804_s30  ;;  %p21813_p12 = scmp.lt.s32.totalorder %s21804_s30, %s21804_s30 }
  0x63   : > { %p21807_p9 = pnand %p21805_p8, %p22021_p7  ;;  %p21814_p2 = por %p21813_p12, %p21812_p11 }
  0x65   : > { %p21808_p10 = pneg %p21807_p9 }
  0x67   : > { %p21815_p3 = pnand %p21814_p2, %p21808_p10 }
  0x69   : > { %21818 = shalt.err (!%p21815_p3)
}
  0x6a   : > { %21672 = dma.hbm_to_vmem [thread:$0]  (!%p22005_p5), %s25874_s9, 2304, %s562_s29, [#allocation13], %s21871_s0, %s21871_s0, %s21872_s21  }
  0x6b   : > { %s21873_s2 = smov [#allocation17]   ;;  %s21819_s20 = scalar_lea.hbm %s25878_s13, 4608 }
  0x6c   : > { %s593_s14 = sshll.u32 %s21873_s2, 4  ;;  %p21820_p2 = scmp.ne.s32.totalorder %s25878_s13, %s21819_s20  ;;  %s594_s14 = int_to_ptr.vmem [resolvable:$true] %s593_s14 }
  0x6d   : > { %p21826_p0 = scmp.lt.u32.totalorder %s21819_s20, %s25878_s13 }
  0x6e   : > { %p21822_p3 = pnand %p21820_p2, %p22021_p7 }
  0x70   : > { %p21823_p13 = pneg %p21822_p3 }
  0x72   : > { %p21828_p1 = pnand %p21826_p0, %p21823_p13 }
  0x74   : > { %21831 = shalt.err (!%p21828_p1)
}
  0x75   : > { %s21832_s29 = scalar_lea.vmem %s594_s14, 4608  ;;  %p21840_p9 = scmp.lt.s32.totalorder %s594_s14, %s594_s14 }
  0x76   : > { %p21833_p4 = scmp.ne.s32.totalorder %s594_s14, %s21832_s29  ;;  %p21841_p10 = scmp.lt.s32.totalorder %s21832_s29, %s21832_s29 }
  0x78   : > { %p21835_p6 = pnand %p21833_p4, %p22021_p7  ;;  %p21842_p11 = por %p21841_p10, %p21840_p9 }
  0x7a   : > { %p21836_p8 = pneg %p21835_p6 }
  0x7c   : > { %p21843_p12 = pnand %p21842_p11, %p21836_p8 }
  0x7e   : > { %21846 = shalt.err (!%p21843_p12)
}
  0x7f   : > { %21678 = dma.hbm_to_vmem [thread:$0]  (!%p22005_p5), %s25878_s13, 4608, %s594_s14, [#allocation16], %s21871_s0, %s21871_s0, %s21872_s21  }
  0x80   : > { %p25943_p2 = scmp.ne.s32.totalorder %s25940_s23, 0 }
  0x82   : > { %626 = sbr.rel (%p25943_p2) target bundleno = 3742 (0xe9e), region = 88 }
  0x89   : > { %p25944_p7 = scmp.eq.s32.totalorder %s21988_s22, 0 }
  0x8b   : > { %21852 = dma.done.wait (%p25944_p7), [#allocation11], 1152   ;;  %p25945_p3 = pmov %p25944_p7 }
  0x8d   : > { %21854 = vsyncadd (%p25945_p3), [#allocation11], 4294966144  ;;  %p25946_p13 = pmov %p25945_p3 }
  0x8e   : > { %p25947_p0 = pmov %p25945_p3 }
  0x8f   : > { %21856 = dma.done.wait (%p25946_p13), [#allocation13], 4608  }
  0x90   : > { %21858 = vsyncadd (%p25947_p0), [#allocation13], 4294962688  ;;  %p25948_p1 = pmov %p25947_p0 }
  0x91   : > { %p25949_p5 = pmov %p25947_p0 }
  0x92   : > { %21860 = dma.done.wait (%p25948_p1), [#allocation16], 9216  }
  0x93   : > { %21862 = vsyncadd (%p25949_p5), [#allocation16], 4294958080  ;;  %vm738_vm0 = vcmask 31744   ;;  %p714_p4 = scmp.lt.s32.totalorder %s21988_s22, 1  ;;  %v25892_v0 = vmov 0.0   ;;  %vm1700_vm1 = vcmask 1043456  }
  0x94   : > { %739 = vst.msk [vmem:[#allocation2] sm:$0xff] %vm738_vm0, %v25892_v0  ;;  %740 = vst.msk [vmem:[#allocation2 + $0x8] sm:$0xff] %vm738_vm0, %v25892_v0  ;;  %s25950_s0 = sld [smem:[#allocation37_spill]]  ;;  %s25951_s14 = sld [smem:[#allocation38_spill]]  ;;  %vm779_vm2 = vcmask 29696   ;;  %vm25894_vm3 = vcmask 64512  }
  0x95   : > { %741 = vst.msk [vmem:[#allocation2 + $0x10] sm:$0xff] %vm738_vm0, %v25892_v0  ;;  %742 = vst.msk [vmem:[#allocation2 + $0x18] sm:$0xff] %vm738_vm0, %v25892_v0  ;;  %s26658_s22 = smov (!%p714_p4, %s21988_s22), 1  ;;  %vm863_vm4 = vcmask 59392   ;;  %s25952_s16 = sld [smem:[#allocation40_spill]] }
  0x96   : > { %743 = vst.msk [vmem:[#allocation2 + $0x20] sm:$0xff] %vm738_vm0, %v25892_v0  ;;  %744 = vst.msk [vmem:[#allocation2 + $0x28] sm:$0xff] %vm738_vm0, %v25892_v0  ;;  %s17545_s1 = sshll.u32 %s26658_s22, 8  ;;  %s26003_s4 = sld [smem:[#allocation39_spill]] }
  0x97   : > { %745 = vst.msk [vmem:[#allocation2 + $0x30] sm:$0xff] %vm738_vm0, %v25892_v0  ;;  %746 = vst.msk [vmem:[#allocation2 + $0x38] sm:$0xff] %vm738_vm0, %v25892_v0  ;;  %s21542_s27 = smul.u32 288, %s26658_s22  ;;  %s26489_s30 = sld [smem:[#allocation41_spill]] }
  0x98   : > { %747 = vst.msk [vmem:[#allocation2 + $0x40] sm:$0xff] %vm738_vm0, %v25892_v0  ;;  %748 = vst.msk [vmem:[#allocation2 + $0x48] sm:$0xff] %vm738_vm0, %v25892_v0  ;;  %s26653_s15 = sld [smem:[#allocation42_spill]]  ;;  %s16462_s26 = sshll.u32 %s26658_s22, 3 }
  0x99   : > { %749 = vst.msk [vmem:[#allocation2 + $0x50] sm:$0xff] %vm738_vm0, %v25892_v0  ;;  %750 = vst.msk [vmem:[#allocation2 + $0x58] sm:$0xff] %vm738_vm0, %v25892_v0  ;;  %s24643_s23 = scalar_lea.vmem %s25882_s17, %s21542_s27  ;;  %s26655_s2 = sld [smem:[#allocation45_spill]] }
  0x9a   : > { %751 = vst.msk [vmem:[#allocation2 + $0x60] sm:$0xff] %vm738_vm0, %v25892_v0  ;;  %752 = vst.msk [vmem:[#allocation2 + $0x68] sm:$0xff] %vm738_vm0, %v25892_v0  ;;  %s22244_s21 = scalar_lea.vmem %s25950_s0, %s17545_s1  ;;  %v16493_v1 = vld [vmem:[%s25951_s14 + $0x4] sm:$0xf]  ;;  %v1553_v2 = vld [vmem:[%s25951_s14] sm:$0xf] }
  0x9b   : > { %753 = vst.msk [vmem:[#allocation2 + $0x70] sm:$0xff] %vm738_vm0, %v25892_v0  ;;  %754 = vst.msk [vmem:[#allocation2 + $0x78] sm:$0xff] %vm738_vm0, %v25892_v0  ;;  %v781_v3 = vld [vmem:[%s22244_s21] sm:$0xff]  ;;  %18653 = vmatprep.subr.msk.mxu0 %vm1700_vm1, %v16493_v1  ;;  %v782_v6 = vld [vmem:[%s22244_s21 + $0x8] sm:$0xff] }
  0x9c   : > { %755 = vst.msk [vmem:[#allocation2 + $0x80] sm:$0xff] %vm738_vm0, %v25892_v0  ;;  %756 = vst.msk [vmem:[#allocation2 + $0x88] sm:$0xff] %vm738_vm0, %v25892_v0  ;;  %v1554_v4 = vld [vmem:[#allocation2 + $0x1] sm:$0xff]  ;;  %v1555_v5 = vld [vmem:[#allocation2 + $0x9] sm:$0xff]  ;;  %18654 = vmatpush3.msk.msra.mxu0 %vm1700_vm1, %v16493_v1 }
  0x9d   : > { %757 = vst.msk [vmem:[#allocation2 + $0x90] sm:$0xff] %vm738_vm0, %v25892_v0  ;;  %758 = vst.msk [vmem:[#allocation2 + $0x98] sm:$0xff] %vm738_vm0, %v25892_v0  ;;  %18655 = vmatprep.mubr.msk.f32.mxu0 %vm738_vm0, %v1554_v4  ;;  %v16463_v7 = vld [vmem:[%s22244_s21 + $0x10] sm:$0xff]  ;;  %v16464_v8 = vld [vmem:[%s22244_s21 + $0x18] sm:$0xff]  ;;  %18709 = vmatprep.subr.msk.mxu0 %vm1700_vm1, %v1553_v2 }
  0x9e   : > { %759 = vst.msk [vmem:[#allocation2 + $0xa0] sm:$0xff] %vm738_vm0, %v25892_v0  ;;  %760 = vst.msk [vmem:[#allocation2 + $0xa8] sm:$0xff] %vm738_vm0, %v25892_v0  ;;  %v16465_v9 = vld [vmem:[%s22244_s21 + $0x20] sm:$0xff]  ;;  %18656 = vmatmul.mubr.msk.f32.vlgmr.msra.gmra.mrb[0].mxu0 %vm738_vm0, %v1555_v5  ;;  %v16466_v10 = vld [vmem:[%s22244_s21 + $0x28] sm:$0xff] }
  0x9f   : > { %761 = vst.msk [vmem:[#allocation2 + $0xb0] sm:$0xff] %vm738_vm0, %v25892_v0  ;;  %762 = vst.msk [vmem:[#allocation2 + $0xb8] sm:$0xff] %vm738_vm0, %v25892_v0  ;;  %v16467_v11 = vld [vmem:[%s22244_s21 + $0x30] sm:$0xff]  ;;  %v16468_v12 = vld [vmem:[%s22244_s21 + $0x38] sm:$0xff]  ;;  %18710 = vmatpush3.msk.msra.mxu0 %vm1700_vm1, %v1553_v2 }
  0xa0   : > { %763 = vst.msk [vmem:[#allocation2 + $0xc0] sm:$0xff] %vm738_vm0, %v25892_v0  ;;  %764 = vst.msk [vmem:[#allocation2 + $0xc8] sm:$0xff] %vm738_vm0, %v25892_v0  ;;  %v16469_v13 = vld [vmem:[%s22244_s21 + $0x40] sm:$0xff]  ;;  %v16470_v14 = vld [vmem:[%s22244_s21 + $0x48] sm:$0xff] }
  0xa1   : > { %765 = vst.msk [vmem:[#allocation2 + $0xd0] sm:$0xff] %vm738_vm0, %v25892_v0  ;;  %766 = vst.msk [vmem:[#allocation2 + $0xd8] sm:$0xff] %vm738_vm0, %v25892_v0  ;;  %v16471_v15 = vld [vmem:[%s22244_s21 + $0x50] sm:$0xff]  ;;  %v16472_v16 = vld [vmem:[%s22244_s21 + $0x58] sm:$0xff] }
  0xa2   : > { %767 = vst.msk [vmem:[#allocation2 + $0xe0] sm:$0xff] %vm738_vm0, %v25892_v0  ;;  %768 = vst.msk [vmem:[#allocation2 + $0xe8] sm:$0xff] %vm738_vm0, %v25892_v0  ;;  %v16473_v17 = vld [vmem:[%s22244_s21 + $0x60] sm:$0xff]  ;;  %v16474_v18 = vld [vmem:[%s22244_s21 + $0x68] sm:$0xff] }
  0xa3   : > { %769 = vst.msk [vmem:[#allocation2 + $0xf0] sm:$0xff] %vm738_vm0, %v25892_v0  ;;  %770 = vst.msk [vmem:[#allocation2 + $0xf8] sm:$0xff] %vm738_vm0, %v25892_v0  ;;  %v16475_v19 = vld [vmem:[%s22244_s21 + $0x70] sm:$0xff]  ;;  %v16476_v20 = vld [vmem:[%s22244_s21 + $0x78] sm:$0xff] }
  0xa4   : > { %771 = vst.msk [vmem:[#allocation2 + $0x100] sm:$0xff] %vm738_vm0, %v25892_v0  ;;  %772 = vst.msk [vmem:[#allocation2 + $0x108] sm:$0xff] %vm738_vm0, %v25892_v0  ;;  %v16477_v21 = vld [vmem:[%s22244_s21 + $0x80] sm:$0xff]  ;;  %v16478_v22 = vld [vmem:[%s22244_s21 + $0x88] sm:$0xff] }
  0xa5   : > { %773 = vst.msk [vmem:[#allocation2 + $0x110] sm:$0xff] %vm738_vm0, %v25892_v0  ;;  %774 = vst.msk [vmem:[#allocation2 + $0x118] sm:$0xff] %vm738_vm0, %v25892_v0  ;;  %v16479_v23 = vld [vmem:[%s22244_s21 + $0x90] sm:$0xff]  ;;  %v16480_v24 = vld [vmem:[%s22244_s21 + $0x98] sm:$0xff] }
  0xa6   : > { %775 = vst.msk [vmem:[#allocation2 + $0x120] sm:$0xff] %vm738_vm0, %v25892_v0  ;;  %776 = vst.msk [vmem:[#allocation2 + $0x128] sm:$0xff] %vm738_vm0, %v25892_v0  ;;  %v16481_v26 = vld [vmem:[%s22244_s21 + $0xa0] sm:$0xff]  ;;  %v16482_v27 = vld [vmem:[%s22244_s21 + $0xa8] sm:$0xff] }
  0xa7   : > { %777 = vst.msk [vmem:[#allocation2 + $0x130] sm:$0xff] %vm738_vm0, %v25892_v0  ;;  %778 = vst.msk [vmem:[#allocation2 + $0x138] sm:$0xff] %vm738_vm0, %v25892_v0  ;;  %v16483_v29 = vld [vmem:[%s22244_s21 + $0xb0] sm:$0xff]  ;;  %v16484_v30 = vld [vmem:[%s22244_s21 + $0xb8] sm:$0xff] }
  0xa8   : > { %783 = vst.msk [vmem:[#allocation2 + $0x13] sm:$0xff] %vm738_vm0, %v781_v3  ;;  %784 = vst.msk [vmem:[#allocation2 + $0x1b] sm:$0xff] %vm738_vm0, %v782_v6  ;;  %v16485_v37 = vld [vmem:[%s22244_s21 + $0xc0] sm:$0xff]  ;;  %v16486_v38 = vld [vmem:[%s22244_s21 + $0xc8] sm:$0xff] }
  0xa9   : > { %788 = vst.msk [vmem:[#allocation2 + $0x25] sm:$0xff] %vm738_vm0, %v16463_v7  ;;  %789 = vst.msk [vmem:[#allocation2 + $0x2d] sm:$0xff] %vm738_vm0, %v16464_v8  ;;  %v16487_v39 = vld [vmem:[%s22244_s21 + $0xd0] sm:$0xff]  ;;  %v16488_v40 = vld [vmem:[%s22244_s21 + $0xd8] sm:$0xff] }
  0xaa   : > { %793 = vst.msk [vmem:[#allocation2 + $0x37] sm:$0xff] %vm738_vm0, %v16465_v9  ;;  %794 = vst.msk [vmem:[#allocation2 + $0x3f] sm:$0xff] %vm738_vm0, %v16466_v10  ;;  %v16489_v41 = vld [vmem:[%s22244_s21 + $0xe0] sm:$0xff]  ;;  %v16490_v43 = vld [vmem:[%s22244_s21 + $0xe8] sm:$0xff] }
  0xab   : > { %798 = vst.msk [vmem:[#allocation2 + $0x49] sm:$0xff] %vm738_vm0, %v16467_v11  ;;  %799 = vst.msk [vmem:[#allocation2 + $0x51] sm:$0xff] %vm738_vm0, %v16468_v12  ;;  %v16568_v44 = vld [vmem:[%s25951_s14 + $0x8] sm:$0xf]  ;;  %v1517_v7 = vld [vmem:[#allocation2] sm:$0xff] }
  0xac   : > { %803 = vst.msk [vmem:[#allocation2 + $0x5b] sm:$0xff] %vm738_vm0, %v16469_v13  ;;  %804 = vst.msk [vmem:[#allocation2 + $0x63] sm:$0xff] %vm738_vm0, %v16470_v14  ;;  %18765 = vmatprep.subr.msk.mxu0 %vm1700_vm1, %v16568_v44  ;;  %v1518_v8 = vld [vmem:[#allocation2 + $0x8] sm:$0xff]  ;;  %v16491_v13 = vld [vmem:[%s22244_s21 + $0xf0] sm:$0xff] }
  0xad   : > { %808 = vst.msk [vmem:[#allocation2 + $0x6d] sm:$0xff] %vm738_vm0, %v16471_v15  ;;  %809 = vst.msk [vmem:[#allocation2 + $0x75] sm:$0xff] %vm738_vm0, %v16472_v16  ;;  %v22360_v10 = vld [vmem:[%s25951_s14 + $0xc] sm:$0xf] }
  0xae   : > { %813 = vst.msk [vmem:[#allocation2 + $0x7f] sm:$0xff] %vm738_vm0, %v16473_v17  ;;  %814 = vst.msk [vmem:[#allocation2 + $0x87] sm:$0xff] %vm738_vm0, %v16474_v18 }
  0xaf   : > { %818 = vst.msk [vmem:[#allocation2 + $0x91] sm:$0xff] %vm738_vm0, %v16475_v19  ;;  %819 = vst.msk [vmem:[#allocation2 + $0x99] sm:$0xff] %vm738_vm0, %v16476_v20  ;;  %v1556_v25 = vld [vmem:[#allocation2 + $0x11] sm:$0xff]  ;;  %v1557_v28 = vld [vmem:[#allocation2 + $0x19] sm:$0xff] }
  0xb0   : > { %823 = vst.msk [vmem:[#allocation2 + $0xa3] sm:$0xff] %vm738_vm0, %v16477_v21  ;;  %824 = vst.msk [vmem:[#allocation2 + $0xab] sm:$0xff] %vm738_vm0, %v16478_v22  ;;  %18658 = vmatprep.mubr.msk.f32.mxu0 %vm738_vm0, %v1556_v25  ;;  %v1558_v31 = vld [vmem:[#allocation2 + $0x21] sm:$0xff]  ;;  %v1559_v32 = vld [vmem:[#allocation2 + $0x29] sm:$0xff] }
  0xb1   : > { %828 = vst.msk [vmem:[#allocation2 + $0xb5] sm:$0xff] %vm738_vm0, %v16479_v23  ;;  %829 = vst.msk [vmem:[#allocation2 + $0xbd] sm:$0xff] %vm738_vm0, %v16480_v24  ;;  %18659 = vmatmul.mubr.msk.f32.gmra.mrb[2].mxu0 %vm738_vm0, %v1557_v28  ;;  %v1560_v33 = vld [vmem:[#allocation2 + $0x31] sm:$0xff]  ;;  %v1561_v34 = vld [vmem:[#allocation2 + $0x39] sm:$0xff] }
  0xb2   : > { %833 = vst.msk [vmem:[#allocation2 + $0xc7] sm:$0xff] %vm738_vm0, %v16481_v26  ;;  %834 = vst.msk [vmem:[#allocation2 + $0xcf] sm:$0xff] %vm738_vm0, %v16482_v27  ;;  %18661 = vmatprep.mubr.msk.f32.mxu0 %vm738_vm0, %v1558_v31  ;;  %v1562_v35 = vld [vmem:[#allocation2 + $0x41] sm:$0xff]  ;;  %v1563_v36 = vld [vmem:[#allocation2 + $0x49] sm:$0xff] }
  0xb3   : > { %838 = vst.msk [vmem:[#allocation2 + $0xd9] sm:$0xff] %vm738_vm0, %v16483_v29  ;;  %839 = vst.msk [vmem:[#allocation2 + $0xe1] sm:$0xff] %vm738_vm0, %v16484_v30  ;;  %v1564_v42 = vld [vmem:[#allocation2 + $0x51] sm:$0xff]  ;;  %v1565_v45 = vld [vmem:[#allocation2 + $0x59] sm:$0xff] }
  0xb4   : > { %843 = vst.msk [vmem:[#allocation2 + $0xeb] sm:$0xff] %vm738_vm0, %v16485_v37  ;;  %844 = vst.msk [vmem:[#allocation2 + $0xf3] sm:$0xff] %vm738_vm0, %v16486_v38  ;;  %v1566_v46 = vld [vmem:[#allocation2 + $0x61] sm:$0xff]  ;;  %v1567_v47 = vld [vmem:[#allocation2 + $0x69] sm:$0xff] }
  0xb5   : > { %18662 = vmatmul.mubr.msk.f32.gmra.mrb[4].mxu0 %vm738_vm0, %v1559_v32  ;;  %848 = vst.msk [vmem:[#allocation2 + $0xfd] sm:$0xff] %vm738_vm0, %v16487_v39  ;;  %849 = vst.msk [vmem:[#allocation2 + $0x105] sm:$0xff] %vm738_vm0, %v16488_v40  ;;  %v1568_v48 = vld [vmem:[#allocation2 + $0x71] sm:$0xff]  ;;  %v1569_v49 = vld [vmem:[#allocation2 + $0x79] sm:$0xff] }
  0xb6   : > { %18664 = vmatprep.mubr.msk.f32.mxu0 %vm738_vm0, %v1560_v33  ;;  %853 = vst.msk [vmem:[#allocation2 + $0x10f] sm:$0xff] %vm738_vm0, %v16489_v41  ;;  %854 = vst.msk [vmem:[#allocation2 + $0x117] sm:$0xff] %vm738_vm0, %v16490_v43  ;;  %v1570_v50 = vld [vmem:[#allocation2 + $0x81] sm:$0xff]  ;;  %v1571_v51 = vld [vmem:[#allocation2 + $0x89] sm:$0xff] }
  0xb7   : > { %v1572_v52 = vld [vmem:[#allocation2 + $0x91] sm:$0xff]  ;;  %v1573_v53 = vld [vmem:[#allocation2 + $0x99] sm:$0xff]  ;;  %v1574_v54 = vld [vmem:[#allocation2 + $0xa1] sm:$0xff]  ;;  %858 = vst.msk [vmem:[#allocation2 + $0x121] sm:$0xff] %vm738_vm0, %v16491_v13 }
  0xb8   : > { %v1575_v55 = vld [vmem:[#allocation2 + $0xa9] sm:$0xff]  ;;  %v1576_v56 = vld [vmem:[#allocation2 + $0xb1] sm:$0xff]  ;;  %v1577_v57 = vld [vmem:[#allocation2 + $0xb9] sm:$0xff]  ;;  %780 = vst.msk [vmem:[#allocation2 + $0x140] sm:$0x3f] %vm779_vm2, %v25892_v0 }
  0xb9   : > { %18665 = vmatmul.mubr.msk.f32.gmra.mrb[6].mxu0 %vm738_vm0, %v1561_v34  ;;  %v1578_v58 = vld [vmem:[#allocation2 + $0xc1] sm:$0xff]  ;;  %v1579_v59 = vld [vmem:[#allocation2 + $0xc9] sm:$0xff]  ;;  %v1580_v60 = vld [vmem:[#allocation2 + $0xd1] sm:$0xff]  ;;  %861 = vst.msk [vmem:[#allocation3] sm:$0xff] %vm25894_vm3, %v25892_v0 }
  0xba   : > { %18667 = vmatprep.mubr.msk.f32.mxu0 %vm738_vm0, %v1562_v35  ;;  %v1581_v61 = vld [vmem:[#allocation2 + $0xd9] sm:$0xff]  ;;  %v1582_v62 = vld [vmem:[#allocation2 + $0xe1] sm:$0xff]  ;;  %v1519_v9 = vld [vmem:[#allocation2 + $0x10] sm:$0xff]  ;;  %862 = vst.msk [vmem:[#allocation3 + $0x8] sm:$0xff] %vm25894_vm3, %v25892_v0 }
  0xbb   : > { %v1583_v63 = vld [vmem:[#allocation2 + $0xe9] sm:$0xff]  ;;  %v1584_v1 = vld [vmem:[#allocation2 + $0xf1] sm:$0xff]  ;;  %v1521_v12 = vld [vmem:[#allocation2 + $0x20] sm:$0xff]  ;;  %865 = vst.msk [vmem:[#allocation3 + $0x133] sm:$0xff] %vm25894_vm3, %v25892_v0 }
  0xbc   : > { %v1585_v2 = vld [vmem:[#allocation2 + $0xf9] sm:$0xff]  ;;  %v1586_v3 = vld [vmem:[#allocation2 + $0x101] sm:$0xff]  ;;  %v1523_v15 = vld [vmem:[#allocation2 + $0x30] sm:$0xff]  ;;  %866 = vst.msk [vmem:[#allocation3 + $0x13b] sm:$0xff] %vm25894_vm3, %v25892_v0 }
  0xbd   : > { %18668 = vmatmul.mubr.msk.f32.gmra.mrb[8].mxu0 %vm738_vm0, %v1563_v36  ;;  %v1587_v4 = vld [vmem:[#allocation2 + $0x109] sm:$0xff]  ;;  %v1588_v5 = vld [vmem:[#allocation2 + $0x111] sm:$0xff]  ;;  %v1589_v6 = vld [vmem:[#allocation2 + $0x119] sm:$0xff]  ;;  %9423 = vst.msk [vmem:[#allocation4] sm:$0xff] %vm25894_vm3, %v25892_v0 }
  0xbe   : > { %18670 = vmatprep.mubr.msk.f32.mxu0 %vm738_vm0, %v1564_v42  ;;  %v1520_v11 = vld [vmem:[#allocation2 + $0x18] sm:$0xff]  ;;  %v1522_v14 = vld [vmem:[#allocation2 + $0x28] sm:$0xff]  ;;  %v1525_v17 = vld [vmem:[#allocation2 + $0x40] sm:$0xff]  ;;  %9424 = vst.msk [vmem:[#allocation4 + $0x8] sm:$0xff] %vm25894_vm3, %v25892_v0 }
  0xbf   : > { %v1524_v16 = vld [vmem:[#allocation2 + $0x38] sm:$0xff]  ;;  %v1526_v18 = vld [vmem:[#allocation2 + $0x48] sm:$0xff]  ;;  %v1527_v19 = vld [vmem:[#allocation2 + $0x50] sm:$0xff]  ;;  %9425 = vst.msk [vmem:[#allocation4 + $0x10] sm:$0xff] %vm25894_vm3, %v25892_v0 }
  0xc0   : > { %v1528_v20 = vld [vmem:[#allocation2 + $0x58] sm:$0xff]  ;;  %v1529_v21 = vld [vmem:[#allocation2 + $0x60] sm:$0xff]  ;;  %v1530_v22 = vld [vmem:[#allocation2 + $0x68] sm:$0xff]  ;;  %9426 = vst.msk [vmem:[#allocation4 + $0x18] sm:$0xff] %vm25894_vm3, %v25892_v0 }
  0xc1   : > { %18671 = vmatmul.mubr.msk.f32.gmra.mrb[10].mxu0 %vm738_vm0, %v1565_v45  ;;  %v1531_v23 = vld [vmem:[#allocation2 + $0x70] sm:$0xff]  ;;  %v1532_v24 = vld [vmem:[#allocation2 + $0x78] sm:$0xff]  ;;  %v1533_v25 = vld [vmem:[#allocation2 + $0x80] sm:$0xff]  ;;  %9427 = vst.msk [vmem:[#allocation4 + $0x20] sm:$0xff] %vm25894_vm3, %v25892_v0 }
  0xc2   : > { %18673 = vmatprep.mubr.msk.f32.mxu0 %vm738_vm0, %v1566_v46  ;;  %v1534_v26 = vld [vmem:[#allocation2 + $0x88] sm:$0xff]  ;;  %v1535_v27 = vld [vmem:[#allocation2 + $0x90] sm:$0xff]  ;;  %v1536_v28 = vld [vmem:[#allocation2 + $0x98] sm:$0xff]  ;;  %9428 = vst.msk [vmem:[#allocation4 + $0x28] sm:$0xff] %vm25894_vm3, %v25892_v0 }
  0xc3   : > { %v1537_v29 = vld [vmem:[#allocation2 + $0xa0] sm:$0xff]  ;;  %v1538_v30 = vld [vmem:[#allocation2 + $0xa8] sm:$0xff]  ;;  %v1539_v31 = vld [vmem:[#allocation2 + $0xb0] sm:$0xff]  ;;  %9429 = vst.msk [vmem:[#allocation4 + $0x30] sm:$0xff] %vm25894_vm3, %v25892_v0 }
  0xc4   : > { %v1540_v32 = vld [vmem:[#allocation2 + $0xb8] sm:$0xff]  ;;  %v1541_v33 = vld [vmem:[#allocation2 + $0xc0] sm:$0xff]  ;;  %v1542_v34 = vld [vmem:[#allocation2 + $0xc8] sm:$0xff]  ;;  %9430 = vst.msk [vmem:[#allocation4 + $0x38] sm:$0xff] %vm25894_vm3, %v25892_v0 }
  0xc5   : > { %18674 = vmatmul.mubr.msk.f32.gmra.mrb[12].mxu0 %vm738_vm0, %v1567_v47  ;;  %v1543_v35 = vld [vmem:[#allocation2 + $0xd0] sm:$0xff]  ;;  %v1544_v36 = vld [vmem:[#allocation2 + $0xd8] sm:$0xff]  ;;  %v1545_v37 = vld [vmem:[#allocation2 + $0xe0] sm:$0xff]  ;;  %9431 = vst.msk [vmem:[#allocation4 + $0x40] sm:$0xff] %vm25894_vm3, %v25892_v0 }
  0xc6   : > { %18676 = vmatprep.mubr.msk.f32.mxu0 %vm738_vm0, %v1568_v48  ;;  %v1546_v38 = vld [vmem:[#allocation2 + $0xe8] sm:$0xff]  ;;  %v1547_v39 = vld [vmem:[#allocation2 + $0xf0] sm:$0xff]  ;;  %v1548_v40 = vld [vmem:[#allocation2 + $0xf8] sm:$0xff]  ;;  %9432 = vst.msk [vmem:[#allocation4 + $0x48] sm:$0xff] %vm25894_vm3, %v25892_v0 }
  0xc7   : > { %v1549_v41 = vld [vmem:[#allocation2 + $0x100] sm:$0xff]  ;;  %v1550_v42 = vld [vmem:[#allocation2 + $0x108] sm:$0xff]  ;;  %v1551_v43 = vld [vmem:[#allocation2 + $0x110] sm:$0xff]  ;;  %9433 = vst.msk [vmem:[#allocation4 + $0x50] sm:$0xff] %vm25894_vm3, %v25892_v0 }
  0xc8   : > { %v2305_v45 = vld [vmem:[#allocation2 + $0x2] sm:$0xff]  ;;  %v2306_v46 = vld [vmem:[#allocation2 + $0xa] sm:$0xff]  ;;  %v22403_v47 = vld [vmem:[#allocation2 + $0x12] sm:$0xff]  ;;  %9434 = vst.msk [vmem:[#allocation4 + $0x58] sm:$0xff] %vm25894_vm3, %v25892_v0 }
  0xc9   : > { %18677 = vmatmul.mubr.msk.f32.gmra.mrb[14].mxu0 %vm738_vm0, %v1569_v49  ;;  %v22408_v48 = vld [vmem:[%s25951_s14 + $0x10] sm:$0xf]  ;;  %v22415_v49 = vld [vmem:[#allocation2 + $0x1a] sm:$0xff]  ;;  %864 = vst.msk [vmem:[#allocation3 + $0x10] sm:$0x7] %vm863_vm4, %v25892_v0 }
  0xca   : > { %18679 = vmatprep.mubr.msk.f32.mxu0 %vm738_vm0, %v1570_v50  ;;  %v22417_v50 = vld [vmem:[#allocation2 + $0x22] sm:$0xff]  ;;  %v2334_v13 = vld [vmem:[#allocation2 + $0xea] sm:$0xff]  ;;  %867 = vst.msk [vmem:[#allocation3 + $0x143] sm:$0x7] %vm863_vm4, %v25892_v0 }
  0xcd   : > { %18680 = vmatmul.mubr.msk.f32.gmra.mrb[16].mxu0 %vm738_vm0, %v1571_v51  ;;  %v16492_v51 = vld [vmem:[%s22244_s21 + $0xf8] sm:$0xff]  ;;  %s21543_s21 = smul.u32 80, %s26658_s22 }
  0xce   : > { %18682 = vmatprep.mubr.msk.f32.mxu0 %vm738_vm0, %v1572_v52  ;;  %859 = vst.msk [vmem:[#allocation2 + $0x129] sm:$0xff] %vm738_vm0, %v16492_v51  ;;  %v22427_v52 = vld [vmem:[#allocation2 + $0x2a] sm:$0xff] }
  0xcf   : > { %v3192_v51 = vld [vmem:[#allocation2 + $0xeb] sm:$0xff]  ;;  %s25240_s24 = scalar_lea.vmem %s25883_s18, %s21543_s21  ;;  %s26652_s21 = sld [smem:[#allocation43_spill]] }
  0xd1   : > { %18683 = vmatmul.mubr.msk.f32.gmra.mrb[18].mxu0 %vm738_vm0, %v1573_v53  ;;  %v22429_v53 = vld [vmem:[#allocation2 + $0x32] sm:$0xff] }
  0xd2   : > { %18685 = vmatprep.mubr.msk.f32.mxu0 %vm738_vm0, %v1574_v54  ;;  %v22435_v54 = vld [vmem:[#allocation2 + $0x3a] sm:$0xff] }
  0xd5   : > { %18686 = vmatmul.mubr.msk.f32.gmra.mrb[20].mxu0 %vm738_vm0, %v1575_v55  ;;  %v22437_v55 = vld [vmem:[#allocation2 + $0x42] sm:$0xff] }
  0xd6   : > { %18688 = vmatprep.mubr.msk.f32.mxu0 %vm738_vm0, %v1576_v56  ;;  %v22443_v56 = vld [vmem:[#allocation2 + $0x4a] sm:$0xff] }
  0xd9   : > { %18689 = vmatmul.mubr.msk.f32.gmra.mrb[22].mxu0 %vm738_vm0, %v1577_v57  ;;  %v22445_v57 = vld [vmem:[#allocation2 + $0x52] sm:$0xff] }
  0xda   : > { %18691 = vmatprep.mubr.msk.f32.mxu0 %vm738_vm0, %v1578_v58  ;;  %v2316_v58 = vld [vmem:[#allocation2 + $0x5a] sm:$0xff] }
  0xdd   : > { %18692 = vmatmul.mubr.msk.f32.gmra.mrb[24].mxu0 %vm738_vm0, %v1579_v59  ;;  %v2317_v59 = vld [vmem:[#allocation2 + $0x62] sm:$0xff] }
  0xde   : > { %18694 = vmatprep.mubr.msk.f32.mxu0 %vm738_vm0, %v1580_v60  ;;  %v2318_v60 = vld [vmem:[#allocation2 + $0x6a] sm:$0xff] }
  0xe1   : > { %18695 = vmatmul.mubr.msk.f32.gmra.mrb[26].mxu0 %vm738_vm0, %v1581_v61  ;;  %v2319_v61 = vld [vmem:[#allocation2 + $0x72] sm:$0xff] }
  0xe2   : > { %18697 = vmatprep.mubr.msk.f32.mxu0 %vm738_vm0, %v1582_v62  ;;  %v2320_v62 = vld [vmem:[#allocation2 + $0x7a] sm:$0xff] }
  0xe5   : > { %18698 = vmatmul.mubr.msk.f32.gmra.mrb[28].mxu0 %vm738_vm0, %v1583_v63  ;;  %v2321_v63 = vld [vmem:[#allocation2 + $0x82] sm:$0xff] }
  0xe6   : > { %18700 = vmatprep.mubr.msk.f32.mxu0 %vm738_vm0, %v1584_v1  ;;  %v2322_v1 = vld [vmem:[#allocation2 + $0x8a] sm:$0xff] }
  0xe9   : > { %18701 = vmatmul.mubr.msk.f32.gmra.mrb[30].mxu0 %vm738_vm0, %v1585_v2  ;;  %v2323_v2 = vld [vmem:[#allocation2 + $0x92] sm:$0xff] }
  0xea   : > { %18703 = vmatprep.mubr.msk.f32.mxu0 %vm738_vm0, %v1586_v3  ;;  %v2324_v3 = vld [vmem:[#allocation2 + $0x9a] sm:$0xff] }
  0xed   : > { %18704 = vmatmul.mubr.msk.f32.gmra.mrb[32].mxu0 %vm738_vm0, %v1587_v4  ;;  %v2325_v4 = vld [vmem:[#allocation2 + $0xa2] sm:$0xff] }
  0xee   : > { %18706 = vmatprep.mubr.msk.f32.mxu0 %vm738_vm0, %v1588_v5  ;;  %v2326_v5 = vld [vmem:[#allocation2 + $0xaa] sm:$0xff] }
  0xf1   : > { %18707 = vmatmul.mubr.msk.f32.gmra.mrb[34].mxu0 %vm738_vm0, %v1589_v6  ;;  %v2327_v6 = vld [vmem:[#allocation2 + $0xb2] sm:$0xff] }
  0xf2   : > { %18711 = vmatprep.mubr.msk.f32.mxu0 %vm738_vm0, %v1517_v7  ;;  %v2328_v7 = vld [vmem:[#allocation2 + $0xba] sm:$0xff] }
  0xf5   : > { %18712 = vmatmul.mubr.msk.f32.vlgmr.msra.gmra.mrb[0].mxu0 %vm738_vm0, %v1518_v8  ;;  %v2329_v8 = vld [vmem:[#allocation2 + $0xc2] sm:$0xff] }
  0xf6   : > { %18766 = vmatpush3.msk.msra.mxu0 %vm1700_vm1, %v16568_v44  ;;  %18714 = vmatprep.mubr.msk.f32.mxu0 %vm738_vm0, %v1519_v9  ;;  %v1552_v44 = vld [vmem:[#allocation2 + $0x118] sm:$0xff]  ;;  %v2330_v9 = vld [vmem:[#allocation2 + $0xca] sm:$0xff] }
  0xf7   : > { %18821 = vmatprep.subr.msk.mxu0 %vm1700_vm1, %v22360_v10 }
  0xf9   : > { %18715 = vmatmul.mubr.msk.f32.gmra.mrb[2].mxu0 %vm738_vm0, %v1520_v11  ;;  %v2332_v11 = vld [vmem:[#allocation2 + $0xda] sm:$0xff] }
  0xfa   : > { %18717 = vmatprep.mubr.msk.f32.mxu0 %vm738_vm0, %v1521_v12  ;;  %v2333_v12 = vld [vmem:[#allocation2 + $0xe2] sm:$0xff] }
  0xfd   : > { %18718 = vmatmul.mubr.msk.f32.gmra.mrb[4].mxu0 %vm738_vm0, %v1522_v14  ;;  %v2335_v14 = vld [vmem:[#allocation2 + $0xf2] sm:$0xff] }
  0xfe   : > { %18720 = vmatprep.mubr.msk.f32.mxu0 %vm738_vm0, %v1523_v15  ;;  %v2336_v15 = vld [vmem:[#allocation2 + $0xfa] sm:$0xff] }
 0x101   : > { %18721 = vmatmul.mubr.msk.f32.gmra.mrb[6].mxu0 %vm738_vm0, %v1524_v16  ;;  %v2337_v16 = vld [vmem:[#allocation2 + $0x102] sm:$0xff] }
 0x102   : > { %18723 = vmatprep.mubr.msk.f32.mxu0 %vm738_vm0, %v1525_v17  ;;  %v2338_v17 = vld [vmem:[#allocation2 + $0x10a] sm:$0xff] }
 0x105   : > { %18724 = vmatmul.mubr.msk.f32.gmra.mrb[8].mxu0 %vm738_vm0, %v1526_v18  ;;  %v2339_v18 = vld [vmem:[#allocation2 + $0x112] sm:$0xff] }
 0x106   : > { %18726 = vmatprep.mubr.msk.f32.mxu0 %vm738_vm0, %v1527_v19  ;;  %v2340_v19 = vld [vmem:[#allocation2 + $0x11a] sm:$0xff] }
 0x109   : > { %18727 = vmatmul.mubr.msk.f32.gmra.mrb[10].mxu0 %vm738_vm0, %v1528_v20  ;;  %v16682_v20 = vld [vmem:[%s25951_s14 + $0x14] sm:$0xf] }
 0x10a   : > { %18729 = vmatprep.mubr.msk.f32.mxu0 %vm738_vm0, %v1529_v21  ;;  %v2769_v21 = vld [vmem:[#allocation2 + $0x122] sm:$0xff] }
 0x10d   : > { %18730 = vmatmul.mubr.msk.f32.gmra.mrb[12].mxu0 %vm738_vm0, %v1530_v22  ;;  %v2770_v22 = vld [vmem:[#allocation2 + $0x12a] sm:$0xff] }
 0x10e   : > { %18732 = vmatprep.mubr.msk.f32.mxu0 %vm738_vm0, %v1531_v23  ;;  %v3165_v23 = vld [vmem:[#allocation2 + $0x13] sm:$0xff] }
 0x111   : > { %18733 = vmatmul.mubr.msk.f32.gmra.mrb[14].mxu0 %vm738_vm0, %v1532_v24  ;;  %v3166_v24 = vld [vmem:[#allocation2 + $0x1b] sm:$0xff] }
 0x112   : > { %18735 = vmatprep.mubr.msk.f32.mxu0 %vm738_vm0, %v1533_v25  ;;  %v3167_v25 = vld [vmem:[#allocation2 + $0x23] sm:$0xff] }
 0x115   : > { %18736 = vmatmul.mubr.msk.f32.gmra.mrb[16].mxu0 %vm738_vm0, %v1534_v26  ;;  %v22531_v26 = vld [vmem:[%s25951_s14 + $0x18] sm:$0xf] }
 0x116   : > { %18738 = vmatprep.mubr.msk.f32.mxu0 %vm738_vm0, %v1535_v27  ;;  %v3168_v27 = vld [vmem:[#allocation2 + $0x2b] sm:$0xff] }
 0x119   : > { %18739 = vmatmul.mubr.msk.f32.gmra.mrb[18].mxu0 %vm738_vm0, %v1536_v28  ;;  %v3169_v28 = vld [vmem:[#allocation2 + $0x33] sm:$0xff] }
 0x11a   : > { %18741 = vmatprep.mubr.msk.f32.mxu0 %vm738_vm0, %v1537_v29  ;;  %v3170_v29 = vld [vmem:[#allocation2 + $0x3b] sm:$0xff] }
 0x11d   : > { %18742 = vmatmul.mubr.msk.f32.gmra.mrb[20].mxu0 %vm738_vm0, %v1538_v30  ;;  %v3171_v30 = vld [vmem:[#allocation2 + $0x43] sm:$0xff] }
 0x11e   : > { %18744 = vmatprep.mubr.msk.f32.mxu0 %vm738_vm0, %v1539_v31  ;;  %v3172_v31 = vld [vmem:[#allocation2 + $0x4b] sm:$0xff] }
 0x121   : > { %18745 = vmatmul.mubr.msk.f32.gmra.mrb[22].mxu0 %vm738_vm0, %v1540_v32  ;;  %v3173_v32 = vld [vmem:[#allocation2 + $0x53] sm:$0xff] }
 0x122   : > { %18747 = vmatprep.mubr.msk.f32.mxu0 %vm738_vm0, %v1541_v33  ;;  %v3174_v33 = vld [vmem:[#allocation2 + $0x5b] sm:$0xff] }
 0x125   : > { %18748 = vmatmul.mubr.msk.f32.gmra.mrb[24].mxu0 %vm738_vm0, %v1542_v34  ;;  %v3175_v34 = vld [vmem:[#allocation2 + $0x63] sm:$0xff] }
 0x126   : > { %18750 = vmatprep.mubr.msk.f32.mxu0 %vm738_vm0, %v1543_v35  ;;  %v3176_v35 = vld [vmem:[#allocation2 + $0x6b] sm:$0xff] }
 0x129   : > { %18751 = vmatmul.mubr.msk.f32.gmra.mrb[26].mxu0 %vm738_vm0, %v1544_v36  ;;  %v3177_v36 = vld [vmem:[#allocation2 + $0x73] sm:$0xff] }
 0x12a   : > { %18753 = vmatprep.mubr.msk.f32.mxu0 %vm738_vm0, %v1545_v37  ;;  %v3178_v37 = vld [vmem:[#allocation2 + $0x7b] sm:$0xff] }
 0x12d   : > { %18754 = vmatmul.mubr.msk.f32.gmra.mrb[28].mxu0 %vm738_vm0, %v1546_v38  ;;  %v3179_v38 = vld [vmem:[#allocation2 + $0x83] sm:$0xff] }
 0x12e   : > { %18756 = vmatprep.mubr.msk.f32.mxu0 %vm738_vm0, %v1547_v39  ;;  %v3180_v39 = vld [vmem:[#allocation2 + $0x8b] sm:$0xff] }
 0x131   : > { %18757 = vmatmul.mubr.msk.f32.gmra.mrb[30].mxu0 %vm738_vm0, %v1548_v40  ;;  %v3181_v40 = vld [vmem:[#allocation2 + $0x93] sm:$0xff] }
 0x132   : > { %18759 = vmatprep.mubr.msk.f32.mxu0 %vm738_vm0, %v1549_v41  ;;  %v3182_v41 = vld [vmem:[#allocation2 + $0x9b] sm:$0xff] }
 0x135   : > { %18760 = vmatmul.mubr.msk.f32.gmra.mrb[32].mxu0 %vm738_vm0, %v1550_v42  ;;  %v3183_v42 = vld [vmem:[#allocation2 + $0xa3] sm:$0xff] }
 0x136   : > { %18762 = vmatprep.mubr.msk.f32.mxu0 %vm738_vm0, %v1551_v43  ;;  %v3184_v43 = vld [vmem:[#allocation2 + $0xab] sm:$0xff] }
 0x139   : > { %18763 = vmatmul.mubr.msk.f32.gmra.mrb[34].mxu0 %vm738_vm0, %v1552_v44  ;;  %v3185_v44 = vld [vmem:[#allocation2 + $0xb3] sm:$0xff] }
 0x13a   : > { %18767 = vmatprep.mubr.msk.f32.mxu0 %vm738_vm0, %v2305_v45  ;;  %v3186_v45 = vld [vmem:[#allocation2 + $0xbb] sm:$0xff] }
 0x13d   : > { %18768 = vmatmul.mubr.msk.f32.vlgmr.msra.gmra.mrb[0].mxu0 %vm738_vm0, %v2306_v46  ;;  %v3187_v46 = vld [vmem:[#allocation2 + $0xc3] sm:$0xff] }
 0x13e   : > { %18822 = vmatpush3.msk.msra.mxu0 %vm1700_vm1, %v22360_v10  ;;  %18770 = vmatprep.mubr.msk.f32.mxu0 %vm738_vm0, %v22403_v47  ;;  %v2331_v10 = vld [vmem:[#allocation2 + $0xd2] sm:$0xff] }
 0x13f   : > { %18877 = vmatprep.subr.msk.mxu0 %vm1700_vm1, %v22408_v48 }
 0x141   : > { %18771 = vmatmul.mubr.msk.f32.gmra.mrb[2].mxu0 %vm738_vm0, %v22415_v49 }
 0x142   : > { %18773 = vmatprep.mubr.msk.f32.mxu0 %vm738_vm0, %v22417_v50 }
 0x145   : > { %18774 = vmatmul.mubr.msk.f32.gmra.mrb[4].mxu0 %vm738_vm0, %v22427_v52 }
 0x146   : > { %18776 = vmatprep.mubr.msk.f32.mxu0 %vm738_vm0, %v22429_v53 }
 0x149   : > { %18777 = vmatmul.mubr.msk.f32.gmra.mrb[6].mxu0 %vm738_vm0, %v22435_v54 }
 0x14a   : > { %18779 = vmatprep.mubr.msk.f32.mxu0 %vm738_vm0, %v22437_v55 }
 0x14d   : > { %18780 = vmatmul.mubr.msk.f32.gmra.mrb[8].mxu0 %vm738_vm0, %v22443_v56 }
 0x14e   : > { %18782 = vmatprep.mubr.msk.f32.mxu0 %vm738_vm0, %v22445_v57 }
 0x151   : > { %18783 = vmatmul.mubr.msk.f32.gmra.mrb[10].mxu0 %vm738_vm0, %v2316_v58 }
 0x152   : > { %18785 = vmatprep.mubr.msk.f32.mxu0 %vm738_vm0, %v2317_v59 }
 0x155   : > { %18786 = vmatmul.mubr.msk.f32.gmra.mrb[12].mxu0 %vm738_vm0, %v2318_v60 }
 0x156   : > { %18788 = vmatprep.mubr.msk.f32.mxu0 %vm738_vm0, %v2319_v61 }
 0x159   : > { %18789 = vmatmul.mubr.msk.f32.gmra.mrb[14].mxu0 %vm738_vm0, %v2320_v62 }
 0x15a   : > { %18791 = vmatprep.mubr.msk.f32.mxu0 %vm738_vm0, %v2321_v63 }
 0x15d   : > { %18792 = vmatmul.mubr.msk.f32.gmra.mrb[16].mxu0 %vm738_vm0, %v2322_v1 }
 0x15e   : > { %18794 = vmatprep.mubr.msk.f32.mxu0 %vm738_vm0, %v2323_v2 }
 0x161   : > { %18795 = vmatmul.mubr.msk.f32.gmra.mrb[18].mxu0 %vm738_vm0, %v2324_v3 }
 0x162   : > { %18797 = vmatprep.mubr.msk.f32.mxu0 %vm738_vm0, %v2325_v4 }
 0x165   : > { %18798 = vmatmul.mubr.msk.f32.gmra.mrb[20].mxu0 %vm738_vm0, %v2326_v5 }
 0x166   : > { %18800 = vmatprep.mubr.msk.f32.mxu0 %vm738_vm0, %v2327_v6 }
 0x169   : > { %18801 = vmatmul.mubr.msk.f32.gmra.mrb[22].mxu0 %vm738_vm0, %v2328_v7 }
 0x16a   : > { %18803 = vmatprep.mubr.msk.f32.mxu0 %vm738_vm0, %v2329_v8 }
 0x16d   : > { %18804 = vmatmul.mubr.msk.f32.gmra.mrb[24].mxu0 %vm738_vm0, %v2330_v9 }
 0x16e   : > { %18806 = vmatprep.mubr.msk.f32.mxu0 %vm738_vm0, %v2331_v10 }
 0x171   : > { %18807 = vmatmul.mubr.msk.f32.gmra.mrb[26].mxu0 %vm738_vm0, %v2332_v11 }
 0x172   : > { %18809 = vmatprep.mubr.msk.f32.mxu0 %vm738_vm0, %v2333_v12 }
 0x175   : > { %18810 = vmatmul.mubr.msk.f32.gmra.mrb[28].mxu0 %vm738_vm0, %v2334_v13 }
 0x176   : > { %18812 = vmatprep.mubr.msk.f32.mxu0 %vm738_vm0, %v2335_v14 }
 0x179   : > { %18813 = vmatmul.mubr.msk.f32.gmra.mrb[30].mxu0 %vm738_vm0, %v2336_v15 }
 0x17a   : > { %18815 = vmatprep.mubr.msk.f32.mxu0 %vm738_vm0, %v2337_v16 }
 0x17d   : > { %18816 = vmatmul.mubr.msk.f32.gmra.mrb[32].mxu0 %vm738_vm0, %v2338_v17 }
 0x17e   : > { %18818 = vmatprep.mubr.msk.f32.mxu0 %vm738_vm0, %v2339_v18 }
 0x181   : > { %18819 = vmatmul.mubr.msk.f32.gmra.mrb[34].mxu0 %vm738_vm0, %v2340_v19 }
 0x182   : > { %18823 = vmatprep.mubr.msk.f32.mxu0 %vm738_vm0, %v22403_v47  ;;  %v3188_v47 = vld [vmem:[#allocation2 + $0xcb] sm:$0xff] }
 0x185   : > { %18824 = vmatmul.mubr.msk.f32.vlgmr.msra.gmra.mrb[0].mxu0 %vm738_vm0, %v22415_v49  ;;  %v3190_v49 = vld [vmem:[#allocation2 + $0xdb] sm:$0xff] }
 0x186   : > { %18878 = vmatpush3.msk.msra.mxu0 %vm1700_vm1, %v22408_v48  ;;  %18826 = vmatprep.mubr.msk.f32.mxu0 %vm738_vm0, %v22417_v50  ;;  %v3189_v48 = vld [vmem:[#allocation2 + $0xd3] sm:$0xff]  ;;  %v3191_v50 = vld [vmem:[#allocation2 + $0xe3] sm:$0xff] }
 0x187   : > { %18933 = vmatprep.subr.msk.mxu0 %vm1700_vm1, %v16682_v20 }
 0x189   : > { %18827 = vmatmul.mubr.msk.f32.gmra.mrb[2].mxu0 %vm738_vm0, %v22427_v52  ;;  %v3193_v52 = vld [vmem:[#allocation2 + $0xf3] sm:$0xff] }
 0x18a   : > { %18829 = vmatprep.mubr.msk.f32.mxu0 %vm738_vm0, %v22429_v53  ;;  %v3194_v53 = vld [vmem:[#allocation2 + $0xfb] sm:$0xff] }
 0x18d   : > { %18830 = vmatmul.mubr.msk.f32.gmra.mrb[4].mxu0 %vm738_vm0, %v22435_v54  ;;  %v3195_v54 = vld [vmem:[#allocation2 + $0x103] sm:$0xff] }
 0x18e   : > { %18832 = vmatprep.mubr.msk.f32.mxu0 %vm738_vm0, %v22437_v55  ;;  %v3196_v55 = vld [vmem:[#allocation2 + $0x10b] sm:$0xff] }
 0x191   : > { %18833 = vmatmul.mubr.msk.f32.gmra.mrb[6].mxu0 %vm738_vm0, %v22443_v56  ;;  %v3197_v56 = vld [vmem:[#allocation2 + $0x113] sm:$0xff] }
 0x192   : > { %18835 = vmatprep.mubr.msk.f32.mxu0 %vm738_vm0, %v22445_v57  ;;  %v3198_v57 = vld [vmem:[#allocation2 + $0x11b] sm:$0xff] }
 0x195   : > { %18836 = vmatmul.mubr.msk.f32.gmra.mrb[8].mxu0 %vm738_vm0, %v2316_v58  ;;  %v3199_v58 = vld [vmem:[#allocation2 + $0x123] sm:$0xff] }
 0x196   : > { %18838 = vmatprep.mubr.msk.f32.mxu0 %vm738_vm0, %v2317_v59  ;;  %v3200_v59 = vld [vmem:[#allocation2 + $0x12b] sm:$0xff] }
 0x199   : > { %18839 = vmatmul.mubr.msk.f32.gmra.mrb[10].mxu0 %vm738_vm0, %v2318_v60  ;;  %v3595_v60 = vld [vmem:[#allocation2 + $0x14] sm:$0xff] }
 0x19a   : > { %18841 = vmatprep.mubr.msk.f32.mxu0 %vm738_vm0, %v2319_v61  ;;  %v3596_v61 = vld [vmem:[#allocation2 + $0x1c] sm:$0xff] }
 0x19d   : > { %18842 = vmatmul.mubr.msk.f32.gmra.mrb[12].mxu0 %vm738_vm0, %v2320_v62  ;;  %v22572_v62 = vld [vmem:[#allocation2 + $0x24] sm:$0xff] }
 0x19e   : > { %18844 = vmatprep.mubr.msk.f32.mxu0 %vm738_vm0, %v2321_v63  ;;  %v22577_v63 = vld [vmem:[%s25951_s14 + $0x1c] sm:$0xf] }
 0x1a1   : > { %18845 = vmatmul.mubr.msk.f32.gmra.mrb[14].mxu0 %vm738_vm0, %v2322_v1  ;;  %v22584_v1 = vld [vmem:[#allocation2 + $0x2c] sm:$0xff] }
 0x1a2   : > { %18847 = vmatprep.mubr.msk.f32.mxu0 %vm738_vm0, %v2323_v2  ;;  %v22586_v2 = vld [vmem:[#allocation2 + $0x34] sm:$0xff] }
 0x1a5   : > { %18848 = vmatmul.mubr.msk.f32.gmra.mrb[16].mxu0 %vm738_vm0, %v2324_v3  ;;  %v22595_v3 = vld [vmem:[#allocation2 + $0x3c] sm:$0xff] }
 0x1a6   : > { %18850 = vmatprep.mubr.msk.f32.mxu0 %vm738_vm0, %v2325_v4  ;;  %v22597_v4 = vld [vmem:[#allocation2 + $0x44] sm:$0xff] }
 0x1a9   : > { %18851 = vmatmul.mubr.msk.f32.gmra.mrb[18].mxu0 %vm738_vm0, %v2326_v5  ;;  %v22603_v5 = vld [vmem:[#allocation2 + $0x4c] sm:$0xff] }
 0x1aa   : > { %18853 = vmatprep.mubr.msk.f32.mxu0 %vm738_vm0, %v2327_v6  ;;  %v22605_v6 = vld [vmem:[#allocation2 + $0x54] sm:$0xff] }
 0x1ad   : > { %18854 = vmatmul.mubr.msk.f32.gmra.mrb[20].mxu0 %vm738_vm0, %v2328_v7  ;;  %v22611_v7 = vld [vmem:[#allocation2 + $0x5c] sm:$0xff] }
 0x1ae   : > { %18856 = vmatprep.mubr.msk.f32.mxu0 %vm738_vm0, %v2329_v8  ;;  %v22613_v8 = vld [vmem:[#allocation2 + $0x64] sm:$0xff] }
 0x1b1   : > { %18857 = vmatmul.mubr.msk.f32.gmra.mrb[22].mxu0 %vm738_vm0, %v2330_v9  ;;  %v3606_v9 = vld [vmem:[#allocation2 + $0x6c] sm:$0xff] }
 0x1b2   : > { %18859 = vmatprep.mubr.msk.f32.mxu0 %vm738_vm0, %v2331_v10  ;;  %v3607_v10 = vld [vmem:[#allocation2 + $0x74] sm:$0xff] }
 0x1b5   : > { %18860 = vmatmul.mubr.msk.f32.gmra.mrb[24].mxu0 %vm738_vm0, %v2332_v11  ;;  %v3608_v11 = vld [vmem:[#allocation2 + $0x7c] sm:$0xff] }
 0x1b6   : > { %18862 = vmatprep.mubr.msk.f32.mxu0 %vm738_vm0, %v2333_v12  ;;  %v3609_v12 = vld [vmem:[#allocation2 + $0x84] sm:$0xff] }
 0x1b9   : > { %18863 = vmatmul.mubr.msk.f32.gmra.mrb[26].mxu0 %vm738_vm0, %v2334_v13  ;;  %v3610_v13 = vld [vmem:[#allocation2 + $0x8c] sm:$0xff] }
 0x1ba   : > { %18865 = vmatprep.mubr.msk.f32.mxu0 %vm738_vm0, %v2335_v14  ;;  %v3611_v14 = vld [vmem:[#allocation2 + $0x94] sm:$0xff] }
 0x1bd   : > { %18866 = vmatmul.mubr.msk.f32.gmra.mrb[28].mxu0 %vm738_vm0, %v2336_v15  ;;  %v3612_v15 = vld [vmem:[#allocation2 + $0x9c] sm:$0xff] }
 0x1be   : > { %18868 = vmatprep.mubr.msk.f32.mxu0 %vm738_vm0, %v2337_v16  ;;  %v3613_v16 = vld [vmem:[#allocation2 + $0xa4] sm:$0xff] }
 0x1c1   : > { %18869 = vmatmul.mubr.msk.f32.gmra.mrb[30].mxu0 %vm738_vm0, %v2338_v17  ;;  %v3614_v17 = vld [vmem:[#allocation2 + $0xac] sm:$0xff] }
 0x1c2   : > { %18871 = vmatprep.mubr.msk.f32.mxu0 %vm738_vm0, %v2339_v18  ;;  %v3615_v18 = vld [vmem:[#allocation2 + $0xb4] sm:$0xff] }
 0x1c5   : > { %18872 = vmatmul.mubr.msk.f32.gmra.mrb[32].mxu0 %vm738_vm0, %v2340_v19  ;;  %v3616_v19 = vld [vmem:[#allocation2 + $0xbc] sm:$0xff] }
 0x1c6   : > { %18874 = vmatprep.mubr.msk.f32.mxu0 %vm738_vm0, %v2769_v21  ;;  %v3618_v21 = vld [vmem:[#allocation2 + $0xcc] sm:$0xff] }
 0x1c9   : > { %18875 = vmatmul.mubr.msk.f32.gmra.mrb[34].mxu0 %vm738_vm0, %v2770_v22  ;;  %v3619_v22 = vld [vmem:[#allocation2 + $0xd4] sm:$0xff] }
 0x1ca   : > { %18879 = vmatprep.mubr.msk.f32.mxu0 %vm738_vm0, %v3165_v23  ;;  %v3620_v23 = vld [vmem:[#allocation2 + $0xdc] sm:$0xff] }
 0x1cd   : > { %18880 = vmatmul.mubr.msk.f32.vlgmr.msra.gmra.mrb[0].mxu0 %vm738_vm0, %v3166_v24  ;;  %v3621_v24 = vld [vmem:[#allocation2 + $0xe4] sm:$0xff] }
 0x1ce   : > { %18934 = vmatpush3.msk.msra.mxu0 %vm1700_vm1, %v16682_v20  ;;  %18882 = vmatprep.mubr.msk.f32.mxu0 %vm738_vm0, %v3167_v25  ;;  %v3617_v20 = vld [vmem:[#allocation2 + $0xc4] sm:$0xff]  ;;  %v3622_v25 = vld [vmem:[#allocation2 + $0xec] sm:$0xff] }
 0x1cf   : > { %18989 = vmatprep.subr.msk.mxu0 %vm1700_vm1, %v22531_v26 }
 0x1d1   : > { %18883 = vmatmul.mubr.msk.f32.gmra.mrb[2].mxu0 %vm738_vm0, %v3168_v27  ;;  %v3624_v27 = vld [vmem:[#allocation2 + $0xfc] sm:$0xff] }
 0x1d2   : > { %18885 = vmatprep.mubr.msk.f32.mxu0 %vm738_vm0, %v3169_v28  ;;  %v3625_v28 = vld [vmem:[#allocation2 + $0x104] sm:$0xff] }
 0x1d5   : > { %18886 = vmatmul.mubr.msk.f32.gmra.mrb[4].mxu0 %vm738_vm0, %v3170_v29  ;;  %v3626_v29 = vld [vmem:[#allocation2 + $0x10c] sm:$0xff] }
 0x1d6   : > { %18888 = vmatprep.mubr.msk.f32.mxu0 %vm738_vm0, %v3171_v30  ;;  %v3627_v30 = vld [vmem:[#allocation2 + $0x114] sm:$0xff] }
 0x1d9   : > { %18889 = vmatmul.mubr.msk.f32.gmra.mrb[6].mxu0 %vm738_vm0, %v3172_v31  ;;  %v3628_v31 = vld [vmem:[#allocation2 + $0x11c] sm:$0xff] }
 0x1da   : > { %18891 = vmatprep.mubr.msk.f32.mxu0 %vm738_vm0, %v3173_v32  ;;  %v3629_v32 = vld [vmem:[#allocation2 + $0x124] sm:$0xff] }
 0x1dd   : > { %18892 = vmatmul.mubr.msk.f32.gmra.mrb[8].mxu0 %vm738_vm0, %v3174_v33  ;;  %v3630_v33 = vld [vmem:[#allocation2 + $0x12c] sm:$0xff] }
 0x1de   : > { %18894 = vmatprep.mubr.msk.f32.mxu0 %vm738_vm0, %v3175_v34  ;;  %v16796_v34 = vld [vmem:[%s25951_s14 + $0x20] sm:$0xf] }
 0x1e1   : > { %18895 = vmatmul.mubr.msk.f32.gmra.mrb[10].mxu0 %vm738_vm0, %v3176_v35  ;;  %v4059_v35 = vld [vmem:[#allocation2 + $0x134] sm:$0xff] }
 0x1e2   : > { %18897 = vmatprep.mubr.msk.f32.mxu0 %vm738_vm0, %v3177_v36  ;;  %v4060_v36 = vld [vmem:[#allocation2 + $0x13c] sm:$0xff] }
 0x1e5   : > { %18898 = vmatmul.mubr.msk.f32.gmra.mrb[12].mxu0 %vm738_vm0, %v3178_v37  ;;  %v4455_v37 = vld [vmem:[#allocation2 + $0x25] sm:$0xff] }
 0x1e6   : > { %18900 = vmatprep.mubr.msk.f32.mxu0 %vm738_vm0, %v3179_v38  ;;  %v4456_v38 = vld [vmem:[#allocation2 + $0x2d] sm:$0xff] }
 0x1e9   : > { %18901 = vmatmul.mubr.msk.f32.gmra.mrb[14].mxu0 %vm738_vm0, %v3180_v39  ;;  %v4457_v39 = vld [vmem:[#allocation2 + $0x35] sm:$0xff] }
 0x1ea   : > { %18903 = vmatprep.mubr.msk.f32.mxu0 %vm738_vm0, %v3181_v40  ;;  %v4458_v40 = vld [vmem:[#allocation2 + $0x3d] sm:$0xff] }
 0x1ed   : > { %18904 = vmatmul.mubr.msk.f32.gmra.mrb[16].mxu0 %vm738_vm0, %v3182_v41  ;;  %v4459_v41 = vld [vmem:[#allocation2 + $0x45] sm:$0xff] }
 0x1ee   : > { %18906 = vmatprep.mubr.msk.f32.mxu0 %vm738_vm0, %v3183_v42  ;;  %v4460_v42 = vld [vmem:[#allocation2 + $0x4d] sm:$0xff] }
 0x1f1   : > { %18907 = vmatmul.mubr.msk.f32.gmra.mrb[18].mxu0 %vm738_vm0, %v3184_v43  ;;  %v4461_v43 = vld [vmem:[#allocation2 + $0x55] sm:$0xff] }
 0x1f2   : > { %18909 = vmatprep.mubr.msk.f32.mxu0 %vm738_vm0, %v3185_v44  ;;  %v4462_v44 = vld [vmem:[#allocation2 + $0x5d] sm:$0xff] }
 0x1f5   : > { %18910 = vmatmul.mubr.msk.f32.gmra.mrb[20].mxu0 %vm738_vm0, %v3186_v45  ;;  %v4463_v45 = vld [vmem:[#allocation2 + $0x65] sm:$0xff] }
 0x1f6   : > { %18912 = vmatprep.mubr.msk.f32.mxu0 %vm738_vm0, %v3187_v46  ;;  %v4464_v46 = vld [vmem:[#allocation2 + $0x6d] sm:$0xff] }
 0x1f9   : > { %18913 = vmatmul.mubr.msk.f32.gmra.mrb[22].mxu0 %vm738_vm0, %v3188_v47  ;;  %v4465_v47 = vld [vmem:[#allocation2 + $0x75] sm:$0xff] }
 0x1fa   : > { %18915 = vmatprep.mubr.msk.f32.mxu0 %vm738_vm0, %v3189_v48  ;;  %v4466_v48 = vld [vmem:[#allocation2 + $0x7d] sm:$0xff] }
 0x1fd   : > { %18916 = vmatmul.mubr.msk.f32.gmra.mrb[24].mxu0 %vm738_vm0, %v3190_v49  ;;  %v4467_v49 = vld [vmem:[#allocation2 + $0x85] sm:$0xff] }
 0x1fe   : > { %18918 = vmatprep.mubr.msk.f32.mxu0 %vm738_vm0, %v3191_v50  ;;  %v4468_v50 = vld [vmem:[#allocation2 + $0x8d] sm:$0xff] }
 0x201   : > { %18919 = vmatmul.mubr.msk.f32.gmra.mrb[26].mxu0 %vm738_vm0, %v3192_v51  ;;  %v4469_v51 = vld [vmem:[#allocation2 + $0x95] sm:$0xff] }
 0x202   : > { %18921 = vmatprep.mubr.msk.f32.mxu0 %vm738_vm0, %v3193_v52  ;;  %v4470_v52 = vld [vmem:[#allocation2 + $0x9d] sm:$0xff] }
 0x205   : > { %18922 = vmatmul.mubr.msk.f32.gmra.mrb[28].mxu0 %vm738_vm0, %v3194_v53  ;;  %v4471_v53 = vld [vmem:[#allocation2 + $0xa5] sm:$0xff] }
 0x206   : > { %18924 = vmatprep.mubr.msk.f32.mxu0 %vm738_vm0, %v3195_v54  ;;  %v4472_v54 = vld [vmem:[#allocation2 + $0xad] sm:$0xff] }
 0x209   : > { %18925 = vmatmul.mubr.msk.f32.gmra.mrb[30].mxu0 %vm738_vm0, %v3196_v55  ;;  %v4473_v55 = vld [vmem:[#allocation2 + $0xb5] sm:$0xff] }
 0x20a   : > { %18927 = vmatprep.mubr.msk.f32.mxu0 %vm738_vm0, %v3197_v56  ;;  %v4474_v56 = vld [vmem:[#allocation2 + $0xbd] sm:$0xff] }
 0x20d   : > { %18928 = vmatmul.mubr.msk.f32.gmra.mrb[32].mxu0 %vm738_vm0, %v3198_v57  ;;  %v4475_v57 = vld [vmem:[#allocation2 + $0xc5] sm:$0xff] }
 0x20e   : > { %18930 = vmatprep.mubr.msk.f32.mxu0 %vm738_vm0, %v3199_v58  ;;  %v4476_v58 = vld [vmem:[#allocation2 + $0xcd] sm:$0xff] }
 0x211   : > { %18931 = vmatmul.mubr.msk.f32.gmra.mrb[34].mxu0 %vm738_vm0, %v3200_v59  ;;  %v4477_v59 = vld [vmem:[#allocation2 + $0xd5] sm:$0xff] }
 0x212   : > { %18935 = vmatprep.mubr.msk.f32.mxu0 %vm738_vm0, %v3595_v60  ;;  %v4478_v60 = vld [vmem:[#allocation2 + $0xdd] sm:$0xff] }
 0x215   : > { %18936 = vmatmul.mubr.msk.f32.vlgmr.msra.gmra.mrb[0].mxu0 %vm738_vm0, %v3596_v61  ;;  %v4479_v61 = vld [vmem:[#allocation2 + $0xe5] sm:$0xff] }
 0x216   : > { %18990 = vmatpush3.msk.msra.mxu0 %vm1700_vm1, %v22531_v26  ;;  %18938 = vmatprep.mubr.msk.f32.mxu0 %vm738_vm0, %v22572_v62  ;;  %v3623_v26 = vld [vmem:[#allocation2 + $0xf4] sm:$0xff] }
 0x217   : > { %19045 = vmatprep.subr.msk.mxu0 %vm1700_vm1, %v22577_v63 }
 0x219   : > { %18939 = vmatmul.mubr.msk.f32.gmra.mrb[2].mxu0 %vm738_vm0, %v22584_v1 }
 0x21a   : > { %18941 = vmatprep.mubr.msk.f32.mxu0 %vm738_vm0, %v22586_v2 }
 0x21d   : > { %18942 = vmatmul.mubr.msk.f32.gmra.mrb[4].mxu0 %vm738_vm0, %v22595_v3 }
 0x21e   : > { %18944 = vmatprep.mubr.msk.f32.mxu0 %vm738_vm0, %v22597_v4 }
 0x221   : > { %18945 = vmatmul.mubr.msk.f32.gmra.mrb[6].mxu0 %vm738_vm0, %v22603_v5 }
 0x222   : > { %18947 = vmatprep.mubr.msk.f32.mxu0 %vm738_vm0, %v22605_v6 }
 0x225   : > { %18948 = vmatmul.mubr.msk.f32.gmra.mrb[8].mxu0 %vm738_vm0, %v22611_v7 }
 0x226   : > { %18950 = vmatprep.mubr.msk.f32.mxu0 %vm738_vm0, %v22613_v8 }
 0x229   : > { %18951 = vmatmul.mubr.msk.f32.gmra.mrb[10].mxu0 %vm738_vm0, %v3606_v9 }
 0x22a   : > { %18953 = vmatprep.mubr.msk.f32.mxu0 %vm738_vm0, %v3607_v10 }
 0x22d   : > { %18954 = vmatmul.mubr.msk.f32.gmra.mrb[12].mxu0 %vm738_vm0, %v3608_v11 }
 0x22e   : > { %18956 = vmatprep.mubr.msk.f32.mxu0 %vm738_vm0, %v3609_v12 }
 0x231   : > { %18957 = vmatmul.mubr.msk.f32.gmra.mrb[14].mxu0 %vm738_vm0, %v3610_v13 }
 0x232   : > { %18959 = vmatprep.mubr.msk.f32.mxu0 %vm738_vm0, %v3611_v14 }
 0x235   : > { %18960 = vmatmul.mubr.msk.f32.gmra.mrb[16].mxu0 %vm738_vm0, %v3612_v15 }
 0x236   : > { %18962 = vmatprep.mubr.msk.f32.mxu0 %vm738_vm0, %v3613_v16 }
 0x239   : > { %18963 = vmatmul.mubr.msk.f32.gmra.mrb[18].mxu0 %vm738_vm0, %v3614_v17 }
 0x23a   : > { %18965 = vmatprep.mubr.msk.f32.mxu0 %vm738_vm0, %v3615_v18 }
 0x23d   : > { %18966 = vmatmul.mubr.msk.f32.gmra.mrb[20].mxu0 %vm738_vm0, %v3616_v19 }
 0x23e   : > { %18968 = vmatprep.mubr.msk.f32.mxu0 %vm738_vm0, %v3617_v20 }
 0x241   : > { %18969 = vmatmul.mubr.msk.f32.gmra.mrb[22].mxu0 %vm738_vm0, %v3618_v21 }
 0x242   : > { %18971 = vmatprep.mubr.msk.f32.mxu0 %vm738_vm0, %v3619_v22 }
 0x245   : > { %18972 = vmatmul.mubr.msk.f32.gmra.mrb[24].mxu0 %vm738_vm0, %v3620_v23 }
 0x246   : > { %18974 = vmatprep.mubr.msk.f32.mxu0 %vm738_vm0, %v3621_v24 }
 0x249   : > { %18975 = vmatmul.mubr.msk.f32.gmra.mrb[26].mxu0 %vm738_vm0, %v3622_v25 }
 0x24a   : > { %18977 = vmatprep.mubr.msk.f32.mxu0 %vm738_vm0, %v3623_v26 }
 0x24d   : > { %18978 = vmatmul.mubr.msk.f32.gmra.mrb[28].mxu0 %vm738_vm0, %v3624_v27 }
 0x24e   : > { %18980 = vmatprep.mubr.msk.f32.mxu0 %vm738_vm0, %v3625_v28 }
 0x251   : > { %18981 = vmatmul.mubr.msk.f32.gmra.mrb[30].mxu0 %vm738_vm0, %v3626_v29 }
 0x252   : > { %18983 = vmatprep.mubr.msk.f32.mxu0 %vm738_vm0, %v3627_v30 }
 0x255   : > { %18984 = vmatmul.mubr.msk.f32.gmra.mrb[32].mxu0 %vm738_vm0, %v3628_v31 }
 0x256   : > { %18986 = vmatprep.mubr.msk.f32.mxu0 %vm738_vm0, %v3629_v32 }
 0x259   : > { %18987 = vmatmul.mubr.msk.f32.gmra.mrb[34].mxu0 %vm738_vm0, %v3630_v33 }
 0x25a   : > { %18991 = vmatprep.mubr.msk.f32.mxu0 %vm738_vm0, %v22572_v62  ;;  %v4480_v62 = vld [vmem:[#allocation2 + $0xed] sm:$0xff] }
 0x25d   : > { %18992 = vmatmul.mubr.msk.f32.vlgmr.msra.gmra.mrb[0].mxu0 %vm738_vm0, %v22584_v1  ;;  %v4482_v1 = vld [vmem:[#allocation2 + $0xfd] sm:$0xff] }
 0x25e   : > { %19046 = vmatpush3.msk.msra.mxu0 %vm1700_vm1, %v22577_v63  ;;  %18994 = vmatprep.mubr.msk.f32.mxu0 %vm738_vm0, %v22586_v2  ;;  %v4481_v63 = vld [vmem:[#allocation2 + $0xf5] sm:$0xff]  ;;  %v4483_v2 = vld [vmem:[#allocation2 + $0x105] sm:$0xff] }
 0x25f   : > { %19101 = vmatprep.subr.msk.mxu0 %vm1700_vm1, %v16796_v34 }
 0x261   : > { %18995 = vmatmul.mubr.msk.f32.gmra.mrb[2].mxu0 %vm738_vm0, %v22595_v3  ;;  %v4484_v3 = vld [vmem:[#allocation2 + $0x10d] sm:$0xff] }
 0x262   : > { %18997 = vmatprep.mubr.msk.f32.mxu0 %vm738_vm0, %v22597_v4  ;;  %v4485_v4 = vld [vmem:[#allocation2 + $0x115] sm:$0xff] }
 0x265   : > { %18998 = vmatmul.mubr.msk.f32.gmra.mrb[4].mxu0 %vm738_vm0, %v22603_v5  ;;  %v4486_v5 = vld [vmem:[#allocation2 + $0x11d] sm:$0xff] }
 0x266   : > { %19000 = vmatprep.mubr.msk.f32.mxu0 %vm738_vm0, %v22605_v6  ;;  %v4487_v6 = vld [vmem:[#allocation2 + $0x125] sm:$0xff] }
 0x269   : > { %19001 = vmatmul.mubr.msk.f32.gmra.mrb[6].mxu0 %vm738_vm0, %v22611_v7  ;;  %v4488_v7 = vld [vmem:[#allocation2 + $0x12d] sm:$0xff] }
 0x26a   : > { %19003 = vmatprep.mubr.msk.f32.mxu0 %vm738_vm0, %v22613_v8  ;;  %v4489_v8 = vld [vmem:[#allocation2 + $0x135] sm:$0xff] }
 0x26d   : > { %19004 = vmatmul.mubr.msk.f32.gmra.mrb[8].mxu0 %vm738_vm0, %v3606_v9  ;;  %v4490_v9 = vld [vmem:[#allocation2 + $0x13d] sm:$0xff] }
 0x26e   : > { %19006 = vmatprep.mubr.msk.f32.mxu0 %vm738_vm0, %v3607_v10  ;;  %v4885_v10 = vld [vmem:[#allocation2 + $0x26] sm:$0xff] }
 0x271   : > { %19007 = vmatmul.mubr.msk.f32.gmra.mrb[10].mxu0 %vm738_vm0, %v3608_v11  ;;  %v4886_v11 = vld [vmem:[#allocation2 + $0x2e] sm:$0xff] }
 0x272   : > { %19009 = vmatprep.mubr.msk.f32.mxu0 %vm738_vm0, %v3609_v12  ;;  %v4887_v12 = vld [vmem:[#allocation2 + $0x36] sm:$0xff] }
 0x275   : > { %19010 = vmatmul.mubr.msk.f32.gmra.mrb[12].mxu0 %vm738_vm0, %v3610_v13  ;;  %v4888_v13 = vld [vmem:[#allocation2 + $0x3e] sm:$0xff] }
 0x276   : > { %19012 = vmatprep.mubr.msk.f32.mxu0 %vm738_vm0, %v3611_v14  ;;  %v4889_v14 = vld [vmem:[#allocation2 + $0x46] sm:$0xff] }
 0x279   : > { %19013 = vmatmul.mubr.msk.f32.gmra.mrb[14].mxu0 %vm738_vm0, %v3612_v15  ;;  %v4890_v15 = vld [vmem:[#allocation2 + $0x4e] sm:$0xff] }
 0x27a   : > { %19015 = vmatprep.mubr.msk.f32.mxu0 %vm738_vm0, %v3613_v16  ;;  %v4891_v16 = vld [vmem:[#allocation2 + $0x56] sm:$0xff] }
 0x27d   : > { %19016 = vmatmul.mubr.msk.f32.gmra.mrb[16].mxu0 %vm738_vm0, %v3614_v17  ;;  %v4892_v17 = vld [vmem:[#allocation2 + $0x5e] sm:$0xff] }
 0x27e   : > { %19018 = vmatprep.mubr.msk.f32.mxu0 %vm738_vm0, %v3615_v18  ;;  %v4893_v18 = vld [vmem:[#allocation2 + $0x66] sm:$0xff] }
 0x281   : > { %19019 = vmatmul.mubr.msk.f32.gmra.mrb[18].mxu0 %vm738_vm0, %v3616_v19  ;;  %v4894_v19 = vld [vmem:[#allocation2 + $0x6e] sm:$0xff] }
 0x282   : > { %19021 = vmatprep.mubr.msk.f32.mxu0 %vm738_vm0, %v3617_v20  ;;  %v4895_v20 = vld [vmem:[#allocation2 + $0x76] sm:$0xff] }
 0x285   : > { %19022 = vmatmul.mubr.msk.f32.gmra.mrb[20].mxu0 %vm738_vm0, %v3618_v21  ;;  %v4896_v21 = vld [vmem:[#allocation2 + $0x7e] sm:$0xff] }
 0x286   : > { %19024 = vmatprep.mubr.msk.f32.mxu0 %vm738_vm0, %v3619_v22  ;;  %v4897_v22 = vld [vmem:[#allocation2 + $0x86] sm:$0xff] }
 0x289   : > { %19025 = vmatmul.mubr.msk.f32.gmra.mrb[22].mxu0 %vm738_vm0, %v3620_v23  ;;  %v4898_v23 = vld [vmem:[#allocation2 + $0x8e] sm:$0xff] }
 0x28a   : > { %19027 = vmatprep.mubr.msk.f32.mxu0 %vm738_vm0, %v3621_v24  ;;  %v4899_v24 = vld [vmem:[#allocation2 + $0x96] sm:$0xff] }
 0x28d   : > { %19028 = vmatmul.mubr.msk.f32.gmra.mrb[24].mxu0 %vm738_vm0, %v3622_v25  ;;  %v4900_v25 = vld [vmem:[#allocation2 + $0x9e] sm:$0xff] }
 0x28e   : > { %19030 = vmatprep.mubr.msk.f32.mxu0 %vm738_vm0, %v3623_v26  ;;  %v4901_v26 = vld [vmem:[#allocation2 + $0xa6] sm:$0xff] }
 0x291   : > { %19031 = vmatmul.mubr.msk.f32.gmra.mrb[26].mxu0 %vm738_vm0, %v3624_v27  ;;  %v4902_v27 = vld [vmem:[#allocation2 + $0xae] sm:$0xff] }
 0x292   : > { %19033 = vmatprep.mubr.msk.f32.mxu0 %vm738_vm0, %v3625_v28  ;;  %v4903_v28 = vld [vmem:[#allocation2 + $0xb6] sm:$0xff] }
 0x295   : > { %19034 = vmatmul.mubr.msk.f32.gmra.mrb[28].mxu0 %vm738_vm0, %v3626_v29  ;;  %v4904_v29 = vld [vmem:[#allocation2 + $0xbe] sm:$0xff] }
 0x296   : > { %19036 = vmatprep.mubr.msk.f32.mxu0 %vm738_vm0, %v3627_v30  ;;  %v4905_v30 = vld [vmem:[#allocation2 + $0xc6] sm:$0xff] }
 0x299   : > { %19037 = vmatmul.mubr.msk.f32.gmra.mrb[30].mxu0 %vm738_vm0, %v3628_v31  ;;  %v4906_v31 = vld [vmem:[#allocation2 + $0xce] sm:$0xff] }
 0x29a   : > { %19039 = vmatprep.mubr.msk.f32.mxu0 %vm738_vm0, %v3629_v32  ;;  %v4907_v32 = vld [vmem:[#allocation2 + $0xd6] sm:$0xff] }
 0x29d   : > { %19040 = vmatmul.mubr.msk.f32.gmra.mrb[32].mxu0 %vm738_vm0, %v3630_v33  ;;  %v4908_v33 = vld [vmem:[#allocation2 + $0xde] sm:$0xff] }
 0x29e   : > { %19042 = vmatprep.mubr.msk.f32.mxu0 %vm738_vm0, %v4059_v35  ;;  %v4910_v35 = vld [vmem:[#allocation2 + $0xee] sm:$0xff] }
 0x2a1   : > { %19043 = vmatmul.mubr.msk.f32.gmra.mrb[34].mxu0 %vm738_vm0, %v4060_v36  ;;  %v4911_v36 = vld [vmem:[#allocation2 + $0xf6] sm:$0xff] }
 0x2a2   : > { %19047 = vmatprep.mubr.msk.f32.mxu0 %vm738_vm0, %v4455_v37  ;;  %v4912_v37 = vld [vmem:[#allocation2 + $0xfe] sm:$0xff] }
 0x2a5   : > { %19048 = vmatmul.mubr.msk.f32.vlgmr.msra.gmra.mrb[0].mxu0 %vm738_vm0, %v4456_v38  ;;  %v4913_v38 = vld [vmem:[#allocation2 + $0x106] sm:$0xff] }
 0x2a6   : > { %19102 = vmatpush3.msk.msra.mxu0 %vm1700_vm1, %v16796_v34  ;;  %19050 = vmatprep.mubr.msk.f32.mxu0 %vm738_vm0, %v4457_v39  ;;  %v4909_v34 = vld [vmem:[#allocation2 + $0xe6] sm:$0xff]  ;;  %v4914_v39 = vld [vmem:[#allocation2 + $0x10e] sm:$0xff] }
 0x2a9   : > { %19051 = vmatmul.mubr.msk.f32.gmra.mrb[2].mxu0 %vm738_vm0, %v4458_v40  ;;  %v4915_v40 = vld [vmem:[#allocation2 + $0x116] sm:$0xff] }
 0x2aa   : > { %19053 = vmatprep.mubr.msk.f32.mxu0 %vm738_vm0, %v4459_v41  ;;  %v4916_v41 = vld [vmem:[#allocation2 + $0x11e] sm:$0xff] }
 0x2ad   : > { %19054 = vmatmul.mubr.msk.f32.gmra.mrb[4].mxu0 %vm738_vm0, %v4460_v42  ;;  %v4917_v42 = vld [vmem:[#allocation2 + $0x126] sm:$0xff] }
 0x2ae   : > { %19056 = vmatprep.mubr.msk.f32.mxu0 %vm738_vm0, %v4461_v43  ;;  %v4918_v43 = vld [vmem:[#allocation2 + $0x12e] sm:$0xff] }
 0x2b1   : > { %19057 = vmatmul.mubr.msk.f32.gmra.mrb[6].mxu0 %vm738_vm0, %v4462_v44  ;;  %v4919_v44 = vld [vmem:[#allocation2 + $0x136] sm:$0xff] }
 0x2b2   : > { %19059 = vmatprep.mubr.msk.f32.mxu0 %vm738_vm0, %v4463_v45  ;;  %v4920_v45 = vld [vmem:[#allocation2 + $0x13e] sm:$0xff] }
 0x2b5   : > { %19060 = vmatmul.mubr.msk.f32.gmra.mrb[8].mxu0 %vm738_vm0, %v4464_v46  ;;  %v16835_v46 = vld [vmem:[%s25952_s16 + $0x8] sm:$0xff] }
 0x2b6   : > { %19062 = vmatprep.mubr.msk.f32.mxu0 %vm738_vm0, %v4465_v47  ;;  %20804 = vmatprep.subr.mxu1 %v16835_v46  ;;  %v22808_v47 = vld [vmem:[%s25952_s16] sm:$0xff] }
 0x2b7   : > { %19157 = vmatprep.subr.mxu0 %v16835_v46  ;;  %20805 = vmatpush3.msra.mxu1 %v16835_v46  ;;  %25953 = vst [vmem:[#allocation22_spill] sm:$0xff] %v22808_v47 }
 0x2b8   : > { %19213 = vmatprep.subr.mxu1 %v22808_v47 }
 0x2b9   : > { %19063 = vmatmul.mubr.msk.f32.gmra.mrb[10].mxu0 %vm738_vm0, %v4466_v48  ;;  %v868_v48 = vlaneseq }
 0x2ba   : > { %19065 = vmatprep.mubr.msk.f32.mxu0 %vm738_vm0, %v4467_v49 }
 0x2bb   : > { %v22811_v49 = vshrl.u32 %v868_v48, 7 }
 0x2bd   : > { %19066 = vmatmul.mubr.msk.f32.gmra.mrb[12].mxu0 %vm738_vm0, %v4468_v50  ;;  %v22814_v50 = vadd.s32 8, %v22811_v49 }
 0x2be   : > { %19068 = vmatprep.mubr.msk.f32.mxu0 %vm738_vm0, %v4469_v51  ;;  %v22817_v51 = vadd.s32 24, %v22811_v49 }
 0x2bf   : > { %25954 = vst [vmem:[#allocation23_spill] sm:$0xff] %v22814_v50 }
 0x2c0   : > { %25955 = vst [vmem:[#allocation24_spill] sm:$0xff] %v22817_v51 }
 0x2c1   : > { %19069 = vmatmul.mubr.msk.f32.gmra.mrb[14].mxu0 %vm738_vm0, %v4470_v52 }
 0x2c2   : > { %19071 = vmatprep.mubr.msk.f32.mxu0 %vm738_vm0, %v4471_v53  ;;  %v22820_v52 = vmul.u32.u64.low 3817748708, %v22814_v50  ;;  %v22821_v53 = vmul.u32.u64.high 3817748708, %v22814_v50, %v22820_v52 }
 0x2c5   : > { %19072 = vmatmul.mubr.msk.f32.gmra.mrb[16].mxu0 %vm738_vm0, %v4472_v54  ;;  %v22824_v54 = vadd.s32 16, %v22811_v49 }
 0x2c6   : > { %19074 = vmatprep.mubr.msk.f32.mxu0 %vm738_vm0, %v4473_v55 }
 0x2c7   : > { %25956 = vst [vmem:[#allocation25_spill] sm:$0xff] %v22824_v54 }
 0x2c9   : > { %19075 = vmatmul.mubr.msk.f32.gmra.mrb[18].mxu0 %vm738_vm0, %v4474_v56  ;;  %v22827_v55 = vmul.u32.u64.low 3817748708, %v22811_v49  ;;  %v22828_v56 = vmul.u32.u64.high 3817748708, %v22811_v49, %v22827_v55 }
 0x2ca   : > { %19077 = vmatprep.mubr.msk.f32.mxu0 %vm738_vm0, %v4475_v57 }
 0x2cd   : > { %19078 = vmatmul.mubr.msk.f32.gmra.mrb[20].mxu0 %vm738_vm0, %v4476_v58  ;;  %v22831_v57 = vmul.u32.u64.low 3817748708, %v22817_v51  ;;  %v22832_v58 = vmul.u32.u64.high 3817748708, %v22817_v51, %v22831_v57 }
 0x2ce   : > { %19080 = vmatprep.mubr.msk.f32.mxu0 %vm738_vm0, %v4477_v59  ;;  %v22971_v57 = vadd.s32 96, %v22811_v49 }
 0x2d1   : > { %19081 = vmatmul.mubr.msk.f32.gmra.mrb[22].mxu0 %vm738_vm0, %v4478_v60  ;;  %v22835_v59 = vmul.u32.u64.low 3817748708, %v22824_v54  ;;  %v22836_v60 = vmul.u32.u64.high 3817748708, %v22824_v54, %v22835_v59 }
 0x2d2   : > { %19083 = vmatprep.mubr.msk.f32.mxu0 %vm738_vm0, %v4479_v61  ;;  %v22839_v61 = vadd.s32 40, %v22811_v49 }
 0x2d4   : > { %25957 = vst [vmem:[#allocation26_spill] sm:$0xff] %v22839_v61 }
 0x2d5   : > { %19084 = vmatmul.mubr.msk.f32.gmra.mrb[24].mxu0 %vm738_vm0, %v4480_v62  ;;  %v922_v62 = vshrl.u32 %v22821_v53, 4 }
 0x2d6   : > { %19086 = vmatprep.mubr.msk.f32.mxu0 %vm738_vm0, %v4481_v63  ;;  %v911_v63 = vshrl.u32 %v22828_v56, 4 }
 0x2d9   : > { %19087 = vmatmul.mubr.msk.f32.gmra.mrb[26].mxu0 %vm738_vm0, %v4482_v1 }
 0x2da   : > { %19089 = vmatprep.mubr.msk.f32.mxu0 %vm738_vm0, %v4483_v2  ;;  %v22844_v1 = vmul.u32.u64.low 3817748708, %v22839_v61  ;;  %v22845_v2 = vmul.u32.u64.high 3817748708, %v22839_v61, %v22844_v1 }
 0x2dd   : > { %19090 = vmatmul.mubr.msk.f32.gmra.mrb[28].mxu0 %vm738_vm0, %v4484_v3  ;;  %v22848_v3 = vadd.s32 32, %v22811_v49 }
 0x2de   : > { %19092 = vmatprep.mubr.msk.f32.mxu0 %vm738_vm0, %v4485_v4  ;;  %v944_v4 = vshrl.u32 %v22832_v58, 4 }
 0x2df   : > { %25958 = vst [vmem:[#allocation27_spill] sm:$0xff] %v22848_v3 }
 0x2e1   : > { %19093 = vmatmul.mubr.msk.f32.gmra.mrb[30].mxu0 %vm738_vm0, %v4486_v5  ;;  %v22852_v5 = vadd.s32 56, %v22811_v49 }
 0x2e2   : > { %19095 = vmatprep.mubr.msk.f32.mxu0 %vm738_vm0, %v4487_v6  ;;  %v923_v6 = vmul.u32 18, %v922_v62 }
 0x2e3   : > { %25959 = vst [vmem:[#allocation28_spill] sm:$0xff] %v22852_v5 }
 0x2e5   : > { %19096 = vmatmul.mubr.msk.f32.gmra.mrb[32].mxu0 %vm738_vm0, %v4488_v7  ;;  %v933_v7 = vshrl.u32 %v22836_v60, 4 }
 0x2e6   : > { %19098 = vmatprep.mubr.msk.f32.mxu0 %vm738_vm0, %v4489_v8  ;;  %v22856_v8 = vadd.s32 48, %v22811_v49 }
 0x2e8   : > { %25960 = vst [vmem:[#allocation29_spill] sm:$0xff] %v22856_v8 }
 0x2e9   : > { %19099 = vmatmul.mubr.msk.f32.gmra.mrb[34].mxu0 %vm738_vm0, %v4490_v9  ;;  %v912_v9 = vmul.u32 18, %v911_v63 }
 0x2ea   : > { %19103 = vmatprep.mubr.msk.f32.mxu0 %vm738_vm0, %v4885_v10 }
 0x2ed   : > { %19104 = vmatmul.mubr.msk.f32.vlgmr.msra.gmra.mrb[0].mxu0 %vm738_vm0, %v4886_v11  ;;  %v22859_v10 = vmul.u32.u64.low 3817748708, %v22848_v3  ;;  %v22860_v11 = vmul.u32.u64.high 3817748708, %v22848_v3, %v22859_v10 }
 0x2ee   : > { %19106 = vmatprep.mubr.msk.f32.mxu0 %vm738_vm0, %v4887_v12  ;;  %19158 = vmatpush3.msra.mxu0 %v16835_v46  ;;  %v945_v12 = vmul.u32 18, %v944_v4 }
 0x2f1   : > { %19107 = vmatmul.mubr.msk.f32.gmra.mrb[2].mxu0 %vm738_vm0, %v4888_v13 }
 0x2f2   : > { %19109 = vmatprep.mubr.msk.f32.mxu0 %vm738_vm0, %v4889_v14  ;;  %v22863_v13 = vmul.u32.u64.low 3817748708, %v22852_v5  ;;  %v22864_v14 = vmul.u32.u64.high 3817748708, %v22852_v5, %v22863_v13 }
 0x2f5   : > { %19110 = vmatmul.mubr.msk.f32.gmra.mrb[4].mxu0 %vm738_vm0, %v4890_v15  ;;  %v22867_v15 = vsub.s32 %v22814_v50, %v923_v6 }
 0x2f6   : > { %19112 = vmatprep.mubr.msk.f32.mxu0 %vm738_vm0, %v4891_v16  ;;  %v934_v16 = vmul.u32 18, %v933_v7 }
 0x2f7   : > { %vm1302_vm5 = vcmp.ne.s32.totalorder %v22867_v15, 0  ;;  %vm1338_vm6 = vcmp.lt.s32.totalorder %v22867_v15, 0 }
 0x2f8   : > { %vm22922_vm12 = vmand %vm1338_vm6, %vm1302_vm5 }
 0x2f9   : > { %19113 = vmatmul.mubr.msk.f32.gmra.mrb[6].mxu0 %vm738_vm0, %v4892_v17 }
 0x2fa   : > { %19115 = vmatprep.mubr.msk.f32.mxu0 %vm738_vm0, %v4893_v18  ;;  %v22870_v17 = vmul.u32.u64.low 3817748708, %v22856_v8  ;;  %v22871_v18 = vmul.u32.u64.high 3817748708, %v22856_v8, %v22870_v17 }
 0x2fd   : > { %19116 = vmatmul.mubr.msk.f32.gmra.mrb[8].mxu0 %vm738_vm0, %v4894_v19  ;;  %v22874_v19 = vsub.s32 %v22811_v49, %v912_v9  ;;  %v23005_v9 = vmul.u32.u64.low 3817748708, %v22971_v57  ;;  %v23006_v10 = vmul.u32.u64.high 3817748708, %v22971_v57, %v23005_v9 }
 0x2fe   : > { %19118 = vmatprep.mubr.msk.f32.mxu0 %vm738_vm0, %v4895_v20  ;;  %v966_v20 = vshrl.u32 %v22845_v2, 4 }
 0x2ff   : > { %vm1301_vm7 = vcmp.ne.s32.totalorder %v22874_v19, 0  ;;  %vm1337_vm8 = vcmp.lt.s32.totalorder %v22874_v19, 0 }
 0x300   : > { %vm22937_vm14 = vmand %vm1337_vm8, %vm1301_vm7 }
 0x301   : > { %19119 = vmatmul.mubr.msk.f32.gmra.mrb[10].mxu0 %vm738_vm0, %v4896_v21  ;;  %v22878_v21 = vsub.s32 %v22817_v51, %v945_v12  ;;  %v23014_v12 = vadd.s32 120, %v22811_v49  ;;  %v23223_v51 = vadd.s32 184, %v22811_v49 }
 0x302   : > { %19121 = vmatprep.mubr.msk.f32.mxu0 %vm738_vm0, %v4897_v22  ;;  %v22883_v22 = vadd.s32 18, %v22867_v15 }
 0x303   : > { %vm1304_vm9 = vcmp.ne.s32.totalorder %v22878_v21, 0  ;;  %vm1340_vm10 = vcmp.lt.s32.totalorder %v22878_v21, 0 }
 0x304   : > { %vm22952_vm15 = vmand %vm1340_vm10, %vm1304_vm9 }
 0x305   : > { %19122 = vmatmul.mubr.msk.f32.gmra.mrb[12].mxu0 %vm738_vm0, %v4898_v23  ;;  %v22886_v23 = vsub.s32 %v22824_v54, %v934_v16  ;;  %v23022_v16 = vadd.s32 112, %v22811_v49 }
 0x306   : > { %19124 = vmatprep.mubr.msk.f32.mxu0 %vm738_vm0, %v4899_v24  ;;  %v22889_v24 = vadd.s32 72, %v22811_v49 }
 0x307   : > { %vm1303_vm11 = vcmp.ne.s32.totalorder %v22886_v23, 0  ;;  %vm1339_vm13 = vcmp.lt.s32.totalorder %v22886_v23, 0 }
 0x308   : > { %25961 = vst [vmem:[#allocation30_spill] sm:$0xff] %v22889_v24 }
 0x309   : > { %19125 = vmatmul.mubr.msk.f32.gmra.mrb[14].mxu0 %vm738_vm0, %v4900_v25  ;;  %v967_v25 = vmul.u32 18, %v966_v20 }
 0x30a   : > { %19127 = vmatprep.mubr.msk.f32.mxu0 %vm738_vm0, %v4901_v26  ;;  %v955_v26 = vshrl.u32 %v22860_v11, 4 }
 0x30d   : > { %19128 = vmatmul.mubr.msk.f32.gmra.mrb[16].mxu0 %vm738_vm0, %v4902_v27  ;;  %v22895_v27 = vadd.s32 18, %v22874_v19 }
 0x30e   : > { %19130 = vmatprep.mubr.msk.f32.mxu0 %vm738_vm0, %v4903_v28  ;;  %v988_v28 = vshrl.u32 %v22864_v14, 4 }
 0x311   : > { %19131 = vmatmul.mubr.msk.f32.gmra.mrb[18].mxu0 %vm738_vm0, %v4904_v29  ;;  %v22900_v29 = vadd.s32 64, %v22811_v49 }
 0x312   : > { %19133 = vmatprep.mubr.msk.f32.mxu0 %vm738_vm0, %v4905_v30  ;;  %v22904_v30 = vadd.s32 18, %v22878_v21 }
 0x313   : > { %25962 = vst [vmem:[#allocation31_spill] sm:$0xff] %v22900_v29 }
 0x315   : > { %19134 = vmatmul.mubr.msk.f32.gmra.mrb[20].mxu0 %vm738_vm0, %v4906_v31  ;;  %v22907_v31 = vadd.s32 88, %v22811_v49 }
 0x316   : > { %19136 = vmatprep.mubr.msk.f32.mxu0 %vm738_vm0, %v4907_v32  ;;  %v22910_v32 = vadd.s32 80, %v22811_v49 }
 0x317   : > { %v22957_v46 = vmul.u32.u64.low 3817748708, %v22907_v31  ;;  %v22958_v48 = vmul.u32.u64.high 3817748708, %v22907_v31, %v22957_v46 }
 0x318   : > { %v22961_v52 = vmul.u32.u64.low 3817748708, %v22910_v32  ;;  %v22962_v53 = vmul.u32.u64.high 3817748708, %v22910_v32, %v22961_v52 }
 0x319   : > { %19137 = vmatmul.mubr.msk.f32.gmra.mrb[22].mxu0 %vm738_vm0, %v4908_v33  ;;  %v977_v33 = vshrl.u32 %v22871_v18, 4  ;;  %v1032_v17 = vshrl.u32 %v22958_v48, 4  ;;  %v25975_v48 = vmov 0 }
 0x31a   : > { %19139 = vmatprep.mubr.msk.f32.mxu0 %vm738_vm0, %v4909_v34  ;;  %v1021_v18 = vshrl.u32 %v22962_v53, 4 }
 0x31b   : > { %v978_v56 = vmul.u32 18, %v977_v33  ;;  %v1033_v53 = vmul.u32 18, %v1032_v17 }
 0x31d   : > { %19140 = vmatmul.mubr.msk.f32.gmra.mrb[24].mxu0 %vm738_vm0, %v4910_v35  ;;  %v22915_v34 = vmul.u32.u64.low 3817748708, %v22889_v24  ;;  %v22916_v35 = vmul.u32.u64.high 3817748708, %v22889_v24, %v22915_v34  ;;  %v23001_v6 = vsub.s32 %v22856_v8, %v978_v56  ;;  %v1022_v56 = vmul.u32 18, %v1021_v18 }
 0x31e   : > { %19142 = vmatprep.mubr.msk.f32.mxu0 %vm738_vm0, %v4911_v36  ;;  %v23045_v33 = vmul.u32.u64.low 3817748708, %v23014_v12  ;;  %v23046_v34 = vmul.u32.u64.high 3817748708, %v23014_v12, %v23045_v33 }
 0x31f   : > { %v1010_v7 = vshrl.u32 %v22916_v35, 4  ;;  %vm1307_vm8 = vcmp.ne.s32.totalorder %v23001_v6, 0  ;;  %vm1343_vm10 = vcmp.lt.s32.totalorder %v23001_v6, 0  ;;  %v23049_v35 = vadd.s32 128, %v22811_v49 }
 0x320   : > { %v23073_v52 = vadd.s32 18, %v23001_v6  ;;  %v23090_v33 = vadd.s32 144, %v22811_v49  ;;  %v23126_v60 = vsub.s32 %v22910_v32, %v1022_v56  ;;  %v23150_v56 = vadd.s32 168, %v22811_v49 }
 0x321   : > { %19143 = vmatmul.mubr.msk.f32.gmra.mrb[26].mxu0 %vm738_vm0, %v4912_v37  ;;  %v22928_v37 = vadd.s32 18, %v22886_v23 }
 0x322   : > { %19145 = vmatprep.mubr.msk.f32.mxu0 %vm738_vm0, %v4913_v38  ;;  %v22931_v38 = vsub.s32 %v22839_v61, %v967_v25  ;;  %v1011_v25 = vmul.u32 18, %v1010_v7  ;;  %v1043_v7 = vshrl.u32 %v23006_v10, 4 }
 0x324   : > { %vm1306_vm1 = vcmp.ne.s32.totalorder %v22931_v38, 0  ;;  %vm1342_vm2 = vcmp.lt.s32.totalorder %v22931_v38, 0  ;;  %v23010_v11 = vadd.s32 18, %v22931_v38  ;;  %v23097_v18 = vsub.s32 %v22889_v24, %v1011_v25 }
 0x325   : > { %19146 = vmatmul.mubr.msk.f32.gmra.mrb[28].mxu0 %vm738_vm0, %v4914_v39  ;;  %v956_v39 = vmul.u32 18, %v955_v26  ;;  %v23033_v26 = vadd.s32 136, %v22811_v49  ;;  %vm23039_vm9 = vmand %vm1342_vm2, %vm1306_vm1  ;;  %v23199_v24 = vmul.u32.u64.low 3817748708, %v23150_v56  ;;  %v23200_v8 = vmul.u32.u64.high 3817748708, %v23150_v56, %v23199_v24 }
 0x326   : > { %19148 = vmatprep.mubr.msk.f32.mxu0 %vm738_vm0, %v4915_v40  ;;  %vm23080_vm1 = vmand %vm1343_vm10, %vm1307_vm8  ;;  %vm1310_vm2 = vcmp.ne.s32.totalorder %v23097_v18, 0  ;;  %vm1347_vm8 = vcmp.lt.s32.totalorder %v23126_v60, 0  ;;  %v25990_v24 = vmov 0 }
 0x327   : > { %v22974_v58 = vsub.s32 %v22848_v3, %v956_v39  ;;  %v25973_v39 = vmov 0 }
 0x329   : > { %19149 = vmatmul.mubr.msk.f32.gmra.mrb[30].mxu0 %vm738_vm0, %v4916_v41  ;;  %v989_v41 = vmul.u32 18, %v988_v28  ;;  %vm1305_vm4 = vcmp.ne.s32.totalorder %v22974_v58, 0  ;;  %vm1341_vm5 = vcmp.lt.s32.totalorder %v22974_v58, 0  ;;  %v23018_v13 = vadd.s32 18, %v22974_v58 }
 0x32a   : > { %19151 = vmatprep.mubr.msk.f32.mxu0 %vm738_vm0, %v4917_v42 }
 0x32b   : > { %v22998_v4 = vsub.s32 %v22852_v5, %v989_v41 }
 0x32d   : > { %19152 = vmatmul.mubr.msk.f32.gmra.mrb[32].mxu0 %vm738_vm0, %v4918_v43  ;;  %v22942_v42 = vmul.u32.u64.low 3817748708, %v22900_v29  ;;  %v22943_v43 = vmul.u32.u64.high 3817748708, %v22900_v29, %v22942_v42  ;;  %vm1308_vm6 = vcmp.ne.s32.totalorder %v22998_v4, 0  ;;  %vm1344_vm7 = vcmp.lt.s32.totalorder %v22998_v4, 0 }
 0x32e   : > { %19154 = vmatprep.mubr.msk.f32.mxu0 %vm738_vm0, %v4919_v44  ;;  %v22946_v44 = vadd.s32 104, %v22811_v49  ;;  %v23029_v20 = vadd.s32 18, %v22998_v4 }
 0x32f   : > { %v999_v14 = vshrl.u32 %v22943_v43, 4  ;;  %v23061_v43 = vmul.u32.u64.low 3817748708, %v23022_v16  ;;  %v23062_v46 = vmul.u32.u64.high 3817748708, %v23022_v16, %v23061_v43 }
 0x330   : > { %v22985_v62 = vmul.u32.u64.low 3817748708, %v22946_v44  ;;  %v22986_v63 = vmul.u32.u64.high 3817748708, %v22946_v44, %v22985_v62  ;;  %v23100_v43 = vmul.u32.u64.low 3817748708, %v23049_v35  ;;  %v23101_v0 = vmul.u32.u64.high 3817748708, %v23049_v35, %v23100_v43 }
 0x331   : > { %19155 = vmatmul.mubr.msk.f32.gmra.mrb[34].mxu0 %vm738_vm0, %v4920_v45  ;;  %vm22966_vm0 = vmand %vm1339_vm13, %vm1303_vm11  ;;  %v1000_v41 = vmul.u32 18, %v999_v14  ;;  %v23076_v62 = vadd.s32 152, %v22811_v49  ;;  %v23086_v9 = vmul.u32.u64.low 3817748708, %v23033_v26  ;;  %v23087_v14 = vmul.u32.u64.high 3817748708, %v23033_v26, %v23086_v9 }
 0x332   : > { %vm23055_vm11 = vmand %vm1341_vm5, %vm1305_vm4  ;;  %v1054_v42 = vshrl.u32 %v22986_v63, 4  ;;  %v25977_v63 = vmov 0  ;;  %v23119_v43 = vsub.s32 %v22907_v31, %v1033_v53  ;;  %v1044_v9 = vmul.u32 18, %v1043_v7 }
 0x333   : > { %v25974_v39 = vsel %vm23055_vm11, 4294967295, %v25973_v39  ;;  %vm23068_vm13 = vmand %vm1344_vm7, %vm1308_vm6  ;;  %v25978_v63 = vsel %vm23080_vm1, 4294967295, %v25977_v63  ;;  %v23112_v2 = vsub.s32 %v22900_v29, %v1000_v41  ;;  %vm1346_vm4 = vcmp.lt.s32.totalorder %v23097_v18, 0 }
 0x334   : > { %v25976_v48 = vsel %vm23068_vm13, 4294967295, %v25975_v48  ;;  %v1055_v17 = vmul.u32 18, %v1054_v42  ;;  %v23122_v1 = vmul.u32.u64.low 3817748708, %v23076_v62  ;;  %v23123_v10 = vmul.u32.u64.high 3817748708, %v23076_v62, %v23122_v1  ;;  %vm23164_vm3 = vmand %vm1346_vm4, %vm1310_vm2 }
 0x335   : > { %v23129_v41 = vmul.u32.u64.low 3817748708, %v23090_v33  ;;  %v23130_v59 = vmul.u32.u64.high 3817748708, %v23090_v33, %v23129_v41  ;;  %v23135_v42 = vadd.s32 18, %v23097_v18  ;;  %v1076_v31 = vshrl.u32 %v23046_v34, 4 }
 0x336   : > { %vm1309_vm5 = vcmp.ne.s32.totalorder %v23112_v2, 0  ;;  %vm1345_vm6 = vcmp.lt.s32.totalorder %v23112_v2, 0  ;;  %v23141_v32 = vsub.s32 %v22946_v44, %v1055_v17  ;;  %v1065_v1 = vshrl.u32 %v23062_v46, 4 }
 0x337   : > { %v23145_v53 = vadd.s32 18, %v23112_v2  ;;  %vm1312_vm7 = vcmp.ne.s32.totalorder %v23119_v43, 0  ;;  %v23153_v34 = vadd.s32 18, %v23119_v43  ;;  %v23157_v44 = vsub.s32 %v22971_v57, %v1044_v9  ;;  %vm23177_vm10 = vmand %vm1345_vm6, %vm1309_vm5 }
 0x338   : > { %v1098_v46 = vshrl.u32 %v23087_v14, 4  ;;  %v23170_v17 = vadd.s32 18, %v23126_v60  ;;  %v1077_v41 = vmul.u32 18, %v1076_v31  ;;  %v1087_v25 = vshrl.u32 %v23101_v0, 4 }
 0x339   : > { %25979 = vst [vmem:[#allocation32_spill] sm:$0xff] %v23157_v44  ;;  %vm1314_vm2 = vcmp.ne.s32.totalorder %v23141_v32, 0  ;;  %vm1350_vm4 = vcmp.lt.s32.totalorder %v23141_v32, 0  ;;  %v1066_v14 = vmul.u32 18, %v1065_v1  ;;  %v23184_v9 = vadd.s32 160, %v22811_v49 }
 0x33a   : > { %vm25984_vm1 = vcmp.lt.s32.totalorder %v23119_v43, 0  ;;  %v25985_v0 = vmov 0  ;;  %v23195_v31 = vadd.s32 18, %v23141_v32  ;;  %v1120_v29 = vshrl.u32 %v23123_v10, 4  ;;  %vm23215_vm11 = vmand %vm1350_vm4, %vm1314_vm2 }
 0x33b   : > { %vm23190_vm13 = vmand %vm25984_vm1, %vm1312_vm7  ;;  %vm25987_vm5 = vcmp.ne.s32.totalorder %v23126_v60, 0  ;;  %v25988_v1 = vmov 0  ;;  %vm1313_vm1 = vcmp.ne.s32.totalorder %v23157_v44, 0  ;;  %vm1349_vm7 = vcmp.lt.s32.totalorder %v23157_v44, 0 }
 0x33c   : > { %v25986_v0 = vsel %vm23190_vm13, 4294967295, %v25985_v0  ;;  %vm23204_vm6 = vmand %vm1347_vm8, %vm25987_vm5  ;;  %v1099_v5 = vmul.u32 18, %v1098_v46  ;;  %v1109_v3 = vshrl.u32 %v23130_v59, 4  ;;  %v25991_v24 = vsel %vm23215_vm11, 4294967295, %v25990_v24 }
 0x33d   : > { %v25989_v1 = vsel %vm23204_vm6, 4294967295, %v25988_v1  ;;  %v23220_v61 = vsub.s32 %v23014_v12, %v1077_v41  ;;  %v1088_v54 = vmul.u32 18, %v1087_v25  ;;  %v23226_v46 = vadd.s32 18, %v23157_v44  ;;  %vm23249_vm8 = vmand %vm1349_vm7, %vm1313_vm1 }
 0x33e   : > { %v23229_v59 = vsub.s32 %v23022_v16, %v1066_v14  ;;  %v23232_v50 = vmul.u32.u64.low 3817748708, %v23184_v9  ;;  %v23233_v10 = vmul.u32.u64.high 3817748708, %v23184_v9, %v23232_v50  ;;  %v25994_v41 = vmov 0 }
 0x33f   : > { %25992 = vst [vmem:[#allocation33_spill] sm:$0xff] %v23220_v61  ;;  %25993 = vst [vmem:[#allocation34_spill] sm:$0xff] %v23226_v46  ;;  %v25995_v41 = vsel %vm23249_vm8, 4294967295, %v25994_v41  ;;  %v1121_v50 = vmul.u32 18, %v1120_v29  ;;  %v25997_v14 = vsel %vm22922_vm12, %v22883_v22, %v22867_v15  ;;  %v23267_v25 = vsub.s32 %v23033_v26, %v1099_v5 }
 0x340   : > { %25996 = vst [vmem:[#allocation35_spill] sm:$0xff] %v25995_v41  ;;  %vm23258_vm2 = vcmp.lt.s32.totalorder %v25997_v14, 16  ;;  %v1110_v47 = vmul.u32 18, %v1109_v3  ;;  %v23270_v29 = vadd.s32 176, %v22811_v49  ;;  %v26000_v15 = vsel %vm22937_vm14, %v22895_v27, %v22874_v19 }
 0x341   : > { %vm23277_vm12 = vcmp.lt.s32.totalorder %v26000_v15, 16  ;;  %vm1316_vm4 = vcmp.ne.s32.totalorder %v23220_v61, 0  ;;  %v23283_v36 = vsub.s32 %v23049_v35, %v1088_v54  ;;  %v23295_v19 = vadd.s32 18, %v23220_v61  ;;  %v23309_v35 = vld [vmem:[%s26003_s4] ss:$0 sm:$0xff]  ;;  %s21544_s4 = smul.u32 24, %s26658_s22 }
 0x342   : > { %v23286_v5 = vmul.u32.u64.low 3817748708, %v23223_v51  ;;  %v23287_v3 = vmul.u32.u64.high 3817748708, %v23223_v51, %v23286_v5  ;;  %v23300_v54 = vadd.s32 18, %v23229_v59  ;;  %v23303_v27 = vsub.s32 %v23076_v62, %v1121_v50 }
 0x343   : > { %v1142_v26 = vshrl.u32 %v23200_v8, 4  ;;  %v26004_v14 = vsel %vm22952_vm15, %v22904_v30, %v22878_v21  ;;  %v23322_v62 = vsub.s32 %v23090_v33, %v1110_v47  ;;  %v26007_v45 = vsel %vm22966_vm0, %v22928_v37, %v22886_v23 }
 0x344   : > { %vm23316_vm7 = vcmp.lt.s32.totalorder %v26004_v14, 16  ;;  %v23325_v8 = vmul.u32.u64.low 3817748708, %v23270_v29  ;;  %v23326_v50 = vmul.u32.u64.high 3817748708, %v23270_v29, %v23325_v8  ;;  %vm23333_vm5 = vcmp.lt.s32.totalorder %v26007_v45, 16 }
 0x345   : > { %v23339_v30 = vadd.s32 18, %v23267_v25  ;;  %v23343_v47 = vadd.s32 200, %v22811_v49  ;;  %v23347_v55 = vadd.s32 18, %v23283_v36  ;;  %v1131_v23 = vshrl.u32 %v23233_v10, 4 }
 0x346   : > { %v23351_v37 = vadd.s32 192, %v22811_v49  ;;  %vm26011_vm0 = vcmp.lt.s32.totalorder %v23220_v61, 0  ;;  %v26012_v8 = vmov 0  ;;  %v1143_v45 = vmul.u32 18, %v1142_v26 }
 0x347   : > { %26010 = vst [vmem:[#allocation36_spill] sm:$0xff] %v23343_v47  ;;  %vm23358_vm1 = vmand %vm26011_vm0, %vm1316_vm4  ;;  %vm26017_vm4 = vcmp.ne.s32.totalorder %v23229_v59, 0  ;;  %vm26018_vm0 = vcmp.lt.s32.totalorder %v23229_v59, 0  ;;  %v23383_v26 = vadd.s32 18, %v23303_v27  ;;  %vm26030_vm14 = vcmp.lt.s32.totalorder %v23283_v36, 0 }
 0x348   : > { %v26013_v8 = vsel %vm23358_vm1, 4294967295, %v26012_v8  ;;  %vm23378_vm11 = vmand %vm26018_vm0, %vm26017_vm4  ;;  %vm26025_vm4 = vcmp.ne.s32.totalorder %v23267_v25, 0  ;;  %vm26026_vm0 = vcmp.lt.s32.totalorder %v23267_v25, 0  ;;  %v23453_v61 = vadd.s32 18, %v23322_v62 }
 0x349   : > { %vm23400_vm13 = vmand %vm26026_vm0, %vm26025_vm4  ;;  %v23418_v46 = vmul.u32.u64.low 3817748708, %v23351_v37  ;;  %v23419_v41 = vmul.u32.u64.high 3817748708, %v23351_v37, %v23418_v46  ;;  %vm26034_vm4 = vcmp.lt.s32.totalorder %v23303_v27, 0  ;;  %v26055_v7 = vsel %vm23177_vm10, %v23145_v53, %v23112_v2 }
 0x34a   : > { %v23437_v46 = vsub.s32 %v23150_v56, %v1143_v45  ;;  %v1153_v56 = vshrl.u32 %v23326_v50, 4 }
 0x3c0   : > { %v19105_v33 = vpop.f32.mrb[0].mxu0 }
 0x3c1   : > { %v5323_v5 = vadd.f32 %v19105_v33, %v23309_v35  ;;  %v5100_v14 = vpop.f32.mrb[1].mxu0  ;;  %v26014_v33 = vsel %vm23039_vm9, %v23010_v11, %v22931_v38  ;;  %vm26021_vm9 = vnez %v25974_v39 }
 0x3c2   : > { %v5322_v10 = vadd.f32 %v23309_v35, %v5100_v14  ;;  %vm23370_vm8 = vcmp.lt.s32.totalorder %v26014_v33, 16  ;;  %v26022_v11 = vsel %vm26021_vm9, %v23018_v13, %v22974_v58  ;;  %v1164_v33 = vshrl.u32 %v23287_v3, 4 }
 0x3c3   : > { %v5359_v38 = vmax.f32 %v5323_v5, 0.0  ;;  %vm23392_vm6 = vcmp.lt.s32.totalorder %v26022_v11, 16  ;;  %v23406_v5 = vmul.u32.u64.low 3817748708, %v23343_v47  ;;  %v23407_v39 = vmul.u32.u64.high 3817748708, %v23343_v47, %v23406_v5 }
 0x3c4   : > { %v5358_v44 = vmax.f32 %v5322_v10, 0.0  ;;  %v19108_v58 = vpop.f32.mrb[2].mxu0  ;;  %vm26029_vm9 = vcmp.ne.s32.totalorder %v23283_v36, 0  ;;  %v1132_v11 = vmul.u32 18, %v1131_v23  ;;  %v23811_v23 = vadd.s32 256, %v22811_v49 }
 0x3c5   : > { %vm23413_vm15 = vmand %vm26030_vm14, %vm26029_vm9  ;;  %v5467_v3 = vsel %vm23258_vm2, %v5359_v38, 0.0  ;;  %v5325_v5 = vadd.f32 %v19108_v58, %v23309_v35  ;;  %v5110_v10 = vpop.f32.mrb[3].mxu0  ;;  %vm26033_vm14 = vcmp.ne.s32.totalorder %v23303_v27, 0  ;;  %vm26037_vm2 = vcmask 64512  }
 0x3c6   : > { %vm23432_vm0 = vmand %vm26034_vm4, %vm26033_vm14  ;;  %5503 = vst.msk [vmem:[#allocation3 + $0x1b] sm:$0xff] %vm26037_vm2, %v5467_v3  ;;  %v5466_v12 = vsel %vm23277_vm12, %v5358_v44, 0.0  ;;  %v5324_v38 = vadd.f32 %v23309_v35, %v5110_v10  ;;  %vm26038_vm9 = vnez %v25976_v48  ;;  %vm26043_vm12 = vnez %v25978_v63 }
 0x3c7   : > { %v26039_v58 = vsel %vm26038_vm9, %v23029_v20, %v22998_v4  ;;  %vm26042_vm14 = vmmov %vm26037_vm2  ;;  %v5361_v22 = vmax.f32 %v5325_v5, 0.0  ;;  %v26044_v48 = vsel %vm26043_vm12, %v23073_v52, %v23001_v6  ;;  %v1459_v4 = vsel %vm23378_vm11, %v23300_v54, %v23229_v59 }
 0x3c8   : > { %vm23448_vm1 = vcmp.lt.s32.totalorder %v26039_v58, 16  ;;  %5502 = vst.msk [vmem:[#allocation3 + $0x13] sm:$0xff] %vm26042_vm14, %v5466_v12  ;;  %vm23462_vm4 = vcmp.lt.s32.totalorder %v26044_v48, 16  ;;  %v1462_v20 = vsel %vm23400_vm13, %v23339_v30, %v23267_v25  ;;  %v1461_v63 = vsel %vm23413_vm15, %v23347_v55, %v23283_v36  ;;  %v19111_v50 = vpop.f32.mrb[4].mxu0 }
 0x3c9   : > { %vm26047_vm2 = vcmp.ne.s32.totalorder %v23322_v62, 0  ;;  %vm26048_vm9 = vcmp.lt.s32.totalorder %v23322_v62, 0  ;;  %v5360_v52 = vmax.f32 %v5324_v38, 0.0  ;;  %v1464_v45 = vsel %vm23432_vm0, %v23383_v26, %v23303_v27  ;;  %v5120_v58 = vpop.f32.mrb[5].mxu0 }
 0x3ca   : > { %vm23482_vm14 = vmand %vm26048_vm9, %vm26047_vm2  ;;  %v23491_v3 = vsub.s32 %v23184_v9, %v1132_v11  ;;  %v1165_v5 = vmul.u32 18, %v1164_v33  ;;  %v5469_v10 = vsel %vm23316_vm7, %v5361_v22, 0.0  ;;  %v5327_v12 = vadd.f32 %v19111_v50, %v23309_v35 }
 0x3cb   : > { %vm1322_vm12 = vcmp.ne.s32.totalorder %v23437_v46, 0  ;;  %vm1358_vm2 = vcmp.lt.s32.totalorder %v23437_v46, 0  ;;  %vm26051_vm9 = vcmask 64512   ;;  %v5468_v38 = vsel %vm23333_vm5, %v5360_v52, 0.0 }
 0x3cc   : > { %5505 = vst.msk [vmem:[#allocation3 + $0x2b] sm:$0xff] %vm26051_vm9, %v5469_v10  ;;  %v5326_v48 = vadd.f32 %v23309_v35, %v5120_v58  ;;  %v26052_v9 = vsel %vm23164_vm3, %v23135_v42, %v23097_v18  ;;  %v1463_v33 = vsel %vm23482_vm14, %v23453_v61, %v23322_v62  ;;  %v1154_v11 = vmul.u32 18, %v1153_v56  ;;  %5504 = vst.msk [vmem:[#allocation3 + $0x23] sm:$0xff] %vm26051_vm9, %v5468_v38  ;;  %v19114_v50 = vpop.f32.mrb[6].mxu0 }
 0x3cd   : > { %vm23507_vm7 = vcmp.lt.s32.totalorder %v26052_v9, 16  ;;  %v5363_v21 = vmax.f32 %v5327_v12, 0.0  ;;  %vm23521_vm5 = vcmp.lt.s32.totalorder %v26055_v7, 16  ;;  %v23526_v42 = vadd.s32 18, %v23437_v46  ;;  %vm23538_vm3 = vmand %vm1358_vm2, %vm1322_vm12  ;;  %v5130_v38 = vpop.f32.mrb[7].mxu0 }
 0x3ce   : > { %v23529_v22 = vadd.s32 216, %v22811_v49  ;;  %v23532_v56 = vadd.s32 208, %v22811_v49  ;;  %v5362_v52 = vmax.f32 %v5326_v48, 0.0  ;;  %v23543_v53 = vsub.s32 %v23223_v51, %v1165_v5  ;;  %vm26060_vm2 = vmmov %vm26051_vm9 }
 0x3cf   : > { %v1186_v57 = vshrl.u32 %v23407_v39, 4  ;;  %v1175_v10 = vshrl.u32 %v23419_v41, 4  ;;  %v5471_v12 = vsel %vm23370_vm8, %v5363_v21, 0.0  ;;  %v5329_v58 = vadd.f32 %v19114_v50, %v23309_v35  ;;  %v5577_v39 = vld [vmem:[#allocation3 + $0x11] sm:$0xff]  ;;  %v5578_v48 = vld [vmem:[#allocation3 + $0x19] sm:$0xff]  ;;  %vm26072_vm10 = vmmov %vm26060_vm2 }
 0x3d0   : > { %5507 = vst.msk [vmem:[#allocation3 + $0x3b] sm:$0xff] %vm26060_vm2, %v5471_v12  ;;  %v5470_v51 = vsel %vm23392_vm6, %v5362_v52, 0.0  ;;  %v5328_v5 = vadd.f32 %v23309_v35, %v5130_v38  ;;  %vm26061_vm9 = vnez %v25986_v0  ;;  %v23566_v9 = vadd.s32 18, %v23491_v3  ;;  %vm26065_vm6 = vmmov %vm26060_vm2  ;;  %19162 = vmatprep.mubr.msk.f32.mxu1 %vm26060_vm2, %v5577_v39 }
 0x3d1   : > { %v26062_v41 = vsel %vm26061_vm9, %v23153_v34, %v23119_v43  ;;  %v23569_v21 = vsub.s32 %v23270_v29, %v1154_v11  ;;  %5506 = vst.msk [vmem:[#allocation3 + $0x33] sm:$0xff] %vm26065_vm6, %v5470_v51  ;;  %v5365_v28 = vmax.f32 %v5329_v58, 0.0  ;;  %vm26066_vm12 = vnez %v25989_v1  ;;  %v23593_v1 = vld [vmem:[%s25952_s16 + $0x10] sm:$0xff]  ;;  %v26071_v58 = vld [vmem:[#allocation22_spill] sm:$0xff]  ;;  %vm26078_vm6 = vmmov %vm26060_vm2 }
 0x3d2   : > { %vm23561_vm8 = vcmp.lt.s32.totalorder %v26062_v41, 16  ;;  %v26067_v43 = vsel %vm26066_vm12, %v23170_v17, %v23126_v60  ;;  %v1466_v0 = vsel %vm23538_vm3, %v23526_v42, %v23437_v46  ;;  %v5364_v7 = vmax.f32 %v5328_v5, 0.0  ;;  %v19117_v60 = vpop.f32.mrb[8].mxu0  ;;  %vm26070_vm12 = vmmov %vm26060_vm2  ;;  %v26079_v41 = vld [vmem:[#allocation35_spill] sm:$0xff] }
 0x3d3   : > { %vm23578_vm9 = vcmp.lt.s32.totalorder %v26067_v43, 16  ;;  %v23587_v29 = vmul.u32.u64.low 3817748708, %v23529_v22  ;;  %v23588_v11 = vmul.u32.u64.high 3817748708, %v23529_v22, %v23587_v29  ;;  %19163 = vmatmul.mubr.msk.f32.vlgmr.msra.gmra.mrb[0].mxu1 %vm26070_vm12, %v5578_v48  ;;  %v1187_v17 = vmul.u32 18, %v1186_v57  ;;  %v5140_v38 = vpop.f32.mrb[9].mxu0  ;;  %v5580_v47 = vld [vmem:[#allocation3 + $0x29] sm:$0xff] }
 0x3d4   : > { %v1176_v52 = vmul.u32 18, %v1175_v10  ;;  %v5473_v50 = vsel %vm23448_vm1, %v5365_v28, 0.0  ;;  %v5331_v12 = vadd.f32 %v19117_v60, %v23309_v35  ;;  %19214 = vmatpush3.msra.mxu1 %v26071_v58  ;;  %v23603_v51 = vadd.s32 232, %v22811_v49  ;;  %v5579_v10 = vld [vmem:[#allocation3 + $0x21] sm:$0xff]  ;;  %v26082_v28 = vld [vmem:[#allocation32_spill] sm:$0xff] }
 0x3d5   : > { %5509 = vst.msk [vmem:[#allocation3 + $0x4b] sm:$0xff] %vm26072_vm10, %v5473_v50  ;;  %v5472_v5 = vsel %vm23462_vm4, %v5364_v7, 0.0  ;;  %v5330_v57 = vadd.f32 %v23309_v35, %v5140_v38  ;;  %vm26073_vm1 = vnez %v25991_v24  ;;  %19269 = vmatprep.subr.mxu1 %v23593_v1  ;;  %vm26077_vm4 = vmmov %vm26060_vm2  ;;  %19165 = vmatprep.mubr.msk.f32.mxu1 %vm26078_vm6, %v5579_v10  ;;  %vm26080_vm3 = vnez %v26079_v41  ;;  %v26081_v24 = vld [vmem:[#allocation34_spill] sm:$0xff] }
 0x3d6   : > { %v26074_v39 = vsel %vm26073_vm1, %v23195_v31, %v23141_v32  ;;  %5508 = vst.msk [vmem:[#allocation3 + $0x43] sm:$0xff] %vm26077_vm4, %v5472_v5  ;;  %v5367_v44 = vmax.f32 %v5331_v12, 0.0  ;;  %v26083_v32 = vsel %vm26080_vm3, %v26081_v24, %v26082_v28  ;;  %vm26086_vm2 = vcmp.ne.s32.totalorder %v23491_v3, 0  ;;  %v19120_v12 = vpop.f32.mrb[10].mxu0  ;;  %vm26090_vm3 = vmmov %vm26077_vm4  ;;  %v26095_v5 = vld [vmem:[#allocation36_spill] sm:$0xff] }
 0x3d7   : > { %vm23614_vm12 = vcmp.lt.s32.totalorder %v26074_v39, 16  ;;  %vm23628_vm1 = vcmp.lt.s32.totalorder %v26083_v32, 16  ;;  %vm26087_vm10 = vcmp.lt.s32.totalorder %v23491_v3, 0  ;;  %v23641_v29 = vadd.s32 18, %v23543_v53  ;;  %19166 = vmatmul.mubr.msk.f32.gmra.mrb[2].mxu1 %vm26090_vm3, %v5580_v47  ;;  %v5150_v41 = vpop.f32.mrb[11].mxu0  ;;  %v26102_v32 = vld [vmem:[#allocation33_spill] sm:$0xff] }
 0x3d8   : > { %vm23636_vm14 = vmand %vm26087_vm10, %vm26086_vm2  ;;  %v23644_v7 = vmul.u32.u64.low 3817748708, %v23532_v56  ;;  %v23645_v60 = vmul.u32.u64.high 3817748708, %v23532_v56, %v23644_v7  ;;  %v5366_v50 = vmax.f32 %v5330_v57, 0.0  ;;  %vm26091_vm6 = vcmp.ne.s32.totalorder %v23543_v53, 0 }
 0x3d9   : > { %vm26092_vm4 = vcmp.lt.s32.totalorder %v23543_v53, 0  ;;  %v23657_v38 = vadd.s32 18, %v23569_v21  ;;  %v23660_v10 = vsub.s32 %v26095_v5, %v1187_v17  ;;  %v23663_v39 = vsub.s32 %v23351_v37, %v1176_v52  ;;  %v5581_v52 = vld [vmem:[#allocation3 + $0x31] sm:$0xff] }
 0x3da   : > { %vm23652_vm0 = vmand %vm26092_vm4, %vm26091_vm6  ;;  %v5475_v57 = vsel %vm23507_vm7, %v5367_v44, 0.0  ;;  %v5333_v47 = vadd.f32 %v19120_v12, %v23309_v35  ;;  %vm26096_vm2 = vcmp.ne.s32.totalorder %v23569_v21, 0  ;;  %vm26097_vm10 = vcmp.lt.s32.totalorder %v23569_v21, 0  ;;  %v5582_v44 = vld [vmem:[#allocation3 + $0x39] sm:$0xff] }
 0x3db   : > { %vm23672_vm3 = vmand %vm26097_vm10, %vm26096_vm2  ;;  %v23677_v17 = vmul.u32.u64.low 3817748708, %v23603_v51  ;;  %v23678_v28 = vmul.u32.u64.high 3817748708, %v23603_v51, %v23677_v17  ;;  %vm26100_vm6 = vcmask 64512   ;;  %v5474_v37 = vsel %vm23521_vm5, %v5366_v50, 0.0 }
 0x3dc   : > { %5511 = vst.msk [vmem:[#allocation3 + $0x5b] sm:$0xff] %vm26100_vm6, %v5475_v57  ;;  %v5332_v15 = vadd.f32 %v23309_v35, %v5150_v41  ;;  %vm26101_vm7 = vnez %v26013_v8  ;;  %v1465_v5 = vsel %vm23636_vm14, %v23566_v9, %v23491_v3  ;;  %v23698_v18 = vadd.s32 224, %v22811_v49  ;;  %vm26106_vm5 = vmmov %vm26100_vm6  ;;  %v19123_v17 = vpop.f32.mrb[12].mxu0 }
 0x3dd   : > { %v26103_v7 = vsel %vm26101_vm7, %v23295_v19, %v26102_v32  ;;  %5510 = vst.msk [vmem:[#allocation3 + $0x53] sm:$0xff] %vm26106_vm5, %v5474_v37  ;;  %v5369_v50 = vmax.f32 %v5333_v47, 0.0  ;;  %vm26107_vm2 = vmmov %vm26106_vm5  ;;  %vm23707_vm10 = vcmp.lt.s32.totalorder %v1459_v4, 16  ;;  %v1468_v8 = vsel %vm23652_vm0, %v23641_v29, %v23543_v53  ;;  %v5160_v4 = vpop.f32.mrb[13].mxu0 }
 0x3de   : > { %vm23689_vm4 = vcmp.lt.s32.totalorder %v26103_v7, 16  ;;  %19168 = vmatprep.mubr.msk.f32.mxu1 %vm26107_vm2, %v5581_v52  ;;  %v1208_v57 = vshrl.u32 %v23588_v11, 4  ;;  %v23717_v47 = vadd.s32 248, %v22811_v49  ;;  %v5368_v41 = vmax.f32 %v5332_v15, 0.0  ;;  %vm26110_vm6 = vmmov %vm26107_vm2  ;;  %v5583_v52 = vld [vmem:[#allocation3 + $0x41] sm:$0xff] }
 0x3df   : > { %19169 = vmatmul.mubr.msk.f32.gmra.mrb[4].mxu1 %vm26110_vm6, %v5582_v44  ;;  %v1467_v59 = vsel %vm23672_vm3, %v23657_v38, %v23569_v21  ;;  %vm1326_vm11 = vcmp.ne.s32.totalorder %v23660_v10, 0  ;;  %vm1362_vm7 = vcmp.lt.s32.totalorder %v23660_v10, 0  ;;  %v5477_v16 = vsel %vm23561_vm8, %v5369_v50, 0.0  ;;  %v5584_v44 = vld [vmem:[#allocation3 + $0x49] sm:$0xff]  ;;  %vm26113_vm6 = vmmov %vm26107_vm2  ;;  %v19126_v50 = vpop.f32.mrb[14].mxu0 }
 0x3e0   : > { %v5335_v54 = vadd.f32 %v19123_v17, %v23309_v35  ;;  %v23730_v11 = vadd.s32 18, %v23660_v10  ;;  %vm1325_vm5 = vcmp.ne.s32.totalorder %v23663_v39, 0  ;;  %5513 = vst.msk [vmem:[#allocation3 + $0x6b] sm:$0xff] %vm26107_vm2, %v5477_v16  ;;  %v5476_v37 = vsel %vm23578_vm9, %v5368_v41, 0.0  ;;  %vm26114_vm9 = vmmov %vm26107_vm2  ;;  %v5170_v41 = vpop.f32.mrb[15].mxu0 }
 0x3e1   : > { %v5334_v15 = vadd.f32 %v23309_v35, %v5160_v4  ;;  %vm23742_vm8 = vcmp.lt.s32.totalorder %v1462_v20, 16  ;;  %v23747_v32 = vmul.u32.u64.low 3817748708, %v23698_v18  ;;  %v23748_v7 = vmul.u32.u64.high 3817748708, %v23698_v18, %v23747_v32  ;;  %5512 = vst.msk [vmem:[#allocation3 + $0x63] sm:$0xff] %vm26113_vm6, %v5476_v37  ;;  %19171 = vmatprep.mubr.msk.f32.mxu1 %vm26114_vm9, %v5583_v52  ;;  %vm23768_vm9 = vmand %vm1362_vm7, %vm1326_vm11 }
 0x3e2   : > { %v5371_v34 = vmax.f32 %v5335_v54, 0.0  ;;  %vm23757_vm2 = vcmp.lt.s32.totalorder %v1461_v63, 16  ;;  %vm1361_vm13 = vcmp.lt.s32.totalorder %v23663_v39, 0  ;;  %v1209_v30 = vmul.u32 18, %v1208_v57  ;;  %vm26119_vm15 = vmmov %vm26113_vm6 }
 0x3e3   : > { %v1197_v14 = vshrl.u32 %v23645_v60, 4  ;;  %v5370_v20 = vmax.f32 %v5334_v15, 0.0  ;;  %19172 = vmatmul.mubr.msk.f32.gmra.mrb[6].mxu1 %vm26113_vm6, %v5584_v44  ;;  %v23773_v36 = vmul.u32.u64.low 3817748708, %v23717_v47  ;;  %v23774_v55 = vmul.u32.u64.high 3817748708, %v23717_v47, %v23773_v36  ;;  %vm23803_vm7 = vmand %vm1361_vm13, %vm1325_vm5 }
 0x3e4   : > { %v23777_v63 = vadd.s32 240, %v22811_v49  ;;  %v5479_v60 = vsel %vm23614_vm12, %v5371_v34, 0.0  ;;  %v5337_v57 = vadd.f32 %v19126_v50, %v23309_v35  ;;  %v23783_v17 = vadd.s32 18, %v23663_v39  ;;  %v5585_v37 = vld [vmem:[#allocation3 + $0x51] sm:$0xff]  ;;  %v5586_v15 = vld [vmem:[#allocation3 + $0x59] sm:$0xff]  ;;  %v19129_v34 = vpop.f32.mrb[16].mxu0 }
 0x3e5   : > { %v1230_v16 = vshrl.u32 %v23678_v28, 4  ;;  %5515 = vst.msk [vmem:[#allocation3 + $0x7b] sm:$0xff] %vm26119_vm15, %v5479_v60  ;;  %v5478_v54 = vsel %vm23628_vm1, %v5370_v20, 0.0  ;;  %v5336_v4 = vadd.f32 %v23309_v35, %v5170_v41  ;;  %vm23795_vm12 = vcmp.lt.s32.totalorder %v1464_v45, 16  ;;  %vm26125_vm1 = vmmov %vm26113_vm6  ;;  %v5180_v50 = vpop.f32.mrb[17].mxu0 }
 0x3e6   : > { %v23808_v28 = vadd.s32 264, %v22811_v49  ;;  %5514 = vst.msk [vmem:[#allocation3 + $0x73] sm:$0xff] %vm26125_vm1, %v5478_v54  ;;  %v5373_v27 = vmax.f32 %v5337_v57, 0.0  ;;  %vm26126_vm6 = vmmov %vm26125_vm1  ;;  %vm23820_vm5 = vcmp.lt.s32.totalorder %v1463_v33, 16  ;;  %v1470_v45 = vsel %vm23768_vm9, %v23730_v11, %v23660_v10  ;;  %v19132_v54 = vpop.f32.mrb[18].mxu0 }
 0x3e7   : > { %19174 = vmatprep.mubr.msk.f32.mxu1 %vm26126_vm6, %v5585_v37  ;;  %v23829_v52 = vsub.s32 %v23529_v22, %v1209_v30  ;;  %v1198_v44 = vmul.u32 18, %v1197_v14  ;;  %v5372_v32 = vmax.f32 %v5336_v4, 0.0  ;;  %vm26130_vm13 = vmmov %vm26125_vm1  ;;  %v23837_v62 = vadd.s32 280, %v22811_v49 }
 0x3e8   : > { %19175 = vmatmul.mubr.msk.f32.gmra.mrb[8].mxu1 %vm26130_vm13, %v5586_v15  ;;  %v23833_v6 = vmul.u32.u64.low 3817748708, %v23777_v63  ;;  %v23834_v61 = vmul.u32.u64.high 3817748708, %v23777_v63, %v23833_v6  ;;  %v5481_v33 = vsel %vm23689_vm4, %v5373_v27, 0.0  ;;  %v5339_v20 = vadd.f32 %v19129_v34, %v23309_v35  ;;  %vm26131_vm11 = vmmov %vm26125_vm1  ;;  %v5587_v60 = vld [vmem:[#allocation3 + $0x61] sm:$0xff]  ;;  %v5588_v57 = vld [vmem:[#allocation3 + $0x69] sm:$0xff] }
 0x3e9   : > { %v1469_v22 = vsel %vm23803_vm7, %v23783_v17, %v23663_v39  ;;  %v1231_v30 = vmul.u32 18, %v1230_v16  ;;  %5517 = vst.msk [vmem:[#allocation3 + $0x8b] sm:$0xff] %vm26131_vm11, %v5481_v33  ;;  %v5480_v14 = vsel %vm23707_vm10, %v5372_v32, 0.0  ;;  %v5338_v36 = vadd.f32 %v23309_v35, %v5180_v50  ;;  %vm26135_vm10 = vmmov %vm26126_vm6 }
 0x3ea   : > { %vm23855_vm1 = vcmp.lt.s32.totalorder %v1466_v0, 16  ;;  %v23860_v41 = vmul.u32.u64.low 3817748708, %v23808_v28  ;;  %v23861_v16 = vmul.u32.u64.high 3817748708, %v23808_v28, %v23860_v41  ;;  %5516 = vst.msk [vmem:[#allocation3 + $0x83] sm:$0xff] %vm26126_vm6, %v5480_v14  ;;  %v5375_v19 = vmax.f32 %v5339_v20, 0.0  ;;  %19177 = vmatprep.mubr.msk.f32.mxu1 %vm26135_vm10, %v5587_v60  ;;  %vm26138_vm11 = vmmov %vm26126_vm6 }
 0x3eb   : > { %vm23870_vm15 = vcmp.lt.s32.totalorder %v1465_v5, 16  ;;  %vm1328_vm13 = vcmp.ne.s32.totalorder %v23829_v52, 0  ;;  %v23876_v42 = vsub.s32 %v23532_v56, %v1198_v44  ;;  %v1219_v2 = vshrl.u32 %v23748_v7, 4  ;;  %v5190_v56 = vpop.f32.mrb[19].mxu0  ;;  %vm26139_vm14 = vmmov %vm26126_vm6 }
 0x3ec   : > { %v5374_v0 = vmax.f32 %v5338_v36, 0.0  ;;  %19178 = vmatmul.mubr.msk.f32.gmra.mrb[10].mxu1 %vm26138_vm11, %v5588_v57  ;;  %vm1364_vm4 = vcmp.lt.s32.totalorder %v23829_v52, 0  ;;  %v23882_v43 = vadd.s32 18, %v23829_v52  ;;  %v1252_v3 = vshrl.u32 %v23774_v55, 4  ;;  %v19135_v58 = vpop.f32.mrb[20].mxu0 }
 0x3ed   : > { %v5483_v9 = vsel %vm23742_vm8, %v5375_v19, 0.0  ;;  %v5341_v5 = vadd.f32 %v19132_v54, %v23309_v35  ;;  %v23889_v4 = vmul.u32.u64.low 3817748708, %v23811_v23  ;;  %v23890_v7 = vmul.u32.u64.high 3817748708, %v23811_v23, %v23889_v4  ;;  %v5589_v27 = vld [vmem:[#allocation3 + $0x71] sm:$0xff]  ;;  %v5590_v44 = vld [vmem:[#allocation3 + $0x79] sm:$0xff]  ;;  %v5200_v6 = vpop.f32.mrb[21].mxu0 }
 0x3ee   : > { %5519 = vst.msk [vmem:[#allocation3 + $0x9b] sm:$0xff] %vm26139_vm14, %v5483_v9  ;;  %v5482_v37 = vsel %vm23757_vm2, %v5374_v0, 0.0  ;;  %v5340_v15 = vadd.f32 %v23309_v35, %v5190_v56  ;;  %vm23901_vm8 = vcmp.lt.s32.totalorder %v1468_v8, 16  ;;  %v23906_v55 = vsub.s32 %v23603_v51, %v1231_v30  ;;  %vm26142_vm2 = vmmov %vm26126_vm6 }
 0x3ef   : > { %v23909_v32 = vadd.s32 272, %v22811_v49  ;;  %5518 = vst.msk [vmem:[#allocation3 + $0x93] sm:$0xff] %vm26142_vm2, %v5482_v37  ;;  %v5377_v25 = vmax.f32 %v5341_v5, 0.0  ;;  %vm26143_vm6 = vmmov %vm26142_vm2  ;;  %vm23918_vm0 = vcmp.lt.s32.totalorder %v1467_v59, 16  ;;  %vm1327_vm10 = vcmp.ne.s32.totalorder %v23876_v42, 0 }
 0x3f0   : > { %19180 = vmatprep.mubr.msk.f32.mxu1 %vm26143_vm6, %v5589_v27  ;;  %vm1363_vm11 = vcmp.lt.s32.totalorder %v23876_v42, 0  ;;  %v1220_v51 = vmul.u32 18, %v1219_v2  ;;  %v5376_v29 = vmax.f32 %v5340_v15, 0.0  ;;  %vm26146_vm14 = vmmov %vm26142_vm2  ;;  %v23934_v21 = vadd.s32 18, %v23876_v42 }
 0x3f1   : > { %19181 = vmatmul.mubr.msk.f32.gmra.mrb[12].mxu1 %vm26146_vm14, %v5590_v44  ;;  %vm23929_vm2 = vmand %vm1364_vm4, %vm1328_vm13  ;;  %v1253_v38 = vmul.u32 18, %v1252_v3  ;;  %v1241_v8 = vshrl.u32 %v23834_v61, 4  ;;  %v5485_v59 = vsel %vm23795_vm12, %v5377_v25, 0.0  ;;  %v5343_v34 = vadd.f32 %v19135_v58, %v23309_v35  ;;  %v5591_v14 = vld [vmem:[#allocation3 + $0x81] sm:$0xff]  ;;  %v5592_v36 = vld [vmem:[#allocation3 + $0x89] sm:$0xff] }
 0x3f2   : > { %v23941_v33 = vmul.u32.u64.low 3817748708, %v23837_v62  ;;  %v23942_v20 = vmul.u32.u64.high 3817748708, %v23837_v62, %v23941_v33  ;;  %vm26149_vm3 = vmmov %vm26143_vm6  ;;  %v5484_v50 = vsel %vm23820_vm5, %v5376_v29, 0.0  ;;  %v5342_v30 = vadd.f32 %v23309_v35, %v5200_v6 }
 0x3f3   : > { %5521 = vst.msk [vmem:[#allocation3 + $0xab] sm:$0xff] %vm26149_vm3, %v5485_v59  ;;  %vm23953_vm12 = vcmp.lt.s32.totalorder %v1470_v45, 16  ;;  %v23958_v61 = vmul.u32.u64.low 3817748708, %v23909_v32  ;;  %v23959_v60 = vmul.u32.u64.high 3817748708, %v23909_v32, %v23958_v61  ;;  %vm26152_vm13 = vmmov %vm26149_vm3  ;;  %v5379_v26 = vmax.f32 %v5343_v34, 0.0  ;;  %v19138_v45 = vpop.f32.mrb[22].mxu0 }
 0x3f4   : > { %5520 = vst.msk [vmem:[#allocation3 + $0xa3] sm:$0xff] %vm26152_vm13, %v5484_v50  ;;  %vm26153_vm5 = vmmov %vm26149_vm3  ;;  %vm23968_vm4 = vcmp.lt.s32.totalorder %v1469_v22, 16  ;;  %v1472_v11 = vsel %vm23929_vm2, %v23882_v43, %v23829_v52  ;;  %v23985_v31 = vsub.s32 %v23698_v18, %v1220_v51  ;;  %v1274_v39 = vshrl.u32 %v23861_v16, 4  ;;  %v5210_v19 = vpop.f32.mrb[23].mxu0 }
 0x3f5   : > { %19183 = vmatprep.mubr.msk.f32.mxu1 %vm26153_vm5, %v5591_v14  ;;  %vm23980_vm9 = vmand %vm1363_vm11, %vm1327_vm10  ;;  %v5378_v17 = vmax.f32 %v5342_v30, 0.0  ;;  %vm1330_vm6 = vcmp.ne.s32.totalorder %v23906_v55, 0  ;;  %v23991_v52 = vsub.s32 %v23717_v47, %v1253_v38  ;;  %v1242_v22 = vmul.u32 18, %v1241_v8  ;;  %v19141_v9 = vpop.f32.mrb[24].mxu0 }
 0x3f6   : > { %vm26158_vm7 = vmmov %vm26149_vm3  ;;  %v5487_v57 = vsel %vm23855_vm1, %v5379_v26, 0.0  ;;  %v5345_v41 = vadd.f32 %v19138_v45, %v23309_v35  ;;  %vm1366_vm10 = vcmp.lt.s32.totalorder %v23906_v55, 0  ;;  %v1263_v18 = vshrl.u32 %v23890_v7, 4  ;;  %v5593_v47 = vld [vmem:[#allocation3 + $0x91] sm:$0xff]  ;;  %v5594_v0 = vld [vmem:[#allocation3 + $0x99] sm:$0xff]  ;;  %v5220_v4 = vpop.f32.mrb[25].mxu0 }
 0x3f7   : > { %19184 = vmatmul.mubr.msk.f32.gmra.mrb[14].mxu1 %vm26158_vm7, %v5592_v36  ;;  %vm26159_vm11 = vmmov %vm26149_vm3  ;;  %v5486_v16 = vsel %vm23870_vm15, %v5378_v17, 0.0  ;;  %v5344_v2 = vadd.f32 %v23309_v35, %v5210_v19  ;;  %v1471_v12 = vsel %vm23980_vm9, %v23934_v21, %v23876_v42  ;;  %v1438_v54 = vadd.s32 18, %v23906_v55  ;;  %v19144_v8 = vpop.f32.mrb[26].mxu0 }
 0x3f8   : > { %5523 = vst.msk [vmem:[#allocation3 + $0xbb] sm:$0xff] %vm26159_vm11, %v5487_v57  ;;  %vm26160_vm1 = vmmov %vm26149_vm3  ;;  %v5381_v43 = vmax.f32 %v5345_v41, 0.0  ;;  %vm1329_vm2 = vcmp.ne.s32.totalorder %v23985_v31, 0  ;;  %vm1365_vm15 = vcmp.lt.s32.totalorder %v23985_v31, 0  ;;  %v1275_v46 = vmul.u32 18, %v1274_v39  ;;  %v5230_v50 = vpop.f32.mrb[27].mxu0 }
 0x3f9   : > { %5522 = vst.msk [vmem:[#allocation3 + $0xb3] sm:$0xff] %vm26160_vm1, %v5486_v16  ;;  %vm26161_vm14 = vmmov %vm26160_vm1  ;;  %v5380_v3 = vmax.f32 %v5344_v2, 0.0  ;;  %vm1332_vm13 = vcmp.ne.s32.totalorder %v23991_v52, 0  ;;  %vm1368_vm5 = vcmp.lt.s32.totalorder %v23991_v52, 0  ;;  %v24015_v42 = vsub.s32 %v23777_v63, %v1242_v22  ;;  %v19147_v13 = vpop.f32.mrb[28].mxu0 }
 0x3fa   : > { %19186 = vmatprep.mubr.msk.f32.mxu1 %vm26161_vm14, %v5593_v47  ;;  %vm26162_vm3 = vmmov %vm26160_vm1  ;;  %v5489_v5 = vsel %vm23901_vm8, %v5381_v43, 0.0  ;;  %v5347_v56 = vadd.f32 %v19141_v9, %v23309_v35  ;;  %v1264_v37 = vmul.u32 18, %v1263_v18  ;;  %v1296_v15 = vshrl.u32 %v23942_v20, 4  ;;  %v5554_v43 = vld [vmem:[#allocation3 + $0x80] sm:$0xff] }
 0x3fb   : > { %19187 = vmatmul.mubr.msk.f32.gmra.mrb[16].mxu1 %vm26162_vm3, %v5594_v0  ;;  %vm24024_vm9 = vmand %vm1366_vm10, %vm1330_vm6  ;;  %v5488_v63 = vsel %vm23918_vm0, %v5380_v3, 0.0  ;;  %v5346_v27 = vadd.f32 %v23309_v35, %v5220_v4  ;;  %v5595_v44 = vld [vmem:[#allocation3 + $0xa1] sm:$0xff]  ;;  %vm24033_vm8 = vcmp.lt.s32.totalorder %v1472_v11, 16  ;;  %v5596_v25 = vld [vmem:[#allocation3 + $0xa9] sm:$0xff]  ;;  %v1285_v51 = vshrl.u32 %v23959_v60, 4 }
 0x3fc   : > { %vm26165_vm7 = vmmov %vm26160_vm1  ;;  %v5383_v29 = vmax.f32 %v5347_v56, 0.0  ;;  %vm24040_vm11 = vcmp.lt.s32.totalorder %v1471_v12, 16  ;;  %v1437_v24 = vadd.s32 18, %v23985_v31  ;;  %v1440_v21 = vadd.s32 18, %v23991_v52  ;;  %v5551_v12 = vld [vmem:[#allocation3 + $0x68] sm:$0xff] }
 0x3fd   : > { %5525 = vst.msk [vmem:[#allocation3 + $0xcb] sm:$0xff] %vm26165_vm7, %v5489_v5  ;;  %vm26168_vm6 = vmmov %vm26160_vm1  ;;  %v5382_v38 = vmax.f32 %v5346_v27, 0.0  ;;  %v1474_v59 = vsel %vm24024_vm9, %v1438_v54, %v23906_v55  ;;  %v24068_v6 = vsub.s32 %v23808_v28, %v1275_v46  ;;  %v5349_v20 = vadd.f32 %v19144_v8, %v23309_v35 }
 0x3fe   : > { %5524 = vst.msk [vmem:[#allocation3 + $0xc3] sm:$0xff] %vm26168_vm6, %v5488_v63  ;;  %vm26169_vm10 = vmmov %vm26160_vm1  ;;  %v5491_v33 = vsel %vm23953_vm12, %v5383_v29, 0.0  ;;  %v24074_v55 = vsub.s32 %v23811_v23, %v1264_v37  ;;  %v1297_v30 = vmul.u32 18, %v1296_v15  ;;  %v5348_v36 = vadd.f32 %v23309_v35, %v5230_v50 }
 0x3ff   : > { %19189 = vmatprep.mubr.msk.f32.mxu1 %vm26169_vm10, %v5595_v44  ;;  %vm24048_vm0 = vmand %vm1365_vm15, %vm1329_vm2  ;;  %vm1331_vm2 = vcmp.ne.s32.totalorder %v24015_v42, 0  ;;  %v5490_v14 = vsel %vm23968_vm4, %v5382_v38, 0.0  ;;  %vm1367_vm3 = vcmp.lt.s32.totalorder %v24015_v42, 0  ;;  %v1286_v48 = vmul.u32 18, %v1285_v51 }
 0x400   : > { %19190 = vmatmul.mubr.msk.f32.gmra.mrb[18].mxu1 %vm26160_vm1, %v5596_v25  ;;  %vm24062_vm14 = vmand %vm1368_vm5, %vm1332_vm13  ;;  %v5597_v61 = vld [vmem:[#allocation3 + $0xb1] sm:$0xff]  ;;  %v5598_v28 = vld [vmem:[#allocation3 + $0xb9] sm:$0xff]  ;;  %v5385_v60 = vmax.f32 %v5349_v20, 0.0  ;;  %vm24083_vm5 = vcmp.lt.s32.totalorder %v1474_v59, 16  ;;  %v1473_v26 = vsel %vm24048_vm0, %v1437_v24, %v23985_v31  ;;  %v5384_v11 = vmax.f32 %v5348_v36, 0.0  ;;  %v5240_v31 = vpop.f32.mrb[29].mxu0 }
 0x401   : > { %vm26176_vm15 = vmmov %vm26160_vm1  ;;  %v1476_v10 = vsel %vm24062_vm14, %v1440_v21, %v23991_v52  ;;  %v1439_v39 = vadd.s32 18, %v24015_v42  ;;  %vm1334_vm9 = vcmp.ne.s32.totalorder %v24068_v6, 0  ;;  %vm1370_vm7 = vcmp.lt.s32.totalorder %v24068_v6, 0  ;;  %v19150_v54 = vpop.f32.mrb[30].mxu0  ;;  %v24220_v52 = vld [vmem:[%s25952_s16 + $0x18] sm:$0xff] }
 0x402   : > { %5527 = vst.msk [vmem:[#allocation3 + $0xdb] sm:$0xff] %vm26176_vm15, %v5491_v33  ;;  %vm26177_vm12 = vmmov %vm26160_vm1  ;;  %v5493_v17 = vsel %vm24033_vm8, %v5385_v60, 0.0  ;;  %v5351_v45 = vadd.f32 %v19147_v13, %v23309_v35  ;;  %vm1333_vm10 = vcmp.ne.s32.totalorder %v24074_v55, 0  ;;  %v24110_v22 = vsub.s32 %v23837_v62, %v1297_v30  ;;  %v5250_v5 = vpop.f32.mrb[31].mxu0  ;;  %v5548_v62 = vld [vmem:[#allocation3 + $0x50] sm:$0xff] }
 0x403   : > { %5526 = vst.msk [vmem:[#allocation3 + $0xd3] sm:$0xff] %vm26177_vm12, %v5490_v14  ;;  %vm26178_vm13 = vmmov %vm26160_vm1  ;;  %v5492_v57 = vsel %vm24040_vm11, %v5384_v11, 0.0  ;;  %v5350_v41 = vadd.f32 %v23309_v35, %v5240_v31  ;;  %vm1369_vm8 = vcmp.lt.s32.totalorder %v24074_v55, 0  ;;  %v24118_v16 = vsub.s32 %v23909_v32, %v1286_v48  ;;  %v19153_v40 = vpop.f32.mrb[32].mxu0  ;;  %v5539_v31 = vld [vmem:[#allocation3 + $0x8] sm:$0xff] }
 0x404   : > { %19192 = vmatprep.mubr.msk.f32.mxu1 %vm26178_vm13, %v5597_v61  ;;  %vm26181_vm4 = vmmov %vm26160_vm1  ;;  %v5387_v2 = vmax.f32 %v5351_v45, 0.0  ;;  %vm24121_vm14 = vcmp.lt.s32.totalorder %v1473_v26, 16  ;;  %v1442_v47 = vadd.s32 18, %v24068_v6  ;;  %vm24127_vm11 = vcmp.lt.s32.totalorder %v1476_v10, 16  ;;  %v5260_v24 = vpop.f32.mrb[33].mxu0  ;;  %v5538_v45 = vld [vmem:[#allocation3] sm:$0xff] }
 0x405   : > { %19193 = vmatmul.mubr.msk.f32.gmra.mrb[20].mxu1 %vm26181_vm4, %v5598_v28  ;;  %vm24104_vm6 = vmand %vm1367_vm3, %vm1331_vm2  ;;  %v5599_v19 = vld [vmem:[#allocation3 + $0xc1] sm:$0xff]  ;;  %v5600_v18 = vld [vmem:[#allocation3 + $0xc9] sm:$0xff]  ;;  %v5386_v0 = vmax.f32 %v5350_v41, 0.0  ;;  %v1441_v46 = vadd.s32 18, %v24074_v55  ;;  %v5353_v9 = vadd.f32 %v19150_v54, %v23309_v35  ;;  %vm1336_vm13 = vcmp.ne.s32.totalorder %v24110_v22, 0  ;;  %v19156_v50 = vpop.f32.mrb[34].mxu0 }
 0x406   : > { %vm26184_vm0 = vmmov %vm26160_vm1  ;;  %v1475_v32 = vsel %vm24104_vm6, %v1439_v39, %v24015_v42  ;;  %v5495_v3 = vsel %vm24083_vm5, %v5387_v2, 0.0  ;;  %vm1372_vm4 = vcmp.lt.s32.totalorder %v24110_v22, 0  ;;  %v5352_v4 = vadd.f32 %v23309_v35, %v5250_v5  ;;  %v5270_v36 = vpop.f32.mrb[35].mxu0  ;;  %v5542_v41 = vld [vmem:[#allocation3 + $0x20] sm:$0xff]  ;;  %v5547_v2 = vld [vmem:[#allocation3 + $0x48] sm:$0xff] }
 0x407   : > { %5529 = vst.msk [vmem:[#allocation3 + $0xeb] sm:$0xff] %vm26184_vm0, %v5493_v17  ;;  %vm26185_vm1 = vmmov %vm26184_vm0  ;;  %v5494_v56 = vsel %vm24121_vm14, %v5386_v0, 0.0  ;;  %vm1335_vm5 = vcmp.ne.s32.totalorder %v24118_v16, 0  ;;  %v5389_v15 = vmax.f32 %v5353_v9, 0.0  ;;  %v1444_v27 = vadd.s32 18, %v24110_v22  ;;  %v5550_v0 = vld [vmem:[#allocation3 + $0x60] sm:$0xff] }
 0x408   : > { %5528 = vst.msk [vmem:[#allocation3 + $0xe3] sm:$0xff] %vm26185_vm1, %v5492_v57  ;;  %vm26188_vm2 = vmmov %vm26184_vm0  ;;  %v5388_v44 = vmax.f32 %v5352_v4, 0.0  ;;  %v1443_v29 = vadd.s32 18, %v24118_v16  ;;  %v5355_v53 = vadd.f32 %v19153_v40, %v23309_v35  ;;  %v5354_v8 = vadd.f32 %v23309_v35, %v5260_v24  ;;  %v5541_v57 = vld [vmem:[#allocation3 + $0x18] sm:$0xff]  ;;  %v5552_v54 = vld [vmem:[#allocation3 + $0x70] sm:$0xff] }
 0x409   : > { %19195 = vmatprep.mubr.msk.f32.mxu1 %vm26188_vm2, %v5599_v19  ;;  %vm26191_vm15 = vmmov %vm26184_vm0  ;;  %v5497_v58 = vsel %vm24127_vm11, %v5389_v15, 0.0  ;;  %v5357_v14 = vadd.f32 %v19156_v50, %v23309_v35  ;;  %v5356_v28 = vadd.f32 %v23309_v35, %v5270_v36  ;;  %v5543_v19 = vld [vmem:[#allocation3 + $0x28] sm:$0xff]  ;;  %v5557_v9 = vld [vmem:[#allocation3 + $0x98] sm:$0xff] }
 0x40a   : > { %19196 = vmatmul.mubr.msk.f32.gmra.mrb[22].mxu1 %vm26191_vm15, %v5600_v18  ;;  %vm24139_vm3 = vmand %vm1370_vm7, %vm1334_vm9  ;;  %v5601_v7 = vld [vmem:[#allocation3 + $0xd1] sm:$0xff]  ;;  %v5602_v37 = vld [vmem:[#allocation3 + $0xd9] sm:$0xff]  ;;  %vm1371_vm7 = vcmp.lt.s32.totalorder %v24118_v16, 0  ;;  %v5390_v20 = vmax.f32 %v5354_v8, 0.0 }
 0x40b   : > { %vm24151_vm12 = vmand %vm1369_vm8, %vm1333_vm10  ;;  %vm1511_vm10 = vcmp.lt.s32.totalorder %v1475_v32, 16  ;;  %19198 = vmatprep.mubr.msk.f32.mxu1 %vm26184_vm0, %v5601_v7  ;;  %v1478_v63 = vsel %vm24139_vm3, %v1442_v47, %v24068_v6  ;;  %v5391_v6 = vmax.f32 %v5355_v53, 0.0  ;;  %v5393_v23 = vmax.f32 %v5357_v14, 0.0  ;;  %v5544_v18 = vld [vmem:[#allocation3 + $0x30] sm:$0xff]  ;;  %v5549_v47 = vld [vmem:[#allocation3 + $0x58] sm:$0xff] }
 0x40c   : > { %vm26196_vm9 = vmmov %vm26184_vm0  ;;  %v1477_v25 = vsel %vm24151_vm12, %v1441_v46, %v24074_v55  ;;  %v5496_v38 = vsel %vm1511_vm10, %v5388_v44, 0.0  ;;  %vm1514_vm15 = vcmp.lt.s32.totalorder %v1478_v63, 16  ;;  %v5392_v26 = vmax.f32 %v5356_v28, 0.0  ;;  %v5553_v32 = vld [vmem:[#allocation3 + $0x78] sm:$0xff]  ;;  %v5555_v46 = vld [vmem:[#allocation3 + $0x88] sm:$0xff] }
 0x40d   : > { %5531 = vst.msk [vmem:[#allocation3 + $0xfb] sm:$0xff] %vm26196_vm9, %v5495_v3  ;;  %vm26197_vm6 = vmmov %vm26184_vm0  ;;  %vm1513_vm3 = vcmp.lt.s32.totalorder %v1477_v25, 16  ;;  %v5499_v30 = vsel %vm1514_vm15, %v5391_v6, 0.0  ;;  %v5556_v3 = vld [vmem:[#allocation3 + $0x90] sm:$0xff]  ;;  %v5558_v5 = vld [vmem:[#allocation3 + $0xa0] sm:$0xff] }
 0x40e   : > { %5530 = vst.msk [vmem:[#allocation3 + $0xf3] sm:$0xff] %vm26197_vm6, %v5494_v56  ;;  %vm26198_vm8 = vmmov %vm26184_vm0  ;;  %v5498_v61 = vsel %vm1513_vm3, %v5390_v20, 0.0  ;;  %v5559_v42 = vld [vmem:[#allocation3 + $0xa8] sm:$0xff]  ;;  %v5560_v56 = vld [vmem:[#allocation3 + $0xb0] sm:$0xff] }
 0x40f   : > { %19199 = vmatmul.mubr.msk.f32.gmra.mrb[24].mxu1 %vm26198_vm8, %v5602_v37  ;;  %vm24177_vm1 = vmand %vm1372_vm4, %vm1336_vm13  ;;  %v5603_v59 = vld [vmem:[#allocation3 + $0xe1] sm:$0xff]  ;;  %v5604_v34 = vld [vmem:[#allocation3 + $0xe9] sm:$0xff] }
 0x410   : > { %vm24189_vm14 = vmand %vm1371_vm7, %vm1335_vm5  ;;  %v1480_v33 = vsel %vm24177_vm1, %v1444_v27, %v24110_v22  ;;  %v5540_v22 = vld [vmem:[#allocation3 + $0x10] sm:$0xff]  ;;  %v5561_v4 = vld [vmem:[#allocation3 + $0xb8] sm:$0xff] }
 0x411   : > { %vm26203_vm2 = vmmov %vm26184_vm0  ;;  %v1479_v55 = vsel %vm24189_vm14, %v1443_v29, %v24118_v16  ;;  %vm1516_vm9 = vcmp.lt.s32.totalorder %v1480_v33, 16  ;;  %v5545_v16 = vld [vmem:[#allocation3 + $0x38] sm:$0xff]  ;;  %v5562_v7 = vld [vmem:[#allocation3 + $0xc0] sm:$0xff] }
 0x412   : > { %5533 = vst.msk [vmem:[#allocation3 + $0x10b] sm:$0xff] %vm26203_vm2, %v5497_v58  ;;  %vm26204_vm11 = vmmov %vm26184_vm0  ;;  %vm1515_vm7 = vcmp.lt.s32.totalorder %v1479_v55, 16  ;;  %v5501_v10 = vsel %vm1516_vm9, %v5393_v23, 0.0  ;;  %v5563_v37 = vld [vmem:[#allocation3 + $0xc8] sm:$0xff]  ;;  %v5564_v15 = vld [vmem:[#allocation3 + $0xd0] sm:$0xff] }
 0x413   : > { %5532 = vst.msk [vmem:[#allocation3 + $0x103] sm:$0xff] %vm26204_vm11, %v5496_v38  ;;  %vm26205_vm12 = vmmov %vm26184_vm0  ;;  %v5500_v11 = vsel %vm1515_vm7, %v5392_v26, 0.0  ;;  %v5565_v63 = vld [vmem:[#allocation3 + $0xd8] sm:$0xff]  ;;  %v5566_v27 = vld [vmem:[#allocation3 + $0xe0] sm:$0xff] }
 0x414   : > { %19201 = vmatprep.mubr.msk.f32.mxu1 %vm26205_vm12, %v5603_v59  ;;  %vm26206_vm13 = vmmov %vm26184_vm0  ;;  %5537 = vst.msk [vmem:[#allocation3 + $0x12b] sm:$0xff] %vm26184_vm0, %v5501_v10  ;;  %v5567_v44 = vld [vmem:[#allocation3 + $0xe8] sm:$0xff]  ;;  %v24263_v38 = vld [vmem:[%s25952_s16 + $0x20] sm:$0xff] }
 0x415   : > { %19202 = vmatmul.mubr.msk.f32.gmra.mrb[26].mxu1 %vm26206_vm13, %v5604_v34  ;;  %vm26207_vm4 = vmmov %vm26184_vm0  ;;  %v5605_v48 = vld [vmem:[#allocation3 + $0xf1] sm:$0xff]  ;;  %v5606_v60 = vld [vmem:[#allocation3 + $0xf9] sm:$0xff] }
 0x416   : > { %5535 = vst.msk [vmem:[#allocation3 + $0x11b] sm:$0xff] %vm26207_vm4, %v5499_v30  ;;  %vm26208_vm5 = vmmov %vm26184_vm0  ;;  %v5568_v40 = vld [vmem:[#allocation3 + $0xf0] sm:$0xff]  ;;  %v5569_v25 = vld [vmem:[#allocation3 + $0xf8] sm:$0xff] }
 0x417   : > { %5534 = vst.msk [vmem:[#allocation3 + $0x113] sm:$0xff] %vm26208_vm5, %v5498_v61  ;;  %vm26209_vm6 = vmmov %vm26184_vm0  ;;  %v6319_v53 = vld [vmem:[#allocation3 + $0x2] sm:$0xff]  ;;  %v6320_v21 = vld [vmem:[#allocation3 + $0xa] sm:$0xff] }
 0x418   : > { %19204 = vmatprep.mubr.msk.f32.mxu1 %vm26209_vm6, %v5605_v48  ;;  %vm26210_vm10 = vmmov %vm26184_vm0  ;;  %v24266_v8 = vld [vmem:[#allocation3 + $0x12] sm:$0xff]  ;;  %v24272_v59 = vld [vmem:[#allocation3 + $0x1a] sm:$0xff] }
 0x419   : > { %19205 = vmatmul.mubr.msk.f32.gmra.mrb[28].mxu1 %vm26210_vm10, %v5606_v60  ;;  %vm26211_vm8 = vmmov %vm26184_vm0  ;;  %v24276_v34 = vld [vmem:[#allocation3 + $0x22] sm:$0xff]  ;;  %v24280_v6 = vld [vmem:[#allocation3 + $0x2a] sm:$0xff] }
 0x41a   : > { %v5607_v13 = vld [vmem:[#allocation3 + $0x101] sm:$0xff]  ;;  %v5608_v39 = vld [vmem:[#allocation3 + $0x109] sm:$0xff]  ;;  %5536 = vst.msk [vmem:[#allocation3 + $0x123] sm:$0xff] %vm26211_vm8, %v5500_v11  ;;  %vm26212_vm1 = vmmov %vm26184_vm0 }
 0x41b   : > { %19207 = vmatprep.mubr.msk.f32.mxu1 %vm26212_vm1, %v5607_v13  ;;  %vm26213_vm14 = vmmov %vm26184_vm0  ;;  %v5570_v51 = vld [vmem:[#allocation3 + $0x100] sm:$0xff]  ;;  %v5571_v29 = vld [vmem:[#allocation3 + $0x108] sm:$0xff] }
 0x41c   : > { %vm26214_vm2 = vmmov %vm26184_vm0  ;;  %v24284_v33 = vld [vmem:[#allocation3 + $0x32] sm:$0xff]  ;;  %v24288_v20 = vld [vmem:[#allocation3 + $0x3a] sm:$0xff] }
 0x41d   : > { %19208 = vmatmul.mubr.msk.f32.gmra.mrb[30].mxu1 %vm26213_vm14, %v5608_v39  ;;  %vm26215_vm15 = vmmov %vm26184_vm0  ;;  %v24292_v50 = vld [vmem:[#allocation3 + $0x42] sm:$0xff]  ;;  %v24296_v55 = vld [vmem:[#allocation3 + $0x4a] sm:$0xff] }
 0x41e   : > { %v5609_v35 = vld [vmem:[#allocation3 + $0x111] sm:$0xff]  ;;  %v5610_v17 = vld [vmem:[#allocation3 + $0x119] sm:$0xff]  ;;  %vm26216_vm11 = vmmov %vm26184_vm0 }
 0x41f   : > { %19210 = vmatprep.mubr.msk.f32.mxu1 %vm26214_vm2, %v5609_v35  ;;  %vm26217_vm3 = vmmov %vm26184_vm0  ;;  %v5572_v58 = vld [vmem:[#allocation3 + $0x110] sm:$0xff]  ;;  %v5573_v24 = vld [vmem:[#allocation3 + $0x118] sm:$0xff] }
 0x420   : > { %vm26218_vm12 = vmmov %vm26184_vm0  ;;  %v24300_v30 = vld [vmem:[#allocation3 + $0x52] sm:$0xff]  ;;  %v6330_v14 = vld [vmem:[#allocation3 + $0x5a] sm:$0xff] }
 0x421   : > { %19211 = vmatmul.mubr.msk.f32.gmra.mrb[32].mxu1 %vm26215_vm15, %v5610_v17  ;;  %vm26219_vm13 = vmmov %vm26184_vm0  ;;  %v6331_v36 = vld [vmem:[#allocation3 + $0x62] sm:$0xff]  ;;  %v6332_v61 = vld [vmem:[#allocation3 + $0x6a] sm:$0xff] }
 0x422   : > { %19215 = vmatprep.mubr.msk.f32.mxu1 %vm26216_vm11, %v5538_v45  ;;  %vm26220_vm4 = vmmov %vm26184_vm0  ;;  %v6333_v28 = vld [vmem:[#allocation3 + $0x72] sm:$0xff]  ;;  %v6334_v48 = vld [vmem:[#allocation3 + $0x7a] sm:$0xff] }
 0x423   : > { %vm26221_vm9 = vmmov %vm26184_vm0  ;;  %v6335_v60 = vld [vmem:[#allocation3 + $0x82] sm:$0xff]  ;;  %v6336_v23 = vld [vmem:[#allocation3 + $0x8a] sm:$0xff] }
 0x424   : > { %vm26222_vm5 = vmmov %vm26184_vm0  ;;  %v6337_v26 = vld [vmem:[#allocation3 + $0x92] sm:$0xff]  ;;  %v6338_v10 = vld [vmem:[#allocation3 + $0x9a] sm:$0xff] }
 0x425   : > { %19216 = vmatmul.mubr.msk.f32.vlgmr.msra.gmra.mrb[34].mxu1 %vm26217_vm3, %v5539_v31  ;;  %vm26223_vm7 = vmmov %vm26184_vm0  ;;  %v6339_v11 = vld [vmem:[#allocation3 + $0xa2] sm:$0xff]  ;;  %v6340_v13 = vld [vmem:[#allocation3 + $0xaa] sm:$0xff] }
 0x426   : > { %19270 = vmatpush3.msra.mxu1 %v23593_v1  ;;  %19218 = vmatprep.mubr.msk.f32.mxu1 %vm26218_vm12, %v5540_v22  ;;  %v5546_v1 = vld [vmem:[#allocation3 + $0x40] sm:$0xff]  ;;  %vm26224_vm6 = vmmov %vm26184_vm0  ;;  %v6341_v39 = vld [vmem:[#allocation3 + $0xb2] sm:$0xff] }
 0x427   : > { %19325 = vmatprep.subr.mxu1 %v24220_v52  ;;  %vm26225_vm10 = vmmov %vm26184_vm0  ;;  %v6342_v35 = vld [vmem:[#allocation3 + $0xba] sm:$0xff]  ;;  %v6343_v17 = vld [vmem:[#allocation3 + $0xc2] sm:$0xff] }
 0x428   : > { %vm26226_vm8 = vmmov %vm26184_vm0  ;;  %v6344_v45 = vld [vmem:[#allocation3 + $0xca] sm:$0xff]  ;;  %v6345_v31 = vld [vmem:[#allocation3 + $0xd2] sm:$0xff] }
 0x429   : > { %19219 = vmatmul.mubr.msk.f32.gmra.mrb[0].mxu1 %vm26219_vm13, %v5541_v57  ;;  %vm26227_vm1 = vmmov %vm26184_vm0  ;;  %v6347_v22 = vld [vmem:[#allocation3 + $0xe2] sm:$0xff]  ;;  %v6348_v57 = vld [vmem:[#allocation3 + $0xea] sm:$0xff] }
 0x42a   : > { %19221 = vmatprep.mubr.msk.f32.mxu1 %vm26220_vm4, %v5542_v41  ;;  %vm26228_vm14 = vmmov %vm26184_vm0  ;;  %v6349_v41 = vld [vmem:[#allocation3 + $0xf2] sm:$0xff] }
 0x42b   : > { %vm26229_vm2 = vmmov %vm26184_vm0 }
 0x42c   : > { %vm26230_vm15 = vmmov %vm26184_vm0 }
 0x42d   : > { %19222 = vmatmul.mubr.msk.f32.gmra.mrb[2].mxu1 %vm26221_vm9, %v5543_v19  ;;  %vm26231_vm11 = vmmov %vm26184_vm0  ;;  %v6350_v19 = vld [vmem:[#allocation3 + $0xfa] sm:$0xff] }
 0x42e   : > { %19224 = vmatprep.mubr.msk.f32.mxu1 %vm26222_vm5, %v5544_v18  ;;  %vm26232_vm3 = vmmov %vm26184_vm0  ;;  %v6351_v18 = vld [vmem:[#allocation3 + $0x102] sm:$0xff] }
 0x42f   : > { %vm26233_vm12 = vmmov %vm26184_vm0 }
 0x430   : > { %vm26234_vm13 = vmmov %vm26184_vm0 }
 0x431   : > { %19225 = vmatmul.mubr.msk.f32.gmra.mrb[4].mxu1 %vm26223_vm7, %v5545_v16  ;;  %vm26235_vm4 = vmmov %vm26184_vm0  ;;  %v6352_v16 = vld [vmem:[#allocation3 + $0x10a] sm:$0xff] }
 0x432   : > { %19227 = vmatprep.mubr.msk.f32.mxu1 %vm26224_vm6, %v5546_v1  ;;  %vm26236_vm9 = vmmov %vm26184_vm0  ;;  %v6353_v1 = vld [vmem:[#allocation3 + $0x112] sm:$0xff] }
 0x433   : > { %vm26237_vm5 = vmmov %vm26184_vm0 }
 0x434   : > { %vm26238_vm7 = vmmov %vm26184_vm0 }
 0x435   : > { %19228 = vmatmul.mubr.msk.f32.gmra.mrb[6].mxu1 %vm26225_vm10, %v5547_v2  ;;  %vm26239_vm6 = vmmov %vm26184_vm0  ;;  %v6354_v2 = vld [vmem:[#allocation3 + $0x11a] sm:$0xff] }
 0x436   : > { %19230 = vmatprep.mubr.msk.f32.mxu1 %vm26184_vm0, %v5548_v62  ;;  %vm26240_vm10 = vmmov %vm26184_vm0  ;;  %v17019_v62 = vld [vmem:[%s25952_s16 + $0x28] sm:$0xff] }
 0x439   : > { %19231 = vmatmul.mubr.msk.f32.gmra.mrb[8].mxu1 %vm26226_vm8, %v5549_v47  ;;  %vm26241_vm8 = vmmov %vm26184_vm0  ;;  %v6780_v47 = vld [vmem:[#allocation3 + $0x122] sm:$0xff] }
 0x43a   : > { %19233 = vmatprep.mubr.msk.f32.mxu1 %vm26227_vm1, %v5550_v0  ;;  %vm26242_vm1 = vmmov %vm26184_vm0  ;;  %v6781_v0 = vld [vmem:[#allocation3 + $0x12a] sm:$0xff] }
 0x43d   : > { %19234 = vmatmul.mubr.msk.f32.gmra.mrb[10].mxu1 %vm26228_vm14, %v5551_v12  ;;  %vm26243_vm14 = vmmov %vm26184_vm0  ;;  %v7173_v12 = vld [vmem:[#allocation3 + $0x13] sm:$0xff] }
 0x43e   : > { %19236 = vmatprep.mubr.msk.f32.mxu1 %vm26229_vm2, %v5552_v54  ;;  %vm26244_vm2 = vmmov %vm26184_vm0  ;;  %v7174_v54 = vld [vmem:[#allocation3 + $0x1b] sm:$0xff] }
 0x441   : > { %19237 = vmatmul.mubr.msk.f32.gmra.mrb[12].mxu1 %vm26230_vm15, %v5553_v32  ;;  %vm26245_vm15 = vmmov %vm26184_vm0  ;;  %v24382_v32 = vld [vmem:[%s25952_s16 + $0x30] sm:$0xff] }
 0x442   : > { %19239 = vmatprep.mubr.msk.f32.mxu1 %vm26231_vm11, %v5554_v43  ;;  %vm26246_vm11 = vmmov %vm26184_vm0  ;;  %v7175_v43 = vld [vmem:[#allocation3 + $0x23] sm:$0xff] }
 0x445   : > { %19240 = vmatmul.mubr.msk.f32.gmra.mrb[14].mxu1 %vm26232_vm3, %v5555_v46  ;;  %vm26247_vm3 = vmmov %vm26184_vm0  ;;  %v7176_v46 = vld [vmem:[#allocation3 + $0x2b] sm:$0xff] }
 0x446   : > { %19242 = vmatprep.mubr.msk.f32.mxu1 %vm26233_vm12, %v5556_v3  ;;  %vm26248_vm12 = vmmov %vm26184_vm0  ;;  %v7177_v3 = vld [vmem:[#allocation3 + $0x33] sm:$0xff] }
 0x449   : > { %19243 = vmatmul.mubr.msk.f32.gmra.mrb[16].mxu1 %vm26234_vm13, %v5557_v9  ;;  %vm26249_vm13 = vmmov %vm26184_vm0  ;;  %v7178_v9 = vld [vmem:[#allocation3 + $0x3b] sm:$0xff] }
 0x44a   : > { %19245 = vmatprep.mubr.msk.f32.mxu1 %vm26235_vm4, %v5558_v5  ;;  %vm26250_vm4 = vmmov %vm26184_vm0  ;;  %v7179_v5 = vld [vmem:[#allocation3 + $0x43] sm:$0xff] }
 0x44d   : > { %19246 = vmatmul.mubr.msk.f32.gmra.mrb[18].mxu1 %vm26236_vm9, %v5559_v42  ;;  %vm26251_vm9 = vmmov %vm26184_vm0  ;;  %v7180_v42 = vld [vmem:[#allocation3 + $0x4b] sm:$0xff] }
 0x44e   : > { %19248 = vmatprep.mubr.msk.f32.mxu1 %vm26237_vm5, %v5560_v56  ;;  %vm26252_vm5 = vmmov %vm26184_vm0  ;;  %v7181_v56 = vld [vmem:[#allocation3 + $0x53] sm:$0xff] }
 0x451   : > { %19249 = vmatmul.mubr.msk.f32.gmra.mrb[20].mxu1 %vm26238_vm7, %v5561_v4  ;;  %vm26253_vm7 = vmmov %vm26184_vm0  ;;  %v7182_v4 = vld [vmem:[#allocation3 + $0x5b] sm:$0xff] }
 0x452   : > { %19251 = vmatprep.mubr.msk.f32.mxu1 %vm26239_vm6, %v5562_v7  ;;  %vm26254_vm6 = vmmov %vm26184_vm0  ;;  %v7183_v7 = vld [vmem:[#allocation3 + $0x63] sm:$0xff] }
 0x455   : > { %19252 = vmatmul.mubr.msk.f32.gmra.mrb[22].mxu1 %vm26240_vm10, %v5563_v37  ;;  %vm26255_vm10 = vmmov %vm26184_vm0  ;;  %v7184_v37 = vld [vmem:[#allocation3 + $0x6b] sm:$0xff] }
 0x456   : > { %19254 = vmatprep.mubr.msk.f32.mxu1 %vm26184_vm0, %v5564_v15  ;;  %v7185_v15 = vld [vmem:[#allocation3 + $0x73] sm:$0xff] }
 0x459   : > { %19255 = vmatmul.mubr.msk.f32.gmra.mrb[24].mxu1 %vm26241_vm8, %v5565_v63  ;;  %vm26256_vm8 = vmmov %vm26184_vm0  ;;  %v7186_v63 = vld [vmem:[#allocation3 + $0x7b] sm:$0xff] }
 0x45a   : > { %19257 = vmatprep.mubr.msk.f32.mxu1 %vm26242_vm1, %v5566_v27  ;;  %vm26257_vm1 = vmmov %vm26184_vm0  ;;  %v7187_v27 = vld [vmem:[#allocation3 + $0x83] sm:$0xff] }
 0x45d   : > { %19258 = vmatmul.mubr.msk.f32.gmra.mrb[26].mxu1 %vm26243_vm14, %v5567_v44  ;;  %vm26258_vm14 = vmmov %vm26184_vm0  ;;  %v7188_v44 = vld [vmem:[#allocation3 + $0x8b] sm:$0xff] }
 0x45e   : > { %19260 = vmatprep.mubr.msk.f32.mxu1 %vm26244_vm2, %v5568_v40  ;;  %vm26259_vm2 = vmmov %vm26184_vm0  ;;  %v7189_v40 = vld [vmem:[#allocation3 + $0x93] sm:$0xff] }
 0x461   : > { %19261 = vmatmul.mubr.msk.f32.gmra.mrb[28].mxu1 %vm26245_vm15, %v5569_v25  ;;  %vm26260_vm15 = vmmov %vm26184_vm0  ;;  %v7190_v25 = vld [vmem:[#allocation3 + $0x9b] sm:$0xff] }
 0x462   : > { %19263 = vmatprep.mubr.msk.f32.mxu1 %vm26246_vm11, %v5570_v51  ;;  %vm26261_vm11 = vmmov %vm26184_vm0  ;;  %v7191_v51 = vld [vmem:[#allocation3 + $0xa3] sm:$0xff] }
 0x465   : > { %19264 = vmatmul.mubr.msk.f32.gmra.mrb[30].mxu1 %vm26247_vm3, %v5571_v29  ;;  %vm26262_vm3 = vmmov %vm26184_vm0  ;;  %v7192_v29 = vld [vmem:[#allocation3 + $0xab] sm:$0xff] }
 0x466   : > { %19266 = vmatprep.mubr.msk.f32.mxu1 %vm26248_vm12, %v5572_v58  ;;  %vm26263_vm12 = vmmov %vm26184_vm0  ;;  %v7193_v58 = vld [vmem:[#allocation3 + $0xb3] sm:$0xff] }
 0x469   : > { %19267 = vmatmul.mubr.msk.f32.gmra.mrb[32].mxu1 %vm26249_vm13, %v5573_v24  ;;  %vm26264_vm13 = vmmov %vm26184_vm0  ;;  %v7195_v24 = vld [vmem:[#allocation3 + $0xc3] sm:$0xff] }
 0x46a   : > { %19271 = vmatprep.mubr.msk.f32.mxu1 %vm26250_vm4, %v6319_v53  ;;  %vm26265_vm4 = vmmov %vm26184_vm0  ;;  %v7194_v53 = vld [vmem:[#allocation3 + $0xbb] sm:$0xff] }
 0x46d   : > { %19272 = vmatmul.mubr.msk.f32.vlgmr.msra.gmra.mrb[34].mxu1 %vm26251_vm9, %v6320_v21  ;;  %vm26266_vm9 = vmmov %vm26184_vm0  ;;  %v7196_v21 = vld [vmem:[#allocation3 + $0xcb] sm:$0xff] }
 0x46e   : > { %19326 = vmatpush3.msra.mxu1 %v24220_v52  ;;  %19274 = vmatprep.mubr.msk.f32.mxu1 %vm26252_vm5, %v24266_v8  ;;  %vm26267_vm5 = vmmov %vm26184_vm0  ;;  %v6346_v52 = vld [vmem:[#allocation3 + $0xda] sm:$0xff] }
 0x46f   : > { %19381 = vmatprep.subr.mxu1 %v24263_v38 }
 0x471   : > { %19275 = vmatmul.mubr.msk.f32.gmra.mrb[0].mxu1 %vm26253_vm7, %v24272_v59  ;;  %vm26268_vm7 = vmmov %vm26184_vm0 }
 0x472   : > { %19277 = vmatprep.mubr.msk.f32.mxu1 %vm26254_vm6, %v24276_v34  ;;  %vm26269_vm6 = vmmov %vm26184_vm0 }
 0x475   : > { %19278 = vmatmul.mubr.msk.f32.gmra.mrb[2].mxu1 %vm26255_vm10, %v24280_v6  ;;  %vm26270_vm10 = vmmov %vm26184_vm0 }
 0x476   : > { %19280 = vmatprep.mubr.msk.f32.mxu1 %vm26184_vm0, %v24284_v33 }
 0x479   : > { %19281 = vmatmul.mubr.msk.f32.gmra.mrb[4].mxu1 %vm26256_vm8, %v24288_v20  ;;  %vm26271_vm8 = vmmov %vm26184_vm0 }
 0x47a   : > { %19283 = vmatprep.mubr.msk.f32.mxu1 %vm26257_vm1, %v24292_v50  ;;  %vm26272_vm1 = vmmov %vm26184_vm0 }
 0x47d   : > { %19284 = vmatmul.mubr.msk.f32.gmra.mrb[6].mxu1 %vm26258_vm14, %v24296_v55  ;;  %vm26273_vm14 = vmmov %vm26184_vm0 }
 0x47e   : > { %19286 = vmatprep.mubr.msk.f32.mxu1 %vm26259_vm2, %v24300_v30  ;;  %vm26274_vm2 = vmmov %vm26184_vm0 }
 0x481   : > { %19287 = vmatmul.mubr.msk.f32.gmra.mrb[8].mxu1 %vm26260_vm15, %v6330_v14  ;;  %vm26275_vm15 = vmmov %vm26184_vm0 }
 0x482   : > { %19289 = vmatprep.mubr.msk.f32.mxu1 %vm26261_vm11, %v6331_v36  ;;  %vm26276_vm11 = vmmov %vm26184_vm0 }
 0x485   : > { %19290 = vmatmul.mubr.msk.f32.gmra.mrb[10].mxu1 %vm26262_vm3, %v6332_v61  ;;  %vm26277_vm3 = vmmov %vm26184_vm0 }
 0x486   : > { %19292 = vmatprep.mubr.msk.f32.mxu1 %vm26263_vm12, %v6333_v28  ;;  %vm26278_vm12 = vmmov %vm26184_vm0 }
 0x489   : > { %19293 = vmatmul.mubr.msk.f32.gmra.mrb[12].mxu1 %vm26264_vm13, %v6334_v48  ;;  %vm26279_vm13 = vmmov %vm26184_vm0 }
 0x48a   : > { %19295 = vmatprep.mubr.msk.f32.mxu1 %vm26265_vm4, %v6335_v60  ;;  %vm26280_vm4 = vmmov %vm26184_vm0 }
 0x48d   : > { %19296 = vmatmul.mubr.msk.f32.gmra.mrb[14].mxu1 %vm26266_vm9, %v6336_v23  ;;  %vm26281_vm9 = vmmov %vm26184_vm0 }
 0x48e   : > { %19298 = vmatprep.mubr.msk.f32.mxu1 %vm26267_vm5, %v6337_v26  ;;  %vm26282_vm5 = vmmov %vm26184_vm0 }
 0x491   : > { %19299 = vmatmul.mubr.msk.f32.gmra.mrb[16].mxu1 %vm26268_vm7, %v6338_v10  ;;  %vm26283_vm7 = vmmov %vm26184_vm0 }
 0x492   : > { %19301 = vmatprep.mubr.msk.f32.mxu1 %vm26269_vm6, %v6339_v11  ;;  %vm26284_vm6 = vmmov %vm26184_vm0 }
 0x495   : > { %19302 = vmatmul.mubr.msk.f32.gmra.mrb[18].mxu1 %vm26270_vm10, %v6340_v13  ;;  %vm26285_vm10 = vmmov %vm26184_vm0 }
 0x496   : > { %19304 = vmatprep.mubr.msk.f32.mxu1 %vm26184_vm0, %v6341_v39 }
 0x499   : > { %19305 = vmatmul.mubr.msk.f32.gmra.mrb[20].mxu1 %vm26271_vm8, %v6342_v35  ;;  %vm26286_vm8 = vmmov %vm26184_vm0 }
 0x49a   : > { %19307 = vmatprep.mubr.msk.f32.mxu1 %vm26272_vm1, %v6343_v17  ;;  %vm26287_vm1 = vmmov %vm26184_vm0 }
 0x49d   : > { %19308 = vmatmul.mubr.msk.f32.gmra.mrb[22].mxu1 %vm26273_vm14, %v6344_v45  ;;  %vm26288_vm14 = vmmov %vm26184_vm0 }
 0x49e   : > { %19310 = vmatprep.mubr.msk.f32.mxu1 %vm26274_vm2, %v6345_v31  ;;  %vm26289_vm2 = vmmov %vm26184_vm0 }
 0x4a1   : > { %19311 = vmatmul.mubr.msk.f32.gmra.mrb[24].mxu1 %vm26275_vm15, %v6346_v52  ;;  %vm26290_vm15 = vmmov %vm26184_vm0 }
 0x4a2   : > { %19313 = vmatprep.mubr.msk.f32.mxu1 %vm26276_vm11, %v6347_v22  ;;  %vm26291_vm11 = vmmov %vm26184_vm0 }
 0x4a5   : > { %19314 = vmatmul.mubr.msk.f32.gmra.mrb[26].mxu1 %vm26277_vm3, %v6348_v57  ;;  %vm26292_vm3 = vmmov %vm26184_vm0 }
 0x4a6   : > { %19316 = vmatprep.mubr.msk.f32.mxu1 %vm26278_vm12, %v6349_v41  ;;  %vm26293_vm12 = vmmov %vm26184_vm0 }
 0x4a9   : > { %19317 = vmatmul.mubr.msk.f32.gmra.mrb[28].mxu1 %vm26279_vm13, %v6350_v19  ;;  %vm26294_vm13 = vmmov %vm26184_vm0 }
 0x4aa   : > { %19319 = vmatprep.mubr.msk.f32.mxu1 %vm26280_vm4, %v6351_v18  ;;  %vm26295_vm4 = vmmov %vm26184_vm0 }
 0x4ad   : > { %19320 = vmatmul.mubr.msk.f32.gmra.mrb[30].mxu1 %vm26281_vm9, %v6352_v16  ;;  %vm26296_vm9 = vmmov %vm26184_vm0 }
 0x4ae   : > { %19322 = vmatprep.mubr.msk.f32.mxu1 %vm26282_vm5, %v6353_v1  ;;  %vm26297_vm5 = vmmov %vm26184_vm0 }
 0x4b1   : > { %19323 = vmatmul.mubr.msk.f32.gmra.mrb[32].mxu1 %vm26283_vm7, %v6354_v2  ;;  %vm26298_vm7 = vmmov %vm26184_vm0 }
 0x4b2   : > { %19327 = vmatprep.mubr.msk.f32.mxu1 %vm26284_vm6, %v24266_v8  ;;  %vm26299_vm6 = vmmov %vm26184_vm0  ;;  %v7198_v8 = vld [vmem:[#allocation3 + $0xdb] sm:$0xff] }
 0x4b5   : > { %19328 = vmatmul.mubr.msk.f32.vlgmr.msra.gmra.mrb[34].mxu1 %vm26285_vm10, %v24272_v59  ;;  %vm26300_vm10 = vmmov %vm26184_vm0  ;;  %v7199_v59 = vld [vmem:[#allocation3 + $0xe3] sm:$0xff] }
 0x4b6   : > { %19382 = vmatpush3.msra.mxu1 %v24263_v38  ;;  %19330 = vmatprep.mubr.msk.f32.mxu1 %vm26184_vm0, %v24276_v34  ;;  %v7197_v38 = vld [vmem:[#allocation3 + $0xd3] sm:$0xff]  ;;  %v7200_v34 = vld [vmem:[#allocation3 + $0xeb] sm:$0xff] }
 0x4b7   : > { %19437 = vmatprep.subr.mxu1 %v17019_v62 }
 0x4b9   : > { %19331 = vmatmul.mubr.msk.f32.gmra.mrb[0].mxu1 %vm26286_vm8, %v24280_v6  ;;  %vm26301_vm8 = vmmov %vm26184_vm0  ;;  %v7201_v6 = vld [vmem:[#allocation3 + $0xf3] sm:$0xff] }
 0x4ba   : > { %19333 = vmatprep.mubr.msk.f32.mxu1 %vm26287_vm1, %v24284_v33  ;;  %vm26302_vm1 = vmmov %vm26184_vm0  ;;  %v7202_v33 = vld [vmem:[#allocation3 + $0xfb] sm:$0xff] }
 0x4bd   : > { %19334 = vmatmul.mubr.msk.f32.gmra.mrb[2].mxu1 %vm26288_vm14, %v24288_v20  ;;  %vm26303_vm14 = vmmov %vm26184_vm0  ;;  %v7203_v20 = vld [vmem:[#allocation3 + $0x103] sm:$0xff] }
 0x4be   : > { %19336 = vmatprep.mubr.msk.f32.mxu1 %vm26289_vm2, %v24292_v50  ;;  %vm26304_vm2 = vmmov %vm26184_vm0  ;;  %v7204_v50 = vld [vmem:[#allocation3 + $0x10b] sm:$0xff] }
 0x4c1   : > { %19337 = vmatmul.mubr.msk.f32.gmra.mrb[4].mxu1 %vm26290_vm15, %v24296_v55  ;;  %vm26305_vm15 = vmmov %vm26184_vm0  ;;  %v7205_v55 = vld [vmem:[#allocation3 + $0x113] sm:$0xff] }
 0x4c2   : > { %19339 = vmatprep.mubr.msk.f32.mxu1 %vm26291_vm11, %v24300_v30  ;;  %vm26306_vm11 = vmmov %vm26184_vm0  ;;  %v7206_v30 = vld [vmem:[#allocation3 + $0x11b] sm:$0xff] }
 0x4c5   : > { %19340 = vmatmul.mubr.msk.f32.gmra.mrb[6].mxu1 %vm26292_vm3, %v6330_v14  ;;  %vm26307_vm3 = vmmov %vm26184_vm0  ;;  %v7207_v14 = vld [vmem:[#allocation3 + $0x123] sm:$0xff] }
 0x4c6   : > { %19342 = vmatprep.mubr.msk.f32.mxu1 %vm26293_vm12, %v6331_v36  ;;  %vm26308_vm12 = vmmov %vm26184_vm0  ;;  %v7208_v36 = vld [vmem:[#allocation3 + $0x12b] sm:$0xff] }
 0x4c9   : > { %19343 = vmatmul.mubr.msk.f32.gmra.mrb[8].mxu1 %vm26294_vm13, %v6332_v61  ;;  %vm26309_vm13 = vmmov %vm26184_vm0  ;;  %v7600_v61 = vld [vmem:[#allocation3 + $0x14] sm:$0xff] }
 0x4ca   : > { %19345 = vmatprep.mubr.msk.f32.mxu1 %vm26295_vm4, %v6333_v28  ;;  %vm26310_vm4 = vmmov %vm26184_vm0  ;;  %v7601_v28 = vld [vmem:[#allocation3 + $0x1c] sm:$0xff] }
 0x4cd   : > { %19346 = vmatmul.mubr.msk.f32.gmra.mrb[10].mxu1 %vm26296_vm9, %v6334_v48  ;;  %vm26311_vm9 = vmmov %vm26184_vm0  ;;  %v24424_v48 = vld [vmem:[%s25952_s16 + $0x38] sm:$0xff] }
 0x4ce   : > { %19348 = vmatprep.mubr.msk.f32.mxu1 %vm26297_vm5, %v6335_v60  ;;  %vm26312_vm5 = vmmov %vm26184_vm0  ;;  %v24427_v60 = vld [vmem:[#allocation3 + $0x24] sm:$0xff] }
 0x4d1   : > { %19349 = vmatmul.mubr.msk.f32.gmra.mrb[12].mxu1 %vm26298_vm7, %v6336_v23  ;;  %vm26313_vm7 = vmmov %vm26184_vm0  ;;  %v24433_v23 = vld [vmem:[#allocation3 + $0x2c] sm:$0xff] }
 0x4d2   : > { %19351 = vmatprep.mubr.msk.f32.mxu1 %vm26299_vm6, %v6337_v26  ;;  %vm26314_vm6 = vmmov %vm26184_vm0  ;;  %v24437_v26 = vld [vmem:[#allocation3 + $0x34] sm:$0xff] }
 0x4d5   : > { %19352 = vmatmul.mubr.msk.f32.gmra.mrb[14].mxu1 %vm26300_vm10, %v6338_v10  ;;  %vm26315_vm10 = vmmov %vm26184_vm0  ;;  %v24441_v10 = vld [vmem:[#allocation3 + $0x3c] sm:$0xff] }
 0x4d6   : > { %19354 = vmatprep.mubr.msk.f32.mxu1 %vm26184_vm0, %v6339_v11  ;;  %v24445_v11 = vld [vmem:[#allocation3 + $0x44] sm:$0xff] }
 0x4d9   : > { %19355 = vmatmul.mubr.msk.f32.gmra.mrb[16].mxu1 %vm26301_vm8, %v6340_v13  ;;  %vm26316_vm8 = vmmov %vm26184_vm0  ;;  %v24449_v13 = vld [vmem:[#allocation3 + $0x4c] sm:$0xff] }
 0x4da   : > { %19357 = vmatprep.mubr.msk.f32.mxu1 %vm26302_vm1, %v6341_v39  ;;  %vm26317_vm1 = vmmov %vm26184_vm0  ;;  %v24453_v39 = vld [vmem:[#allocation3 + $0x54] sm:$0xff] }
 0x4dd   : > { %19358 = vmatmul.mubr.msk.f32.gmra.mrb[18].mxu1 %vm26303_vm14, %v6342_v35  ;;  %vm26318_vm14 = vmmov %vm26184_vm0  ;;  %v24457_v35 = vld [vmem:[#allocation3 + $0x5c] sm:$0xff] }
 0x4de   : > { %19360 = vmatprep.mubr.msk.f32.mxu1 %vm26304_vm2, %v6343_v17  ;;  %vm26319_vm2 = vmmov %vm26184_vm0  ;;  %v24461_v17 = vld [vmem:[#allocation3 + $0x64] sm:$0xff] }
 0x4e1   : > { %19361 = vmatmul.mubr.msk.f32.gmra.mrb[20].mxu1 %vm26305_vm15, %v6344_v45  ;;  %vm26320_vm15 = vmmov %vm26184_vm0  ;;  %v24465_v45 = vld [vmem:[#allocation3 + $0x6c] sm:$0xff] }
 0x4e2   : > { %19363 = vmatprep.mubr.msk.f32.mxu1 %vm26306_vm11, %v6345_v31  ;;  %vm26321_vm11 = vmmov %vm26184_vm0  ;;  %v24469_v31 = vld [vmem:[#allocation3 + $0x74] sm:$0xff] }
 0x4e5   : > { %19364 = vmatmul.mubr.msk.f32.gmra.mrb[22].mxu1 %vm26307_vm3, %v6346_v52  ;;  %vm26322_vm3 = vmmov %vm26184_vm0  ;;  %v24473_v52 = vld [vmem:[#allocation3 + $0x7c] sm:$0xff] }
 0x4e6   : > { %19366 = vmatprep.mubr.msk.f32.mxu1 %vm26308_vm12, %v6347_v22  ;;  %vm26323_vm12 = vmmov %vm26184_vm0  ;;  %v24477_v22 = vld [vmem:[#allocation3 + $0x84] sm:$0xff] }
 0x4e9   : > { %19367 = vmatmul.mubr.msk.f32.gmra.mrb[24].mxu1 %vm26309_vm13, %v6348_v57  ;;  %vm26324_vm13 = vmmov %vm26184_vm0  ;;  %v7615_v57 = vld [vmem:[#allocation3 + $0x8c] sm:$0xff] }
 0x4ea   : > { %19369 = vmatprep.mubr.msk.f32.mxu1 %vm26310_vm4, %v6349_v41  ;;  %vm26325_vm4 = vmmov %vm26184_vm0  ;;  %v7616_v41 = vld [vmem:[#allocation3 + $0x94] sm:$0xff] }
 0x4ed   : > { %19370 = vmatmul.mubr.msk.f32.gmra.mrb[26].mxu1 %vm26311_vm9, %v6350_v19  ;;  %vm26326_vm9 = vmmov %vm26184_vm0  ;;  %v7617_v19 = vld [vmem:[#allocation3 + $0x9c] sm:$0xff] }
 0x4ee   : > { %19372 = vmatprep.mubr.msk.f32.mxu1 %vm26312_vm5, %v6351_v18  ;;  %vm26327_vm5 = vmmov %vm26184_vm0  ;;  %v7618_v18 = vld [vmem:[#allocation3 + $0xa4] sm:$0xff] }
 0x4f1   : > { %19373 = vmatmul.mubr.msk.f32.gmra.mrb[28].mxu1 %vm26313_vm7, %v6352_v16  ;;  %vm26328_vm7 = vmmov %vm26184_vm0  ;;  %v7619_v16 = vld [vmem:[#allocation3 + $0xac] sm:$0xff] }
 0x4f2   : > { %19375 = vmatprep.mubr.msk.f32.mxu1 %vm26314_vm6, %v6353_v1  ;;  %vm26329_vm6 = vmmov %vm26184_vm0  ;;  %v7620_v1 = vld [vmem:[#allocation3 + $0xb4] sm:$0xff] }
 0x4f5   : > { %19376 = vmatmul.mubr.msk.f32.gmra.mrb[30].mxu1 %vm26315_vm10, %v6354_v2  ;;  %vm26330_vm10 = vmmov %vm26184_vm0  ;;  %v7621_v2 = vld [vmem:[#allocation3 + $0xbc] sm:$0xff] }
 0x4f6   : > { %19378 = vmatprep.mubr.msk.f32.mxu1 %vm26184_vm0, %v6780_v47  ;;  %v7623_v47 = vld [vmem:[#allocation3 + $0xcc] sm:$0xff] }
 0x4f9   : > { %19379 = vmatmul.mubr.msk.f32.gmra.mrb[32].mxu1 %vm26316_vm8, %v6781_v0  ;;  %vm26331_vm8 = vmmov %vm26184_vm0  ;;  %v7624_v0 = vld [vmem:[#allocation3 + $0xd4] sm:$0xff] }
 0x4fa   : > { %19383 = vmatprep.mubr.msk.f32.mxu1 %vm26317_vm1, %v7173_v12  ;;  %vm26332_vm1 = vmmov %vm26184_vm0  ;;  %v7625_v12 = vld [vmem:[#allocation3 + $0xdc] sm:$0xff] }
 0x4fd   : > { %19384 = vmatmul.mubr.msk.f32.vlgmr.msra.gmra.mrb[34].mxu1 %vm26318_vm14, %v7174_v54  ;;  %vm26333_vm14 = vmmov %vm26184_vm0  ;;  %v7626_v54 = vld [vmem:[#allocation3 + $0xe4] sm:$0xff] }
 0x4fe   : > { %19438 = vmatpush3.msra.mxu1 %v17019_v62  ;;  %19386 = vmatprep.mubr.msk.f32.mxu1 %vm26319_vm2, %v7175_v43  ;;  %vm26334_vm2 = vmmov %vm26184_vm0  ;;  %v7622_v62 = vld [vmem:[#allocation3 + $0xc4] sm:$0xff]  ;;  %v7628_v43 = vld [vmem:[#allocation3 + $0xf4] sm:$0xff] }
 0x4ff   : > { %19493 = vmatprep.subr.mxu1 %v24382_v32 }
 0x501   : > { %19387 = vmatmul.mubr.msk.f32.gmra.mrb[0].mxu1 %vm26320_vm15, %v7176_v46  ;;  %vm26335_vm15 = vmmov %vm26184_vm0  ;;  %v7629_v46 = vld [vmem:[#allocation3 + $0xfc] sm:$0xff] }
 0x502   : > { %19389 = vmatprep.mubr.msk.f32.mxu1 %vm26321_vm11, %v7177_v3  ;;  %vm26336_vm11 = vmmov %vm26184_vm0  ;;  %v7630_v3 = vld [vmem:[#allocation3 + $0x104] sm:$0xff] }
 0x505   : > { %19390 = vmatmul.mubr.msk.f32.gmra.mrb[2].mxu1 %vm26322_vm3, %v7178_v9  ;;  %vm26337_vm3 = vmmov %vm26184_vm0  ;;  %v7631_v9 = vld [vmem:[#allocation3 + $0x10c] sm:$0xff] }
 0x506   : > { %19392 = vmatprep.mubr.msk.f32.mxu1 %vm26323_vm12, %v7179_v5  ;;  %vm26338_vm12 = vmmov %vm26184_vm0  ;;  %v7632_v5 = vld [vmem:[#allocation3 + $0x114] sm:$0xff] }
 0x509   : > { %19393 = vmatmul.mubr.msk.f32.gmra.mrb[4].mxu1 %vm26324_vm13, %v7180_v42  ;;  %vm26339_vm13 = vmmov %vm26184_vm0  ;;  %v7633_v42 = vld [vmem:[#allocation3 + $0x11c] sm:$0xff] }
 0x50a   : > { %19395 = vmatprep.mubr.msk.f32.mxu1 %vm26325_vm4, %v7181_v56  ;;  %vm26340_vm4 = vmmov %vm26184_vm0  ;;  %v7634_v56 = vld [vmem:[#allocation3 + $0x124] sm:$0xff] }
 0x50d   : > { %19396 = vmatmul.mubr.msk.f32.gmra.mrb[6].mxu1 %vm26326_vm9, %v7182_v4  ;;  %vm26341_vm9 = vmmov %vm26184_vm0  ;;  %v7635_v4 = vld [vmem:[#allocation3 + $0x12c] sm:$0xff] }
 0x50e   : > { %19398 = vmatprep.mubr.msk.f32.mxu1 %vm26327_vm5, %v7183_v7  ;;  %vm26342_vm5 = vmmov %vm26184_vm0  ;;  %v17130_v7 = vld [vmem:[%s25952_s16 + $0x40] sm:$0xff] }
 0x511   : > { %19399 = vmatmul.mubr.msk.f32.gmra.mrb[8].mxu1 %vm26328_vm7, %v7184_v37  ;;  %vm26343_vm7 = vmmov %vm26184_vm0  ;;  %v5575_v37 = vld [vmem:[#allocation3 + $0x1] sm:$0xff] }
 0x512   : > { %19401 = vmatprep.mubr.msk.f32.mxu1 %vm26329_vm6, %v7185_v15  ;;  %vm26344_vm6 = vmmov %vm26184_vm0  ;;  %v5576_v15 = vld [vmem:[#allocation3 + $0x9] sm:$0xff] }
 0x515   : > { %19402 = vmatmul.mubr.msk.f32.gmra.mrb[10].mxu1 %vm26330_vm10, %v7186_v63  ;;  %vm26345_vm10 = vmmov %vm26184_vm0  ;;  %v8061_v63 = vld [vmem:[#allocation3 + $0x134] sm:$0xff] }
 0x516   : > { %19404 = vmatprep.mubr.msk.f32.mxu1 %vm26184_vm0, %v7187_v27  ;;  %v8062_v27 = vld [vmem:[#allocation3 + $0x13c] sm:$0xff] }
 0x519   : > { %19405 = vmatmul.mubr.msk.f32.gmra.mrb[12].mxu1 %vm26331_vm8, %v7188_v44  ;;  %vm26346_vm8 = vmmov %vm26184_vm0  ;;  %v8454_v44 = vld [vmem:[#allocation3 + $0x25] sm:$0xff] }
 0x51a   : > { %19407 = vmatprep.mubr.msk.f32.mxu1 %vm26332_vm1, %v7189_v40  ;;  %vm26347_vm1 = vmmov %vm26184_vm0  ;;  %v8455_v40 = vld [vmem:[#allocation3 + $0x2d] sm:$0xff] }
 0x51d   : > { %19408 = vmatmul.mubr.msk.f32.gmra.mrb[14].mxu1 %vm26333_vm14, %v7190_v25  ;;  %vm26348_vm14 = vmmov %vm26184_vm0  ;;  %v8456_v25 = vld [vmem:[#allocation3 + $0x35] sm:$0xff] }
 0x51e   : > { %19410 = vmatprep.mubr.msk.f32.mxu1 %vm26334_vm2, %v7191_v51  ;;  %vm26349_vm2 = vmmov %vm26184_vm0  ;;  %v8457_v51 = vld [vmem:[#allocation3 + $0x3d] sm:$0xff] }
 0x521   : > { %19411 = vmatmul.mubr.msk.f32.gmra.mrb[16].mxu1 %vm26335_vm15, %v7192_v29  ;;  %vm26350_vm15 = vmmov %vm26184_vm0  ;;  %v8458_v29 = vld [vmem:[#allocation3 + $0x45] sm:$0xff] }
 0x522   : > { %19413 = vmatprep.mubr.msk.f32.mxu1 %vm26336_vm11, %v7193_v58  ;;  %vm26351_vm11 = vmmov %vm26184_vm0  ;;  %v8459_v58 = vld [vmem:[#allocation3 + $0x4d] sm:$0xff] }
 0x525   : > { %19414 = vmatmul.mubr.msk.f32.gmra.mrb[18].mxu1 %vm26337_vm3, %v7194_v53  ;;  %vm26352_vm3 = vmmov %vm26184_vm0  ;;  %v8460_v53 = vld [vmem:[#allocation3 + $0x55] sm:$0xff] }
 0x526   : > { %19416 = vmatprep.mubr.msk.f32.mxu1 %vm26338_vm12, %v7195_v24  ;;  %vm26353_vm12 = vmmov %vm26184_vm0  ;;  %v8461_v24 = vld [vmem:[#allocation3 + $0x5d] sm:$0xff] }
 0x529   : > { %19417 = vmatmul.mubr.msk.f32.gmra.mrb[20].mxu1 %vm26339_vm13, %v7196_v21  ;;  %vm26354_vm13 = vmmov %vm26184_vm0  ;;  %v8462_v21 = vld [vmem:[#allocation3 + $0x65] sm:$0xff] }
 0x52a   : > { %19419 = vmatprep.mubr.msk.f32.mxu1 %vm26340_vm4, %v7197_v38  ;;  %vm26355_vm4 = vmmov %vm26184_vm0  ;;  %v8463_v38 = vld [vmem:[#allocation3 + $0x6d] sm:$0xff] }
 0x52d   : > { %19420 = vmatmul.mubr.msk.f32.gmra.mrb[22].mxu1 %vm26341_vm9, %v7198_v8  ;;  %vm26356_vm9 = vmmov %vm26184_vm0  ;;  %v8464_v8 = vld [vmem:[#allocation3 + $0x75] sm:$0xff] }
 0x52e   : > { %19422 = vmatprep.mubr.msk.f32.mxu1 %vm26342_vm5, %v7199_v59  ;;  %vm26357_vm5 = vmmov %vm26184_vm0  ;;  %v8465_v59 = vld [vmem:[#allocation3 + $0x7d] sm:$0xff] }
 0x531   : > { %19423 = vmatmul.mubr.msk.f32.gmra.mrb[24].mxu1 %vm26343_vm7, %v7200_v34  ;;  %vm26358_vm7 = vmmov %vm26184_vm0  ;;  %v8466_v34 = vld [vmem:[#allocation3 + $0x85] sm:$0xff] }
 0x532   : > { %19425 = vmatprep.mubr.msk.f32.mxu1 %vm26344_vm6, %v7201_v6  ;;  %vm26359_vm6 = vmmov %vm26184_vm0  ;;  %v8467_v6 = vld [vmem:[#allocation3 + $0x8d] sm:$0xff] }
 0x535   : > { %19426 = vmatmul.mubr.msk.f32.gmra.mrb[26].mxu1 %vm26345_vm10, %v7202_v33  ;;  %vm26360_vm10 = vmmov %vm26184_vm0  ;;  %v8468_v33 = vld [vmem:[#allocation3 + $0x95] sm:$0xff] }
 0x536   : > { %19428 = vmatprep.mubr.msk.f32.mxu1 %vm26184_vm0, %v7203_v20  ;;  %v8469_v20 = vld [vmem:[#allocation3 + $0x9d] sm:$0xff] }
 0x539   : > { %19429 = vmatmul.mubr.msk.f32.gmra.mrb[28].mxu1 %vm26346_vm8, %v7204_v50  ;;  %vm26361_vm8 = vmmov %vm26184_vm0  ;;  %v8470_v50 = vld [vmem:[#allocation3 + $0xa5] sm:$0xff] }
 0x53a   : > { %19431 = vmatprep.mubr.msk.f32.mxu1 %vm26347_vm1, %v7205_v55  ;;  %vm26362_vm1 = vmmov %vm26184_vm0  ;;  %v8471_v55 = vld [vmem:[#allocation3 + $0xad] sm:$0xff] }
 0x53d   : > { %19432 = vmatmul.mubr.msk.f32.gmra.mrb[30].mxu1 %vm26348_vm14, %v7206_v30  ;;  %vm26363_vm14 = vmmov %vm26184_vm0  ;;  %v8472_v30 = vld [vmem:[#allocation3 + $0xb5] sm:$0xff] }
 0x53e   : > { %19434 = vmatprep.mubr.msk.f32.mxu1 %vm26349_vm2, %v7207_v14  ;;  %vm26364_vm2 = vmmov %vm26184_vm0  ;;  %v8473_v14 = vld [vmem:[#allocation3 + $0xbd] sm:$0xff] }
 0x541   : > { %19435 = vmatmul.mubr.msk.f32.gmra.mrb[32].mxu1 %vm26350_vm15, %v7208_v36  ;;  %vm26365_vm15 = vmmov %vm26184_vm0  ;;  %v8474_v36 = vld [vmem:[#allocation3 + $0xc5] sm:$0xff] }
 0x542   : > { %19439 = vmatprep.mubr.msk.f32.mxu1 %vm26351_vm11, %v7600_v61  ;;  %vm26366_vm11 = vmmov %vm26184_vm0  ;;  %v8475_v61 = vld [vmem:[#allocation3 + $0xcd] sm:$0xff] }
 0x545   : > { %19440 = vmatmul.mubr.msk.f32.vlgmr.msra.gmra.mrb[34].mxu1 %vm26352_vm3, %v7601_v28  ;;  %vm26367_vm3 = vmmov %vm26184_vm0  ;;  %v8476_v28 = vld [vmem:[#allocation3 + $0xd5] sm:$0xff] }
 0x546   : > { %19494 = vmatpush3.msra.mxu1 %v24382_v32  ;;  %19442 = vmatprep.mubr.msk.f32.mxu1 %vm26353_vm12, %v24427_v60  ;;  %vm26368_vm12 = vmmov %vm26184_vm0  ;;  %v7627_v32 = vld [vmem:[#allocation3 + $0xec] sm:$0xff] }
 0x547   : > { %19549 = vmatprep.subr.mxu1 %v24424_v48 }
 0x549   : > { %19443 = vmatmul.mubr.msk.f32.gmra.mrb[0].mxu1 %vm26354_vm13, %v24433_v23  ;;  %vm26369_vm13 = vmmov %vm26184_vm0 }
 0x54a   : > { %19445 = vmatprep.mubr.msk.f32.mxu1 %vm26355_vm4, %v24437_v26  ;;  %vm26370_vm4 = vmmov %vm26184_vm0 }
 0x54d   : > { %19446 = vmatmul.mubr.msk.f32.gmra.mrb[2].mxu1 %vm26356_vm9, %v24441_v10  ;;  %vm26371_vm9 = vmmov %vm26184_vm0 }
 0x54e   : > { %19448 = vmatprep.mubr.msk.f32.mxu1 %vm26357_vm5, %v24445_v11  ;;  %vm26372_vm5 = vmmov %vm26184_vm0 }
 0x551   : > { %19449 = vmatmul.mubr.msk.f32.gmra.mrb[4].mxu1 %vm26358_vm7, %v24449_v13  ;;  %vm26373_vm7 = vmmov %vm26184_vm0 }
 0x552   : > { %19451 = vmatprep.mubr.msk.f32.mxu1 %vm26359_vm6, %v24453_v39  ;;  %vm26374_vm6 = vmmov %vm26184_vm0 }
 0x555   : > { %19452 = vmatmul.mubr.msk.f32.gmra.mrb[6].mxu1 %vm26360_vm10, %v24457_v35  ;;  %vm26375_vm10 = vmmov %vm26184_vm0 }
 0x556   : > { %19454 = vmatprep.mubr.msk.f32.mxu1 %vm26184_vm0, %v24461_v17 }
 0x559   : > { %19455 = vmatmul.mubr.msk.f32.gmra.mrb[8].mxu1 %vm26361_vm8, %v24465_v45  ;;  %vm26376_vm8 = vmmov %vm26184_vm0 }
 0x55a   : > { %19457 = vmatprep.mubr.msk.f32.mxu1 %vm26362_vm1, %v24469_v31  ;;  %vm26377_vm1 = vmmov %vm26184_vm0 }
 0x55d   : > { %19458 = vmatmul.mubr.msk.f32.gmra.mrb[10].mxu1 %vm26363_vm14, %v24473_v52  ;;  %vm26378_vm14 = vmmov %vm26184_vm0 }
 0x55e   : > { %19460 = vmatprep.mubr.msk.f32.mxu1 %vm26364_vm2, %v24477_v22  ;;  %vm26379_vm2 = vmmov %vm26184_vm0 }
 0x561   : > { %19461 = vmatmul.mubr.msk.f32.gmra.mrb[12].mxu1 %vm26365_vm15, %v7615_v57  ;;  %vm26380_vm15 = vmmov %vm26184_vm0 }
 0x562   : > { %19463 = vmatprep.mubr.msk.f32.mxu1 %vm26366_vm11, %v7616_v41  ;;  %vm26381_vm11 = vmmov %vm26184_vm0 }
 0x565   : > { %19464 = vmatmul.mubr.msk.f32.gmra.mrb[14].mxu1 %vm26367_vm3, %v7617_v19  ;;  %vm26382_vm3 = vmmov %vm26184_vm0 }
 0x566   : > { %19466 = vmatprep.mubr.msk.f32.mxu1 %vm26368_vm12, %v7618_v18  ;;  %vm26383_vm12 = vmmov %vm26184_vm0 }
 0x569   : > { %19467 = vmatmul.mubr.msk.f32.gmra.mrb[16].mxu1 %vm26369_vm13, %v7619_v16  ;;  %vm26384_vm13 = vmmov %vm26184_vm0 }
 0x56a   : > { %19469 = vmatprep.mubr.msk.f32.mxu1 %vm26370_vm4, %v7620_v1  ;;  %vm26385_vm4 = vmmov %vm26184_vm0 }
 0x56d   : > { %19470 = vmatmul.mubr.msk.f32.gmra.mrb[18].mxu1 %vm26371_vm9, %v7621_v2  ;;  %vm26386_vm9 = vmmov %vm26184_vm0 }
 0x56e   : > { %19472 = vmatprep.mubr.msk.f32.mxu1 %vm26372_vm5, %v7622_v62  ;;  %vm26387_vm5 = vmmov %vm26184_vm0 }
 0x571   : > { %19473 = vmatmul.mubr.msk.f32.gmra.mrb[20].mxu1 %vm26373_vm7, %v7623_v47  ;;  %vm26388_vm7 = vmmov %vm26184_vm0 }
 0x572   : > { %19475 = vmatprep.mubr.msk.f32.mxu1 %vm26374_vm6, %v7624_v0  ;;  %vm26389_vm6 = vmmov %vm26184_vm0 }
 0x575   : > { %19476 = vmatmul.mubr.msk.f32.gmra.mrb[22].mxu1 %vm26375_vm10, %v7625_v12  ;;  %vm26390_vm10 = vmmov %vm26184_vm0 }
 0x576   : > { %19478 = vmatprep.mubr.msk.f32.mxu1 %vm26184_vm0, %v7626_v54 }
 0x579   : > { %19479 = vmatmul.mubr.msk.f32.gmra.mrb[24].mxu1 %vm26376_vm8, %v7627_v32  ;;  %vm26391_vm8 = vmmov %vm26184_vm0 }
 0x57a   : > { %19481 = vmatprep.mubr.msk.f32.mxu1 %vm26377_vm1, %v7628_v43  ;;  %vm26392_vm1 = vmmov %vm26184_vm0 }
 0x57d   : > { %19482 = vmatmul.mubr.msk.f32.gmra.mrb[26].mxu1 %vm26378_vm14, %v7629_v46  ;;  %vm26393_vm14 = vmmov %vm26184_vm0 }
 0x57e   : > { %19484 = vmatprep.mubr.msk.f32.mxu1 %vm26379_vm2, %v7630_v3  ;;  %19159 = vmatprep.mubr.msk.f32.mxu0 %vm26393_vm14, %v5575_v37  ;;  %vm26394_vm2 = vmmov %vm26184_vm0  ;;  %v8904_v37 = vld [vmem:[#allocation3 + $0xde] sm:$0xff] }
 0x57f   : > { %19160 = vmatmul.mubr.msk.f32.vlgmr.msra.gmra.mrb[36].mxu0 %vm26394_vm2, %v5576_v15  ;;  %vm26408_vm14 = vmmov %vm26184_vm0  ;;  %v8905_v15 = vld [vmem:[#allocation3 + $0xe6] sm:$0xff] }
 0x580   : > { %vm26409_vm2 = vmmov %vm26184_vm0 }
 0x581   : > { %19485 = vmatmul.mubr.msk.f32.gmra.mrb[28].mxu1 %vm26380_vm15, %v7631_v9  ;;  %vm26395_vm15 = vmmov %vm26184_vm0 }
 0x582   : > { %19487 = vmatprep.mubr.msk.f32.mxu1 %vm26381_vm11, %v7632_v5  ;;  %vm26396_vm11 = vmmov %vm26184_vm0 }
 0x585   : > { %19488 = vmatmul.mubr.msk.f32.gmra.mrb[30].mxu1 %vm26382_vm3, %v7633_v42  ;;  %vm26397_vm3 = vmmov %vm26184_vm0 }
 0x586   : > { %19490 = vmatprep.mubr.msk.f32.mxu1 %vm26383_vm12, %v7634_v56  ;;  %vm26398_vm12 = vmmov %vm26184_vm0 }
 0x589   : > { %19491 = vmatmul.mubr.msk.f32.gmra.mrb[32].mxu1 %vm26384_vm13, %v7635_v4  ;;  %vm26399_vm13 = vmmov %vm26184_vm0 }
 0x58a   : > { %19495 = vmatprep.mubr.msk.f32.mxu1 %vm26385_vm4, %v24427_v60  ;;  %vm26400_vm4 = vmmov %vm26184_vm0  ;;  %v8478_v60 = vld [vmem:[#allocation3 + $0xe5] sm:$0xff] }
 0x58d   : > { %19496 = vmatmul.mubr.msk.f32.vlgmr.msra.gmra.mrb[34].mxu1 %vm26386_vm9, %v24433_v23  ;;  %vm26401_vm9 = vmmov %vm26184_vm0  ;;  %v8479_v23 = vld [vmem:[#allocation3 + $0xed] sm:$0xff] }
 0x58e   : > { %19550 = vmatpush3.msra.mxu1 %v24424_v48  ;;  %19498 = vmatprep.mubr.msk.f32.mxu1 %vm26387_vm5, %v24437_v26  ;;  %vm26402_vm5 = vmmov %vm26184_vm0  ;;  %v8477_v48 = vld [vmem:[#allocation3 + $0xdd] sm:$0xff]  ;;  %v8480_v26 = vld [vmem:[#allocation3 + $0xf5] sm:$0xff] }
 0x58f   : > { %19605 = vmatprep.subr.mxu1 %v17130_v7 }
 0x591   : > { %19499 = vmatmul.mubr.msk.f32.gmra.mrb[0].mxu1 %vm26388_vm7, %v24441_v10  ;;  %vm26403_vm7 = vmmov %vm26184_vm0  ;;  %v8481_v10 = vld [vmem:[#allocation3 + $0xfd] sm:$0xff] }
 0x592   : > { %19501 = vmatprep.mubr.msk.f32.mxu1 %vm26389_vm6, %v24445_v11  ;;  %vm26404_vm6 = vmmov %vm26184_vm0  ;;  %v8482_v11 = vld [vmem:[#allocation3 + $0x105] sm:$0xff] }
 0x595   : > { %19502 = vmatmul.mubr.msk.f32.gmra.mrb[2].mxu1 %vm26390_vm10, %v24449_v13  ;;  %vm26405_vm10 = vmmov %vm26184_vm0  ;;  %v8483_v13 = vld [vmem:[#allocation3 + $0x10d] sm:$0xff] }
 0x596   : > { %19504 = vmatprep.mubr.msk.f32.mxu1 %vm26184_vm0, %v24453_v39  ;;  %v8484_v39 = vld [vmem:[#allocation3 + $0x115] sm:$0xff] }
 0x599   : > { %19505 = vmatmul.mubr.msk.f32.gmra.mrb[4].mxu1 %vm26391_vm8, %v24457_v35  ;;  %vm26406_vm8 = vmmov %vm26184_vm0  ;;  %v8485_v35 = vld [vmem:[#allocation3 + $0x11d] sm:$0xff] }
 0x59a   : > { %19507 = vmatprep.mubr.msk.f32.mxu1 %vm26392_vm1, %v24461_v17  ;;  %vm26407_vm1 = vmmov %vm26184_vm0  ;;  %v8486_v17 = vld [vmem:[#allocation3 + $0x125] sm:$0xff] }
 0x59d   : > { %19508 = vmatmul.mubr.msk.f32.gmra.mrb[6].mxu1 %vm26395_vm15, %v24465_v45  ;;  %vm26410_vm15 = vmmov %vm26184_vm0  ;;  %v8488_v45 = vld [vmem:[#allocation3 + $0x135] sm:$0xff] }
 0x59e   : > { %19510 = vmatprep.mubr.msk.f32.mxu1 %vm26396_vm11, %v24469_v31  ;;  %vm26411_vm11 = vmmov %vm26184_vm0  ;;  %v8487_v31 = vld [vmem:[#allocation3 + $0x12d] sm:$0xff] }
 0x5a1   : > { %19511 = vmatmul.mubr.msk.f32.gmra.mrb[8].mxu1 %vm26397_vm3, %v24473_v52  ;;  %vm26412_vm3 = vmmov %vm26184_vm0  ;;  %v8489_v52 = vld [vmem:[#allocation3 + $0x13d] sm:$0xff] }
 0x5a2   : > { %19513 = vmatprep.mubr.msk.f32.mxu1 %vm26398_vm12, %v24477_v22  ;;  %vm26413_vm12 = vmmov %vm26184_vm0  ;;  %v8881_v22 = vld [vmem:[#allocation3 + $0x26] sm:$0xff] }
 0x5a5   : > { %19514 = vmatmul.mubr.msk.f32.gmra.mrb[10].mxu1 %vm26399_vm13, %v7615_v57  ;;  %vm26414_vm13 = vmmov %vm26184_vm0  ;;  %v8882_v57 = vld [vmem:[#allocation3 + $0x2e] sm:$0xff] }
 0x5a6   : > { %19516 = vmatprep.mubr.msk.f32.mxu1 %vm26400_vm4, %v7616_v41  ;;  %vm26415_vm4 = vmmov %vm26184_vm0  ;;  %v8883_v41 = vld [vmem:[#allocation3 + $0x36] sm:$0xff] }
 0x5a9   : > { %19517 = vmatmul.mubr.msk.f32.gmra.mrb[12].mxu1 %vm26401_vm9, %v7617_v19  ;;  %vm26416_vm9 = vmmov %vm26184_vm0  ;;  %v8884_v19 = vld [vmem:[#allocation3 + $0x3e] sm:$0xff] }
 0x5aa   : > { %19519 = vmatprep.mubr.msk.f32.mxu1 %vm26402_vm5, %v7618_v18  ;;  %vm26417_vm5 = vmmov %vm26184_vm0  ;;  %v8885_v18 = vld [vmem:[#allocation3 + $0x46] sm:$0xff] }
 0x5ad   : > { %19520 = vmatmul.mubr.msk.f32.gmra.mrb[14].mxu1 %vm26403_vm7, %v7619_v16  ;;  %vm26418_vm7 = vmmov %vm26184_vm0  ;;  %v8886_v16 = vld [vmem:[#allocation3 + $0x4e] sm:$0xff] }
 0x5ae   : > { %19522 = vmatprep.mubr.msk.f32.mxu1 %vm26404_vm6, %v7620_v1  ;;  %vm26419_vm6 = vmmov %vm26184_vm0  ;;  %v8887_v1 = vld [vmem:[#allocation3 + $0x56] sm:$0xff] }
 0x5b1   : > { %19523 = vmatmul.mubr.msk.f32.gmra.mrb[16].mxu1 %vm26405_vm10, %v7621_v2  ;;  %vm26420_vm10 = vmmov %vm26184_vm0  ;;  %v8888_v2 = vld [vmem:[#allocation3 + $0x5e] sm:$0xff] }
 0x5b2   : > { %19525 = vmatprep.mubr.msk.f32.mxu1 %vm26184_vm0, %v7622_v62  ;;  %v8889_v62 = vld [vmem:[#allocation3 + $0x66] sm:$0xff] }
 0x5b5   : > { %19526 = vmatmul.mubr.msk.f32.gmra.mrb[18].mxu1 %vm26406_vm8, %v7623_v47  ;;  %vm26421_vm8 = vmmov %vm26184_vm0  ;;  %v8890_v47 = vld [vmem:[#allocation3 + $0x6e] sm:$0xff] }
 0x5b6   : > { %19528 = vmatprep.mubr.msk.f32.mxu1 %vm26407_vm1, %v7624_v0  ;;  %vm26422_vm1 = vmmov %vm26184_vm0  ;;  %v8891_v0 = vld [vmem:[#allocation3 + $0x76] sm:$0xff] }
 0x5b9   : > { %19529 = vmatmul.mubr.msk.f32.gmra.mrb[20].mxu1 %vm26408_vm14, %v7625_v12  ;;  %vm26423_vm14 = vmmov %vm26184_vm0  ;;  %v8892_v12 = vld [vmem:[#allocation3 + $0x7e] sm:$0xff] }
 0x5ba   : > { %19531 = vmatprep.mubr.msk.f32.mxu1 %vm26409_vm2, %v7626_v54  ;;  %vm26424_vm2 = vmmov %vm26184_vm0  ;;  %v8893_v54 = vld [vmem:[#allocation3 + $0x86] sm:$0xff] }
 0x5bd   : > { %19532 = vmatmul.mubr.msk.f32.gmra.mrb[22].mxu1 %vm26410_vm15, %v7627_v32  ;;  %vm26425_vm15 = vmmov %vm26184_vm0  ;;  %v8894_v32 = vld [vmem:[#allocation3 + $0x8e] sm:$0xff] }
 0x5be   : > { %19534 = vmatprep.mubr.msk.f32.mxu1 %vm26411_vm11, %v7628_v43  ;;  %vm26426_vm11 = vmmov %vm26184_vm0  ;;  %v8895_v43 = vld [vmem:[#allocation3 + $0x96] sm:$0xff] }
 0x5c1   : > { %19535 = vmatmul.mubr.msk.f32.gmra.mrb[24].mxu1 %vm26412_vm3, %v7629_v46  ;;  %vm26427_vm3 = vmmov %vm26184_vm0  ;;  %v8896_v46 = vld [vmem:[#allocation3 + $0x9e] sm:$0xff] }
 0x5c2   : > { %19537 = vmatprep.mubr.msk.f32.mxu1 %vm26413_vm12, %v7630_v3  ;;  %vm26428_vm12 = vmmov %vm26184_vm0  ;;  %v8897_v3 = vld [vmem:[#allocation3 + $0xa6] sm:$0xff] }
 0x5c5   : > { %19538 = vmatmul.mubr.msk.f32.gmra.mrb[26].mxu1 %vm26414_vm13, %v7631_v9  ;;  %vm26429_vm13 = vmmov %vm26184_vm0  ;;  %v8898_v9 = vld [vmem:[#allocation3 + $0xae] sm:$0xff] }
 0x5c6   : > { %19540 = vmatprep.mubr.msk.f32.mxu1 %vm26415_vm4, %v7632_v5  ;;  %vm26430_vm4 = vmmov %vm26184_vm0  ;;  %v8899_v5 = vld [vmem:[#allocation3 + $0xb6] sm:$0xff] }
 0x5c9   : > { %19541 = vmatmul.mubr.msk.f32.gmra.mrb[28].mxu1 %vm26416_vm9, %v7633_v42  ;;  %vm26431_vm9 = vmmov %vm26184_vm0  ;;  %v8900_v42 = vld [vmem:[#allocation3 + $0xbe] sm:$0xff] }
 0x5ca   : > { %19543 = vmatprep.mubr.msk.f32.mxu1 %vm26417_vm5, %v7634_v56  ;;  %vm26432_vm5 = vmmov %vm26184_vm0  ;;  %v8901_v56 = vld [vmem:[#allocation3 + $0xc6] sm:$0xff] }
 0x5cd   : > { %19544 = vmatmul.mubr.msk.f32.gmra.mrb[30].mxu1 %vm26418_vm7, %v7635_v4  ;;  %vm26433_vm7 = vmmov %vm26184_vm0  ;;  %v8902_v4 = vld [vmem:[#allocation3 + $0xce] sm:$0xff] }
 0x5ce   : > { %19546 = vmatprep.mubr.msk.f32.mxu1 %vm26419_vm6, %v8061_v63  ;;  %vm26434_vm6 = vmmov %vm26184_vm0  ;;  %v8906_v63 = vld [vmem:[#allocation3 + $0xee] sm:$0xff] }
 0x5d1   : > { %19547 = vmatmul.mubr.msk.f32.gmra.mrb[32].mxu1 %vm26420_vm10, %v8062_v27  ;;  %vm26435_vm10 = vmmov %vm26184_vm0  ;;  %v8907_v27 = vld [vmem:[#allocation3 + $0xf6] sm:$0xff] }
 0x5d2   : > { %19551 = vmatprep.mubr.msk.f32.mxu1 %vm26184_vm0, %v8454_v44  ;;  %v8908_v44 = vld [vmem:[#allocation3 + $0xfe] sm:$0xff] }
 0x5d5   : > { %19552 = vmatmul.mubr.msk.f32.vlgmr.msra.gmra.mrb[34].mxu1 %vm26421_vm8, %v8455_v40  ;;  %vm26436_vm8 = vmmov %vm26184_vm0  ;;  %v8909_v40 = vld [vmem:[#allocation3 + $0x106] sm:$0xff] }
 0x5d6   : > { %19606 = vmatpush3.msra.mxu1 %v17130_v7  ;;  %19554 = vmatprep.mubr.msk.f32.mxu1 %vm26422_vm1, %v8456_v25  ;;  %vm26437_vm1 = vmmov %vm26184_vm0  ;;  %v8903_v7 = vld [vmem:[#allocation3 + $0xd6] sm:$0xff]  ;;  %v8910_v25 = vld [vmem:[#allocation3 + $0x10e] sm:$0xff] }
 0x5d9   : > { %19555 = vmatmul.mubr.msk.f32.gmra.mrb[0].mxu1 %vm26423_vm14, %v8457_v51  ;;  %vm26438_vm14 = vmmov %vm26184_vm0  ;;  %v8911_v51 = vld [vmem:[#allocation3 + $0x116] sm:$0xff] }
 0x5da   : > { %19557 = vmatprep.mubr.msk.f32.mxu1 %vm26424_vm2, %v8458_v29  ;;  %vm26439_vm2 = vmmov %vm26184_vm0  ;;  %v8912_v29 = vld [vmem:[#allocation3 + $0x11e] sm:$0xff] }
 0x5dd   : > { %19558 = vmatmul.mubr.msk.f32.gmra.mrb[2].mxu1 %vm26425_vm15, %v8459_v58  ;;  %vm26440_vm15 = vmmov %vm26184_vm0  ;;  %v8913_v58 = vld [vmem:[#allocation3 + $0x126] sm:$0xff] }
 0x5de   : > { %19560 = vmatprep.mubr.msk.f32.mxu1 %vm26426_vm11, %v8460_v53  ;;  %vm26441_vm11 = vmmov %vm26184_vm0  ;;  %v8915_v53 = vld [vmem:[#allocation3 + $0x136] sm:$0xff] }
 0x5e1   : > { %19561 = vmatmul.mubr.msk.f32.gmra.mrb[4].mxu1 %vm26427_vm3, %v8461_v24  ;;  %vm26442_vm3 = vmmov %vm26184_vm0  ;;  %v8914_v24 = vld [vmem:[#allocation3 + $0x12e] sm:$0xff] }
 0x5e2   : > { %19563 = vmatprep.mubr.msk.f32.mxu1 %vm26428_vm12, %v8462_v21  ;;  %vm26443_vm12 = vmmov %vm26184_vm0  ;;  %v8916_v21 = vld [vmem:[#allocation3 + $0x13e] sm:$0xff] }
 0x5e5   : > { %19564 = vmatmul.mubr.msk.f32.gmra.mrb[6].mxu1 %vm26429_vm13, %v8463_v38  ;;  %vm26444_vm13 = vmmov %vm26184_vm0 }
 0x5e6   : > { %19566 = vmatprep.mubr.msk.f32.mxu1 %vm26430_vm4, %v8464_v8  ;;  %vm26445_vm4 = vmmov %vm26184_vm0 }
 0x5e9   : > { %19567 = vmatmul.mubr.msk.f32.gmra.mrb[8].mxu1 %vm26431_vm9, %v8465_v59  ;;  %vm26446_vm9 = vmmov %vm26184_vm0  ;;  %v9730_v59 = vld [vmem:[#allocation10 + $0x8] sm:$0xff] }
 0x5ea   : > { %19569 = vmatprep.mubr.msk.f32.mxu1 %vm26432_vm5, %v8466_v34  ;;  %vm26447_vm5 = vmmov %vm26184_vm0  ;;  %19661 = vmatprep.subr.mxu0 %v9730_v59  ;;  %v9719_v34 = vld [vmem:[#allocation4 + $0x1] sm:$0xff] }
 0x5eb   : > { %19662 = vmatpush3.msra.mxu0 %v9730_v59 }
 0x5ed   : > { %19570 = vmatmul.mubr.msk.f32.gmra.mrb[10].mxu1 %vm26433_vm7, %v8467_v6  ;;  %vm26448_vm7 = vmmov %vm26184_vm0  ;;  %v24630_v6 = vld [vmem:[#allocation10] sm:$0xff] }
 0x5ee   : > { %19572 = vmatprep.mubr.msk.f32.mxu1 %vm26434_vm6, %v8468_v33  ;;  %vm26449_vm6 = vmmov %vm26184_vm0  ;;  %19678 = vmatprep.subr.mxu0 %v24630_v6 }
 0x5f1   : > { %19573 = vmatmul.mubr.msk.f32.gmra.mrb[12].mxu1 %vm26435_vm10, %v8469_v20  ;;  %vm26450_vm10 = vmmov %vm26184_vm0  ;;  %v24637_v20 = vld [vmem:[%s26489_s30] ss:$0 sm:$0xff] }
 0x5f2   : > { %19575 = vmatprep.mubr.msk.f32.mxu1 %vm26184_vm0, %v8470_v50 }
 0x5f5   : > { %19576 = vmatmul.mubr.msk.f32.gmra.mrb[14].mxu1 %vm26436_vm8, %v8471_v55  ;;  %vm26451_vm8 = vmmov %vm26184_vm0 }
 0x5f6   : > { %19578 = vmatprep.mubr.msk.f32.mxu1 %vm26437_vm1, %v8472_v30  ;;  %vm26452_vm1 = vmmov %vm26184_vm0 }
 0x5f9   : > { %19579 = vmatmul.mubr.msk.f32.gmra.mrb[16].mxu1 %vm26438_vm14, %v8473_v14  ;;  %vm26453_vm14 = vmmov %vm26184_vm0 }
 0x5fa   : > { %19581 = vmatprep.mubr.msk.f32.mxu1 %vm26439_vm2, %v8474_v36  ;;  %vm26454_vm2 = vmmov %vm26184_vm0 }
 0x5fd   : > { %19582 = vmatmul.mubr.msk.f32.gmra.mrb[18].mxu1 %vm26440_vm15, %v8475_v61  ;;  %vm26455_vm15 = vmmov %vm26184_vm0 }
 0x5fe   : > { %19584 = vmatprep.mubr.msk.f32.mxu1 %vm26441_vm11, %v8476_v28  ;;  %vm26456_vm11 = vmmov %vm26184_vm0 }
 0x601   : > { %19585 = vmatmul.mubr.msk.f32.gmra.mrb[20].mxu1 %vm26442_vm3, %v8477_v48  ;;  %vm26457_vm3 = vmmov %vm26184_vm0 }
 0x602   : > { %19587 = vmatprep.mubr.msk.f32.mxu1 %vm26443_vm12, %v8478_v60  ;;  %vm26458_vm12 = vmmov %vm26184_vm0 }
 0x605   : > { %19588 = vmatmul.mubr.msk.f32.gmra.mrb[22].mxu1 %vm26444_vm13, %v8479_v23  ;;  %vm26459_vm13 = vmmov %vm26184_vm0 }
 0x606   : > { %19590 = vmatprep.mubr.msk.f32.mxu1 %vm26445_vm4, %v8480_v26  ;;  %vm26460_vm4 = vmmov %vm26184_vm0 }
 0x609   : > { %19591 = vmatmul.mubr.msk.f32.gmra.mrb[24].mxu1 %vm26446_vm9, %v8481_v10  ;;  %vm26461_vm9 = vmmov %vm26184_vm0 }
 0x60a   : > { %19593 = vmatprep.mubr.msk.f32.mxu1 %vm26447_vm5, %v8482_v11  ;;  %vm26462_vm5 = vmmov %vm26184_vm0 }
 0x60d   : > { %19594 = vmatmul.mubr.msk.f32.gmra.mrb[26].mxu1 %vm26448_vm7, %v8483_v13  ;;  %vm26463_vm7 = vmmov %vm26184_vm0 }
 0x60e   : > { %19596 = vmatprep.mubr.msk.f32.mxu1 %vm26449_vm6, %v8484_v39  ;;  %vm26464_vm6 = vmmov %vm26184_vm0 }
 0x611   : > { %19597 = vmatmul.mubr.msk.f32.gmra.mrb[28].mxu1 %vm26450_vm10, %v8485_v35  ;;  %vm26465_vm10 = vmmov %vm26184_vm0 }
 0x612   : > { %19599 = vmatprep.mubr.msk.f32.mxu1 %vm26184_vm0, %v8486_v17 }
 0x615   : > { %19600 = vmatmul.mubr.msk.f32.gmra.mrb[30].mxu1 %vm26451_vm8, %v8487_v31  ;;  %vm26466_vm8 = vmmov %vm26184_vm0 }
 0x616   : > { %19602 = vmatprep.mubr.msk.f32.mxu1 %vm26452_vm1, %v8488_v45  ;;  %vm26467_vm1 = vmmov %vm26184_vm0 }
 0x619   : > { %19603 = vmatmul.mubr.msk.f32.gmra.mrb[32].mxu1 %vm26453_vm14, %v8489_v52  ;;  %vm26468_vm14 = vmmov %vm26184_vm0 }
 0x61a   : > { %19607 = vmatprep.mubr.msk.f32.mxu1 %vm26454_vm2, %v8881_v22  ;;  %vm26469_vm2 = vmmov %vm26184_vm0 }
 0x61d   : > { %19608 = vmatmul.mubr.msk.f32.vlgmr.msra.gmra.mrb[34].mxu1 %vm26455_vm15, %v8882_v57  ;;  %vm26470_vm15 = vmmov %vm26184_vm0 }
 0x61e   : > { %19610 = vmatprep.mubr.msk.f32.mxu1 %vm26456_vm11, %v8883_v41  ;;  %vm26471_vm11 = vmmov %vm26184_vm0 }
 0x621   : > { %19611 = vmatmul.mubr.msk.f32.gmra.mrb[0].mxu1 %vm26457_vm3, %v8884_v19  ;;  %vm26472_vm3 = vmmov %vm26184_vm0 }
 0x622   : > { %19613 = vmatprep.mubr.msk.f32.mxu1 %vm26458_vm12, %v8885_v18  ;;  %vm26473_vm12 = vmmov %vm26184_vm0 }
 0x625   : > { %19614 = vmatmul.mubr.msk.f32.gmra.mrb[2].mxu1 %vm26459_vm13, %v8886_v16  ;;  %vm26474_vm13 = vmmov %vm26184_vm0 }
 0x626   : > { %19616 = vmatprep.mubr.msk.f32.mxu1 %vm26460_vm4, %v8887_v1  ;;  %vm26475_vm4 = vmmov %vm26184_vm0 }
 0x629   : > { %19617 = vmatmul.mubr.msk.f32.gmra.mrb[4].mxu1 %vm26461_vm9, %v8888_v2  ;;  %vm26476_vm9 = vmmov %vm26184_vm0 }
 0x62a   : > { %19619 = vmatprep.mubr.msk.f32.mxu1 %vm26462_vm5, %v8889_v62  ;;  %vm26477_vm5 = vmmov %vm26184_vm0 }
 0x62d   : > { %19620 = vmatmul.mubr.msk.f32.gmra.mrb[6].mxu1 %vm26463_vm7, %v8890_v47  ;;  %vm26478_vm7 = vmmov %vm26184_vm0 }
 0x62e   : > { %19622 = vmatprep.mubr.msk.f32.mxu1 %vm26464_vm6, %v8891_v0  ;;  %vm26479_vm6 = vmmov %vm26184_vm0 }
 0x631   : > { %19623 = vmatmul.mubr.msk.f32.gmra.mrb[8].mxu1 %vm26465_vm10, %v8892_v12  ;;  %vm26480_vm10 = vmmov %vm26184_vm0 }
 0x632   : > { %19625 = vmatprep.mubr.msk.f32.mxu1 %vm26184_vm0, %v8893_v54 }
 0x635   : > { %19626 = vmatmul.mubr.msk.f32.gmra.mrb[10].mxu1 %vm26466_vm8, %v8894_v32  ;;  %vm26481_vm8 = vmmov %vm26184_vm0 }
 0x636   : > { %19628 = vmatprep.mubr.msk.f32.mxu1 %vm26467_vm1, %v8895_v43  ;;  %vm26482_vm1 = vmmov %vm26184_vm0 }
 0x639   : > { %19629 = vmatmul.mubr.msk.f32.gmra.mrb[12].mxu1 %vm26468_vm14, %v8896_v46  ;;  %vm26483_vm14 = vmmov %vm26184_vm0 }
 0x63a   : > { %19631 = vmatprep.mubr.msk.f32.mxu1 %vm26469_vm2, %v8897_v3  ;;  %vm26484_vm2 = vmmov %vm26184_vm0 }
 0x63d   : > { %19632 = vmatmul.mubr.msk.f32.gmra.mrb[14].mxu1 %vm26470_vm15, %v8898_v9  ;;  %vm26485_vm15 = vmmov %vm26184_vm0 }
 0x63e   : > { %19634 = vmatprep.mubr.msk.f32.mxu1 %vm26471_vm11, %v8899_v5  ;;  %vm26486_vm11 = vmmov %vm26184_vm0 }
 0x641   : > { %19635 = vmatmul.mubr.msk.f32.gmra.mrb[16].mxu1 %vm26472_vm3, %v8900_v42  ;;  %vm26487_vm3 = vmmov %vm26184_vm0 }
 0x642   : > { %19637 = vmatprep.mubr.msk.f32.mxu1 %vm26473_vm12, %v8901_v56  ;;  %vm26488_vm12 = vmmov %vm26184_vm0 }
 0x643   : > { %19663 = vmatprep.mubr.msk.f32.mxu0 %vm26488_vm12, %v9719_v34  ;;  %vm26504_vm12 = vmmov %vm26184_vm0 }
 0x645   : > { %19638 = vmatmul.mubr.msk.f32.gmra.mrb[18].mxu1 %vm26474_vm13, %v8902_v4  ;;  %vm26490_vm13 = vmmov %vm26184_vm0 }
 0x646   : > { %19640 = vmatprep.mubr.msk.f32.mxu1 %vm26475_vm4, %v8903_v7  ;;  %vm26491_vm4 = vmmov %vm26184_vm0 }
 0x649   : > { %19641 = vmatmul.mubr.msk.f32.gmra.mrb[20].mxu1 %vm26476_vm9, %v8904_v37  ;;  %vm26492_vm9 = vmmov %vm26184_vm0 }
 0x64a   : > { %19643 = vmatprep.mubr.msk.f32.mxu1 %vm26477_vm5, %v8905_v15  ;;  %vm26493_vm5 = vmmov %vm26184_vm0 }
 0x64d   : > { %19644 = vmatmul.mubr.msk.f32.gmra.mrb[22].mxu1 %vm26478_vm7, %v8906_v63  ;;  %vm26494_vm7 = vmmov %vm26184_vm0 }
 0x64e   : > { %19646 = vmatprep.mubr.msk.f32.mxu1 %vm26479_vm6, %v8907_v27  ;;  %vm26495_vm6 = vmmov %vm26184_vm0 }
 0x651   : > { %19647 = vmatmul.mubr.msk.f32.gmra.mrb[24].mxu1 %vm26480_vm10, %v8908_v44  ;;  %vm26496_vm10 = vmmov %vm26184_vm0 }
 0x652   : > { %19649 = vmatprep.mubr.msk.f32.mxu1 %vm26184_vm0, %v8909_v40  ;;  %v19161_v38 = vpop.f32.mrb[36].mxu0 }
 0x653   : > { %v5787_v8 = vpop.f32.mrb[37].mxu0 }
 0x655   : > { %19650 = vmatmul.mubr.msk.f32.gmra.mrb[26].mxu1 %vm26481_vm8, %v8910_v25  ;;  %vm26497_vm8 = vmmov %vm26184_vm0 }
 0x656   : > { %19652 = vmatprep.mubr.msk.f32.mxu1 %vm26482_vm1, %v8911_v51  ;;  %vm26498_vm1 = vmmov %vm26184_vm0 }
 0x659   : > { %19653 = vmatmul.mubr.msk.f32.gmra.mrb[28].mxu1 %vm26483_vm14, %v8912_v29  ;;  %vm26499_vm14 = vmmov %vm26184_vm0 }
 0x65a   : > { %19655 = vmatprep.mubr.msk.f32.mxu1 %vm26484_vm2, %v8913_v58  ;;  %vm26500_vm2 = vmmov %vm26184_vm0 }
 0x65d   : > { %19656 = vmatmul.mubr.msk.f32.gmra.mrb[30].mxu1 %vm26485_vm15, %v8914_v24  ;;  %vm26501_vm15 = vmmov %vm26184_vm0 }
 0x65e   : > { %19658 = vmatprep.mubr.msk.f32.mxu1 %vm26486_vm11, %v8915_v53  ;;  %vm26502_vm11 = vmmov %vm26184_vm0 }
 0x661   : > { %19659 = vmatmul.mubr.msk.f32.gmra.mrb[32].mxu1 %vm26487_vm3, %v8916_v21  ;;  %vm26503_vm3 = vmmov %vm26184_vm0 }
 0x6f0   : > { %v19609_v33 = vpop.f32.mrb[34].mxu1 }
 0x6f1   : > { %v20806_v50 = vadd.f32 %v19609_v33, %v19161_v38  ;;  %v9093_v55 = vpop.f32.mrb[35].mxu1 }
 0x6f2   : > { %v20807_v30 = vadd.f32 %v9093_v55, %v5787_v8 }
 0x6f3   : > { %v9316_v14 = vadd.f32 %v20806_v50, %v24637_v20 }
 0x6f4   : > { %v9315_v36 = vadd.f32 %v20807_v30, %v24637_v20  ;;  %v19612_v61 = vpop.f32.mrb[0].mxu1 }
 0x6f5   : > { %v9352_v28 = vmax.f32 %v9316_v14, 0.0  ;;  %v9318_v48 = vadd.f32 %v19612_v61, %v24637_v20  ;;  %v9103_v60 = vpop.f32.mrb[1].mxu1 }
 0x6f6   : > { %v9351_v23 = vmax.f32 %v9315_v36, 0.0  ;;  %v9317_v26 = vadd.f32 %v24637_v20, %v9103_v60 }
 0x6f7   : > { %9388 = vst.msk [vmem:[%s24643_s23 + $0x8] sm:$0xff] %vm26490_vm13, %v9352_v28  ;;  %v9354_v10 = vmax.f32 %v9318_v48, 0.0  ;;  %v24700_v28 = vld [vmem:[#allocation10 + $0x10] sm:$0xff]  ;;  %vm26505_vm13 = vmmov %vm26184_vm0 }
 0x6f8   : > { %9387 = vst.msk [vmem:[%s24643_s23] sm:$0xff] %vm26491_vm4, %v9351_v23  ;;  %v9353_v11 = vmax.f32 %v9317_v26, 0.0  ;;  %v19615_v13 = vpop.f32.mrb[2].mxu1  ;;  %vm26506_vm4 = vmmov %vm26184_vm0 }
 0x6f9   : > { %9390 = vst.msk [vmem:[%s24643_s23 + $0x18] sm:$0xff] %vm26492_vm9, %v9354_v10  ;;  %v9320_v39 = vadd.f32 %v19615_v13, %v24637_v20  ;;  %v9113_v35 = vpop.f32.mrb[3].mxu1  ;;  %vm26507_vm9 = vmmov %vm26184_vm0 }
 0x6fa   : > { %9389 = vst.msk [vmem:[%s24643_s23 + $0x10] sm:$0xff] %vm26493_vm5, %v9353_v11  ;;  %v9319_v17 = vadd.f32 %v24637_v20, %v9113_v35  ;;  %vm26508_vm5 = vmmov %vm26184_vm0 }
 0x6fb   : > { %v9356_v45 = vmax.f32 %v9320_v39, 0.0 }
 0x6fc   : > { %v9355_v31 = vmax.f32 %v9319_v17, 0.0  ;;  %v19618_v52 = vpop.f32.mrb[4].mxu1 }
 0x6fd   : > { %9392 = vst.msk [vmem:[%s24643_s23 + $0x28] sm:$0xff] %vm26494_vm7, %v9356_v45  ;;  %v9322_v22 = vadd.f32 %v19618_v52, %v24637_v20  ;;  %v9123_v57 = vpop.f32.mrb[5].mxu1  ;;  %vm26509_vm7 = vmmov %vm26184_vm0 }
 0x6fe   : > { %9391 = vst.msk [vmem:[%s24643_s23 + $0x20] sm:$0xff] %vm26495_vm6, %v9355_v31  ;;  %v9321_v41 = vadd.f32 %v24637_v20, %v9123_v57  ;;  %vm26510_vm6 = vmmov %vm26184_vm0 }
 0x6ff   : > { %v9358_v19 = vmax.f32 %v9322_v22, 0.0  ;;  %v9437_v47 = vld [vmem:[%s24643_s23] ss:$2 sm:$0xff]  ;;  %v17168_v0 = vld [vmem:[%s24643_s23 + $0x1] ss:$2 sm:$0xff] }
 0x700   : > { %v9357_v18 = vmax.f32 %v9321_v41, 0.0  ;;  %v19621_v16 = vpop.f32.mrb[6].mxu1  ;;  %v9444_v5 = vmax.f32 %v9437_v47, %v17168_v0 }
 0x701   : > { %9394 = vst.msk [vmem:[%s24643_s23 + $0x38] sm:$0xff] %vm26496_vm10, %v9358_v19  ;;  %v9324_v1 = vadd.f32 %v19621_v16, %v24637_v20  ;;  %v9133_v2 = vpop.f32.mrb[7].mxu1  ;;  %vm26511_vm10 = vmmov %vm26184_vm0 }
 0x702   : > { %9393 = vst.msk [vmem:[%s24643_s23 + $0x30] sm:$0xff] %vm26184_vm0, %v9357_v18  ;;  %v9323_v62 = vadd.f32 %v24637_v20, %v9133_v2 }
 0x703   : > { %v9360_v12 = vmax.f32 %v9324_v1, 0.0 }
 0x704   : > { %v9359_v54 = vmax.f32 %v9323_v62, 0.0  ;;  %v19624_v32 = vpop.f32.mrb[8].mxu1 }
 0x705   : > { %v17169_v43 = vld [vmem:[%s24643_s23 + $0x12] ss:$2 sm:$0xff]  ;;  %v17170_v46 = vld [vmem:[%s24643_s23 + $0x13] ss:$2 sm:$0xff]  ;;  %9396 = vst.msk [vmem:[%s24643_s23 + $0x48] sm:$0xff] %vm26497_vm8, %v9360_v12  ;;  %v9326_v3 = vadd.f32 %v19624_v32, %v24637_v20  ;;  %v9143_v9 = vpop.f32.mrb[9].mxu1  ;;  %vm26512_vm8 = vmmov %vm26184_vm0 }
 0x706   : > { %v9445_v42 = vmax.f32 %v17169_v43, %v17170_v46  ;;  %9395 = vst.msk [vmem:[%s24643_s23 + $0x40] sm:$0xff] %vm26498_vm1, %v9359_v54  ;;  %v9325_v56 = vadd.f32 %v24637_v20, %v9143_v9  ;;  %vm26513_vm1 = vmmov %vm26184_vm0 }
 0x707   : > { %v9362_v4 = vmax.f32 %v9326_v3, 0.0 }
 0x708   : > { %v9446_v7 = vmax.f32 %v9444_v5, %v9445_v42  ;;  %v9361_v37 = vmax.f32 %v9325_v56, 0.0  ;;  %v19627_v15 = vpop.f32.mrb[10].mxu1 }
 0x709   : > { %9398 = vst.msk [vmem:[%s24643_s23 + $0x58] sm:$0xff] %vm26499_vm14, %v9362_v4  ;;  %v9328_v63 = vadd.f32 %v19627_v15, %v24637_v20  ;;  %v9153_v27 = vpop.f32.mrb[11].mxu1  ;;  %v17171_v40 = vld [vmem:[%s24643_s23 + $0x24] ss:$2 sm:$0xff]  ;;  %v17172_v25 = vld [vmem:[%s24643_s23 + $0x25] ss:$2 sm:$0xff]  ;;  %vm26514_vm14 = vmmov %vm26184_vm0 }
 0x70a   : > { %9447 = vst.msk [vmem:[#allocation4 + $0xb] sm:$0xff] %vm26500_vm2, %v9446_v7  ;;  %v9327_v44 = vadd.f32 %v24637_v20, %v9153_v27  ;;  %v9456_v8 = vmax.f32 %v17171_v40, %v17172_v25  ;;  %vm26515_vm2 = vmmov %vm26184_vm0 }
 0x70b   : > { %9397 = vst.msk [vmem:[%s24643_s23 + $0x50] sm:$0xff] %vm26501_vm15, %v9361_v37  ;;  %v9364_v51 = vmax.f32 %v9328_v63, 0.0  ;;  %vm26516_vm15 = vmmov %vm26184_vm0 }
 0x70c   : > { %v9363_v29 = vmax.f32 %v9327_v44, 0.0  ;;  %v19630_v58 = vpop.f32.mrb[12].mxu1 }
 0x70d   : > { %v17173_v53 = vld [vmem:[%s24643_s23 + $0x36] ss:$2 sm:$0xff]  ;;  %v17174_v24 = vld [vmem:[%s24643_s23 + $0x37] ss:$2 sm:$0xff]  ;;  %9400 = vst.msk [vmem:[%s24643_s23 + $0x68] sm:$0xff] %vm26502_vm11, %v9364_v51  ;;  %v9330_v21 = vadd.f32 %v19630_v58, %v24637_v20  ;;  %v9163_v38 = vpop.f32.mrb[13].mxu1  ;;  %vm26517_vm11 = vmmov %vm26184_vm0 }
 0x70e   : > { %v9457_v59 = vmax.f32 %v17173_v53, %v17174_v24  ;;  %9399 = vst.msk [vmem:[%s24643_s23 + $0x60] sm:$0xff] %vm26503_vm3, %v9363_v29  ;;  %v9329_v34 = vadd.f32 %v24637_v20, %v9163_v38  ;;  %vm26518_vm3 = vmmov %vm26184_vm0 }
 0x70f   : > { %v9366_v33 = vmax.f32 %v9330_v21, 0.0 }
 0x710   : > { %v9458_v50 = vmax.f32 %v9456_v8, %v9457_v59  ;;  %v9365_v55 = vmax.f32 %v9329_v34, 0.0  ;;  %v19633_v30 = vpop.f32.mrb[14].mxu1 }
 0x711   : > { %9402 = vst.msk [vmem:[%s24643_s23 + $0x78] sm:$0xff] %vm26504_vm12, %v9366_v33  ;;  %v9332_v14 = vadd.f32 %v19633_v30, %v24637_v20  ;;  %v9173_v36 = vpop.f32.mrb[15].mxu1  ;;  %v9720_v61 = vld [vmem:[#allocation4 + $0x9] sm:$0xff]  ;;  %vm26519_vm12 = vmmov %vm26184_vm0 }
 0x712   : > { %9459 = vst.msk [vmem:[#allocation4 + $0x15] sm:$0xff] %vm26505_vm13, %v9458_v50  ;;  %v9331_v48 = vadd.f32 %v24637_v20, %v9173_v36  ;;  %19664 = vmatmul.mubr.msk.f32.vlgmr.msra.gmra.mrb[38].mxu0 %vm26507_vm9, %v9720_v61  ;;  %v17175_v60 = vld [vmem:[%s24643_s23 + $0x48] ss:$2 sm:$0xff]  ;;  %v17176_v23 = vld [vmem:[%s24643_s23 + $0x49] ss:$2 sm:$0xff]  ;;  %vm26520_vm13 = vmmov %vm26184_vm0 }
 0x713   : > { %9401 = vst.msk [vmem:[%s24643_s23 + $0x70] sm:$0xff] %vm26506_vm4, %v9365_v55  ;;  %v9368_v26 = vmax.f32 %v9332_v14, 0.0  ;;  %19679 = vmatpush3.msra.mxu0 %v24630_v6  ;;  %v9468_v45 = vmax.f32 %v17175_v60, %v17176_v23  ;;  %vm26521_vm4 = vmmov %vm26184_vm0 }
 0x714   : > { %v9367_v10 = vmax.f32 %v9331_v48, 0.0  ;;  %v19636_v11 = vpop.f32.mrb[16].mxu1  ;;  %19695 = vmatprep.subr.mxu0 %v24700_v28  ;;  %vm26522_vm9 = vmmov %vm26184_vm0 }
 0x715   : > { %v17177_v13 = vld [vmem:[%s24643_s23 + $0x5a] ss:$2 sm:$0xff]  ;;  %v17178_v39 = vld [vmem:[%s24643_s23 + $0x5b] ss:$2 sm:$0xff]  ;;  %9404 = vst.msk [vmem:[%s24643_s23 + $0x88] sm:$0xff] %vm26508_vm5, %v9368_v26  ;;  %v9334_v35 = vadd.f32 %v19636_v11, %v24637_v20  ;;  %v9183_v17 = vpop.f32.mrb[17].mxu1  ;;  %vm26523_vm5 = vmmov %vm26184_vm0 }
 0x716   : > { %v9469_v31 = vmax.f32 %v17177_v13, %v17178_v39  ;;  %9403 = vst.msk [vmem:[%s24643_s23 + $0x80] sm:$0xff] %vm26509_vm7, %v9367_v10  ;;  %v9333_v6 = vadd.f32 %v24637_v20, %v9183_v17  ;;  %vm26524_vm7 = vmmov %vm26184_vm0 }
 0x717   : > { %v9370_v52 = vmax.f32 %v9334_v35, 0.0 }
 0x718   : > { %v9470_v22 = vmax.f32 %v9468_v45, %v9469_v31  ;;  %v9369_v57 = vmax.f32 %v9333_v6, 0.0  ;;  %v19639_v41 = vpop.f32.mrb[18].mxu1 }
 0x719   : > { %9406 = vst.msk [vmem:[%s24643_s23 + $0x98] sm:$0xff] %vm26510_vm6, %v9370_v52  ;;  %v9336_v19 = vadd.f32 %v19639_v41, %v24637_v20  ;;  %v9193_v18 = vpop.f32.mrb[19].mxu1  ;;  %v9721_v16 = vld [vmem:[#allocation4 + $0x11] sm:$0xff]  ;;  %vm26525_vm6 = vmmov %vm26184_vm0 }
 0x71a   : > { %9471 = vst.msk [vmem:[#allocation4 + $0x1f] sm:$0xff] %vm26511_vm10, %v9470_v22  ;;  %v9335_v1 = vadd.f32 %v24637_v20, %v9193_v18  ;;  %19666 = vmatprep.mubr.msk.f32.mxu0 %vm26512_vm8, %v9721_v16  ;;  %v17179_v2 = vld [vmem:[%s24643_s23 + $0x6c] ss:$2 sm:$0xff]  ;;  %v17180_v62 = vld [vmem:[%s24643_s23 + $0x6d] ss:$2 sm:$0xff]  ;;  %vm26526_vm10 = vmmov %vm26184_vm0 }
 0x71b   : > { %9405 = vst.msk [vmem:[%s24643_s23 + $0x90] sm:$0xff] %vm26184_vm0, %v9369_v57  ;;  %v9372_v47 = vmax.f32 %v9336_v19, 0.0  ;;  %v9480_v3 = vmax.f32 %v17179_v2, %v17180_v62  ;;  %vm26527_vm8 = vmmov %vm26184_vm0 }
 0x71c   : > { %v9371_v0 = vmax.f32 %v9335_v1, 0.0  ;;  %v19642_v12 = vpop.f32.mrb[20].mxu1 }
 0x71d   : > { %v17181_v54 = vld [vmem:[%s24643_s23 + $0x7e] ss:$2 sm:$0xff]  ;;  %v17182_v32 = vld [vmem:[%s24643_s23 + $0x7f] ss:$2 sm:$0xff]  ;;  %9408 = vst.msk [vmem:[%s24643_s23 + $0xa8] sm:$0xff] %vm26513_vm1, %v9372_v47  ;;  %v9338_v43 = vadd.f32 %v19642_v12, %v24637_v20  ;;  %v9203_v46 = vpop.f32.mrb[21].mxu1  ;;  %vm26528_vm1 = vmmov %vm26184_vm0 }
 0x71e   : > { %v9481_v9 = vmax.f32 %v17181_v54, %v17182_v32  ;;  %9407 = vst.msk [vmem:[%s24643_s23 + $0xa0] sm:$0xff] %vm26514_vm14, %v9371_v0  ;;  %v9337_v5 = vadd.f32 %v24637_v20, %v9203_v46  ;;  %vm26529_vm14 = vmmov %vm26184_vm0 }
 0x71f   : > { %v9374_v42 = vmax.f32 %v9338_v43, 0.0 }
 0x720   : > { %v9482_v56 = vmax.f32 %v9480_v3, %v9481_v9  ;;  %v9373_v4 = vmax.f32 %v9337_v5, 0.0  ;;  %v19645_v7 = vpop.f32.mrb[22].mxu1 }
 0x721   : > { %9410 = vst.msk [vmem:[%s24643_s23 + $0xb8] sm:$0xff] %vm26515_vm2, %v9374_v42  ;;  %v9340_v37 = vadd.f32 %v19645_v7, %v24637_v20  ;;  %v9213_v15 = vpop.f32.mrb[23].mxu1  ;;  %v9722_v63 = vld [vmem:[#allocation4 + $0x19] sm:$0xff]  ;;  %v9723_v44 = vld [vmem:[#allocation4 + $0x21] sm:$0xff]  ;;  %vm26530_vm2 = vmmov %vm26184_vm0  ;;  %v26535_v7 = vmov 0.0  }
 0x722   : > { %9483 = vst.msk [vmem:[#allocation4 + $0x29] sm:$0xff] %vm26516_vm15, %v9482_v56  ;;  %v9339_v27 = vadd.f32 %v24637_v20, %v9213_v15  ;;  %19667 = vmatmul.mubr.msk.f32.gmra.mrb[40].mxu0 %vm26518_vm3, %v9722_v63  ;;  %v17183_v24 = vld [vmem:[%s24643_s23 + $0x90] ss:$2 sm:$0xff]  ;;  %v17184_v21 = vld [vmem:[%s24643_s23 + $0x91] ss:$2 sm:$0xff]  ;;  %vm26531_vm15 = vmmov %vm26184_vm0 }
 0x723   : > { %9409 = vst.msk [vmem:[%s24643_s23 + $0xb0] sm:$0xff] %vm26517_vm11, %v9373_v4  ;;  %v9376_v40 = vmax.f32 %v9340_v37, 0.0  ;;  %19669 = vmatprep.mubr.msk.f32.mxu0 %vm26519_vm12, %v9723_v44  ;;  %v9492_v14 = vmax.f32 %v17183_v24, %v17184_v21  ;;  %vm26532_vm11 = vmmov %vm26184_vm0  ;;  %v10199_v24 = vld [vmem:[#allocation10 + $0x18] sm:$0xff]  ;;  %v9710_v21 = vld [vmem:[#allocation4 + $0x10] sm:$0xff] }
 0x724   : > { %v9375_v25 = vmax.f32 %v9339_v27, 0.0  ;;  %v19648_v51 = vpop.f32.mrb[24].mxu1  ;;  %vm26533_vm3 = vmmov %vm26184_vm0 }
 0x725   : > { %9412 = vst.msk [vmem:[%s24643_s23 + $0xc8] sm:$0xff] %vm26520_vm13, %v9376_v40  ;;  %v9342_v29 = vadd.f32 %v19648_v51, %v24637_v20  ;;  %v9223_v58 = vpop.f32.mrb[25].mxu1  ;;  %vm26534_vm12 = vmmov %vm26184_vm0  ;;  %vm9435_vm13 = vcmask 62464  }
 0x726   : > { %9411 = vst.msk [vmem:[%s24643_s23 + $0xc0] sm:$0xff] %vm26521_vm4, %v9375_v25  ;;  %v9341_v53 = vadd.f32 %v24637_v20, %v9223_v58  ;;  %vm26536_vm4 = vmmov %vm26184_vm0  ;;  %v9708_v58 = vld [vmem:[#allocation4] sm:$0xff] }
 0x727   : > { %v9378_v38 = vmax.f32 %v9342_v29, 0.0  ;;  %9436 = vst.msk [vmem:[#allocation4 + $0x60] sm:$0x3f] %vm9435_vm13, %v26535_v7  ;;  %vm26550_vm13 = vmmov %vm26184_vm0 }
 0x728   : > { %v9377_v8 = vmax.f32 %v9341_v53, 0.0  ;;  %v19651_v59 = vpop.f32.mrb[26].mxu1  ;;  %v9709_v53 = vld [vmem:[#allocation4 + $0x8] sm:$0xff] }
 0x729   : > { %9414 = vst.msk [vmem:[%s24643_s23 + $0xd8] sm:$0xff] %vm26522_vm9, %v9378_v38  ;;  %v9344_v50 = vadd.f32 %v19651_v59, %v24637_v20  ;;  %v9233_v55 = vpop.f32.mrb[27].mxu1  ;;  %v9724_v30 = vld [vmem:[#allocation4 + $0x29] sm:$0xff]  ;;  %vm26537_vm9 = vmmov %vm26184_vm0  ;;  %v9711_v38 = vld [vmem:[#allocation4 + $0x18] sm:$0xff] }
 0x72a   : > { %v17185_v34 = vld [vmem:[%s24643_s23 + $0xa2] ss:$2 sm:$0xff]  ;;  %v17186_v33 = vld [vmem:[%s24643_s23 + $0xa3] ss:$2 sm:$0xff]  ;;  %9413 = vst.msk [vmem:[%s24643_s23 + $0xd0] sm:$0xff] %vm26523_vm5, %v9377_v8  ;;  %v9343_v61 = vadd.f32 %v24637_v20, %v9233_v55  ;;  %19670 = vmatmul.mubr.msk.f32.gmra.mrb[42].mxu0 %vm26524_vm7, %v9724_v30  ;;  %vm26538_vm5 = vmmov %vm26184_vm0 }
 0x72b   : > { %v9493_v36 = vmax.f32 %v17185_v34, %v17186_v33  ;;  %v9380_v48 = vmax.f32 %v9344_v50, 0.0  ;;  %vm26539_vm7 = vmmov %vm26184_vm0  ;;  %v9712_v8 = vld [vmem:[#allocation4 + $0x20] sm:$0xff]  ;;  %v9713_v59 = vld [vmem:[#allocation4 + $0x28] sm:$0xff] }
 0x72c   : > { %v9379_v23 = vmax.f32 %v9343_v61, 0.0  ;;  %v19654_v26 = vpop.f32.mrb[28].mxu1  ;;  %v10022_v30 = vld [vmem:[#allocation4 + $0xa] sm:$0xff]  ;;  %v10024_v61 = vld [vmem:[#allocation4 + $0x1a] sm:$0xff] }
 0x72d   : > { %v9494_v60 = vmax.f32 %v9492_v14, %v9493_v36  ;;  %9416 = vst.msk [vmem:[%s24643_s23 + $0xe8] sm:$0xff] %vm26525_vm6, %v9380_v48  ;;  %v9346_v10 = vadd.f32 %v19654_v26, %v24637_v20  ;;  %v9243_v11 = vpop.f32.mrb[29].mxu1  ;;  %v17187_v39 = vld [vmem:[%s24643_s23 + $0xb4] ss:$2 sm:$0xff]  ;;  %v17188_v35 = vld [vmem:[%s24643_s23 + $0xb5] ss:$2 sm:$0xff]  ;;  %vm26540_vm6 = vmmov %vm26184_vm0 }
 0x72e   : > { %9415 = vst.msk [vmem:[%s24643_s23 + $0xe0] sm:$0xff] %vm26184_vm0, %v9379_v23  ;;  %v9345_v13 = vadd.f32 %v24637_v20, %v9243_v11  ;;  %v9504_v41 = vmax.f32 %v17187_v39, %v17188_v35  ;;  %v10366_v14 = vld [vmem:[#allocation10 + $0x20] sm:$0xff]  ;;  %v10025_v48 = vld [vmem:[#allocation4 + $0x22] sm:$0xff] }
 0x72f   : > { %9495 = vst.msk [vmem:[#allocation4 + $0x33] sm:$0xff] %vm26526_vm10, %v9494_v60  ;;  %v9382_v17 = vmax.f32 %v9346_v10, 0.0  ;;  %vm26541_vm10 = vmmov %vm26184_vm0  ;;  %v10023_v36 = vld [vmem:[#allocation4 + $0x12] sm:$0xff]  ;;  %v10026_v60 = vld [vmem:[#allocation4 + $0x2a] sm:$0xff] }
 0x730   : > { %v9381_v45 = vmax.f32 %v9345_v13, 0.0  ;;  %v19657_v31 = vpop.f32.mrb[30].mxu1  ;;  %v11280_v26 = vld [vmem:[#allocation12 + $0x10] sm:$0xff]  ;;  %v11281_v10 = vld [vmem:[#allocation12 + $0x18] sm:$0xff] }
 0x731   : > { %v17189_v6 = vld [vmem:[%s24643_s23 + $0xc6] ss:$2 sm:$0xff]  ;;  %v17190_v52 = vld [vmem:[%s24643_s23 + $0xc7] ss:$2 sm:$0xff]  ;;  %9418 = vst.msk [vmem:[%s24643_s23 + $0xf8] sm:$0xff] %vm26527_vm8, %v9382_v17  ;;  %v9348_v22 = vadd.f32 %v19657_v31, %v24637_v20  ;;  %v9253_v57 = vpop.f32.mrb[31].mxu1  ;;  %vm26542_vm8 = vmmov %vm26184_vm0  ;;  %v20525_v11 = vpack.c.bf16 %v11281_v10, %v11280_v26 }
 0x732   : > { %v9505_v19 = vmax.f32 %v17189_v6, %v17190_v52  ;;  %9417 = vst.msk [vmem:[%s24643_s23 + $0xf0] sm:$0xff] %vm26528_vm1, %v9381_v45  ;;  %v9347_v18 = vadd.f32 %v24637_v20, %v9253_v57  ;;  %vm26543_vm1 = vmmov %vm26184_vm0  ;;  %v10533_v17 = vld [vmem:[#allocation10 + $0x28] sm:$0xff]  ;;  %v10355_v31 = vld [vmem:[#allocation4 + $0xb] sm:$0xff] }
 0x733   : > { %v9384_v16 = vmax.f32 %v9348_v22, 0.0  ;;  %20526 = vmatprep.subr.bf16.mxu1 %v20525_v11  ;;  %v10356_v6 = vld [vmem:[#allocation4 + $0x13] sm:$0xff]  ;;  %v10700_v52 = vld [vmem:[#allocation10 + $0x30] sm:$0xff] }
 0x734   : > { %v9506_v1 = vmax.f32 %v9504_v41, %v9505_v19  ;;  %v9383_v2 = vmax.f32 %v9347_v18, 0.0  ;;  %v19660_v62 = vpop.f32.mrb[32].mxu1  ;;  %20528 = vmatpush3.bf16.msra.mxu1 %v20525_v11  ;;  %v10357_v22 = vld [vmem:[#allocation4 + $0x1b] sm:$0xff]  ;;  %v10358_v57 = vld [vmem:[#allocation4 + $0x23] sm:$0xff]  ;;  %v10359_v41 = vld [vmem:[#allocation4 + $0x2b] sm:$0xff] }
 0x735   : > { %9420 = vst.msk [vmem:[%s24643_s23 + $0x108] sm:$0xff] %vm26529_vm14, %v9384_v16  ;;  %v9350_v47 = vadd.f32 %v19660_v62, %v24637_v20  ;;  %v9263_v0 = vpop.f32.mrb[33].mxu1  ;;  %v17191_v32 = vld [vmem:[%s24643_s23 + $0xd8] ss:$2 sm:$0xff]  ;;  %v17192_v43 = vld [vmem:[%s24643_s23 + $0xd9] ss:$2 sm:$0xff]  ;;  %vm26544_vm14 = vmmov %vm26184_vm0 }
 0x736   : > { %v9725_v12 = vld [vmem:[#allocation4 + $0x31] sm:$0xff]  ;;  %9507 = vst.msk [vmem:[#allocation4 + $0x3d] sm:$0xff] %vm26530_vm2, %v9506_v1  ;;  %v9349_v54 = vadd.f32 %v24637_v20, %v9263_v0  ;;  %v9516_v42 = vmax.f32 %v17191_v32, %v17192_v43  ;;  %vm26545_vm2 = vmmov %vm26184_vm0  ;;  %v10867_v0 = vld [vmem:[#allocation10 + $0x38] sm:$0xff] }
 0x737   : > { %9419 = vst.msk [vmem:[%s24643_s23 + $0x100] sm:$0xff] %vm26531_vm15, %v9383_v2  ;;  %19672 = vmatprep.mubr.msk.f32.mxu0 %vm26532_vm11, %v9725_v12  ;;  %v9386_v46 = vmax.f32 %v9350_v47, 0.0  ;;  %v9714_v34 = vld [vmem:[#allocation4 + $0x30] sm:$0xff]  ;;  %vm26546_vm15 = vmmov %vm26184_vm0  ;;  %v10524_v12 = vld [vmem:[#allocation4 + $0x1c] sm:$0xff] }
 0x738   : > { %v9385_v3 = vmax.f32 %v9349_v54, 0.0  ;;  %vm26547_vm11 = vmmov %vm26184_vm0  ;;  %v10027_v23 = vld [vmem:[#allocation4 + $0x32] sm:$0xff]  ;;  %v10525_v54 = vld [vmem:[#allocation4 + $0x24] sm:$0xff] }
 0x739   : > { %v17193_v9 = vld [vmem:[%s24643_s23 + $0xea] ss:$2 sm:$0xff]  ;;  %v17194_v5 = vld [vmem:[%s24643_s23 + $0xeb] ss:$2 sm:$0xff]  ;;  %9422 = vst.msk [vmem:[%s24643_s23 + $0x118] sm:$0xff] %vm26533_vm3, %v9386_v46  ;;  %vm26548_vm3 = vmmov %vm26184_vm0 }
 0x73a   : > { %v9517_v56 = vmax.f32 %v17193_v9, %v17194_v5  ;;  %9421 = vst.msk [vmem:[%s24643_s23 + $0x110] sm:$0xff] %vm26534_vm12, %v9385_v3  ;;  %vm26549_vm12 = vmmov %vm26184_vm0  ;;  %v10360_v19 = vld [vmem:[#allocation4 + $0x33] sm:$0xff] }
 0x73b   : > { %v10522_v62 = vld [vmem:[#allocation4 + $0xc] sm:$0xff]  ;;  %v10523_v47 = vld [vmem:[#allocation4 + $0x14] sm:$0xff] }
 0x73c   : > { %v9518_v4 = vmax.f32 %v9516_v42, %v9517_v56  ;;  %v10526_v32 = vld [vmem:[#allocation4 + $0x2c] sm:$0xff]  ;;  %v10527_v43 = vld [vmem:[#allocation4 + $0x34] sm:$0xff]  ;;  %v10698_v56 = vld [vmem:[#allocation4 + $0x5c] sm:$0xff] }
 0x73d   : > { %v9726_v20 = vld [vmem:[#allocation4 + $0x39] sm:$0xff]  ;;  %v11034_v42 = vld [vmem:[#allocation10 + $0x40] sm:$0xff] }
 0x73e   : > { %9519 = vst.msk [vmem:[#allocation4 + $0x47] sm:$0xff] %vm26536_vm4, %v9518_v4  ;;  %19673 = vmatmul.mubr.msk.f32.gmra.mrb[44].mxu0 %vm26537_vm9, %v9726_v20  ;;  %v17195_v37 = vld [vmem:[%s24643_s23 + $0xfc] ss:$2 sm:$0xff]  ;;  %v17196_v15 = vld [vmem:[%s24643_s23 + $0xfd] ss:$2 sm:$0xff]  ;;  %vm26551_vm4 = vmmov %vm26184_vm0 }
 0x73f   : > { %v9528_v44 = vmax.f32 %v17195_v37, %v17196_v15  ;;  %v9715_v33 = vld [vmem:[#allocation4 + $0x38] sm:$0xff]  ;;  %vm26552_vm9 = vmmov %vm26184_vm0  ;;  %v10858_v37 = vld [vmem:[#allocation4 + $0x25] sm:$0xff] }
 0x740   : > { %v10028_v13 = vld [vmem:[#allocation4 + $0x3a] sm:$0xff]  ;;  %v10859_v15 = vld [vmem:[#allocation4 + $0x2d] sm:$0xff] }
 0x741   : > { %v17197_v63 = vld [vmem:[%s24643_s23 + $0x10e] ss:$2 sm:$0xff]  ;;  %v17198_v27 = vld [vmem:[%s24643_s23 + $0x10f] ss:$2 sm:$0xff]  ;;  %v10856_v4 = vld [vmem:[#allocation4 + $0x15] sm:$0xff]  ;;  %s733_s23 = scalar_lea.vmem %s25884_s19, %s21544_s4 }
 0x742   : > { %v9529_v40 = vmax.f32 %v17197_v63, %v17198_v27  ;;  %v10361_v18 = vld [vmem:[#allocation4 + $0x3b] sm:$0xff] }
 0x743   : > { %v10528_v46 = vld [vmem:[#allocation4 + $0x3c] sm:$0xff] }
 0x744   : > { %v9530_v25 = vmax.f32 %v9528_v44, %v9529_v40  ;;  %v10857_v20 = vld [vmem:[#allocation4 + $0x1d] sm:$0xff]  ;;  %v10860_v63 = vld [vmem:[#allocation4 + $0x35] sm:$0xff] }
 0x745   : > { %v9727_v51 = vld [vmem:[#allocation4 + $0x41] sm:$0xff]  ;;  %v9728_v29 = vld [vmem:[#allocation4 + $0x49] sm:$0xff] }
 0x746   : > { %9531 = vst.msk [vmem:[#allocation4 + $0x51] sm:$0xff] %vm26538_vm5, %v9530_v25  ;;  %19675 = vmatprep.mubr.msk.f32.mxu0 %vm26539_vm7, %v9727_v51  ;;  %v9716_v50 = vld [vmem:[#allocation4 + $0x40] sm:$0xff]  ;;  %v9717_v55 = vld [vmem:[#allocation4 + $0x48] sm:$0xff]  ;;  %vm26553_vm5 = vmmov %vm26184_vm0 }
 0x747   : > { %19676 = vmatmul.mubr.msk.f32.gmra.mrb[46].mxu0 %vm26540_vm6, %v9728_v29  ;;  %vm26554_vm7 = vmmov %vm26184_vm0  ;;  %v10029_v39 = vld [vmem:[#allocation4 + $0x42] sm:$0xff]  ;;  %v11023_v29 = vld [vmem:[#allocation4 + $0x16] sm:$0xff] }
 0x748   : > { %19680 = vmatprep.mubr.msk.f32.mxu0 %vm26541_vm10, %v9708_v58  ;;  %vm26555_vm6 = vmmov %vm26184_vm0  ;;  %vm9532_vm10 = vcmask 130048   ;;  %v10362_v16 = vld [vmem:[#allocation4 + $0x43] sm:$0xff] }
 0x749   : > { %9533 = vst.msk [vmem:[#allocation5] sm:$0xff] %vm9532_vm10, %v26535_v7  ;;  %9536 = vst.msk [vmem:[#allocation5 + $0x5b] sm:$0xff] %vm9532_vm10, %v26535_v7  ;;  %v10529_v3 = vld [vmem:[#allocation4 + $0x44] sm:$0xff] }
 0x74a   : > { %12785 = vst.msk [vmem:[#allocation6] sm:$0xff] %vm9532_vm10, %v26535_v7  ;;  %12786 = vst.msk [vmem:[#allocation6 + $0x8] sm:$0xff] %vm9532_vm10, %v26535_v7  ;;  %v10861_v27 = vld [vmem:[#allocation4 + $0x3d] sm:$0xff]  ;;  %v10862_v44 = vld [vmem:[#allocation4 + $0x45] sm:$0xff] }
 0x74b   : > { %19681 = vmatmul.mubr.msk.f32.vlgmr.msra.gmra.mrb[38].mxu0 %vm26184_vm0, %v9709_v53  ;;  %12787 = vst.msk [vmem:[#allocation6 + $0x10] sm:$0xff] %vm9532_vm10, %v26535_v7  ;;  %12788 = vst.msk [vmem:[#allocation6 + $0x18] sm:$0xff] %vm9532_vm10, %v26535_v7  ;;  %v10865_v51 = vld [vmem:[#allocation4 + $0x5d] sm:$0xff]  ;;  %v11025_v53 = vld [vmem:[#allocation4 + $0x26] sm:$0xff] }
 0x74c   : > { %19696 = vmatpush3.msra.mxu0 %v24700_v28  ;;  %19683 = vmatprep.mubr.msk.f32.mxu0 %vm26542_vm8, %v9710_v21  ;;  %v10021_v28 = vld [vmem:[#allocation4 + $0x2] sm:$0xff]  ;;  %vm26556_vm8 = vmmov %vm26184_vm0  ;;  %v11027_v21 = vld [vmem:[#allocation4 + $0x36] sm:$0xff] }
 0x74d   : > { %19712 = vmatprep.subr.mxu0 %v10199_v24  ;;  %v10030_v35 = vld [vmem:[#allocation4 + $0x4a] sm:$0xff]  ;;  %v10197_v45 = vld [vmem:[#allocation4 + $0x52] sm:$0xff]  ;;  %v11024_v58 = vld [vmem:[#allocation4 + $0x1e] sm:$0xff] }
 0x74e   : > { %v10363_v1 = vld [vmem:[#allocation4 + $0x4b] sm:$0xff]  ;;  %v10364_v2 = vld [vmem:[#allocation4 + $0x53] sm:$0xff] }
 0x74f   : > { %19684 = vmatmul.mubr.msk.f32.gmra.mrb[40].mxu0 %vm26543_vm1, %v9711_v38  ;;  %vm26557_vm1 = vmmov %vm26184_vm0  ;;  %v10530_v9 = vld [vmem:[#allocation4 + $0x4c] sm:$0xff]  ;;  %v10531_v5 = vld [vmem:[#allocation4 + $0x54] sm:$0xff] }
 0x750   : > { %19686 = vmatprep.mubr.msk.f32.mxu0 %vm26544_vm14, %v9712_v8  ;;  %vm26558_vm14 = vmmov %vm26184_vm0  ;;  %v10863_v40 = vld [vmem:[#allocation4 + $0x4d] sm:$0xff]  ;;  %v10864_v25 = vld [vmem:[#allocation4 + $0x55] sm:$0xff] }
 0x751   : > { %v11028_v38 = vld [vmem:[#allocation4 + $0x3e] sm:$0xff]  ;;  %v11029_v8 = vld [vmem:[#allocation4 + $0x46] sm:$0xff] }
 0x753   : > { %19687 = vmatmul.mubr.msk.f32.gmra.mrb[42].mxu0 %vm26545_vm2, %v9713_v59  ;;  %vm26559_vm2 = vmmov %vm26184_vm0  ;;  %v11030_v59 = vld [vmem:[#allocation4 + $0x4e] sm:$0xff] }
 0x754   : > { %19689 = vmatprep.mubr.msk.f32.mxu0 %vm26546_vm15, %v9714_v34  ;;  %vm26560_vm15 = vmmov %vm26184_vm0  ;;  %v11031_v34 = vld [vmem:[#allocation4 + $0x56] sm:$0xff] }
 0x757   : > { %19690 = vmatmul.mubr.msk.f32.gmra.mrb[44].mxu0 %vm26547_vm11, %v9715_v33  ;;  %vm26561_vm11 = vmmov %vm26184_vm0  ;;  %v11032_v33 = vld [vmem:[#allocation4 + $0x5e] sm:$0xff] }
 0x758   : > { %19692 = vmatprep.mubr.msk.f32.mxu0 %vm26548_vm3, %v9716_v50  ;;  %vm26562_vm3 = vmmov %vm26184_vm0  ;;  %v11267_v50 = vld [vmem:[#allocation12] sm:$0xff] }
 0x75b   : > { %19693 = vmatmul.mubr.msk.f32.gmra.mrb[46].mxu0 %vm26549_vm12, %v9717_v55  ;;  %vm26563_vm12 = vmmov %vm26184_vm0 }
 0x75c   : > { %19697 = vmatprep.mubr.msk.f32.mxu0 %vm26550_vm13, %v10021_v28  ;;  %vm26564_vm13 = vmmov %vm26184_vm0  ;;  %v11268_v28 = vld [vmem:[#allocation12 + $0x8] sm:$0xff] }
 0x75d   : > { %v24901_v55 = vpack.c.bf16 %v11268_v28, %v11267_v50  ;;  %v24984_v50 = vld [vmem:[%s25871_s6] ss:$0 sm:$0xff] }
 0x75f   : > { %19698 = vmatmul.mubr.msk.f32.vlgmr.msra.gmra.mrb[38].mxu0 %vm26551_vm4, %v10022_v30  ;;  %vm26565_vm4 = vmmov %vm26184_vm0  ;;  %20530 = vmatprep.subr.bf16.mxu1 %v24901_v55 }
 0x760   : > { %19713 = vmatpush3.msra.mxu0 %v10199_v24  ;;  %19700 = vmatprep.mubr.msk.f32.mxu0 %vm26552_vm9, %v10023_v36  ;;  %vm26566_vm9 = vmmov %vm26184_vm0  ;;  %v11026_v24 = vld [vmem:[#allocation4 + $0x2e] sm:$0xff] }
 0x761   : > { %19729 = vmatprep.subr.mxu0 %v10366_v14 }
 0x763   : > { %19701 = vmatmul.mubr.msk.f32.gmra.mrb[40].mxu0 %vm26553_vm5, %v10024_v61  ;;  %vm26567_vm5 = vmmov %vm26184_vm0 }
 0x764   : > { %19703 = vmatprep.mubr.msk.f32.mxu0 %vm26554_vm7, %v10025_v48  ;;  %vm26568_vm7 = vmmov %vm26184_vm0 }
 0x767   : > { %19704 = vmatmul.mubr.msk.f32.gmra.mrb[42].mxu0 %vm26555_vm6, %v10026_v60  ;;  %vm26569_vm6 = vmmov %vm26184_vm0 }
 0x768   : > { %19706 = vmatprep.mubr.msk.f32.mxu0 %vm26184_vm0, %v10027_v23 }
 0x76b   : > { %19707 = vmatmul.mubr.msk.f32.gmra.mrb[44].mxu0 %vm26556_vm8, %v10028_v13  ;;  %vm26570_vm8 = vmmov %vm26184_vm0 }
 0x76c   : > { %19709 = vmatprep.mubr.msk.f32.mxu0 %vm26557_vm1, %v10029_v39  ;;  %vm26571_vm1 = vmmov %vm26184_vm0 }
 0x76f   : > { %19710 = vmatmul.mubr.msk.f32.gmra.mrb[46].mxu0 %vm26558_vm14, %v10030_v35  ;;  %vm26572_vm14 = vmmov %vm26184_vm0 }
 0x770   : > { %19714 = vmatprep.mubr.msk.f32.mxu0 %vm26559_vm2, %v10022_v30  ;;  %vm26573_vm2 = vmmov %vm26184_vm0 }
 0x773   : > { %19715 = vmatmul.mubr.msk.f32.vlgmr.msra.gmra.mrb[38].mxu0 %vm26560_vm15, %v10023_v36  ;;  %vm26574_vm15 = vmmov %vm26184_vm0 }
 0x774   : > { %19730 = vmatpush3.msra.mxu0 %v10366_v14  ;;  %19717 = vmatprep.mubr.msk.f32.mxu0 %vm26561_vm11, %v10024_v61  ;;  %vm26575_vm11 = vmmov %vm26184_vm0  ;;  %v26615_v14 = vld [vmem:[#allocation23_spill] sm:$0xff] }
 0x775   : > { %19746 = vmatprep.subr.mxu0 %v10533_v17  ;;  %v24906_v36 = vmul.u32.u64.low 3435973837, %v26615_v14  ;;  %v24907_v61 = vmul.u32.u64.high 3435973837, %v26615_v14, %v24906_v36 }
 0x777   : > { %19718 = vmatmul.mubr.msk.f32.gmra.mrb[40].mxu0 %vm26562_vm3, %v10025_v48  ;;  %vm26576_vm3 = vmmov %vm26184_vm0  ;;  %v9555_v11 = vshrl.u32 %v24907_v61, 3 }
 0x778   : > { %19720 = vmatprep.mubr.msk.f32.mxu0 %vm26563_vm12, %v10026_v60  ;;  %vm26577_vm12 = vmmov %vm26184_vm0  ;;  %v24910_v48 = vmul.u32.u64.low 3435973837, %v22811_v49  ;;  %v24911_v60 = vmul.u32.u64.high 3435973837, %v22811_v49, %v24910_v48 }
 0x77b   : > { %19721 = vmatmul.mubr.msk.f32.gmra.mrb[42].mxu0 %vm26564_vm13, %v10027_v23  ;;  %vm26578_vm13 = vmmov %vm26184_vm0  ;;  %v26616_v23 = vld [vmem:[#allocation24_spill] sm:$0xff] }
 0x77c   : > { %19723 = vmatprep.mubr.msk.f32.mxu0 %vm26565_vm4, %v10028_v13  ;;  %vm26579_vm4 = vmmov %vm26184_vm0  ;;  %v24914_v26 = vmul.u32.u64.low 3435973837, %v26616_v23  ;;  %v24915_v10 = vmul.u32.u64.high 3435973837, %v26616_v23, %v24914_v26  ;;  %v26617_v13 = vld [vmem:[#allocation25_spill] sm:$0xff] }
 0x77f   : > { %19724 = vmatmul.mubr.msk.f32.gmra.mrb[44].mxu0 %vm26566_vm9, %v10029_v39  ;;  %vm26580_vm9 = vmmov %vm26184_vm0 }
 0x780   : > { %19726 = vmatprep.mubr.msk.f32.mxu0 %vm26567_vm5, %v10030_v35  ;;  %vm26581_vm5 = vmmov %vm26184_vm0  ;;  %v24919_v39 = vmul.u32.u64.low 3435973837, %v26617_v13  ;;  %v24920_v35 = vmul.u32.u64.high 3435973837, %v26617_v13, %v24919_v39 }
 0x783   : > { %19727 = vmatmul.mubr.msk.f32.gmra.mrb[46].mxu0 %vm26568_vm7, %v10197_v45  ;;  %vm26582_vm7 = vmmov %vm26184_vm0 }
 0x784   : > { %19731 = vmatprep.mubr.msk.f32.mxu0 %vm26569_vm6, %v10355_v31  ;;  %vm26583_vm6 = vmmov %vm26184_vm0 }
 0x787   : > { %19732 = vmatmul.mubr.msk.f32.vlgmr.msra.gmra.mrb[38].mxu0 %vm26184_vm0, %v10356_v6  ;;  %v9556_v6 = vmul.u32 10, %v9555_v11 }
 0x788   : > { %19747 = vmatpush3.msra.mxu0 %v10533_v17  ;;  %19734 = vmatprep.mubr.msk.f32.mxu0 %vm26570_vm8, %v10357_v22  ;;  %vm26584_vm8 = vmmov %vm26184_vm0  ;;  %v26618_v17 = vld [vmem:[#allocation26_spill] sm:$0xff]  ;;  %v9577_v22 = vshrl.u32 %v24915_v10, 3 }
 0x789   : > { %19763 = vmatprep.subr.mxu0 %v10700_v52  ;;  %v24923_v45 = vmul.u32.u64.low 3435973837, %v26618_v17  ;;  %v24924_v31 = vmul.u32.u64.high 3435973837, %v26618_v17, %v24923_v45 }
 0x78b   : > { %19735 = vmatmul.mubr.msk.f32.gmra.mrb[40].mxu0 %vm26571_vm1, %v10358_v57  ;;  %vm26585_vm1 = vmmov %vm26184_vm0  ;;  %v26619_v57 = vld [vmem:[#allocation27_spill] sm:$0xff] }
 0x78c   : > { %19737 = vmatprep.mubr.msk.f32.mxu0 %vm26572_vm14, %v10359_v41  ;;  %vm26586_vm14 = vmmov %vm26184_vm0 }
 0x78f   : > { %19738 = vmatmul.mubr.msk.f32.gmra.mrb[42].mxu0 %vm26573_vm2, %v10360_v19  ;;  %vm26587_vm2 = vmmov %vm26184_vm0  ;;  %v24929_v41 = vmul.u32.u64.low 3435973837, %v26619_v57  ;;  %v24930_v19 = vmul.u32.u64.high 3435973837, %v26619_v57, %v24929_v41 }
 0x790   : > { %19740 = vmatprep.mubr.msk.f32.mxu0 %vm26574_vm15, %v10361_v18  ;;  %vm26588_vm15 = vmmov %vm26184_vm0  ;;  %v9557_v18 = vsub.s32 %v26615_v14, %v9556_v6 }
 0x793   : > { %19741 = vmatmul.mubr.msk.f32.gmra.mrb[44].mxu0 %vm26575_vm11, %v10362_v16  ;;  %vm26589_vm11 = vmmov %vm26184_vm0 }
 0x794   : > { %19743 = vmatprep.mubr.msk.f32.mxu0 %vm26576_vm3, %v10363_v1  ;;  %vm26590_vm3 = vmmov %vm26184_vm0  ;;  %v9566_v1 = vshrl.u32 %v24920_v35, 3 }
 0x797   : > { %19744 = vmatmul.mubr.msk.f32.gmra.mrb[46].mxu0 %vm26577_vm12, %v10364_v2  ;;  %vm26591_vm12 = vmmov %vm26184_vm0  ;;  %v26620_v2 = vld [vmem:[#allocation28_spill] sm:$0xff] }
 0x798   : > { %19748 = vmatprep.mubr.msk.f32.mxu0 %vm26578_vm13, %v10522_v62  ;;  %vm26592_vm13 = vmmov %vm26184_vm0 }
 0x79b   : > { %19749 = vmatmul.mubr.msk.f32.vlgmr.msra.gmra.mrb[38].mxu0 %vm26579_vm4, %v10523_v47  ;;  %vm26593_vm4 = vmmov %vm26184_vm0 }
 0x79c   : > { %19764 = vmatpush3.msra.mxu0 %v10700_v52  ;;  %19751 = vmatprep.mubr.msk.f32.mxu0 %vm26580_vm9, %v10524_v12  ;;  %vm26594_vm9 = vmmov %vm26184_vm0  ;;  %v9544_v52 = vshrl.u32 %v24911_v60, 3 }
 0x79d   : > { %19780 = vmatprep.subr.mxu0 %v10867_v0 }
 0x79e   : > { %v9545_v16 = vmul.u32 10, %v9544_v52 }
 0x79f   : > { %19752 = vmatmul.mubr.msk.f32.gmra.mrb[40].mxu0 %vm26581_vm5, %v10525_v54  ;;  %vm26595_vm5 = vmmov %vm26184_vm0 }
 0x7a0   : > { %19754 = vmatprep.mubr.msk.f32.mxu0 %vm26582_vm7, %v10526_v32  ;;  %vm26596_vm7 = vmmov %vm26184_vm0 }
 0x7a3   : > { %19755 = vmatmul.mubr.msk.f32.gmra.mrb[42].mxu0 %vm26583_vm6, %v10527_v43  ;;  %vm26597_vm6 = vmmov %vm26184_vm0 }
 0x7a4   : > { %19757 = vmatprep.mubr.msk.f32.mxu0 %vm26184_vm0, %v10528_v46 }
 0x7a7   : > { %19758 = vmatmul.mubr.msk.f32.gmra.mrb[44].mxu0 %vm26584_vm8, %v10529_v3  ;;  %vm26598_vm8 = vmmov %vm26184_vm0 }
 0x7a8   : > { %19760 = vmatprep.mubr.msk.f32.mxu0 %vm26585_vm1, %v10530_v9  ;;  %vm26599_vm1 = vmmov %vm26184_vm0 }
 0x7ab   : > { %19761 = vmatmul.mubr.msk.f32.gmra.mrb[46].mxu0 %vm26586_vm14, %v10531_v5  ;;  %vm26600_vm14 = vmmov %vm26184_vm0 }
 0x7ac   : > { %19765 = vmatprep.mubr.msk.f32.mxu0 %vm26587_vm2, %v10523_v47  ;;  %vm26601_vm2 = vmmov %vm26184_vm0  ;;  %v24935_v62 = vmul.u32.u64.low 3435973837, %v26620_v2  ;;  %v24936_v47 = vmul.u32.u64.high 3435973837, %v26620_v2, %v24935_v62 }
 0x7af   : > { %19766 = vmatmul.mubr.msk.f32.vlgmr.msra.gmra.mrb[38].mxu0 %vm26588_vm15, %v10524_v12  ;;  %vm26602_vm15 = vmmov %vm26184_vm0  ;;  %v26621_v12 = vld [vmem:[#allocation29_spill] sm:$0xff] }
 0x7b0   : > { %19781 = vmatpush3.msra.mxu0 %v10867_v0  ;;  %19768 = vmatprep.mubr.msk.f32.mxu0 %vm26589_vm11, %v10525_v54  ;;  %vm26603_vm11 = vmmov %vm26184_vm0  ;;  %v9599_v0 = vshrl.u32 %v24924_v31, 3 }
 0x7b1   : > { %19797 = vmatprep.subr.mxu0 %v11034_v42 }
 0x7b3   : > { %19769 = vmatmul.mubr.msk.f32.gmra.mrb[40].mxu0 %vm26590_vm3, %v10526_v32  ;;  %vm26604_vm3 = vmmov %vm26184_vm0  ;;  %v24940_v54 = vmul.u32.u64.low 3435973837, %v26621_v12  ;;  %v24941_v32 = vmul.u32.u64.high 3435973837, %v26621_v12, %v24940_v54 }
 0x7b4   : > { %19771 = vmatprep.mubr.msk.f32.mxu0 %vm26591_vm12, %v10527_v43  ;;  %vm26605_vm12 = vmmov %vm26184_vm0  ;;  %v9578_v43 = vmul.u32 10, %v9577_v22 }
 0x7b7   : > { %19772 = vmatmul.mubr.msk.f32.gmra.mrb[42].mxu0 %vm26592_vm13, %v10528_v46  ;;  %vm26606_vm13 = vmmov %vm26184_vm0  ;;  %v9546_v46 = vsub.s32 %v22811_v49, %v9545_v16 }
 0x7b8   : > { %19774 = vmatprep.mubr.msk.f32.mxu0 %vm26593_vm4, %v10529_v3  ;;  %vm26607_vm4 = vmmov %vm26184_vm0  ;;  %v9567_v3 = vmul.u32 10, %v9566_v1 }
 0x7bb   : > { %19775 = vmatmul.mubr.msk.f32.gmra.mrb[44].mxu0 %vm26594_vm9, %v10530_v9  ;;  %vm26608_vm9 = vmmov %vm26184_vm0  ;;  %v9600_v9 = vmul.u32 10, %v9599_v0 }
 0x7bc   : > { %19777 = vmatprep.mubr.msk.f32.mxu0 %vm26595_vm5, %v10531_v5  ;;  %vm26609_vm5 = vmmov %vm26184_vm0  ;;  %v26622_v5 = vld [vmem:[#allocation30_spill] sm:$0xff] }
 0x7bf   : > { %19778 = vmatmul.mubr.msk.f32.gmra.mrb[46].mxu0 %vm26596_vm7, %v10698_v56  ;;  %vm26610_vm7 = vmmov %vm26184_vm0 }
 0x7c0   : > { %19782 = vmatprep.mubr.msk.f32.mxu0 %vm26597_vm6, %v10856_v4  ;;  %vm26611_vm6 = vmmov %vm26184_vm0  ;;  %v9579_v4 = vsub.s32 %v26616_v23, %v9578_v43 }
 0x7c3   : > { %19783 = vmatmul.mubr.msk.f32.vlgmr.msra.gmra.mrb[38].mxu0 %vm26184_vm0, %v10857_v20  ;;  %v9588_v20 = vshrl.u32 %v24930_v19, 3 }
 0x7c4   : > { %19798 = vmatpush3.msra.mxu0 %v11034_v42  ;;  %19785 = vmatprep.mubr.msk.f32.mxu0 %vm26598_vm8, %v10858_v37  ;;  %vm26612_vm8 = vmmov %vm26184_vm0  ;;  %v24945_v42 = vmul.u32.u64.low 3435973837, %v26622_v5  ;;  %v24946_v56 = vmul.u32.u64.high 3435973837, %v26622_v5, %v24945_v42  ;;  %v26623_v37 = vld [vmem:[#allocation31_spill] sm:$0xff] }
 0x7c7   : > { %19786 = vmatmul.mubr.msk.f32.gmra.mrb[40].mxu0 %vm26599_vm1, %v10859_v15  ;;  %vm26613_vm1 = vmmov %vm26184_vm0 }
 0x7c8   : > { %19788 = vmatprep.mubr.msk.f32.mxu0 %vm26600_vm14, %v10860_v63  ;;  %vm26614_vm14 = vmmov %vm26184_vm0  ;;  %v24951_v15 = vmul.u32.u64.low 3435973837, %v26623_v37  ;;  %v24952_v63 = vmul.u32.u64.high 3435973837, %v26623_v37, %v24951_v15 }
 0x7ca   : > { %v9632_v36 = vshrl.u32 %v24952_v63, 3 }
 0x7cb   : > { %19789 = vmatmul.mubr.msk.f32.gmra.mrb[42].mxu0 %vm26601_vm2, %v10861_v27  ;;  %vm9534_vm2 = vcmask 124928   ;;  %v9679_v27 = vadd.s32 10, %v9557_v18 }
 0x7cc   : > { %19791 = vmatprep.mubr.msk.f32.mxu0 %vm26602_vm15, %v10862_v44  ;;  %9535 = vst.msk [vmem:[#allocation5 + $0x8] sm:$0x7] %vm9534_vm2, %v26535_v7  ;;  %9537 = vst.msk [vmem:[#allocation5 + $0x63] sm:$0x7] %vm9534_vm2, %v26535_v7  ;;  %vm9649_vm15 = vcmp.ne.s32.totalorder %v9557_v18, 0  ;;  %v9633_v22 = vmul.u32 10, %v9632_v36 }
 0x7cf   : > { %19792 = vmatmul.mubr.msk.f32.gmra.mrb[44].mxu0 %vm26603_vm11, %v10863_v40  ;;  %vm9659_vm11 = vcmp.lt.s32.totalorder %v9557_v18, 0  ;;  %v24959_v40 = vsub.s32 %v26617_v13, %v9567_v3 }
 0x7d0   : > { %19794 = vmatprep.mubr.msk.f32.mxu0 %vm26604_vm3, %v10864_v25  ;;  %vm24954_vm3 = vmand %vm9659_vm11, %vm9649_vm15  ;;  %v9621_v25 = vshrl.u32 %v24936_v47, 3 }
 0x7d1   : > { %v9680_v48 = vadd.s32 10, %v24959_v40 }
 0x7d3   : > { %19795 = vmatmul.mubr.msk.f32.gmra.mrb[46].mxu0 %vm26605_vm12, %v10865_v51  ;;  %v11269_v30 = vld [vmem:[#allocation5 + $0x1] sm:$0xff]  ;;  %vm9648_vm12 = vcmp.ne.s32.totalorder %v9546_v46, 0  ;;  %v24963_v51 = vsub.s32 %v26618_v17, %v9600_v9 }
 0x7d4   : > { %19799 = vmatprep.mubr.msk.f32.mxu0 %vm26606_vm13, %v11023_v29  ;;  %19818 = vmatprep.mubr.msk.f32.mxu1 %vm9532_vm10, %v11269_v30  ;;  %vm9658_vm13 = vcmp.lt.s32.totalorder %v9546_v46, 0  ;;  %v9610_v29 = vshrl.u32 %v24941_v32, 3 }
 0x7d5   : > { %v9683_v60 = vadd.s32 10, %v24963_v51 }
 0x7d7   : > { %19800 = vmatmul.mubr.msk.f32.vlgmr.msra.gmra.mrb[38].mxu0 %vm26607_vm4, %v11024_v58  ;;  %v9678_v58 = vadd.s32 10, %v9546_v46  ;;  %vm9651_vm4 = vcmp.ne.s32.totalorder %v9579_v4, 0 }
 0x7d8   : > { %19802 = vmatprep.mubr.msk.f32.mxu0 %vm26608_vm9, %v11025_v53  ;;  %vm9661_vm9 = vcmp.lt.s32.totalorder %v9579_v4, 0  ;;  %v9589_v53 = vmul.u32 10, %v9588_v20  ;;  %v11572_v20 = vld [vmem:[#allocation5 + $0x2] sm:$0xff] }
 0x7da   : > { %v24989_v30 = vsub.s32 %v26619_v57, %v9589_v53 }
 0x7db   : > { %19803 = vmatmul.mubr.msk.f32.gmra.mrb[40].mxu0 %vm26609_vm5, %v11026_v24  ;;  %v9689_v24 = vsel %vm24954_vm3, %v9679_v27, %v9557_v18  ;;  %vm24968_vm5 = vmand %vm9658_vm13, %vm9648_vm12 }
 0x7dc   : > { %19805 = vmatprep.mubr.msk.f32.mxu0 %vm26610_vm7, %v11027_v21  ;;  %vm9650_vm7 = vcmp.ne.s32.totalorder %v24959_v40, 0  ;;  %v9688_v28 = vsel %vm24968_vm5, %v9678_v58, %v9546_v46  ;;  %vm24998_vm2 = vcmp.lt.s32.totalorder %v9689_v24, 8  ;;  %vm9652_vm3 = vcmp.ne.s32.totalorder %v24989_v30, 0 }
 0x7dd   : > { %vm25012_vm11 = vcmp.lt.s32.totalorder %v9688_v28, 8  ;;  %vm9662_vm12 = vcmp.lt.s32.totalorder %v24989_v30, 0  ;;  %v25054_v46 = vsub.s32 %v26623_v37, %v9633_v22 }
 0x7de   : > { %vm25040_vm5 = vmand %vm9662_vm12, %vm9652_vm3 }
 0x7df   : > { %19806 = vmatmul.mubr.msk.f32.gmra.mrb[42].mxu0 %vm26611_vm6, %v11028_v38  ;;  %v9681_v38 = vadd.s32 10, %v9579_v4  ;;  %vm9660_vm6 = vcmp.lt.s32.totalorder %v24959_v40, 0  ;;  %vm9666_vm3 = vcmp.lt.s32.totalorder %v25054_v46, 0 }
 0x7e0   : > { %19808 = vmatprep.mubr.msk.f32.mxu0 %vm26184_vm0, %v11029_v8  ;;  %v9622_v8 = vmul.u32 10, %v9621_v25  ;;  %vm24974_vm0 = vmand %vm9661_vm9, %vm9651_vm4 }
 0x7e1   : > { %v9691_v10 = vsel %vm24974_vm0, %v9681_v38, %v9579_v4 }
 0x7e2   : > { %v25009_v39 = vsub.s32 %v26620_v2, %v9622_v8  ;;  %vm25022_vm13 = vcmp.lt.s32.totalorder %v9691_v10, 8  ;;  %v9682_v2 = vadd.s32 10, %v24989_v30 }
 0x7e3   : > { %19809 = vmatmul.mubr.msk.f32.gmra.mrb[44].mxu0 %vm26612_vm8, %v11030_v59  ;;  %vm9653_vm8 = vcmp.ne.s32.totalorder %v24963_v51, 0 }
 0x7e4   : > { %19811 = vmatprep.mubr.msk.f32.mxu0 %vm26613_vm1, %v11031_v34  ;;  %vm9663_vm1 = vcmp.lt.s32.totalorder %v24963_v51, 0  ;;  %v9611_v34 = vmul.u32 10, %v9610_v29  ;;  %vm9655_vm4 = vcmp.ne.s32.totalorder %v25009_v39, 0  ;;  %vm9665_vm9 = vcmp.lt.s32.totalorder %v25009_v39, 0  ;;  %v11584_v29 = vld [vmem:[#allocation12 + $0x28] sm:$0xff] }
 0x7e5   : > { %vm25004_vm15 = vmand %vm9663_vm1, %vm9653_vm8  ;;  %v9685_v9 = vadd.s32 10, %v25009_v39  ;;  %v9692_v4 = vsel %vm25040_vm5, %v9682_v2, %v24989_v30 }
 0x7e6   : > { %v25017_v31 = vsub.s32 %v26621_v12, %v9611_v34  ;;  %v9693_v18 = vsel %vm25004_vm15, %v9683_v60, %v24963_v51  ;;  %vm25069_vm1 = vmand %vm9665_vm9, %vm9655_vm4  ;;  %v11583_v51 = vld [vmem:[#allocation12 + $0x20] sm:$0xff]  ;;  %vm9702_vm12 = vcmp.lt.s32.totalorder %v9692_v4, 8  ;;  %v9686_v34 = vadd.s32 10, %v25054_v46  ;;  %v11751_v12 = vld [vmem:[#allocation12 + $0x30] sm:$0xff] }
 0x7e7   : > { %19812 = vmatmul.mubr.msk.f32.gmra.mrb[46].mxu0 %vm26614_vm14, %v11032_v33  ;;  %v9643_v33 = vshrl.u32 %v24946_v56, 3  ;;  %vm24992_vm14 = vmand %vm9660_vm6, %vm9650_vm7  ;;  %vm25058_vm8 = vcmp.lt.s32.totalorder %v9693_v18, 8  ;;  %v9695_v53 = vsel %vm25069_vm1, %v9685_v9, %v25009_v39  ;;  %v20533_v61 = vpack.c.bf16 %v11584_v29, %v11583_v51 }
 0x7e8   : > { %v9690_v19 = vsel %vm24992_vm14, %v9680_v48, %v24959_v40  ;;  %vm9654_vm7 = vcmp.ne.s32.totalorder %v25017_v31, 0  ;;  %vm9664_vm6 = vcmp.lt.s32.totalorder %v25017_v31, 0  ;;  %v9684_v37 = vadd.s32 10, %v25017_v31 }
 0x7e9   : > { %v9644_v6 = vmul.u32 10, %v9643_v33  ;;  %vm9700_vm0 = vcmp.lt.s32.totalorder %v9690_v19, 8  ;;  %vm25081_vm14 = vmand %vm9664_vm6, %vm9654_vm7  ;;  %vm9705_vm9 = vcmp.lt.s32.totalorder %v9695_v53, 8  ;;  %vm12801_vm1 = vcmask 125952  }
 0x7ea   : > { %v9694_v8 = vsel %vm25081_vm14, %v9684_v37, %v25017_v31  ;;  %vm13790_vm14 = vcmask 261120  }
 0x7eb   : > { %v25046_v54 = vsub.s32 %v26622_v5, %v9644_v6  ;;  %vm9704_vm5 = vcmp.lt.s32.totalorder %v9694_v8, 8  ;;  %v12088_v8 = vld [vmem:[#allocation12 + $0x58] sm:$0xff]  ;;  %14703 = vst.msk [vmem:[#allocation8] sm:$0xff] %vm13790_vm14, %v26535_v7  ;;  %14704 = vst.msk [vmem:[#allocation8 + $0x8] sm:$0xff] %vm13790_vm14, %v26535_v7 }
 0x7ed   : > { %vm9667_vm15 = vcmp.lt.s32.totalorder %v25046_v54, 0  ;;  %v9687_v24 = vadd.s32 10, %v25046_v54 }
 0x8aa   : > { %v19801_v26 = vpop.f32.mrb[38].mxu0 }
 0x8ab   : > { %v11198_v35 = vadd.f32 %v19801_v26, %v24984_v50  ;;  %v11131_v45 = vpop.f32.mrb[39].mxu0 }
 0x8ac   : > { %v11197_v52 = vadd.f32 %v24984_v50, %v11131_v45 }
 0x8ad   : > { %v11208_v57 = vmax.f32 %v11198_v35, 0.0 }
 0x8ae   : > { %v11207_v16 = vmax.f32 %v11197_v52, 0.0  ;;  %v19804_v1 = vpop.f32.mrb[40].mxu0 }
 0x8af   : > { %v11238_v62 = vsel %vm24998_vm2, %v11208_v57, 0.0  ;;  %v11200_v47 = vadd.f32 %v19804_v1, %v24984_v50  ;;  %v11141_v0 = vpop.f32.mrb[41].mxu0  ;;  %vm9657_vm2 = vcmp.ne.s32.totalorder %v25046_v54, 0 }
 0x8b0   : > { %11248 = vst.msk [vmem:[#allocation5 + $0x13] sm:$0xff] %vm9532_vm10, %v11238_v62  ;;  %v11237_v32 = vsel %vm25012_vm11, %v11207_v16, 0.0  ;;  %v11199_v43 = vadd.f32 %v24984_v50, %v11141_v0  ;;  %vm9656_vm11 = vcmp.ne.s32.totalorder %v25054_v46, 0 }
 0x8b1   : > { %11247 = vst.msk [vmem:[#allocation5 + $0xb] sm:$0xff] %vm9532_vm10, %v11237_v32  ;;  %v11210_v3 = vmax.f32 %v11200_v47, 0.0  ;;  %vm25115_vm4 = vmand %vm9666_vm3, %vm9656_vm11  ;;  %v11257_v47 = vld [vmem:[#allocation5] sm:$0xff] }
 0x8b2   : > { %v11209_v5 = vmax.f32 %v11199_v43, 0.0  ;;  %v19807_v56 = vpop.f32.mrb[42].mxu0  ;;  %v9696_v17 = vsel %vm25115_vm4, %v9686_v34, %v25054_v46 }
 0x8b3   : > { %v11240_v15 = vsel %vm25022_vm13, %v11210_v3, 0.0  ;;  %v11202_v63 = vadd.f32 %v19807_v56, %v24984_v50  ;;  %v11151_v27 = vpop.f32.mrb[43].mxu0  ;;  %vm25103_vm13 = vmand %vm9667_vm15, %vm9657_vm2  ;;  %vm9706_vm6 = vcmp.lt.s32.totalorder %v9696_v17, 8  ;;  %v12423_v17 = vld [vmem:[#allocation12 + $0x70] sm:$0xff] }
 0x8b4   : > { %11250 = vst.msk [vmem:[#allocation5 + $0x23] sm:$0xff] %vm9532_vm10, %v11240_v15  ;;  %v11239_v40 = vsel %vm9700_vm0, %v11209_v5, 0.0  ;;  %v11201_v25 = vadd.f32 %v24984_v50, %v11151_v27  ;;  %v9697_v11 = vsel %vm25103_vm13, %v9687_v24, %v25046_v54  ;;  %v11752_v54 = vld [vmem:[#allocation12 + $0x38] sm:$0xff]  ;;  %v11919_v15 = vld [vmem:[#allocation12 + $0x40] sm:$0xff]  ;;  %vm21876_vm0 = vmmov 0  }
 0x8b5   : > { %11249 = vst.msk [vmem:[#allocation5 + $0x1b] sm:$0xff] %vm9532_vm10, %v11239_v40  ;;  %v11212_v58 = vmax.f32 %v11202_v63, 0.0  ;;  %vm9707_vm7 = vcmp.lt.s32.totalorder %v9697_v11, 8  ;;  %v20537_v32 = vpack.c.bf16 %v11752_v54, %v11751_v12  ;;  %v11920_v63 = vld [vmem:[#allocation12 + $0x48] sm:$0xff]  ;;  %19989 = vmatprep.mubr.msk.f32.mxu0 %vm21876_vm0, %v26535_v7 }
 0x8b6   : > { %v11211_v21 = vmax.f32 %v11201_v25, 0.0  ;;  %v19810_v38 = vpop.f32.mrb[44].mxu0  ;;  %v20541_v27 = vpack.c.bf16 %v11920_v63, %v11919_v15 }
 0x8b7   : > { %v11242_v33 = vsel %vm25058_vm8, %v11212_v58, 0.0  ;;  %v11204_v28 = vadd.f32 %v19810_v38, %v24984_v50  ;;  %v11161_v30 = vpop.f32.mrb[45].mxu0  ;;  %v12087_v38 = vld [vmem:[#allocation12 + $0x50] sm:$0xff]  ;;  %vm12789_vm8 = vcmask 128000  }
 0x8b8   : > { %11252 = vst.msk [vmem:[#allocation5 + $0x33] sm:$0xff] %vm9532_vm10, %v11242_v33  ;;  %v11241_v48 = vsel %vm9702_vm12, %v11211_v21, 0.0  ;;  %v11203_v60 = vadd.f32 %v24984_v50, %v11161_v30  ;;  %v11270_v23 = vld [vmem:[#allocation5 + $0x9] sm:$0xff]  ;;  %v11271_v26 = vld [vmem:[#allocation5 + $0x11] sm:$0xff]  ;;  %v20545_v59 = vpack.c.bf16 %v12088_v8, %v12087_v38  ;;  %v17380_v8 = vld [vmem:[%s25873_s8] ss:$0 sm:$0xff] }
 0x8b9   : > { %11251 = vst.msk [vmem:[#allocation5 + $0x2b] sm:$0xff] %vm9532_vm10, %v11241_v48  ;;  %v11214_v10 = vmax.f32 %v11204_v28, 0.0  ;;  %19819 = vmatmul.mubr.msk.f32.vlgmr.msra.gmra.mrb[36].mxu1 %vm9532_vm10, %v11270_v23  ;;  %v11258_v43 = vld [vmem:[#allocation5 + $0x8] sm:$0xff]  ;;  %v11259_v46 = vld [vmem:[#allocation5 + $0x10] sm:$0xff]  ;;  %v12256_v28 = vld [vmem:[#allocation12 + $0x68] sm:$0xff] }
 0x8ba   : > { %v11213_v39 = vmax.f32 %v11203_v60, 0.0  ;;  %20532 = vmatpush3.bf16.msra.mxu1 %v24901_v55  ;;  %v19813_v35 = vpop.f32.mrb[46].mxu0  ;;  %19821 = vmatprep.mubr.msk.f32.mxu1 %vm9532_vm10, %v11271_v26  ;;  %v11573_v44 = vld [vmem:[#allocation5 + $0xa] sm:$0xff]  ;;  %v11574_v40 = vld [vmem:[#allocation5 + $0x12] sm:$0xff]  ;;  %12790 = vst.msk [vmem:[#allocation6 + $0x20] sm:$0x3f] %vm12789_vm8, %v26535_v7 }
 0x8bb   : > { %v11244_v45 = vsel %vm9705_vm9, %v11214_v10, 0.0  ;;  %v11206_v31 = vadd.f32 %v19813_v35, %v24984_v50  ;;  %v11171_v6 = vpop.f32.mrb[47].mxu0  ;;  %20534 = vmatprep.subr.bf16.mxu1 %v20533_v61  ;;  %v12255_v33 = vld [vmem:[#allocation12 + $0x60] sm:$0xff]  ;;  %v11911_v60 = vld [vmem:[#allocation5 + $0x23] sm:$0xff] }
 0x8bc   : > { %11254 = vst.msk [vmem:[#allocation5 + $0x43] sm:$0xff] %vm9532_vm10, %v11244_v45  ;;  %v11243_v52 = vsel %vm9704_vm5, %v11213_v39, 0.0  ;;  %v11205_v22 = vadd.f32 %v24984_v50, %v11171_v6  ;;  %v11272_v57 = vld [vmem:[#allocation5 + $0x19] sm:$0xff]  ;;  %v11273_v55 = vld [vmem:[#allocation5 + $0x21] sm:$0xff]  ;;  %v11908_v30 = vld [vmem:[#allocation5 + $0xb] sm:$0xff]  ;;  %v20549_v36 = vpack.c.bf16 %v12256_v28, %v12255_v33 }
 0x8bd   : > { %11253 = vst.msk [vmem:[#allocation5 + $0x3b] sm:$0xff] %vm9532_vm10, %v11243_v52  ;;  %v11216_v41 = vmax.f32 %v11206_v31, 0.0  ;;  %19822 = vmatmul.mubr.msk.f32.gmra.mrb[38].mxu1 %vm9532_vm10, %v11272_v57  ;;  %v11260_v3 = vld [vmem:[#allocation5 + $0x18] sm:$0xff]  ;;  %v11261_v9 = vld [vmem:[#allocation5 + $0x20] sm:$0xff]  ;;  %v12424_v45 = vld [vmem:[#allocation12 + $0x78] sm:$0xff] }
 0x8be   : > { %v11215_v19 = vmax.f32 %v11205_v22, 0.0  ;;  %19824 = vmatprep.mubr.msk.f32.mxu1 %vm9532_vm10, %v11273_v55  ;;  %v11575_v25 = vld [vmem:[#allocation5 + $0x1a] sm:$0xff]  ;;  %v11576_v51 = vld [vmem:[#allocation5 + $0x22] sm:$0xff]  ;;  %v12076_v31 = vld [vmem:[#allocation5 + $0xc] sm:$0xff]  ;;  %v20553_v6 = vpack.c.bf16 %v12424_v45, %v12423_v17 }
 0x8bf   : > { %v11246_v18 = vsel %vm9707_vm7, %v11216_v41, 0.0  ;;  %v11910_v48 = vld [vmem:[#allocation5 + $0x1b] sm:$0xff]  ;;  %v11913_v26 = vld [vmem:[#allocation5 + $0x33] sm:$0xff] }
 0x8c0   : > { %11256 = vst.msk [vmem:[#allocation5 + $0x53] sm:$0xff] %vm9532_vm10, %v11246_v18  ;;  %v11245_v16 = vsel %vm9706_vm6, %v11215_v19, 0.0  ;;  %v11274_v1 = vld [vmem:[#allocation5 + $0x29] sm:$0xff]  ;;  %v11275_v2 = vld [vmem:[#allocation5 + $0x31] sm:$0xff]  ;;  %v12078_v22 = vld [vmem:[#allocation5 + $0x1c] sm:$0xff] }
 0x8c1   : > { %11255 = vst.msk [vmem:[#allocation5 + $0x4b] sm:$0xff] %vm9532_vm10, %v11245_v16  ;;  %19825 = vmatmul.mubr.msk.f32.gmra.mrb[40].mxu1 %vm9532_vm10, %v11274_v1  ;;  %v11262_v5 = vld [vmem:[#allocation5 + $0x28] sm:$0xff]  ;;  %v11263_v42 = vld [vmem:[#allocation5 + $0x30] sm:$0xff]  ;;  %v12413_v12 = vld [vmem:[#allocation5 + $0x1d] sm:$0xff] }
 0x8c2   : > { %19827 = vmatprep.mubr.msk.f32.mxu1 %vm9532_vm10, %v11275_v2  ;;  %v11577_v29 = vld [vmem:[#allocation5 + $0x2a] sm:$0xff]  ;;  %v11578_v58 = vld [vmem:[#allocation5 + $0x32] sm:$0xff] }
 0x8c3   : > { %v11912_v23 = vld [vmem:[#allocation5 + $0x2b] sm:$0xff]  ;;  %v11915_v11 = vld [vmem:[#allocation5 + $0x43] sm:$0xff]  ;;  %v12077_v52 = vld [vmem:[#allocation5 + $0x14] sm:$0xff] }
 0x8c4   : > { %v11276_v50 = vld [vmem:[#allocation5 + $0x39] sm:$0xff]  ;;  %v11277_v62 = vld [vmem:[#allocation5 + $0x41] sm:$0xff]  ;;  %v12080_v55 = vld [vmem:[#allocation5 + $0x2c] sm:$0xff] }
 0x8c5   : > { %19828 = vmatmul.mubr.msk.f32.gmra.mrb[42].mxu1 %vm9532_vm10, %v11276_v50  ;;  %v11264_v56 = vld [vmem:[#allocation5 + $0x38] sm:$0xff]  ;;  %v11265_v4 = vld [vmem:[#allocation5 + $0x40] sm:$0xff]  ;;  %v12591_v2 = vld [vmem:[#allocation12 + $0x80] sm:$0xff] }
 0x8c6   : > { %19830 = vmatprep.mubr.msk.f32.mxu1 %vm9532_vm10, %v11277_v62  ;;  %v11579_v53 = vld [vmem:[#allocation5 + $0x3a] sm:$0xff]  ;;  %v11580_v24 = vld [vmem:[#allocation5 + $0x42] sm:$0xff] }
 0x8c7   : > { %v11914_v10 = vld [vmem:[#allocation5 + $0x3b] sm:$0xff]  ;;  %v11917_v35 = vld [vmem:[#allocation5 + $0x53] sm:$0xff]  ;;  %v12079_v57 = vld [vmem:[#allocation5 + $0x24] sm:$0xff] }
 0x8c8   : > { %v11278_v0 = vld [vmem:[#allocation5 + $0x49] sm:$0xff]  ;;  %v11749_v34 = vld [vmem:[#allocation5 + $0x52] sm:$0xff]  ;;  %v12082_v19 = vld [vmem:[#allocation5 + $0x3c] sm:$0xff] }
 0x8c9   : > { %19831 = vmatmul.mubr.msk.f32.gmra.mrb[44].mxu1 %vm9532_vm10, %v11278_v0  ;;  %v11266_v37 = vld [vmem:[#allocation5 + $0x48] sm:$0xff]  ;;  %v12081_v41 = vld [vmem:[#allocation5 + $0x34] sm:$0xff]  ;;  %v12585_v63 = vld [vmem:[#allocation5 + $0x3e] sm:$0xff] }
 0x8ca   : > { %19837 = vmatprep.mubr.msk.f32.mxu1 %vm9532_vm10, %v11257_v47  ;;  %v11581_v21 = vld [vmem:[#allocation5 + $0x4a] sm:$0xff]  ;;  %v12085_v1 = vld [vmem:[#allocation5 + $0x54] sm:$0xff]  ;;  %v12253_v47 = vld [vmem:[#allocation5 + $0x5c] sm:$0xff] }
 0x8cb   : > { %v11916_v39 = vld [vmem:[#allocation5 + $0x4b] sm:$0xff]  ;;  %v12592_v50 = vld [vmem:[#allocation12 + $0x88] sm:$0xff] }
 0x8cc   : > { %v12083_v18 = vld [vmem:[#allocation5 + $0x44] sm:$0xff]  ;;  %v12084_v16 = vld [vmem:[#allocation5 + $0x4c] sm:$0xff]  ;;  %v20557_v62 = vpack.c.bf16 %v12592_v50, %v12591_v2  ;;  %v12412_v0 = vld [vmem:[#allocation5 + $0x15] sm:$0xff] }
 0x8cd   : > { %19838 = vmatmul.mubr.msk.f32.vlgmr.msra.gmra.mrb[36].mxu1 %vm9532_vm10, %v11258_v43  ;;  %v12414_v54 = vld [vmem:[#allocation5 + $0x25] sm:$0xff]  ;;  %v12416_v43 = vld [vmem:[#allocation5 + $0x35] sm:$0xff] }
 0x8ce   : > { %20536 = vmatpush3.bf16.msra.mxu1 %v20533_v61  ;;  %19840 = vmatprep.mubr.msk.f32.mxu1 %vm9532_vm10, %v11259_v46  ;;  %v11909_v61 = vld [vmem:[#allocation5 + $0x13] sm:$0xff]  ;;  %v12417_v46 = vld [vmem:[#allocation5 + $0x3d] sm:$0xff] }
 0x8cf   : > { %20538 = vmatprep.subr.bf16.mxu1 %v20537_v32  ;;  %v12584_v15 = vld [vmem:[#allocation5 + $0x36] sm:$0xff] }
 0x8d1   : > { %19841 = vmatmul.mubr.msk.f32.gmra.mrb[38].mxu1 %vm9532_vm10, %v11260_v3  ;;  %v12418_v3 = vld [vmem:[#allocation5 + $0x45] sm:$0xff] }
 0x8d2   : > { %19843 = vmatprep.mubr.msk.f32.mxu1 %vm9532_vm10, %v11261_v9  ;;  %v12419_v9 = vld [vmem:[#allocation5 + $0x4d] sm:$0xff] }
 0x8d5   : > { %19844 = vmatmul.mubr.msk.f32.gmra.mrb[40].mxu1 %vm9532_vm10, %v11262_v5  ;;  %v12420_v5 = vld [vmem:[#allocation5 + $0x55] sm:$0xff] }
 0x8d6   : > { %19846 = vmatprep.mubr.msk.f32.mxu1 %vm9532_vm10, %v11263_v42  ;;  %v12421_v42 = vld [vmem:[#allocation5 + $0x5d] sm:$0xff] }
 0x8d9   : > { %19847 = vmatmul.mubr.msk.f32.gmra.mrb[42].mxu1 %vm9532_vm10, %v11264_v56  ;;  %v12580_v56 = vld [vmem:[#allocation5 + $0x16] sm:$0xff] }
 0x8da   : > { %19849 = vmatprep.mubr.msk.f32.mxu1 %vm9532_vm10, %v11265_v4  ;;  %v12581_v4 = vld [vmem:[#allocation5 + $0x1e] sm:$0xff] }
 0x8dd   : > { %19850 = vmatmul.mubr.msk.f32.gmra.mrb[44].mxu1 %vm9532_vm10, %v11266_v37  ;;  %v12583_v37 = vld [vmem:[#allocation5 + $0x2e] sm:$0xff] }
 0x8de   : > { %19856 = vmatprep.mubr.msk.f32.mxu1 %vm9532_vm10, %v11572_v20  ;;  %v12582_v20 = vld [vmem:[#allocation5 + $0x26] sm:$0xff] }
 0x8e1   : > { %19857 = vmatmul.mubr.msk.f32.vlgmr.msra.gmra.mrb[36].mxu1 %vm9532_vm10, %v11573_v44 }
 0x8e2   : > { %20540 = vmatpush3.bf16.msra.mxu1 %v20537_v32  ;;  %19859 = vmatprep.mubr.msk.f32.mxu1 %vm9532_vm10, %v11574_v40  ;;  %v12415_v32 = vld [vmem:[#allocation5 + $0x2d] sm:$0xff] }
 0x8e3   : > { %20542 = vmatprep.subr.bf16.mxu1 %v20541_v27 }
 0x8e5   : > { %19860 = vmatmul.mubr.msk.f32.gmra.mrb[38].mxu1 %vm9532_vm10, %v11575_v25 }
 0x8e6   : > { %19862 = vmatprep.mubr.msk.f32.mxu1 %vm9532_vm10, %v11576_v51 }
 0x8e9   : > { %19863 = vmatmul.mubr.msk.f32.gmra.mrb[40].mxu1 %vm9532_vm10, %v11577_v29 }
 0x8ea   : > { %19865 = vmatprep.mubr.msk.f32.mxu1 %vm9532_vm10, %v11578_v58 }
 0x8ed   : > { %19866 = vmatmul.mubr.msk.f32.gmra.mrb[42].mxu1 %vm9532_vm10, %v11579_v53 }
 0x8ee   : > { %19868 = vmatprep.mubr.msk.f32.mxu1 %vm9532_vm10, %v11580_v24 }
 0x8f1   : > { %19869 = vmatmul.mubr.msk.f32.gmra.mrb[44].mxu1 %vm9532_vm10, %v11581_v21 }
 0x8f2   : > { %19875 = vmatprep.mubr.msk.f32.mxu1 %vm9532_vm10, %v11573_v44  ;;  %v12587_v44 = vld [vmem:[#allocation5 + $0x4e] sm:$0xff] }
 0x8f5   : > { %19876 = vmatmul.mubr.msk.f32.vlgmr.msra.gmra.mrb[36].mxu1 %vm9532_vm10, %v11574_v40  ;;  %v12588_v40 = vld [vmem:[#allocation5 + $0x56] sm:$0xff] }
 0x8f6   : > { %20544 = vmatpush3.bf16.msra.mxu1 %v20541_v27  ;;  %19878 = vmatprep.mubr.msk.f32.mxu1 %vm9532_vm10, %v11575_v25  ;;  %v12586_v27 = vld [vmem:[#allocation5 + $0x46] sm:$0xff]  ;;  %v12589_v25 = vld [vmem:[#allocation5 + $0x5e] sm:$0xff] }
 0x8f7   : > { %20546 = vmatprep.subr.bf16.mxu1 %v20545_v59 }
 0x8f9   : > { %19879 = vmatmul.mubr.msk.f32.gmra.mrb[38].mxu1 %vm9532_vm10, %v11576_v51  ;;  %v12902_v51 = vld [vmem:[#allocation14 + $0x10] sm:$0xff] }
 0x8fa   : > { %19881 = vmatprep.mubr.msk.f32.mxu1 %vm9532_vm10, %v11577_v29  ;;  %v12903_v29 = vld [vmem:[#allocation14 + $0x18] sm:$0xff] }
 0x8fd   : > { %19882 = vmatmul.mubr.msk.f32.gmra.mrb[40].mxu1 %vm9532_vm10, %v11578_v58  ;;  %v21875_v58 = vmov 0.0|0.0  }
 0x8fe   : > { %19884 = vmatprep.mubr.msk.f32.mxu1 %vm9532_vm10, %v11579_v53  ;;  %20561 = vmatprep.subr.bf16.mxu0 %v21875_v58  ;;  %v20562_v53 = vpack.c.bf16 %v12903_v29, %v12902_v51 }
 0x900   : > { %20563 = vmatpush3.bf16.msra.mxu0 %v20562_v53 }
 0x901   : > { %19885 = vmatmul.mubr.msk.f32.gmra.mrb[42].mxu1 %vm9532_vm10, %v11580_v24  ;;  %20567 = vmatprep.subr.bf16.mxu0 %v21875_v58  ;;  %v12896_v24 = vld [vmem:[#allocation14] sm:$0xff] }
 0x902   : > { %19887 = vmatprep.mubr.msk.f32.mxu1 %vm9532_vm10, %v11581_v21  ;;  %v12897_v21 = vld [vmem:[#allocation14 + $0x8] sm:$0xff] }
 0x903   : > { %v20565_v38 = vpack.c.bf16 %v12897_v21, %v12896_v24 }
 0x905   : > { %19888 = vmatmul.mubr.msk.f32.gmra.mrb[44].mxu1 %vm9532_vm10, %v11749_v34 }
 0x906   : > { %19894 = vmatprep.mubr.msk.f32.mxu1 %vm9532_vm10, %v11908_v30 }
 0x909   : > { %19895 = vmatmul.mubr.msk.f32.vlgmr.msra.gmra.mrb[36].mxu1 %vm9532_vm10, %v11909_v61 }
 0x90a   : > { %20548 = vmatpush3.bf16.msra.mxu1 %v20545_v59  ;;  %19897 = vmatprep.mubr.msk.f32.mxu1 %vm9532_vm10, %v11910_v48 }
 0x90b   : > { %20550 = vmatprep.subr.bf16.mxu1 %v20549_v36 }
 0x90d   : > { %19898 = vmatmul.mubr.msk.f32.gmra.mrb[38].mxu1 %vm9532_vm10, %v11911_v60 }
 0x90e   : > { %19900 = vmatprep.mubr.msk.f32.mxu1 %vm9532_vm10, %v11912_v23 }
 0x911   : > { %19901 = vmatmul.mubr.msk.f32.gmra.mrb[40].mxu1 %vm9532_vm10, %v11913_v26 }
 0x912   : > { %19903 = vmatprep.mubr.msk.f32.mxu1 %vm9532_vm10, %v11914_v10 }
 0x915   : > { %19904 = vmatmul.mubr.msk.f32.gmra.mrb[42].mxu1 %vm9532_vm10, %v11915_v11 }
 0x916   : > { %19906 = vmatprep.mubr.msk.f32.mxu1 %vm9532_vm10, %v11916_v39 }
 0x919   : > { %19907 = vmatmul.mubr.msk.f32.gmra.mrb[44].mxu1 %vm9532_vm10, %v11917_v35 }
 0x91a   : > { %19913 = vmatprep.mubr.msk.f32.mxu1 %vm9532_vm10, %v12076_v31 }
 0x91d   : > { %19914 = vmatmul.mubr.msk.f32.vlgmr.msra.gmra.mrb[36].mxu1 %vm9532_vm10, %v12077_v52 }
 0x91e   : > { %20552 = vmatpush3.bf16.msra.mxu1 %v20549_v36  ;;  %19916 = vmatprep.mubr.msk.f32.mxu1 %vm9532_vm10, %v12078_v22 }
 0x91f   : > { %20554 = vmatprep.subr.bf16.mxu1 %v20553_v6 }
 0x921   : > { %19917 = vmatmul.mubr.msk.f32.gmra.mrb[38].mxu1 %vm9532_vm10, %v12079_v57 }
 0x922   : > { %19919 = vmatprep.mubr.msk.f32.mxu1 %vm9532_vm10, %v12080_v55 }
 0x925   : > { %19920 = vmatmul.mubr.msk.f32.gmra.mrb[40].mxu1 %vm9532_vm10, %v12081_v41 }
 0x926   : > { %19922 = vmatprep.mubr.msk.f32.mxu1 %vm9532_vm10, %v12082_v19 }
 0x929   : > { %19923 = vmatmul.mubr.msk.f32.gmra.mrb[42].mxu1 %vm9532_vm10, %v12083_v18 }
 0x92a   : > { %19925 = vmatprep.mubr.msk.f32.mxu1 %vm9532_vm10, %v12084_v16 }
 0x92d   : > { %19926 = vmatmul.mubr.msk.f32.gmra.mrb[44].mxu1 %vm9532_vm10, %v12085_v1 }
 0x92e   : > { %19932 = vmatprep.mubr.msk.f32.mxu1 %vm9532_vm10, %v12077_v52 }
 0x931   : > { %19933 = vmatmul.mubr.msk.f32.vlgmr.msra.gmra.mrb[36].mxu1 %vm9532_vm10, %v12078_v22 }
 0x932   : > { %20556 = vmatpush3.bf16.msra.mxu1 %v20553_v6  ;;  %19935 = vmatprep.mubr.msk.f32.mxu1 %vm9532_vm10, %v12079_v57 }
 0x933   : > { %20558 = vmatprep.subr.bf16.mxu1 %v20557_v62 }
 0x935   : > { %19936 = vmatmul.mubr.msk.f32.gmra.mrb[38].mxu1 %vm9532_vm10, %v12080_v55 }
 0x936   : > { %19938 = vmatprep.mubr.msk.f32.mxu1 %vm9532_vm10, %v12081_v41 }
 0x939   : > { %19939 = vmatmul.mubr.msk.f32.gmra.mrb[40].mxu1 %vm9532_vm10, %v12082_v19 }
 0x93a   : > { %19941 = vmatprep.mubr.msk.f32.mxu1 %vm9532_vm10, %v12083_v18 }
 0x93d   : > { %19942 = vmatmul.mubr.msk.f32.gmra.mrb[42].mxu1 %vm9532_vm10, %v12084_v16 }
 0x93e   : > { %19944 = vmatprep.mubr.msk.f32.mxu1 %vm9532_vm10, %v12085_v1 }
 0x941   : > { %19945 = vmatmul.mubr.msk.f32.gmra.mrb[44].mxu1 %vm9532_vm10, %v12253_v47 }
 0x942   : > { %19951 = vmatprep.mubr.msk.f32.mxu1 %vm9532_vm10, %v12412_v0 }
 0x945   : > { %19952 = vmatmul.mubr.msk.f32.vlgmr.msra.gmra.mrb[36].mxu1 %vm9532_vm10, %v12413_v12 }
 0x946   : > { %20560 = vmatpush3.bf16.msra.mxu1 %v20557_v62  ;;  %19954 = vmatprep.mubr.msk.f32.mxu1 %vm9532_vm10, %v12414_v54 }
 0x947   : > { %20564 = vmatprep.subr.bf16.mxu1 %v21875_v58 }
 0x949   : > { %19955 = vmatmul.mubr.msk.f32.gmra.mrb[38].mxu1 %vm9532_vm10, %v12415_v32 }
 0x94a   : > { %19957 = vmatprep.mubr.msk.f32.mxu1 %vm9532_vm10, %v12416_v43 }
 0x94d   : > { %19958 = vmatmul.mubr.msk.f32.gmra.mrb[40].mxu1 %vm9532_vm10, %v12417_v46 }
 0x94e   : > { %19960 = vmatprep.mubr.msk.f32.mxu1 %vm9532_vm10, %v12418_v3 }
 0x951   : > { %19961 = vmatmul.mubr.msk.f32.gmra.mrb[42].mxu1 %vm9532_vm10, %v12419_v9 }
 0x952   : > { %19963 = vmatprep.mubr.msk.f32.mxu1 %vm9532_vm10, %v12420_v5 }
 0x955   : > { %19964 = vmatmul.mubr.msk.f32.gmra.mrb[44].mxu1 %vm9532_vm10, %v12421_v42 }
 0x956   : > { %19970 = vmatprep.mubr.msk.f32.mxu1 %vm9532_vm10, %v12580_v56 }
 0x959   : > { %19971 = vmatmul.mubr.msk.f32.vlgmr.msra.gmra.mrb[36].mxu1 %vm9532_vm10, %v12581_v4 }
 0x95a   : > { %19973 = vmatprep.mubr.msk.f32.mxu1 %vm9532_vm10, %v12582_v20  ;;  %20566 = vmatpush3.bf16.msra.mxu1 %v20565_v38  ;;  %v13086_v20 = vld [vmem:[#allocation14 + $0x20] sm:$0xff] }
 0x95b   : > { %20570 = vmatprep.subr.bf16.mxu1 %v21875_v58 }
 0x95d   : > { %19974 = vmatmul.mubr.msk.f32.gmra.mrb[38].mxu1 %vm9532_vm10, %v12583_v37  ;;  %v13087_v37 = vld [vmem:[#allocation14 + $0x28] sm:$0xff] }
 0x95e   : > { %19976 = vmatprep.mubr.msk.f32.mxu1 %vm9532_vm10, %v12584_v15  ;;  %v13184_v15 = vld [vmem:[#allocation14 + $0x30] sm:$0xff] }
 0x961   : > { %19977 = vmatmul.mubr.msk.f32.gmra.mrb[40].mxu1 %vm9532_vm10, %v12585_v63  ;;  %v13185_v63 = vld [vmem:[#allocation14 + $0x38] sm:$0xff] }
 0x962   : > { %19979 = vmatprep.mubr.msk.f32.mxu1 %vm9532_vm10, %v12586_v27  ;;  %v20571_v29 = vpack.c.bf16 %v13185_v63, %v13184_v15  ;;  %v13797_v15 = vld [vmem:[#allocation15] sm:$0xff]  ;;  %v13798_v63 = vld [vmem:[#allocation15 + $0x8] sm:$0xff] }
 0x965   : > { %19980 = vmatmul.mubr.msk.f32.gmra.mrb[42].mxu1 %vm9532_vm10, %v12587_v44 }
 0x966   : > { %19982 = vmatprep.mubr.msk.f32.mxu1 %vm9532_vm10, %v12588_v40  ;;  %v20568_v40 = vpack.c.bf16 %v13087_v37, %v13086_v20  ;;  %v13806_v20 = vld [vmem:[#allocation15 + $0x28] sm:$0xff] }
 0x969   : > { %19983 = vmatmul.mubr.msk.f32.gmra.mrb[44].mxu1 %vm9532_vm10, %v12589_v25 }
 0x96a   : > { %20002 = vmatprep.mubr.msk.f32.mxu1 %vm21876_vm0, %v26535_v7 }
 0xa2c   : > { %v19972_v59 = vpop.f32.mrb[36].mxu1 }
 0xa2d   : > { %v12756_v34 = vadd.f32 %v19972_v59, %v17380_v8  ;;  %v12689_v33 = vpop.f32.mrb[37].mxu1 }
 0xa2e   : > { %v12755_v28 = vadd.f32 %v17380_v8, %v12689_v33 }
 0xa2f   : > { %v12766_v30 = vmax.f32 %v12756_v34, 0.0 }
 0xa30   : > { %v12765_v36 = vmax.f32 %v12755_v28, 0.0  ;;  %v19975_v61 = vpop.f32.mrb[38].mxu1 }
 0xa31   : > { %12776 = vst.msk [vmem:[%s25240_s24 + $0x8] sm:$0xff] %vm9532_vm10, %v12766_v30  ;;  %v12758_v48 = vadd.f32 %v19975_v61, %v17380_v8  ;;  %v12699_v60 = vpop.f32.mrb[39].mxu1 }
 0xa32   : > { %12775 = vst.msk [vmem:[%s25240_s24] sm:$0xff] %vm9532_vm10, %v12765_v36  ;;  %v12757_v23 = vadd.f32 %v17380_v8, %v12699_v60 }
 0xa33   : > { %v12768_v26 = vmax.f32 %v12758_v48, 0.0 }
 0xa34   : > { %v12767_v10 = vmax.f32 %v12757_v23, 0.0  ;;  %v19978_v11 = vpop.f32.mrb[40].mxu1  ;;  %v13282_v23 = vld [vmem:[#allocation14 + $0x40] sm:$0xff] }
 0xa35   : > { %12778 = vst.msk [vmem:[%s25240_s24 + $0x18] sm:$0xff] %vm9532_vm10, %v12768_v26  ;;  %v12760_v39 = vadd.f32 %v19978_v11, %v17380_v8  ;;  %v12709_v35 = vpop.f32.mrb[41].mxu1  ;;  %v13283_v26 = vld [vmem:[#allocation14 + $0x48] sm:$0xff] }
 0xa36   : > { %12777 = vst.msk [vmem:[%s25240_s24 + $0x10] sm:$0xff] %vm9532_vm10, %v12767_v10  ;;  %v12759_v17 = vadd.f32 %v17380_v8, %v12709_v35  ;;  %v13380_v10 = vld [vmem:[#allocation14 + $0x50] sm:$0xff]  ;;  %v13381_v35 = vld [vmem:[#allocation14 + $0x58] sm:$0xff] }
 0xa37   : > { %v12770_v45 = vmax.f32 %v12760_v39, 0.0 }
 0xa38   : > { %v12769_v31 = vmax.f32 %v12759_v17, 0.0  ;;  %v19981_v6 = vpop.f32.mrb[42].mxu1  ;;  %v20574_v17 = vpack.c.bf16 %v13283_v26, %v13282_v23 }
 0xa39   : > { %12780 = vst.msk [vmem:[%s25240_s24 + $0x28] sm:$0xff] %vm9532_vm10, %v12770_v45  ;;  %v12762_v52 = vadd.f32 %v19981_v6, %v17380_v8  ;;  %v12791_v22 = vld [vmem:[%s25240_s24] ss:$2 sm:$0xf]  ;;  %v12719_v57 = vpop.f32.mrb[43].mxu1  ;;  %v20577_v45 = vpack.c.bf16 %v13381_v35, %v13380_v10 }
 0xa3a   : > { %12779 = vst.msk [vmem:[%s25240_s24 + $0x20] sm:$0xff] %vm9532_vm10, %v12769_v31  ;;  %v17381_v55 = vld [vmem:[%s25240_s24 + $0x1] ss:$2 sm:$0xf]  ;;  %v12761_v19 = vadd.f32 %v17380_v8, %v12719_v57  ;;  %v13478_v57 = vld [vmem:[#allocation14 + $0x60] sm:$0xff] }
 0xa3b   : > { %v12772_v41 = vmax.f32 %v12762_v52, 0.0  ;;  %v12798_v50 = vmax.f32 %v12791_v22, %v17381_v55  ;;  %v13479_v55 = vld [vmem:[#allocation14 + $0x68] sm:$0xff] }
 0xa3c   : > { %v19984_v18 = vpop.f32.mrb[44].mxu1  ;;  %v12771_v12 = vmax.f32 %v12761_v19, 0.0 }
 0xa3d   : > { %v17382_v16 = vld [vmem:[%s25240_s24 + $0xa] ss:$2 sm:$0xf]  ;;  %v17383_v1 = vld [vmem:[%s25240_s24 + $0xb] ss:$2 sm:$0xf]  ;;  %v12764_v2 = vadd.f32 %v19984_v18, %v17380_v8 }
 0xa3e   : > { %12782 = vst.msk [vmem:[%s25240_s24 + $0x38] sm:$0xff] %vm9532_vm10, %v12772_v41  ;;  %v12799_v62 = vmax.f32 %v17382_v16, %v17383_v1  ;;  %v17384_v47 = vld [vmem:[%s25240_s24 + $0x14] ss:$2 sm:$0xf]  ;;  %v12729_v32 = vpop.f32.mrb[45].mxu1  ;;  %12781 = vst.msk [vmem:[%s25240_s24 + $0x30] sm:$0xff] %vm9532_vm10, %v12771_v12  ;;  %v20580_v1 = vpack.c.bf16 %v13479_v55, %v13478_v57 }
 0xa3f   : > { %v17385_v0 = vld [vmem:[%s25240_s24 + $0x15] ss:$2 sm:$0xf]  ;;  %v12774_v54 = vmax.f32 %v12764_v2, 0.0  ;;  %v12763_v46 = vadd.f32 %v17380_v8, %v12729_v32  ;;  %v13576_v41 = vld [vmem:[#allocation14 + $0x70] sm:$0xff] }
 0xa40   : > { %v12800_v43 = vmax.f32 %v12798_v50, %v12799_v62  ;;  %v12811_v5 = vmax.f32 %v17384_v47, %v17385_v0  ;;  %v17388_v27 = vld [vmem:[%s25240_s24 + $0x28] ss:$2 sm:$0xf]  ;;  %v17389_v44 = vld [vmem:[%s25240_s24 + $0x29] ss:$2 sm:$0xf] }
 0xa41   : > { %v17386_v3 = vld [vmem:[%s25240_s24 + $0x1e] ss:$2 sm:$0xf]  ;;  %v17387_v9 = vld [vmem:[%s25240_s24 + $0x1f] ss:$2 sm:$0xf]  ;;  %v12823_v53 = vmax.f32 %v17388_v27, %v17389_v44  ;;  %v20595_v44 = vpack.c.bf16 %v13798_v63, %v13797_v15 }
 0xa42   : > { %12784 = vst.msk [vmem:[%s25240_s24 + $0x48] sm:$0xff] %vm9532_vm10, %v12774_v54  ;;  %v12812_v42 = vmax.f32 %v17386_v3, %v17387_v9  ;;  %v12773_v56 = vmax.f32 %v12763_v46, 0.0  ;;  %v13577_v16 = vld [vmem:[#allocation14 + $0x78] sm:$0xff]  ;;  %v13674_v47 = vld [vmem:[#allocation14 + $0x80] sm:$0xff]  ;;  %v13675_v0 = vld [vmem:[#allocation14 + $0x88] sm:$0xff] }
 0xa43   : > { %12802 = vst.msk [vmem:[#allocation6 + $0x7] sm:$0xf] %vm12801_vm1, %v12800_v43  ;;  %v20583_v2 = vpack.c.bf16 %v13577_v16, %v13576_v41  ;;  %v20586_v32 = vpack.c.bf16 %v13675_v0, %v13674_v47  ;;  %v13807_v27 = vld [vmem:[#allocation15 + $0x30] sm:$0xff]  ;;  %v25390_v15 = vmul.u32.u64.low 2863311531, %v26617_v13  ;;  %v25391_v63 = vmul.u32.u64.high 2863311531, %v26617_v13, %v25390_v15 }
 0xa44   : > { %v12813_v4 = vmax.f32 %v12811_v5, %v12812_v42  ;;  %12783 = vst.msk [vmem:[%s25240_s24 + $0x40] sm:$0xff] %vm9532_vm10, %v12773_v56  ;;  %v13574_v5 = vld [vmem:[#allocation6 + $0x1d] sm:$0xff] }
 0xa45   : > { %v17390_v25 = vld [vmem:[%s25240_s24 + $0x32] ss:$2 sm:$0xf]  ;;  %v17391_v51 = vld [vmem:[%s25240_s24 + $0x33] ss:$2 sm:$0xf] }
 0xa46   : > { %12814 = vst.msk [vmem:[#allocation6 + $0xd] sm:$0xf] %vm12801_vm1, %v12813_v4  ;;  %v12824_v24 = vmax.f32 %v17390_v25, %v17391_v51  ;;  %v13672_v56 = vld [vmem:[#allocation6 + $0x1e] sm:$0xff]  ;;  %v13805_v4 = vld [vmem:[#allocation15 + $0x20] sm:$0xff] }
 0xa47   : > { %v20589_v37 = vpack.c.bf16 %v13806_v20, %v13805_v4  ;;  %v13799_v25 = vld [vmem:[#allocation15 + $0x10] sm:$0xff]  ;;  %v13800_v51 = vld [vmem:[#allocation15 + $0x18] sm:$0xff] }
 0xa48   : > { %v12825_v34 = vmax.f32 %v12823_v53, %v12824_v24  ;;  %v20598_v53 = vpack.c.bf16 %v13800_v51, %v13799_v25 }
 0xa4a   : > { %v12898_v21 = vld [vmem:[#allocation6 + $0x1] sm:$0xff]  ;;  %12826 = vst.msk [vmem:[#allocation6 + $0x13] sm:$0xf] %vm12801_vm1, %v12825_v34 }
 0xa4b   : > { %v12893_v38 = vld [vmem:[#allocation6] sm:$0xff]  ;;  %19990 = vmatmul.mubr.msk.f32.vlgmr.msra.gmra.mrb[48].mxu0 %vm9532_vm10, %v12898_v21 }
 0xa4c   : > { %20003 = vmatmul.mubr.msk.f32.vlgmr.msra.gmra.mrb[46].mxu1 %vm9532_vm10, %v12893_v38  ;;  %v17392_v8 = vld [vmem:[%s25240_s24 + $0x3c] ss:$2 sm:$0xf]  ;;  %v17393_v59 = vld [vmem:[%s25240_s24 + $0x3d] ss:$2 sm:$0xf]  ;;  %20569 = vmatpush3.bf16.msra.mxu0 %v20568_v40 }
 0xa4d   : > { %19992 = vmatprep.mubr.msk.f32.mxu0 %vm21876_vm0, %v26535_v7  ;;  %v17394_v33 = vld [vmem:[%s25240_s24 + $0x46] ss:$2 sm:$0xf]  ;;  %v17395_v28 = vld [vmem:[%s25240_s24 + $0x47] ss:$2 sm:$0xf]  ;;  %v12835_v30 = vmax.f32 %v17392_v8, %v17393_v59  ;;  %20005 = vmatprep.mubr.msk.f32.mxu1 %vm21876_vm0, %v26535_v7 }
 0xa4e   : > { %20572 = vmatpush3.bf16.msra.mxu1 %v20571_v29  ;;  %v12836_v36 = vmax.f32 %v17394_v33, %v17395_v28  ;;  %v12899_v61 = vld [vmem:[#allocation6 + $0x9] sm:$0xff]  ;;  %20573 = vmatprep.subr.bf16.mxu0 %v21875_v58  ;;  %v13808_v40 = vld [vmem:[#allocation15 + $0x38] sm:$0xff] }
 0xa4f   : > { %v12894_v48 = vld [vmem:[#allocation6 + $0x8] sm:$0xff]  ;;  %20576 = vmatprep.subr.bf16.mxu1 %v21875_v58  ;;  %19993 = vmatmul.mubr.msk.f32.gmra.mrb[50].mxu0 %vm9532_vm10, %v12899_v61  ;;  %v20592_v29 = vpack.c.bf16 %v13808_v40, %v13807_v27 }
 0xa50   : > { %20006 = vmatmul.mubr.msk.f32.gmra.mrb[48].mxu1 %vm9532_vm10, %v12894_v48  ;;  %19995 = vmatprep.mubr.msk.f32.mxu0 %vm21876_vm0, %v26535_v7  ;;  %v12837_v60 = vmax.f32 %v12835_v30, %v12836_v36  ;;  %v13082_v31 = vld [vmem:[#allocation6 + $0x2] sm:$0xff]  ;;  %v13083_v52 = vld [vmem:[#allocation6 + $0xa] sm:$0xff] }
 0xa51   : > { %20008 = vmatprep.mubr.msk.f32.mxu1 %vm21876_vm0, %v26535_v7  ;;  %v12900_v11 = vld [vmem:[#allocation6 + $0x11] sm:$0xff]  ;;  %v13180_v6 = vld [vmem:[#allocation6 + $0x6] sm:$0xff] }
 0xa52   : > { %12838 = vst.msk [vmem:[#allocation6 + $0x19] sm:$0xf] %vm12801_vm1, %v12837_v60  ;;  %v12895_v39 = vld [vmem:[#allocation6 + $0x10] sm:$0xff]  ;;  %v13278_v50 = vld [vmem:[#allocation6 + $0x7] sm:$0xff]  ;;  %vm14705_vm1 = vcmask 254976  }
 0xa53   : > { %19996 = vmatmul.mubr.msk.f32.gmra.mrb[52].mxu0 %vm9532_vm10, %v12900_v11  ;;  %v13181_v22 = vld [vmem:[#allocation6 + $0xe] sm:$0xff]  ;;  %14706 = vst.msk [vmem:[#allocation8 + $0x10] sm:$0x3] %vm14705_vm1, %v26535_v7 }
 0xa54   : > { %20009 = vmatmul.mubr.msk.f32.gmra.mrb[50].mxu1 %vm9532_vm10, %v12895_v39  ;;  %20015 = vmatprep.mubr.msk.f32.mxu0 %vm21876_vm0, %v26535_v7  ;;  %v13279_v62 = vld [vmem:[#allocation6 + $0xf] sm:$0xff] }
 0xa55   : > { %20028 = vmatprep.mubr.msk.f32.mxu1 %vm21876_vm0, %v26535_v7  ;;  %v13474_v43 = vld [vmem:[#allocation6 + $0xc] sm:$0xff] }
 0xa56   : > { %v13572_v46 = vld [vmem:[#allocation6 + $0xd] sm:$0xff] }
 0xa57   : > { %20016 = vmatmul.mubr.msk.f32.vlgmr.msra.gmra.mrb[54].mxu0 %vm9532_vm10, %v13082_v31 }
 0xa58   : > { %20029 = vmatmul.mubr.msk.f32.vlgmr.msra.gmra.mrb[52].mxu1 %vm9532_vm10, %v13180_v6  ;;  %20575 = vmatpush3.bf16.msra.mxu0 %v20574_v17 }
 0xa59   : > { %20018 = vmatprep.mubr.msk.f32.mxu0 %vm21876_vm0, %v26535_v7  ;;  %20031 = vmatprep.mubr.msk.f32.mxu1 %vm21876_vm0, %v26535_v7  ;;  %v13084_v19 = vld [vmem:[#allocation6 + $0x12] sm:$0xff]  ;;  %v13476_v42 = vld [vmem:[#allocation6 + $0x1c] sm:$0xff] }
 0xa5a   : > { %20578 = vmatpush3.bf16.msra.mxu1 %v20577_v45  ;;  %20579 = vmatprep.subr.bf16.mxu0 %v21875_v58  ;;  %v13182_v18 = vld [vmem:[#allocation6 + $0x16] sm:$0xff] }
 0xa5b   : > { %20582 = vmatprep.subr.bf16.mxu1 %v21875_v58  ;;  %20019 = vmatmul.mubr.msk.f32.gmra.mrb[56].mxu0 %vm9532_vm10, %v13083_v52  ;;  %v13280_v12 = vld [vmem:[#allocation6 + $0x17] sm:$0xff] }
 0xa5c   : > { %20032 = vmatmul.mubr.msk.f32.gmra.mrb[54].mxu1 %vm9532_vm10, %v13181_v22  ;;  %20021 = vmatprep.mubr.msk.f32.mxu0 %vm21876_vm0, %v26535_v7  ;;  %v13378_v54 = vld [vmem:[#allocation6 + $0x18] sm:$0xff] }
 0xa5d   : > { %20034 = vmatprep.mubr.msk.f32.mxu1 %vm21876_vm0, %v26535_v7  ;;  %v13475_v3 = vld [vmem:[#allocation6 + $0x14] sm:$0xff] }
 0xa5e   : > { %v13573_v9 = vld [vmem:[#allocation6 + $0x15] sm:$0xff] }
 0xa5f   : > { %20022 = vmatmul.mubr.msk.f32.gmra.mrb[58].mxu0 %vm9532_vm10, %v13084_v19 }
 0xa60   : > { %20035 = vmatmul.mubr.msk.f32.gmra.mrb[56].mxu1 %vm9532_vm10, %v13182_v18  ;;  %20041 = vmatprep.mubr.msk.f32.mxu0 %vm21876_vm0, %v26535_v7 }
 0xa61   : > { %20054 = vmatprep.mubr.msk.f32.mxu1 %vm21876_vm0, %v26535_v7 }
 0xa63   : > { %20042 = vmatmul.mubr.msk.f32.vlgmr.msra.gmra.mrb[60].mxu0 %vm9532_vm10, %v13278_v50 }
 0xa64   : > { %20055 = vmatmul.mubr.msk.f32.vlgmr.msra.gmra.mrb[58].mxu1 %vm9532_vm10, %v12894_v48  ;;  %20581 = vmatpush3.bf16.msra.mxu0 %v20580_v1 }
 0xa65   : > { %20044 = vmatprep.mubr.msk.f32.mxu0 %vm21876_vm0, %v26535_v7  ;;  %20057 = vmatprep.mubr.msk.f32.mxu1 %vm21876_vm0, %v26535_v7 }
 0xa66   : > { %20584 = vmatpush3.bf16.msra.mxu1 %v20583_v2  ;;  %20585 = vmatprep.subr.bf16.mxu0 %v21875_v58  ;;  %v25381_v2 = vmul.u32.u64.low 2863311531, %v22811_v49  ;;  %v25382_v50 = vmul.u32.u64.high 2863311531, %v22811_v49, %v25381_v2 }
 0xa67   : > { %20588 = vmatprep.subr.bf16.mxu1 %v21875_v58  ;;  %20045 = vmatmul.mubr.msk.f32.gmra.mrb[62].mxu0 %vm9532_vm10, %v13279_v62 }
 0xa68   : > { %20058 = vmatmul.mubr.msk.f32.gmra.mrb[60].mxu1 %vm9532_vm10, %v12895_v39  ;;  %20047 = vmatprep.mubr.msk.f32.mxu0 %vm21876_vm0, %v26535_v7  ;;  %v12848_v20 = vshrl.u32 %v25382_v50, 2 }
 0xa69   : > { %20060 = vmatprep.mubr.msk.f32.mxu1 %vm21876_vm0, %v26535_v7 }
 0xa6b   : > { %20048 = vmatmul.mubr.msk.f32.gmra.mrb[64].mxu0 %vm9532_vm10, %v13280_v12 }
 0xa6c   : > { %20061 = vmatmul.mubr.msk.f32.gmra.mrb[62].mxu1 %vm9532_vm10, %v13378_v54  ;;  %20067 = vmatprep.mubr.msk.f32.mxu0 %vm21876_vm0, %v26535_v7 }
 0xa6d   : > { %20080 = vmatprep.mubr.msk.f32.mxu1 %vm21876_vm0, %v26535_v7 }
 0xa6f   : > { %20068 = vmatmul.mubr.msk.f32.vlgmr.msra.gmra.mrb[66].mxu0 %vm9532_vm10, %v13474_v43 }
 0xa70   : > { %20081 = vmatmul.mubr.msk.f32.vlgmr.msra.gmra.mrb[64].mxu1 %vm9532_vm10, %v13572_v46  ;;  %20587 = vmatpush3.bf16.msra.mxu0 %v20586_v32 }
 0xa71   : > { %20070 = vmatprep.mubr.msk.f32.mxu0 %vm21876_vm0, %v26535_v7  ;;  %20083 = vmatprep.mubr.msk.f32.mxu1 %vm21876_vm0, %v26535_v7 }
 0xa72   : > { %20594 = vmatprep.subr.bf16.mxu0 %v21875_v58  ;;  %20590 = vmatpush3.bf16.msra.mxu1 %v20589_v37 }
 0xa73   : > { %20071 = vmatmul.mubr.msk.f32.gmra.mrb[68].mxu0 %vm9532_vm10, %v13475_v3  ;;  %20591 = vmatprep.subr.bf16.mxu1 %v21875_v58  ;;  %v25385_v46 = vmul.u32.u64.low 2863311531, %v26615_v14  ;;  %v25386_v3 = vmul.u32.u64.high 2863311531, %v26615_v14, %v25385_v46 }
 0xa74   : > { %20084 = vmatmul.mubr.msk.f32.gmra.mrb[66].mxu1 %vm9532_vm10, %v13573_v9  ;;  %20073 = vmatprep.mubr.msk.f32.mxu0 %vm21876_vm0, %v26535_v7 }
 0xa75   : > { %20086 = vmatprep.mubr.msk.f32.mxu1 %vm21876_vm0, %v26535_v7 }
 0xa76   : > { %20593 = vmatpush3.bf16.msra.mxu1 %v20592_v29  ;;  %v12849_v29 = vmul.u32 6, %v12848_v20  ;;  %v14091_v20 = vld [vmem:[#allocation15 + $0x60] sm:$0xff] }
 0xa77   : > { %20074 = vmatmul.mubr.msk.f32.gmra.mrb[70].mxu0 %vm9532_vm10, %v13476_v42  ;;  %20600 = vmatprep.subr.bf16.mxu1 %v21875_v58 }
 0xa78   : > { %20087 = vmatmul.mubr.msk.f32.gmra.mrb[68].mxu1 %vm9532_vm10, %v13574_v5  ;;  %20093 = vmatprep.mubr.msk.f32.mxu0 %vm21876_vm0, %v26535_v7 }
 0xa79   : > { %20110 = vmatprep.mubr.msk.f32.mxu1 %vm21876_vm0, %v26535_v7 }
 0xa7b   : > { %20094 = vmatmul.mubr.msk.f32.vlgmr.msra.gmra.mrb[72].mxu0 %vm9532_vm10, %v13181_v22 }
 0xa7c   : > { %20096 = vmatprep.mubr.msk.f32.mxu0 %vm21876_vm0, %v26535_v7  ;;  %20596 = vmatpush3.bf16.msra.mxu0 %v20595_v44 }
 0xa7d   : > { %20597 = vmatprep.subr.bf16.mxu0 %v21875_v58 }
 0xa7f   : > { %20097 = vmatmul.mubr.msk.f32.gmra.mrb[74].mxu0 %vm9532_vm10, %v13182_v18 }
 0xa80   : > { %20099 = vmatprep.mubr.msk.f32.mxu0 %vm21876_vm0, %v26535_v7  ;;  %20599 = vmatpush3.bf16.msra.mxu0 %v20598_v53 }
 0xa81   : > { %20606 = vmatprep.subr.bf16.mxu0 %v21875_v58 }
 0xa83   : > { %20100 = vmatmul.mubr.msk.f32.gmra.mrb[76].mxu0 %vm9532_vm10, %v13672_v56  ;;  %vm12839_vm10 = vcmask 260096  }
 0xa84   : > { %20127 = vmatprep.mubr.msk.f32.mxu0 %vm21876_vm0, %v26535_v7  ;;  %12840 = vst.msk [vmem:[#allocation7] sm:$0x7f] %vm12839_vm10, %v26535_v7  ;;  %12841 = vst.msk [vmem:[#allocation7 + $0x1f] sm:$0x7f] %vm12839_vm10, %v26535_v7  ;;  %vm14730_vm10 = vcmask 520192  }
 0xa85   : > { %14731 = vst.msk [vmem:[#allocation9] sm:$0x1f] %vm14730_vm10, %v26535_v7  ;;  %14732 = vst.msk [vmem:[#allocation9 + $0xd] sm:$0x1f] %vm14730_vm10, %v26535_v7 }
 0xb1e   : > { %v12979_v24 = vpop.f32.mrb[48].mxu0 }
 0xb1f   : > { %v13068_v21 = vpop.f32.mrb[46].mxu1  ;;  %v19991_v8 = vpop.f32.mrb[49].mxu0 }
 0xb20   : > { %v13069_v38 = vadd.f32 %v13068_v21, %v12979_v24  ;;  %v20004_v59 = vpop.f32.mrb[47].mxu1  ;;  %v12859_v24 = vshrl.u32 %v25386_v3, 2 }
 0xb22   : > { %v12984_v34 = vpop.f32.mrb[50].mxu0 }
 0xb23   : > { %v13073_v33 = vpop.f32.mrb[48].mxu1  ;;  %v19994_v30 = vpop.f32.mrb[51].mxu0 }
 0xb24   : > { %v13074_v28 = vadd.f32 %v13073_v33, %v12984_v34  ;;  %v20007_v36 = vpop.f32.mrb[49].mxu1  ;;  %v12850_v33 = vsub.s32 %v22811_v49, %v12849_v29  ;;  %v12860_v30 = vmul.u32 6, %v12859_v24  ;;  %v14094_v24 = vld [vmem:[#allocation15 + $0x78] sm:$0xff] }
 0xb25   : > { %v12870_v36 = vshrl.u32 %v25391_v63, 2 }
 0xb26   : > { %v12989_v61 = vpop.f32.mrb[52].mxu0  ;;  %vm12875_vm2 = vcmp.ne.s32.totalorder %v12850_v33, 0  ;;  %vm12878_vm15 = vcmp.lt.s32.totalorder %v12850_v33, 0 }
 0xb27   : > { %v13078_v48 = vpop.f32.mrb[50].mxu1  ;;  %v19997_v23 = vpop.f32.mrb[53].mxu0  ;;  %vm12881_vm11 = vmand %vm12878_vm15, %vm12875_vm2  ;;  %vm15475_vm2 = vcmask 523264  }
 0xb28   : > { %v13079_v60 = vadd.f32 %v13078_v48, %v12989_v61  ;;  %v20010_v26 = vpop.f32.mrb[51].mxu1 }
 0xb2a   : > { %v13163_v10 = vpop.f32.mrb[54].mxu0 }
 0xb2b   : > { %v13261_v11 = vpop.f32.mrb[52].mxu1  ;;  %v13177_v39 = vadd.f32 %v13163_v10, %v13069_v38  ;;  %v20017_v35 = vpop.f32.mrb[55].mxu0 }
 0xb2c   : > { %v20030_v17 = vpop.f32.mrb[53].mxu1 }
 0xb2d   : > { %v13275_v45 = vadd.f32 %v13261_v11, %v13177_v39  ;;  %v12861_v11 = vsub.s32 %v26615_v14, %v12860_v30  ;;  %v12871_v39 = vmul.u32 6, %v12870_v36  ;;  %v14291_v36 = vld [vmem:[#allocation15 + $0xa0] sm:$0xff] }
 0xb2e   : > { %v13168_v31 = vpop.f32.mrb[56].mxu0 }
 0xb2f   : > { %v13266_v6 = vpop.f32.mrb[54].mxu1  ;;  %v13178_v52 = vadd.f32 %v13168_v31, %v13074_v28  ;;  %v20020_v22 = vpop.f32.mrb[57].mxu0  ;;  %vm12876_vm3 = vcmp.ne.s32.totalorder %v12861_v11, 0  ;;  %vm12879_vm12 = vcmp.lt.s32.totalorder %v12861_v11, 0 }
 0xb30   : > { %v20033_v57 = vpop.f32.mrb[55].mxu1  ;;  %vm12882_vm13 = vmand %vm12879_vm12, %vm12876_vm3 }
 0xb31   : > { %v13276_v55 = vadd.f32 %v13266_v6, %v13178_v52  ;;  %v12884_v6 = vadd.s32 6, %v12850_v33  ;;  %v12872_v57 = vsub.s32 %v26617_v13, %v12871_v39  ;;  %v14293_v39 = vld [vmem:[#allocation15 + $0xb0] sm:$0xff] }
 0xb32   : > { %v13173_v41 = vpop.f32.mrb[58].mxu0 }
 0xb33   : > { %v13271_v19 = vpop.f32.mrb[56].mxu1  ;;  %v13179_v18 = vadd.f32 %v13173_v41, %v13079_v60  ;;  %v20023_v16 = vpop.f32.mrb[59].mxu0  ;;  %v17423_v41 = vld [vmem:[%s25875_s10] ss:$0 sm:$0xff]  ;;  %vm12877_vm4 = vcmp.ne.s32.totalorder %v12872_v57, 0  ;;  %vm12880_vm9 = vcmp.lt.s32.totalorder %v12872_v57, 0 }
 0xb34   : > { %v20036_v1 = vpop.f32.mrb[57].mxu1  ;;  %v12885_v16 = vadd.s32 6, %v12861_v11  ;;  %v12886_v13 = vadd.s32 6, %v12872_v57  ;;  %vm12883_vm7 = vmand %vm12880_vm9, %vm12877_vm4 }
 0xb35   : > { %v13277_v62 = vadd.f32 %v13271_v19, %v13179_v18  ;;  %v12887_v19 = vsel %vm12881_vm11, %v12884_v6, %v12850_v33  ;;  %v14192_v33 = vld [vmem:[#allocation15 + $0x88] sm:$0xff] }
 0xb36   : > { %v13359_v47 = vpop.f32.mrb[60].mxu0  ;;  %vm12890_vm5 = vcmp.lt.s32.totalorder %v12887_v19, 4  ;;  %v12889_v46 = vsel %vm12883_vm7, %v12886_v13, %v12872_v57  ;;  %v14492_v19 = vld [vmem:[#allocation15 + $0xe8] sm:$0xff] }
 0xb37   : > { %v13457_v0 = vpop.f32.mrb[58].mxu1  ;;  %v13373_v12 = vadd.f32 %v13359_v47, %v13275_v45  ;;  %v20043_v54 = vpop.f32.mrb[61].mxu0  ;;  %vm12892_vm8 = vcmp.lt.s32.totalorder %v12889_v46, 4 }
 0xb38   : > { %v20056_v32 = vpop.f32.mrb[59].mxu1 }
 0xb39   : > { %v13471_v43 = vadd.f32 %v13457_v0, %v13373_v12 }
 0xb3a   : > { %v13364_v9 = vpop.f32.mrb[62].mxu0 }
 0xb3b   : > { %v13462_v5 = vpop.f32.mrb[60].mxu1  ;;  %v13374_v42 = vadd.f32 %v13364_v9, %v13276_v55  ;;  %v20046_v56 = vpop.f32.mrb[63].mxu0 }
 0xb3c   : > { %v20059_v4 = vpop.f32.mrb[61].mxu1 }
 0xb3d   : > { %v13472_v37 = vadd.f32 %v13462_v5, %v13374_v42  ;;  %v13991_v5 = vld [vmem:[#allocation15 + $0x40] sm:$0xff]  ;;  %v13992_v42 = vld [vmem:[#allocation15 + $0x48] sm:$0xff] }
 0xb3e   : > { %v13369_v27 = vpop.f32.mrb[64].mxu0  ;;  %v20601_v63 = vpack.c.bf16 %v13992_v42, %v13991_v5 }
 0xb3f   : > { %v13467_v44 = vpop.f32.mrb[62].mxu1  ;;  %v13375_v40 = vadd.f32 %v13369_v27, %v13277_v62  ;;  %v20049_v25 = vpop.f32.mrb[65].mxu0  ;;  %v12888_v62 = vsel %vm12882_vm13, %v12885_v16, %v12861_v11  ;;  %v13993_v27 = vld [vmem:[#allocation15 + $0x50] sm:$0xff]  ;;  %v14394_v16 = vld [vmem:[#allocation15 + $0xd8] sm:$0xff] }
 0xb40   : > { %v20062_v51 = vpop.f32.mrb[63].mxu1  ;;  %vm12891_vm6 = vcmp.lt.s32.totalorder %v12888_v62, 4  ;;  %v14494_v62 = vld [vmem:[#allocation15 + $0xf8] sm:$0xff] }
 0xb41   : > { %v13473_v53 = vadd.f32 %v13467_v44, %v13375_v40  ;;  %v13994_v44 = vld [vmem:[#allocation15 + $0x58] sm:$0xff] }
 0xb42   : > { %v13555_v21 = vpop.f32.mrb[66].mxu0 }
 0xb43   : > { %v13653_v38 = vpop.f32.mrb[64].mxu1  ;;  %v13569_v8 = vadd.f32 %v13555_v21, %v13471_v43  ;;  %v20069_v59 = vpop.f32.mrb[67].mxu0  ;;  %v20604_v21 = vpack.c.bf16 %v13994_v44, %v13993_v27  ;;  %v14753_v27 = vld [vmem:[#allocation17 + $0x20] sm:$0xff]  ;;  %v14754_v44 = vld [vmem:[#allocation17 + $0x28] sm:$0xff] }
 0xb44   : > { %v20082_v34 = vpop.f32.mrb[65].mxu1 }
 0xb45   : > { %v13667_v28 = vadd.f32 %v13653_v38, %v13569_v8  ;;  %v14191_v34 = vld [vmem:[#allocation15 + $0x80] sm:$0xff] }
 0xb46   : > { %v13560_v61 = vpop.f32.mrb[68].mxu0 }
 0xb47   : > { %v13658_v48 = vpop.f32.mrb[66].mxu1  ;;  %v13570_v60 = vadd.f32 %v13560_v61, %v13472_v37  ;;  %v20072_v23 = vpop.f32.mrb[69].mxu0  ;;  %v14092_v37 = vld [vmem:[#allocation15 + $0x68] sm:$0xff] }
 0xb48   : > { %v20085_v26 = vpop.f32.mrb[67].mxu1  ;;  %v20607_v29 = vpack.c.bf16 %v14092_v37, %v14091_v20  ;;  %v14292_v61 = vld [vmem:[#allocation15 + $0xa8] sm:$0xff]  ;;  %v14194_v23 = vld [vmem:[#allocation15 + $0x98] sm:$0xff] }
 0xb49   : > { %v13668_v10 = vadd.f32 %v13658_v48, %v13570_v60  ;;  %v20613_v48 = vpack.c.bf16 %v14192_v33, %v14191_v34  ;;  %v14193_v60 = vld [vmem:[#allocation15 + $0x90] sm:$0xff]  ;;  %v20619_v11 = vpack.c.bf16 %v14292_v61, %v14291_v36 }
 0xb4a   : > { %v13565_v35 = vpop.f32.mrb[70].mxu0 }
 0xb4b   : > { %v13663_v17 = vpop.f32.mrb[68].mxu1  ;;  %v13571_v45 = vadd.f32 %v13565_v35, %v13473_v53  ;;  %v20075_v31 = vpop.f32.mrb[71].mxu0  ;;  %v14093_v53 = vld [vmem:[#allocation15 + $0x70] sm:$0xff]  ;;  %v14294_v35 = vld [vmem:[#allocation15 + $0xb8] sm:$0xff] }
 0xb4c   : > { %v20088_v52 = vpop.f32.mrb[69].mxu1  ;;  %v20610_v59 = vpack.c.bf16 %v14094_v24, %v14093_v53  ;;  %v20622_v6 = vpack.c.bf16 %v14294_v35, %v14293_v39  ;;  %v14756_v53 = vld [vmem:[#allocation17 + $0x38] sm:$0xff] }
 0xb4d   : > { %v13669_v22 = vadd.f32 %v13663_v17, %v13571_v45  ;;  %v20616_v17 = vpack.c.bf16 %v14194_v23, %v14193_v60  ;;  %v14391_v52 = vld [vmem:[#allocation15 + $0xc0] sm:$0xff] }
 0xb4e   : > { %v13751_v55 = vpop.f32.mrb[72].mxu0 }
 0xb4f   : > { %v13765_v14 = vadd.f32 %v13751_v55, %v13667_v28  ;;  %v20095_v18 = vpop.f32.mrb[73].mxu0 }
 0xb50   : > { %v14393_v18 = vld [vmem:[#allocation15 + $0xd0] sm:$0xff] }
 0xb51   : > { %v13775_v1 = vadd.f32 %v17423_v41, %v13765_v14 }
 0xb52   : > { %v13756_v2 = vpop.f32.mrb[74].mxu0 }
 0xb53   : > { %v13778_v50 = vmax.f32 %v13775_v1, 0.0  ;;  %v13766_v47 = vadd.f32 %v13756_v2, %v13668_v10  ;;  %v20098_v0 = vpop.f32.mrb[75].mxu0 }
 0xb55   : > { %v13787_v12 = vsel %vm12890_vm5, %v13778_v50, 0.0  ;;  %v13776_v54 = vadd.f32 %v17423_v41, %v13766_v47  ;;  %v14493_v50 = vld [vmem:[#allocation15 + $0xf0] sm:$0xff]  ;;  %v20628_v47 = vpack.c.bf16 %v14394_v16, %v14393_v18 }
 0xb56   : > { %13791 = vst.msk [vmem:[#allocation7 + $0x7] sm:$0xff] %vm13790_vm14, %v13787_v12  ;;  %v13761_v32 = vpop.f32.mrb[76].mxu0  ;;  %v20634_v13 = vpack.c.bf16 %v14494_v62, %v14493_v50  ;;  %v14591_v12 = vld [vmem:[#allocation15 + $0x100] sm:$0xff] }
 0xb57   : > { %v13779_v43 = vmax.f32 %v13776_v54, 0.0  ;;  %v13767_v3 = vadd.f32 %v13761_v32, %v13669_v22  ;;  %v20101_v9 = vpop.f32.mrb[77].mxu0  ;;  %v14392_v22 = vld [vmem:[#allocation15 + $0xc8] sm:$0xff] }
 0xb58   : > { %v20625_v14 = vpack.c.bf16 %v14392_v22, %v14391_v52  ;;  %v14592_v54 = vld [vmem:[#allocation15 + $0x108] sm:$0xff]  ;;  %v14594_v9 = vld [vmem:[#allocation15 + $0x118] sm:$0xff] }
 0xb59   : > { %v13788_v56 = vsel %vm12891_vm6, %v13779_v43, 0.0  ;;  %v13777_v4 = vadd.f32 %v17423_v41, %v13767_v3  ;;  %v14491_v41 = vld [vmem:[#allocation15 + $0xe0] sm:$0xff]  ;;  %v20637_v46 = vpack.c.bf16 %v14592_v54, %v14591_v12  ;;  %v14593_v3 = vld [vmem:[#allocation15 + $0x110] sm:$0xff] }
 0xb5a   : > { %13792 = vst.msk [vmem:[#allocation7 + $0xf] sm:$0xff] %vm13790_vm14, %v13788_v56  ;;  %v20631_v2 = vpack.c.bf16 %v14492_v19, %v14491_v41  ;;  %v20640_v56 = vpack.c.bf16 %v14594_v9, %v14593_v3 }
 0xb5b   : > { %v13780_v15 = vmax.f32 %v13777_v4, 0.0 }
 0xb5d   : > { %v13789_v40 = vsel %vm12892_vm8, %v13780_v15, 0.0  ;;  %v13801_v25 = vld [vmem:[#allocation7 + $0x1] sm:$0xff] }
 0xb5e   : > { %v13794_v51 = vld [vmem:[#allocation7] sm:$0xff]  ;;  %13793 = vst.msk [vmem:[#allocation7 + $0x17] sm:$0xff] %vm13790_vm14, %v13789_v40  ;;  %20111 = vmatmul.mubr.msk.f32.vlgmr.msra.gmra.mrb[70].mxu1 %vm13790_vm14, %v13801_v25  ;;  %v20643_v25 = vpack.c.bf16 %v14754_v44, %v14753_v27 }
 0xb5f   : > { %20128 = vmatmul.mubr.msk.f32.vlgmr.msra.gmra.mrb[78].mxu0 %vm13790_vm14, %v13794_v51  ;;  %20602 = vmatpush3.bf16.msra.mxu1 %v20601_v63  ;;  %v13987_v26 = vld [vmem:[#allocation7 + $0x2] sm:$0xff] }
 0xb60   : > { %20113 = vmatprep.mubr.msk.f32.mxu1 %vm21876_vm0, %v26535_v7  ;;  %20130 = vmatprep.mubr.msk.f32.mxu0 %vm21876_vm0, %v26535_v7  ;;  %v14087_v10 = vld [vmem:[#allocation7 + $0x6] sm:$0xff] }
 0xb61   : > { %20603 = vmatprep.subr.bf16.mxu1 %v21875_v58  ;;  %v13802_v38 = vld [vmem:[#allocation7 + $0x9] sm:$0xff]  ;;  %20608 = vmatpush3.bf16.msra.mxu0 %v20607_v29  ;;  %v14747_v40 = vld [vmem:[#allocation17] sm:$0xff] }
 0xb62   : > { %v25411_v8 = vld [vmem:[#allocation7 + $0x8] sm:$0xff]  ;;  %20114 = vmatmul.mubr.msk.f32.gmra.mrb[72].mxu1 %vm13790_vm14, %v13802_v38  ;;  %20609 = vmatprep.subr.bf16.mxu0 %v21875_v58  ;;  %v14755_v29 = vld [vmem:[#allocation17 + $0x30] sm:$0xff]  ;;  %v14750_v38 = vld [vmem:[#allocation17 + $0x18] sm:$0xff] }
 0xb63   : > { %20131 = vmatmul.mubr.msk.f32.gmra.mrb[80].mxu0 %vm13790_vm14, %v25411_v8  ;;  %20605 = vmatpush3.bf16.msra.mxu1 %v20604_v21  ;;  %v13988_v45 = vld [vmem:[#allocation7 + $0xa] sm:$0xff] }
 0xb64   : > { %20116 = vmatprep.mubr.msk.f32.mxu1 %vm21876_vm0, %v26535_v7  ;;  %20133 = vmatprep.mubr.msk.f32.mxu0 %vm21876_vm0, %v26535_v7  ;;  %v25439_v31 = vld [vmem:[#allocation7 + $0xe] sm:$0xff] }
 0xb65   : > { %v13803_v28 = vld [vmem:[#allocation7 + $0x11] sm:$0xff]  ;;  %20611 = vmatpush3.bf16.msra.mxu0 %v20610_v59  ;;  %20612 = vmatprep.subr.bf16.mxu1 %v21875_v58  ;;  %v14187_v1 = vld [vmem:[#allocation7 + $0x7] sm:$0xff]  ;;  %v14389_v37 = vld [vmem:[#allocation7 + $0x1c] sm:$0xff] }
 0xb66   : > { %v25421_v30 = vld [vmem:[#allocation7 + $0x10] sm:$0xff]  ;;  %20117 = vmatmul.mubr.msk.f32.gmra.mrb[74].mxu1 %vm13790_vm14, %v13803_v28  ;;  %20618 = vmatprep.subr.bf16.mxu0 %v21875_v58  ;;  %v14289_v43 = vld [vmem:[#allocation7 + $0x18] sm:$0xff]  ;;  %v14748_v51 = vld [vmem:[#allocation17 + $0x8] sm:$0xff] }
 0xb67   : > { %20134 = vmatmul.mubr.msk.f32.gmra.mrb[82].mxu0 %vm13790_vm14, %v25421_v30  ;;  %20144 = vmatprep.mubr.msk.f32.mxu1 %vm21876_vm0, %v26535_v7  ;;  %v13989_v57 = vld [vmem:[#allocation7 + $0x12] sm:$0xff]  ;;  %v14489_v15 = vld [vmem:[#allocation7 + $0x1d] sm:$0xff]  ;;  %v20649_v24 = vpack.c.bf16 %v14748_v51, %v14747_v40 }
 0xb68   : > { %20161 = vmatprep.mubr.msk.f32.mxu0 %vm21876_vm0, %v26535_v7  ;;  %v25449_v55 = vld [vmem:[#allocation7 + $0x16] sm:$0xff]  ;;  %v14387_v5 = vld [vmem:[#allocation7 + $0xc] sm:$0xff]  ;;  %v14589_v63 = vld [vmem:[#allocation7 + $0x1e] sm:$0xff] }
 0xb69   : > { %v14188_v0 = vld [vmem:[#allocation7 + $0xf] sm:$0xff]  ;;  %v14189_v32 = vld [vmem:[#allocation7 + $0x17] sm:$0xff] }
 0xb6a   : > { %20145 = vmatmul.mubr.msk.f32.vlgmr.msra.gmra.mrb[76].mxu1 %vm13790_vm14, %v13987_v26  ;;  %v14487_v42 = vld [vmem:[#allocation7 + $0xd] sm:$0xff]  ;;  %v14488_v20 = vld [vmem:[#allocation7 + $0x15] sm:$0xff] }
 0xb6b   : > { %20162 = vmatmul.mubr.msk.f32.vlgmr.msra.gmra.mrb[84].mxu0 %vm13790_vm14, %v14087_v10  ;;  %20614 = vmatpush3.bf16.msra.mxu1 %v20613_v48  ;;  %v14388_v4 = vld [vmem:[#allocation7 + $0x14] sm:$0xff] }
 0xb6c   : > { %20147 = vmatprep.mubr.msk.f32.mxu1 %vm21876_vm0, %v26535_v7  ;;  %20164 = vmatprep.mubr.msk.f32.mxu0 %vm21876_vm0, %v26535_v7  ;;  %v14749_v21 = vld [vmem:[#allocation17 + $0x10] sm:$0xff] }
 0xb6d   : > { %20615 = vmatprep.subr.bf16.mxu1 %v21875_v58  ;;  %20620 = vmatpush3.bf16.msra.mxu0 %v20619_v11  ;;  %v20652_v59 = vpack.c.bf16 %v14750_v38, %v14749_v21 }
 0xb6e   : > { %20148 = vmatmul.mubr.msk.f32.gmra.mrb[78].mxu1 %vm13790_vm14, %v13988_v45  ;;  %20621 = vmatprep.subr.bf16.mxu0 %v21875_v58 }
 0xb6f   : > { %20165 = vmatmul.mubr.msk.f32.gmra.mrb[86].mxu0 %vm13790_vm14, %v25439_v31  ;;  %20617 = vmatpush3.bf16.msra.mxu1 %v20616_v17 }
 0xb70   : > { %20150 = vmatprep.mubr.msk.f32.mxu1 %vm21876_vm0, %v26535_v7  ;;  %20167 = vmatprep.mubr.msk.f32.mxu0 %vm21876_vm0, %v26535_v7 }
 0xb71   : > { %20623 = vmatpush3.bf16.msra.mxu0 %v20622_v6  ;;  %20624 = vmatprep.subr.bf16.mxu1 %v21875_v58 }
 0xb72   : > { %20151 = vmatmul.mubr.msk.f32.gmra.mrb[80].mxu1 %vm13790_vm14, %v13989_v57  ;;  %20630 = vmatprep.subr.bf16.mxu0 %v21875_v58 }
 0xb73   : > { %20168 = vmatmul.mubr.msk.f32.gmra.mrb[88].mxu0 %vm13790_vm14, %v25449_v55  ;;  %20178 = vmatprep.mubr.msk.f32.mxu1 %vm21876_vm0, %v26535_v7 }
 0xb74   : > { %20195 = vmatprep.mubr.msk.f32.mxu0 %vm21876_vm0, %v26535_v7 }
 0xb76   : > { %20179 = vmatmul.mubr.msk.f32.vlgmr.msra.gmra.mrb[82].mxu1 %vm13790_vm14, %v14187_v1 }
 0xb77   : > { %20196 = vmatmul.mubr.msk.f32.vlgmr.msra.gmra.mrb[90].mxu0 %vm13790_vm14, %v25411_v8  ;;  %20626 = vmatpush3.bf16.msra.mxu1 %v20625_v14  ;;  %v20646_v8 = vpack.c.bf16 %v14756_v53, %v14755_v29 }
 0xb78   : > { %20181 = vmatprep.mubr.msk.f32.mxu1 %vm21876_vm0, %v26535_v7  ;;  %20198 = vmatprep.mubr.msk.f32.mxu0 %vm21876_vm0, %v26535_v7 }
 0xb79   : > { %20627 = vmatprep.subr.bf16.mxu1 %v21875_v58  ;;  %20632 = vmatpush3.bf16.msra.mxu0 %v20631_v2 }
 0xb7a   : > { %20182 = vmatmul.mubr.msk.f32.gmra.mrb[84].mxu1 %vm13790_vm14, %v14188_v0  ;;  %20633 = vmatprep.subr.bf16.mxu0 %v21875_v58 }
 0xb7b   : > { %20199 = vmatmul.mubr.msk.f32.gmra.mrb[92].mxu0 %vm13790_vm14, %v25421_v30  ;;  %20629 = vmatpush3.bf16.msra.mxu1 %v20628_v47 }
 0xb7c   : > { %20184 = vmatprep.mubr.msk.f32.mxu1 %vm21876_vm0, %v26535_v7  ;;  %20201 = vmatprep.mubr.msk.f32.mxu0 %vm21876_vm0, %v26535_v7 }
 0xb7d   : > { %20635 = vmatpush3.bf16.msra.mxu0 %v20634_v13  ;;  %20636 = vmatprep.subr.bf16.mxu1 %v21875_v58 }
 0xb7e   : > { %20185 = vmatmul.mubr.msk.f32.gmra.mrb[86].mxu1 %vm13790_vm14, %v14189_v32  ;;  %20642 = vmatprep.subr.bf16.mxu0 %v21875_v58 }
 0xb7f   : > { %20202 = vmatmul.mubr.msk.f32.gmra.mrb[94].mxu0 %vm13790_vm14, %v14289_v43  ;;  %20212 = vmatprep.mubr.msk.f32.mxu1 %vm21876_vm0, %v26535_v7 }
 0xb80   : > { %20229 = vmatprep.mubr.msk.f32.mxu0 %vm21876_vm0, %v26535_v7 }
 0xb82   : > { %20213 = vmatmul.mubr.msk.f32.vlgmr.msra.gmra.mrb[88].mxu1 %vm13790_vm14, %v14387_v5 }
 0xb83   : > { %20230 = vmatmul.mubr.msk.f32.vlgmr.msra.gmra.mrb[96].mxu0 %vm13790_vm14, %v14487_v42  ;;  %20638 = vmatpush3.bf16.msra.mxu1 %v20637_v46 }
 0xb84   : > { %20215 = vmatprep.mubr.msk.f32.mxu1 %vm21876_vm0, %v26535_v7  ;;  %20232 = vmatprep.mubr.msk.f32.mxu0 %vm21876_vm0, %v26535_v7 }
 0xb85   : > { %20639 = vmatprep.subr.bf16.mxu1 %v21875_v58  ;;  %20644 = vmatpush3.bf16.msra.mxu0 %v20643_v25 }
 0xb86   : > { %20216 = vmatmul.mubr.msk.f32.gmra.mrb[90].mxu1 %vm13790_vm14, %v14388_v4  ;;  %20645 = vmatprep.subr.bf16.mxu0 %v21875_v58 }
 0xb87   : > { %20233 = vmatmul.mubr.msk.f32.gmra.mrb[98].mxu0 %vm13790_vm14, %v14488_v20  ;;  %20641 = vmatpush3.bf16.msra.mxu1 %v20640_v56 }
 0xb88   : > { %20218 = vmatprep.mubr.msk.f32.mxu1 %vm21876_vm0, %v26535_v7  ;;  %20235 = vmatprep.mubr.msk.f32.mxu0 %vm21876_vm0, %v26535_v7 }
 0xb89   : > { %20648 = vmatprep.subr.bf16.mxu1 %v21875_v58  ;;  %20647 = vmatpush3.bf16.msra.mxu0 %v20646_v8 }
 0xb8a   : > { %20219 = vmatmul.mubr.msk.f32.gmra.mrb[92].mxu1 %vm13790_vm14, %v14389_v37  ;;  %20654 = vmatprep.subr.bf16.mxu0 %v21875_v58 }
 0xb8b   : > { %20236 = vmatmul.mubr.msk.f32.gmra.mrb[100].mxu0 %vm13790_vm14, %v14489_v15  ;;  %20246 = vmatprep.mubr.msk.f32.mxu1 %vm21876_vm0, %v26535_v7 }
 0xb8c   : > { %20263 = vmatprep.mubr.msk.f32.mxu0 %vm21876_vm0, %v26535_v7 }
 0xb8e   : > { %20247 = vmatmul.mubr.msk.f32.vlgmr.msra.gmra.mrb[94].mxu1 %vm13790_vm14, %v25439_v31 }
 0xb8f   : > { %20249 = vmatprep.mubr.msk.f32.mxu1 %vm21876_vm0, %v26535_v7  ;;  %20650 = vmatpush3.bf16.msra.mxu1 %v20649_v24 }
 0xb90   : > { %20651 = vmatprep.subr.bf16.mxu1 %v21875_v58 }
 0xb92   : > { %20250 = vmatmul.mubr.msk.f32.gmra.mrb[96].mxu1 %vm13790_vm14, %v25449_v55 }
 0xb93   : > { %20252 = vmatprep.mubr.msk.f32.mxu1 %vm21876_vm0, %v26535_v7  ;;  %20653 = vmatpush3.bf16.msra.mxu1 %v20652_v59 }
 0xb94   : > { %20660 = vmatprep.subr.bf16.mxu1 %v21875_v58 }
 0xb96   : > { %20253 = vmatmul.mubr.msk.f32.gmra.mrb[98].mxu1 %vm13790_vm14, %v14589_v63 }
 0xb97   : > { %20274 = vmatprep.mubr.msk.f32.mxu1 %vm21876_vm0, %v26535_v7 }
 0xc31   : > { %v13884_v34 = vpop.f32.mrb[70].mxu1 }
 0xc32   : > { %v13973_v33 = vpop.f32.mrb[78].mxu0  ;;  %v20112_v30 = vpop.f32.mrb[71].mxu1 }
 0xc33   : > { %v13974_v28 = vadd.f32 %v13973_v33, %v13884_v34  ;;  %v20129_v36 = vpop.f32.mrb[79].mxu0 }
 0xc35   : > { %v13889_v61 = vpop.f32.mrb[72].mxu1 }
 0xc36   : > { %v13978_v48 = vpop.f32.mrb[80].mxu0  ;;  %v20115_v23 = vpop.f32.mrb[73].mxu1 }
 0xc37   : > { %v13979_v60 = vadd.f32 %v13978_v48, %v13889_v61  ;;  %v20132_v26 = vpop.f32.mrb[81].mxu0 }
 0xc38   : > { %v17451_v26 = vld [vmem:[%s25877_s12] ss:$0 sm:$0xff] }
 0xc39   : > { %v13894_v10 = vpop.f32.mrb[74].mxu1 }
 0xc3a   : > { %v13983_v11 = vpop.f32.mrb[82].mxu0  ;;  %v20118_v35 = vpop.f32.mrb[75].mxu1 }
 0xc3b   : > { %v13984_v39 = vadd.f32 %v13983_v11, %v13894_v10  ;;  %v20135_v17 = vpop.f32.mrb[83].mxu0 }
 0xc3d   : > { %v14070_v45 = vpop.f32.mrb[76].mxu1 }
 0xc3e   : > { %v14170_v31 = vpop.f32.mrb[84].mxu0  ;;  %v14084_v6 = vadd.f32 %v14070_v45, %v13974_v28  ;;  %v20146_v52 = vpop.f32.mrb[77].mxu1 }
 0xc3f   : > { %v20163_v22 = vpop.f32.mrb[85].mxu0 }
 0xc40   : > { %v14184_v57 = vadd.f32 %v14170_v31, %v14084_v6 }
 0xc41   : > { %v14075_v55 = vpop.f32.mrb[78].mxu1 }
 0xc42   : > { %v14175_v41 = vpop.f32.mrb[86].mxu0  ;;  %v14085_v19 = vadd.f32 %v14075_v55, %v13979_v60  ;;  %v20149_v14 = vpop.f32.mrb[79].mxu1 }
 0xc43   : > { %v20166_v18 = vpop.f32.mrb[87].mxu0 }
 0xc44   : > { %v14185_v16 = vadd.f32 %v14175_v41, %v14085_v19 }
 0xc45   : > { %v14080_v1 = vpop.f32.mrb[80].mxu1 }
 0xc46   : > { %v14180_v2 = vpop.f32.mrb[88].mxu0  ;;  %v14086_v50 = vadd.f32 %v14080_v1, %v13984_v39  ;;  %v20152_v62 = vpop.f32.mrb[81].mxu1 }
 0xc47   : > { %v20169_v47 = vpop.f32.mrb[89].mxu0 }
 0xc48   : > { %v14186_v0 = vadd.f32 %v14180_v2, %v14086_v50 }
 0xc49   : > { %v14270_v13 = vpop.f32.mrb[82].mxu1 }
 0xc4a   : > { %v14370_v12 = vpop.f32.mrb[90].mxu0  ;;  %v14284_v54 = vadd.f32 %v14270_v13, %v14184_v57  ;;  %v20180_v32 = vpop.f32.mrb[83].mxu1 }
 0xc4b   : > { %v20197_v43 = vpop.f32.mrb[91].mxu0 }
 0xc4c   : > { %v14384_v46 = vadd.f32 %v14370_v12, %v14284_v54  ;;  %v14905_v43 = vld [vmem:[#allocation17 + $0x40] sm:$0xff] }
 0xc4d   : > { %v14275_v3 = vpop.f32.mrb[84].mxu1 }
 0xc4e   : > { %v14375_v9 = vpop.f32.mrb[92].mxu0  ;;  %v14285_v5 = vadd.f32 %v14275_v3, %v14185_v16  ;;  %v20183_v42 = vpop.f32.mrb[85].mxu1  ;;  %v14985_v3 = vld [vmem:[#allocation17 + $0x60] sm:$0xff] }
 0xc4f   : > { %v20200_v56 = vpop.f32.mrb[93].mxu0 }
 0xc50   : > { %v14385_v4 = vadd.f32 %v14375_v9, %v14285_v5  ;;  %v14986_v9 = vld [vmem:[#allocation17 + $0x68] sm:$0xff] }
 0xc51   : > { %v14280_v20 = vpop.f32.mrb[86].mxu1  ;;  %v20661_v56 = vpack.c.bf16 %v14986_v9, %v14985_v3  ;;  %v17473_v9 = vld [vmem:[%s26652_s21 + $0x60] sm:$0xff] }
 0xc52   : > { %v14380_v37 = vpop.f32.mrb[94].mxu0  ;;  %v14286_v15 = vadd.f32 %v14280_v20, %v14186_v0  ;;  %v20186_v63 = vpop.f32.mrb[87].mxu1  ;;  %v14908_v20 = vld [vmem:[#allocation17 + $0x58] sm:$0xff] }
 0xc53   : > { %v20203_v27 = vpop.f32.mrb[95].mxu0 }
 0xc54   : > { %v14386_v44 = vadd.f32 %v14380_v37, %v14286_v15  ;;  %v14987_v37 = vld [vmem:[#allocation17 + $0x70] sm:$0xff]  ;;  %v14988_v15 = vld [vmem:[#allocation17 + $0x78] sm:$0xff] }
 0xc55   : > { %v14470_v40 = vpop.f32.mrb[88].mxu1 }
 0xc56   : > { %v14570_v25 = vpop.f32.mrb[96].mxu0  ;;  %v14484_v51 = vadd.f32 %v14470_v40, %v14384_v46  ;;  %v20214_v29 = vpop.f32.mrb[89].mxu1  ;;  %v14906_v46 = vld [vmem:[#allocation17 + $0x48] sm:$0xff]  ;;  %v20664_v40 = vpack.c.bf16 %v14988_v15, %v14987_v37  ;;  %v17476_v15 = vld [vmem:[%s26652_s21 + $0x78] sm:$0xff] }
 0xc57   : > { %v20231_v53 = vpop.f32.mrb[97].mxu0  ;;  %v20655_v42 = vpack.c.bf16 %v14906_v46, %v14905_v43  ;;  %v15145_v29 = vld [vmem:[#allocation17 + $0xa0] sm:$0xff]  ;;  %v15481_v43 = vld [vmem:[%s26652_s21 + $0x18] sm:$0xff]  ;;  %v17475_v37 = vld [vmem:[%s26652_s21 + $0x70] sm:$0xff] }
 0xc58   : > { %v14584_v24 = vadd.f32 %v14570_v25, %v14484_v51  ;;  %v15065_v25 = vld [vmem:[#allocation17 + $0x80] sm:$0xff]  ;;  %v15066_v51 = vld [vmem:[#allocation17 + $0x88] sm:$0xff] }
 0xc59   : > { %v14475_v21 = vpop.f32.mrb[90].mxu1  ;;  %v15146_v53 = vld [vmem:[#allocation17 + $0xa8] sm:$0xff] }
 0xc5a   : > { %v14575_v38 = vpop.f32.mrb[98].mxu0  ;;  %v14485_v8 = vadd.f32 %v14475_v21, %v14385_v4  ;;  %v20217_v59 = vpop.f32.mrb[91].mxu1  ;;  %v14907_v4 = vld [vmem:[#allocation17 + $0x50] sm:$0xff]  ;;  %v20673_v21 = vpack.c.bf16 %v15146_v53, %v15145_v29 }
 0xc5b   : > { %v20234_v34 = vpop.f32.mrb[99].mxu0  ;;  %v15147_v59 = vld [vmem:[#allocation17 + $0xb0] sm:$0xff] }
 0xc5c   : > { %v14585_v33 = vadd.f32 %v14575_v38, %v14485_v8  ;;  %v15067_v38 = vld [vmem:[#allocation17 + $0x90] sm:$0xff]  ;;  %v15068_v8 = vld [vmem:[#allocation17 + $0x98] sm:$0xff] }
 0xc5d   : > { %v14480_v28 = vpop.f32.mrb[92].mxu1  ;;  %v15148_v34 = vld [vmem:[#allocation17 + $0xb8] sm:$0xff] }
 0xc5e   : > { %v14580_v30 = vpop.f32.mrb[100].mxu0  ;;  %v14486_v36 = vadd.f32 %v14480_v28, %v14386_v44  ;;  %v20220_v61 = vpop.f32.mrb[93].mxu1  ;;  %v20658_v44 = vpack.c.bf16 %v14908_v20, %v14907_v4 }
 0xc5f   : > { %v20237_v48 = vpop.f32.mrb[101].mxu0  ;;  %v15225_v61 = vld [vmem:[#allocation17 + $0xc0] sm:$0xff] }
 0xc60   : > { %v14586_v60 = vadd.f32 %v14580_v30, %v14486_v36  ;;  %v20670_v30 = vpack.c.bf16 %v15068_v8, %v15067_v38  ;;  %v20676_v36 = vpack.c.bf16 %v15148_v34, %v15147_v59  ;;  %v15226_v48 = vld [vmem:[#allocation17 + $0xc8] sm:$0xff] }
 0xc61   : > { %v14670_v23 = vpop.f32.mrb[94].mxu1 }
 0xc62   : > { %v14684_v10 = vadd.f32 %v14670_v23, %v14584_v24  ;;  %v20248_v11 = vpop.f32.mrb[95].mxu1  ;;  %v20667_v24 = vpack.c.bf16 %v15066_v51, %v15065_v25  ;;  %v15306_v23 = vld [vmem:[#allocation17 + $0xe8] sm:$0xff] }
 0xc63   : > { %v15227_v11 = vld [vmem:[#allocation17 + $0xd0] sm:$0xff] }
 0xc64   : > { %v14694_v39 = vadd.f32 %v17451_v26, %v14684_v10 }
 0xc65   : > { %v14675_v35 = vpop.f32.mrb[96].mxu1 }
 0xc66   : > { %v14697_v17 = vmax.f32 %v14694_v39, 0.0  ;;  %v14685_v45 = vadd.f32 %v14675_v35, %v14585_v33  ;;  %v20251_v31 = vpop.f32.mrb[97].mxu1  ;;  %v15228_v39 = vld [vmem:[#allocation17 + $0xd8] sm:$0xff]  ;;  %v15307_v35 = vld [vmem:[#allocation17 + $0xf0] sm:$0xff] }
 0xc68   : > { %14700 = vst.msk [vmem:[%s733_s23] sm:$0xff] %vm13790_vm14, %v14697_v17  ;;  %v14695_v6 = vadd.f32 %v17451_v26, %v14685_v45  ;;  %v15308_v17 = vld [vmem:[#allocation17 + $0xf8] sm:$0xff] }
 0xc69   : > { %v14680_v52 = vpop.f32.mrb[98].mxu1 }
 0xc6a   : > { %v14698_v22 = vmax.f32 %v14695_v6, 0.0  ;;  %v14686_v57 = vadd.f32 %v14680_v52, %v14586_v60  ;;  %v20254_v55 = vpop.f32.mrb[99].mxu1  ;;  %v15305_v60 = vld [vmem:[#allocation17 + $0xe0] sm:$0xff]  ;;  %v20682_v6 = vpack.c.bf16 %v15228_v39, %v15227_v11  ;;  %v20688_v52 = vpack.c.bf16 %v15308_v17, %v15307_v35 }
 0xc6b   : > { %v20685_v10 = vpack.c.bf16 %v15306_v23, %v15305_v60  ;;  %v14737_v17 = vand.u32 3, %v22811_v49  ;;  %v17480_v49 = vld [vmem:[%s26652_s21 + $0x88] sm:$0xff] }
 0xc6c   : > { %14701 = vst.msk [vmem:[%s733_s23 + $0x8] sm:$0xff] %vm13790_vm14, %v14698_v22  ;;  %v14696_v41 = vadd.f32 %v17451_v26, %v14686_v57  ;;  %v20679_v26 = vpack.c.bf16 %v15226_v48, %v15225_v61  ;;  %v15385_v22 = vld [vmem:[#allocation17 + $0x100] sm:$0xff]  ;;  %v15386_v57 = vld [vmem:[#allocation17 + $0x108] sm:$0xff] }
 0xc6d   : > { %v20691_v55 = vpack.c.bf16 %v15386_v57, %v15385_v22 }
 0xc6e   : > { %v14699_v19 = vmax.f32 %v14696_v41, 0.0  ;;  %v15387_v41 = vld [vmem:[#allocation17 + $0x110] sm:$0xff] }
 0xc6f   : > { %v14707_v14 = vld [vmem:[%s733_s23] ss:$2 sm:$0x3]  ;;  %v17452_v18 = vld [vmem:[%s733_s23 + $0x1] ss:$2 sm:$0x3] }
 0xc70   : > { %14702 = vst.msk [vmem:[%s733_s23 + $0x10] sm:$0xff] %vm13790_vm14, %v14699_v19  ;;  %v14714_v2 = vmax.f32 %v14707_v14, %v17452_v18  ;;  %v15388_v19 = vld [vmem:[#allocation17 + $0x118] sm:$0xff] }
 0xc73   : > { %v17453_v16 = vld [vmem:[%s733_s23 + $0x6] ss:$2 sm:$0x3]  ;;  %v17454_v1 = vld [vmem:[%s733_s23 + $0x7] ss:$2 sm:$0x3] }
 0xc74   : > { %v14715_v50 = vmax.f32 %v17453_v16, %v17454_v1  ;;  %v17455_v62 = vld [vmem:[%s733_s23 + $0xc] ss:$2 sm:$0x3]  ;;  %v17456_v47 = vld [vmem:[%s733_s23 + $0xd] ss:$2 sm:$0x3]  ;;  %v20694_v16 = vpack.c.bf16 %v15388_v19, %v15387_v41 }
 0xc75   : > { %v14726_v54 = vmax.f32 %v17455_v62, %v17456_v47  ;;  %v15478_v62 = vld [vmem:[%s26652_s21] sm:$0xff] }
 0xc76   : > { %v14716_v0 = vmax.f32 %v14714_v2, %v14715_v50  ;;  %v17469_v2 = vld [vmem:[%s26652_s21 + $0x40] sm:$0xff]  ;;  %v17470_v50 = vld [vmem:[%s26652_s21 + $0x48] sm:$0xff] }
 0xc77   : > { %v17457_v13 = vld [vmem:[%s733_s23 + $0x12] ss:$2 sm:$0x3]  ;;  %v17458_v12 = vld [vmem:[%s733_s23 + $0x13] ss:$2 sm:$0x3]  ;;  %v20697_v47 = vpack.c.bf16 %v17470_v50, %v17469_v2 }
 0xc78   : > { %v14727_v32 = vmax.f32 %v17457_v13, %v17458_v12  ;;  %14717 = vst.msk [vmem:[#allocation8 + $0x5] sm:$0x3] %vm14705_vm1, %v14716_v0  ;;  %v15479_v0 = vld [vmem:[%s26652_s21 + $0x8] sm:$0xff]  ;;  %v17471_v13 = vld [vmem:[%s26652_s21 + $0x50] sm:$0xff]  ;;  %v17472_v12 = vld [vmem:[%s26652_s21 + $0x58] sm:$0xff]  ;;  %s26654_s23 = sld [smem:[#allocation44_spill]] }
 0xc79   : > { %v20700_v46 = vpack.c.bf16 %v17472_v12, %v17471_v13  ;;  %v17479_v41 = vld [vmem:[%s26652_s21 + $0x80] sm:$0xff]  ;;  %v17482_v2 = vld [vmem:[%s26652_s21 + $0x98] sm:$0xff]  ;;  %v17490_v50 = vld [vmem:[%s26652_s21 + $0xd0] sm:$0xff] }
 0xc7a   : > { %v14728_v5 = vmax.f32 %v14726_v54, %v14727_v32  ;;  %v20709_v54 = vpack.c.bf16 %v15479_v0, %v15478_v62  ;;  %v15480_v32 = vld [vmem:[%s26652_s21 + $0x10] sm:$0xff]  ;;  %v17488_v19 = vld [vmem:[%s26652_s21 + $0xc0] sm:$0xff]  ;;  %v17491_v62 = vld [vmem:[%s26652_s21 + $0xd8] sm:$0xff] }
 0xc7b   : > { %v20712_v3 = vpack.c.bf16 %v15481_v43, %v15480_v32  ;;  %v20736_v12 = vpack.c.bf16 %v17491_v62, %v17490_v50  ;;  %v17484_v32 = vld [vmem:[%s26652_s21 + $0xa8] sm:$0xff]  ;;  %v17492_v43 = vld [vmem:[%s26652_s21 + $0xe0] sm:$0xff] }
 0xc7c   : > { %14729 = vst.msk [vmem:[#allocation8 + $0x9] sm:$0x3] %vm14705_vm1, %v14728_v5  ;;  %v17474_v5 = vld [vmem:[%s26652_s21 + $0x68] sm:$0xff] }
 0xc7d   : > { %v20703_v4 = vpack.c.bf16 %v17474_v5, %v17473_v9  ;;  %v17485_v5 = vld [vmem:[%s26652_s21 + $0xb0] sm:$0xff] }
 0xc7f   : > { %v14751_v63 = vld [vmem:[#allocation8 + $0x1] sm:$0xff] }
 0xc80   : > { %v14746_v27 = vld [vmem:[#allocation8] sm:$0xff]  ;;  %20264 = vmatmul.mubr.msk.f32.vlgmr.msra.gmra.mrb[102].mxu0 %vm13790_vm14, %v14751_v63 }
 0xc81   : > { %20275 = vmatmul.mubr.msk.f32.vlgmr.msra.gmra.mrb[100].mxu1 %vm13790_vm14, %v14746_v27  ;;  %20656 = vmatpush3.bf16.msra.mxu0 %v20655_v42  ;;  %v15482_v42 = vld [vmem:[%s26652_s21 + $0x20] sm:$0xff]  ;;  %v15484_v63 = vld [vmem:[%s26652_s21 + $0x30] sm:$0xff]  ;;  %v15485_v27 = vld [vmem:[%s26652_s21 + $0x38] sm:$0xff] }
 0xc82   : > { %20662 = vmatpush3.bf16.msra.mxu1 %v20661_v56  ;;  %20657 = vmatprep.subr.bf16.mxu0 %v21875_v58  ;;  %v15483_v56 = vld [vmem:[%s26652_s21 + $0x28] sm:$0xff] }
 0xc83   : > { %20663 = vmatprep.subr.bf16.mxu1 %v21875_v58  ;;  %20285 = vmatprep.mubr.msk.f32.mxu0 %vm21876_vm0, %v26535_v7  ;;  %v14903_v33 = vld [vmem:[#allocation8 + $0x2] sm:$0xff]  ;;  %v15383_v1 = vld [vmem:[#allocation8 + $0xa] sm:$0xff]  ;;  %v20715_v20 = vpack.c.bf16 %v15483_v56, %v15482_v42 }
 0xc84   : > { %20296 = vmatprep.mubr.msk.f32.mxu1 %vm21876_vm0, %v26535_v7  ;;  %v14983_v28 = vld [vmem:[#allocation8 + $0x4] sm:$0xff] }
 0xc85   : > { %20659 = vmatpush3.bf16.msra.mxu0 %v20658_v44  ;;  %v15063_v45 = vld [vmem:[#allocation8 + $0x5] sm:$0xff]  ;;  %v20706_v44 = vpack.c.bf16 %v17476_v15, %v17475_v37  ;;  %v17497_v15 = vld [vmem:[%s26652_s21 + $0x100] sm:$0xff] }
 0xc86   : > { %20665 = vmatpush3.bf16.msra.mxu1 %v20664_v40  ;;  %20666 = vmatprep.subr.bf16.mxu0 %v21875_v58  ;;  %v15143_v31 = vld [vmem:[#allocation8 + $0x6] sm:$0xff]  ;;  %v20718_v40 = vpack.c.bf16 %v15485_v27, %v15484_v63  ;;  %v17498_v63 = vld [vmem:[%s26652_s21 + $0x108] sm:$0xff]  ;;  %v17506_v27 = vld [vmem:[%s26652_s21 + $0x140] sm:$0xff] }
 0xc87   : > { %20672 = vmatprep.subr.bf16.mxu1 %v21875_v58  ;;  %v15223_v14 = vld [vmem:[#allocation8 + $0x8] sm:$0xff]  ;;  %v17494_v56 = vld [vmem:[%s26652_s21 + $0xf0] sm:$0xff] }
 0xc88   : > { %20286 = vmatmul.mubr.msk.f32.vlgmr.msra.gmra.mrb[104].mxu0 %vm13790_vm14, %v14903_v33  ;;  %v15303_v18 = vld [vmem:[#allocation8 + $0x9] sm:$0xff] }
 0xc89   : > { %20297 = vmatmul.mubr.msk.f32.vlgmr.msra.gmra.mrb[102].mxu1 %vm13790_vm14, %v14983_v28  ;;  %20668 = vmatpush3.bf16.msra.mxu0 %v20667_v24  ;;  %v17486_v42 = vld [vmem:[%s26652_s21 + $0xb8] sm:$0xff] }
 0xc8a   : > { %20674 = vmatpush3.bf16.msra.mxu1 %v20673_v21  ;;  %20669 = vmatprep.subr.bf16.mxu0 %v21875_v58 }
 0xc8b   : > { %20675 = vmatprep.subr.bf16.mxu1 %v21875_v58  ;;  %20307 = vmatprep.mubr.msk.f32.mxu0 %vm21876_vm0, %v26535_v7 }
 0xc8c   : > { %20318 = vmatprep.mubr.msk.f32.mxu1 %vm21876_vm0, %v26535_v7 }
 0xc8d   : > { %20671 = vmatpush3.bf16.msra.mxu0 %v20670_v30 }
 0xc8e   : > { %20677 = vmatpush3.bf16.msra.mxu1 %v20676_v36  ;;  %20678 = vmatprep.subr.bf16.mxu0 %v21875_v58 }
 0xc8f   : > { %20684 = vmatprep.subr.bf16.mxu1 %v21875_v58 }
 0xc90   : > { %20308 = vmatmul.mubr.msk.f32.vlgmr.msra.gmra.mrb[106].mxu0 %vm13790_vm14, %v15063_v45 }
 0xc91   : > { %20319 = vmatmul.mubr.msk.f32.vlgmr.msra.gmra.mrb[104].mxu1 %vm13790_vm14, %v15143_v31  ;;  %20680 = vmatpush3.bf16.msra.mxu0 %v20679_v26  ;;  %v17468_v31 = vld [vmem:[%s26653_s15] ss:$0 sm:$0xff]  ;;  %s737_s15 = scalar_lea.vmem %s26655_s2, %s16462_s26 }
 0xc92   : > { %20686 = vmatpush3.bf16.msra.mxu1 %v20685_v10  ;;  %20681 = vmatprep.subr.bf16.mxu0 %v21875_v58 }
 0xc93   : > { %20687 = vmatprep.subr.bf16.mxu1 %v21875_v58  ;;  %20329 = vmatprep.mubr.msk.f32.mxu0 %vm21876_vm0, %v26535_v7 }
 0xc94   : > { %20340 = vmatprep.mubr.msk.f32.mxu1 %vm21876_vm0, %v26535_v7 }
 0xc95   : > { %20683 = vmatpush3.bf16.msra.mxu0 %v20682_v6 }
 0xc96   : > { %20689 = vmatpush3.bf16.msra.mxu1 %v20688_v52  ;;  %20690 = vmatprep.subr.bf16.mxu0 %v21875_v58 }
 0xc97   : > { %20696 = vmatprep.subr.bf16.mxu1 %v21875_v58 }
 0xc98   : > { %20330 = vmatmul.mubr.msk.f32.vlgmr.msra.gmra.mrb[108].mxu0 %vm13790_vm14, %v15223_v14  ;;  %v17489_v14 = vld [vmem:[%s26652_s21 + $0xc8] sm:$0xff] }
 0xc99   : > { %20341 = vmatmul.mubr.msk.f32.vlgmr.msra.gmra.mrb[106].mxu1 %vm13790_vm14, %v15303_v18  ;;  %20692 = vmatpush3.bf16.msra.mxu0 %v20691_v55  ;;  %v20721_v18 = vpack.c.bf16 %v17480_v49, %v17479_v41 }
 0xc9a   : > { %20351 = vmatprep.mubr.msk.f32.mxu0 %vm21876_vm0, %v26535_v7  ;;  %20693 = vmatprep.subr.bf16.mxu0 %v21875_v58 }
 0xc9b   : > { %20370 = vmatprep.mubr.msk.f32.mxu1 %vm21876_vm0, %v26535_v7  ;;  %20698 = vmatpush3.bf16.msra.mxu1 %v20697_v47 }
 0xc9c   : > { %20699 = vmatprep.subr.bf16.mxu1 %v21875_v58 }
 0xc9d   : > { %20695 = vmatpush3.bf16.msra.mxu0 %v20694_v16  ;;  %v20733_v16 = vpack.c.bf16 %v17489_v14, %v17488_v19 }
 0xc9e   : > { %20708 = vmatprep.subr.bf16.mxu0 %v21875_v58 }
 0xc9f   : > { %20701 = vmatpush3.bf16.msra.mxu1 %v20700_v46  ;;  %v17493_v46 = vld [vmem:[%s26652_s21 + $0xe8] sm:$0xff] }
 0xca0   : > { %20352 = vmatmul.mubr.msk.f32.vlgmr.msra.gmra.mrb[110].mxu0 %vm13790_vm14, %v15383_v1  ;;  %20702 = vmatprep.subr.bf16.mxu1 %v21875_v58  ;;  %vm14745_vm14 = vcmp.lt.s32.totalorder %v14737_v17, 2  ;;  %v17481_v1 = vld [vmem:[%s26652_s21 + $0x90] sm:$0xff]  ;;  %v20739_v9 = vpack.c.bf16 %v17493_v46, %v17492_v43  ;;  %v17524_v17 = vld [vmem:[%s26652_s21 + $0x1c0] sm:$0xff]  ;;  %v17534_v46 = vld [vmem:[%s26652_s21 + $0x208] sm:$0xff] }
 0xca1   : > { %20389 = vmatprep.mubr.msk.f32.mxu0 %vm21876_vm0, %v26535_v7  ;;  %20710 = vmatpush3.bf16.msra.mxu0 %v20709_v54  ;;  %v20724_v13 = vpack.c.bf16 %v17482_v2, %v17481_v1  ;;  %v17483_v54 = vld [vmem:[%s26652_s21 + $0xa0] sm:$0xff]  ;;  %v17529_v2 = vld [vmem:[%s26652_s21 + $0x1e8] sm:$0xff] }
 0xca2   : > { %20711 = vmatprep.subr.bf16.mxu0 %v21875_v58  ;;  %v17528_v1 = vld [vmem:[%s26652_s21 + $0x1e0] sm:$0xff] }
 0xca3   : > { %20704 = vmatpush3.bf16.msra.mxu1 %v20703_v4  ;;  %v17495_v4 = vld [vmem:[%s26652_s21 + $0xf8] sm:$0xff]  ;;  %v20787_v62 = vpack.c.bf16 %v17529_v2, %v17528_v1  ;;  %v17533_v43 = vld [vmem:[%s26652_s21 + $0x200] sm:$0xff] }
 0xca4   : > { %20705 = vmatprep.subr.bf16.mxu1 %v21875_v58  ;;  %v20742_v37 = vpack.c.bf16 %v17495_v4, %v17494_v56 }
 0xca5   : > { %20713 = vmatpush3.bf16.msra.mxu0 %v20712_v3  ;;  %v20727_v3 = vpack.c.bf16 %v17484_v32, %v17483_v54 }
 0xca6   : > { %20714 = vmatprep.subr.bf16.mxu0 %v21875_v58 }
 0xca7   : > { %20707 = vmatpush3.bf16.msra.mxu1 %v20706_v44  ;;  %v17507_v44 = vld [vmem:[%s26652_s21 + $0x148] sm:$0xff] }
 0xca8   : > { %20720 = vmatprep.subr.bf16.mxu1 %v21875_v58 }
 0xca9   : > { %20716 = vmatpush3.bf16.msra.mxu0 %v20715_v20  ;;  %v20730_v20 = vpack.c.bf16 %v17486_v42, %v17485_v5  ;;  %v17536_v5 = vld [vmem:[%s26652_s21 + $0x218] sm:$0xff] }
 0xcaa   : > { %20717 = vmatprep.subr.bf16.mxu0 %v21875_v58 }
 0xcad   : > { %20719 = vmatpush3.bf16.msra.mxu0 %v20718_v40  ;;  %v20745_v40 = vpack.c.bf16 %v17498_v63, %v17497_v15  ;;  %v17539_v63 = vld [vmem:[%s26652_s21 + $0x230] sm:$0xff] }
 0xcae   : > { %20732 = vmatprep.subr.bf16.mxu0 %v21875_v58 }
 0xd53   : > { %v14826_v25 = vpop.f32.mrb[102].mxu0 }
 0xd54   : > { %v14899_v51 = vpop.f32.mrb[100].mxu1  ;;  %v20265_v53 = vpop.f32.mrb[103].mxu0 }
 0xd55   : > { %v14900_v29 = vadd.f32 %v14899_v51, %v14826_v25  ;;  %v20276_v24 = vpop.f32.mrb[101].mxu1  ;;  %v20757_v25 = vpack.c.bf16 %v17507_v44, %v17506_v27  ;;  %v17499_v51 = vld [vmem:[%s26652_s21 + $0x110] sm:$0xff] }
 0xd56   : > { %v17508_v53 = vld [vmem:[%s26652_s21 + $0x150] sm:$0xff]  ;;  %v17509_v24 = vld [vmem:[%s26652_s21 + $0x158] sm:$0xff] }
 0xd5b   : > { %v14978_v21 = vpop.f32.mrb[104].mxu0 }
 0xd5c   : > { %v15058_v38 = vpop.f32.mrb[102].mxu1  ;;  %v14982_v8 = vadd.f32 %v14978_v21, %v14900_v29  ;;  %v20287_v59 = vpop.f32.mrb[105].mxu0  ;;  %v17500_v29 = vld [vmem:[%s26652_s21 + $0x118] sm:$0xff] }
 0xd5d   : > { %v20298_v34 = vpop.f32.mrb[103].mxu1  ;;  %v20760_v59 = vpack.c.bf16 %v17509_v24, %v17508_v53 }
 0xd5e   : > { %v15062_v33 = vadd.f32 %v15058_v38, %v14982_v8  ;;  %v20748_v8 = vpack.c.bf16 %v17500_v29, %v17499_v51  ;;  %v17501_v34 = vld [vmem:[%s26652_s21 + $0x120] sm:$0xff] }
 0xd63   : > { %v15138_v28 = vpop.f32.mrb[106].mxu0 }
 0xd64   : > { %v15218_v30 = vpop.f32.mrb[104].mxu1  ;;  %v15142_v36 = vadd.f32 %v15138_v28, %v15062_v33  ;;  %v20309_v61 = vpop.f32.mrb[107].mxu0  ;;  %v17502_v33 = vld [vmem:[%s26652_s21 + $0x128] sm:$0xff]  ;;  %v17510_v28 = vld [vmem:[%s26652_s21 + $0x160] sm:$0xff] }
 0xd65   : > { %v20320_v48 = vpop.f32.mrb[105].mxu1 }
 0xd66   : > { %v15222_v60 = vadd.f32 %v15218_v30, %v15142_v36  ;;  %v17511_v30 = vld [vmem:[%s26652_s21 + $0x168] sm:$0xff]  ;;  %v20751_v36 = vpack.c.bf16 %v17502_v33, %v17501_v34  ;;  %v17503_v48 = vld [vmem:[%s26652_s21 + $0x130] sm:$0xff] }
 0xd67   : > { %v20763_v61 = vpack.c.bf16 %v17511_v30, %v17510_v28 }
 0xd6b   : > { %v15298_v23 = vpop.f32.mrb[108].mxu0 }
 0xd6c   : > { %v15378_v26 = vpop.f32.mrb[106].mxu1  ;;  %v15302_v10 = vadd.f32 %v15298_v23, %v15222_v60  ;;  %v20331_v11 = vpop.f32.mrb[109].mxu0  ;;  %v17504_v60 = vld [vmem:[%s26652_s21 + $0x138] sm:$0xff]  ;;  %v17512_v23 = vld [vmem:[%s26652_s21 + $0x170] sm:$0xff] }
 0xd6d   : > { %v20342_v39 = vpop.f32.mrb[107].mxu1 }
 0xd6e   : > { %v15382_v35 = vadd.f32 %v15378_v26, %v15302_v10  ;;  %v17513_v26 = vld [vmem:[%s26652_s21 + $0x178] sm:$0xff]  ;;  %v20754_v10 = vpack.c.bf16 %v17504_v60, %v17503_v48  ;;  %v17515_v39 = vld [vmem:[%s26652_s21 + $0x180] sm:$0xff] }
 0xd6f   : > { %v20766_v11 = vpack.c.bf16 %v17513_v26, %v17512_v23 }
 0xd73   : > { %v15458_v45 = vpop.f32.mrb[110].mxu0 }
 0xd74   : > { %v15462_v6 = vadd.f32 %v15458_v45, %v15382_v35  ;;  %v20353_v52 = vpop.f32.mrb[111].mxu0  ;;  %v17516_v35 = vld [vmem:[%s26652_s21 + $0x188] sm:$0xff] }
 0xd75   : > { %v17525_v45 = vld [vmem:[%s26652_s21 + $0x1c8] sm:$0xff]  ;;  %v17517_v52 = vld [vmem:[%s26652_s21 + $0x190] sm:$0xff] }
 0xd76   : > { %v15470_v22 = vadd.f32 %v17468_v31, %v15462_v6  ;;  %v20769_v31 = vpack.c.bf16 %v17516_v35, %v17515_v39  ;;  %v20781_v6 = vpack.c.bf16 %v17525_v45, %v17524_v17  ;;  %v17542_v35 = vld [vmem:[%s26654_s23] ss:$0 sm:$0xff] }
 0xd78   : > { %v15471_v57 = vmax.f32 %v15470_v22, 0.0  ;;  %v17518_v22 = vld [vmem:[%s26652_s21 + $0x198] sm:$0xff] }
 0xd79   : > { %v20772_v19 = vpack.c.bf16 %v17518_v22, %v17517_v52 }
 0xd7a   : > { %v15474_v55 = vsel %vm14745_vm14, %v15471_v57, 0.0  ;;  %v17526_v57 = vld [vmem:[%s26652_s21 + $0x1d0] sm:$0xff] }
 0xd7b   : > { %15476 = vst.msk [vmem:[#allocation9 + $0x5] sm:$0xff] %vm15475_vm2, %v15474_v55  ;;  %v17527_v55 = vld [vmem:[%s26652_s21 + $0x1d8] sm:$0xff] }
 0xd7c   : > { %v20784_v14 = vpack.c.bf16 %v17527_v55, %v17526_v57 }
 0xd82   : > { %v15486_v47 = vld [vmem:[#allocation9 + $0x1] sm:$0xff]  ;;  %v16062_v56 = vld [vmem:[#allocation9 + $0x9] sm:$0xff] }
 0xd83   : > { %v15477_v0 = vld [vmem:[#allocation9] sm:$0xff]  ;;  %20371 = vmatmul.mubr.msk.f32.vlgmr.msra.gmra.mrb[108].mxu1 %vm15475_vm2, %v15486_v47  ;;  %v17521_v47 = vld [vmem:[%s26652_s21 + $0x1b0] sm:$0xff] }
 0xd84   : > { %20390 = vmatmul.mubr.msk.f32.vlgmr.msra.gmra.mrb[112].mxu0 %vm15475_vm2, %v15477_v0  ;;  %20722 = vmatpush3.bf16.msra.mxu1 %v20721_v18  ;;  %v15642_v21 = vld [vmem:[#allocation9 + $0x2] sm:$0xff]  ;;  %v17519_v18 = vld [vmem:[%s26652_s21 + $0x1a0] sm:$0xff]  ;;  %v17522_v0 = vld [vmem:[%s26652_s21 + $0x1b8] sm:$0xff] }
 0xd85   : > { %20734 = vmatpush3.bf16.msra.mxu0 %v20733_v16  ;;  %20723 = vmatprep.subr.bf16.mxu1 %v21875_v58  ;;  %v15726_v38 = vld [vmem:[#allocation9 + $0x4] sm:$0xff]  ;;  %v20778_v54 = vpack.c.bf16 %v17522_v0, %v17521_v47 }
 0xd86   : > { %20735 = vmatprep.subr.bf16.mxu0 %v21875_v58  ;;  %20408 = vmatprep.mubr.msk.f32.mxu1 %vm21876_vm0, %v26535_v7  ;;  %v15810_v41 = vld [vmem:[#allocation9 + $0x5] sm:$0xff] }
 0xd87   : > { %20427 = vmatprep.mubr.msk.f32.mxu0 %vm21876_vm0, %v26535_v7  ;;  %v15894_v49 = vld [vmem:[#allocation9 + $0x6] sm:$0xff] }
 0xd88   : > { %20725 = vmatpush3.bf16.msra.mxu1 %v20724_v13  ;;  %v17520_v16 = vld [vmem:[%s26652_s21 + $0x1a8] sm:$0xff]  ;;  %v17530_v13 = vld [vmem:[%s26652_s21 + $0x1f0] sm:$0xff] }
 0xd89   : > { %20737 = vmatpush3.bf16.msra.mxu0 %v20736_v12  ;;  %20726 = vmatprep.subr.bf16.mxu1 %v21875_v58  ;;  %v20775_v50 = vpack.c.bf16 %v17520_v16, %v17519_v18  ;;  %v17531_v12 = vld [vmem:[%s26652_s21 + $0x1f8] sm:$0xff]  ;;  %v15978_v42 = vld [vmem:[#allocation9 + $0x8] sm:$0xff] }
 0xd8a   : > { %20738 = vmatprep.subr.bf16.mxu0 %v21875_v58  ;;  %v20790_v32 = vpack.c.bf16 %v17531_v12, %v17530_v13  ;;  %v16146_v44 = vld [vmem:[#allocation9 + $0xa] sm:$0xff] }
 0xd8c   : > { %20728 = vmatpush3.bf16.msra.mxu1 %v20727_v3  ;;  %v20793_v3 = vpack.c.bf16 %v17534_v46, %v17533_v43 }
 0xd8d   : > { %20740 = vmatpush3.bf16.msra.mxu0 %v20739_v9  ;;  %20729 = vmatprep.subr.bf16.mxu1 %v21875_v58  ;;  %v17535_v9 = vld [vmem:[%s26652_s21 + $0x210] sm:$0xff] }
 0xd8e   : > { %20741 = vmatprep.subr.bf16.mxu0 %v21875_v58  ;;  %v20796_v4 = vpack.c.bf16 %v17536_v5, %v17535_v9 }
 0xd90   : > { %20731 = vmatpush3.bf16.msra.mxu1 %v20730_v20  ;;  %v17537_v20 = vld [vmem:[%s26652_s21 + $0x220] sm:$0xff] }
 0xd91   : > { %20743 = vmatpush3.bf16.msra.mxu0 %v20742_v37  ;;  %20744 = vmatprep.subr.bf16.mxu1 %v21875_v58  ;;  %v17538_v37 = vld [vmem:[%s26652_s21 + $0x228] sm:$0xff] }
 0xd92   : > { %20756 = vmatprep.subr.bf16.mxu0 %v21875_v58  ;;  %v20799_v15 = vpack.c.bf16 %v17538_v37, %v17537_v20 }
 0xd93   : > { %20409 = vmatmul.mubr.msk.f32.vlgmr.msra.gmra.mrb[110].mxu1 %vm15475_vm2, %v15642_v21 }
 0xd94   : > { %20428 = vmatmul.mubr.msk.f32.vlgmr.msra.gmra.mrb[114].mxu0 %vm15475_vm2, %v15726_v38  ;;  %20746 = vmatpush3.bf16.msra.mxu1 %v20745_v40 }
 0xd95   : > { %20758 = vmatpush3.bf16.msra.mxu0 %v20757_v25  ;;  %20747 = vmatprep.subr.bf16.mxu1 %v21875_v58 }
 0xd96   : > { %20759 = vmatprep.subr.bf16.mxu0 %v21875_v58  ;;  %20446 = vmatprep.mubr.msk.f32.mxu1 %vm21876_vm0, %v26535_v7 }
 0xd97   : > { %20465 = vmatprep.mubr.msk.f32.mxu0 %vm21876_vm0, %v26535_v7 }
 0xd98   : > { %20749 = vmatpush3.bf16.msra.mxu1 %v20748_v8 }
 0xd99   : > { %20761 = vmatpush3.bf16.msra.mxu0 %v20760_v59  ;;  %20750 = vmatprep.subr.bf16.mxu1 %v21875_v58 }
 0xd9a   : > { %20762 = vmatprep.subr.bf16.mxu0 %v21875_v58 }
 0xd9c   : > { %20752 = vmatpush3.bf16.msra.mxu1 %v20751_v36 }
 0xd9d   : > { %20764 = vmatpush3.bf16.msra.mxu0 %v20763_v61  ;;  %20753 = vmatprep.subr.bf16.mxu1 %v21875_v58 }
 0xd9e   : > { %20765 = vmatprep.subr.bf16.mxu0 %v21875_v58 }
 0xda0   : > { %20755 = vmatpush3.bf16.msra.mxu1 %v20754_v10 }
 0xda1   : > { %20767 = vmatpush3.bf16.msra.mxu0 %v20766_v11  ;;  %20768 = vmatprep.subr.bf16.mxu1 %v21875_v58 }
 0xda2   : > { %20780 = vmatprep.subr.bf16.mxu0 %v21875_v58 }
 0xda3   : > { %20447 = vmatmul.mubr.msk.f32.vlgmr.msra.gmra.mrb[112].mxu1 %vm15475_vm2, %v15810_v41 }
 0xda4   : > { %20466 = vmatmul.mubr.msk.f32.vlgmr.msra.gmra.mrb[116].mxu0 %vm15475_vm2, %v15894_v49  ;;  %20770 = vmatpush3.bf16.msra.mxu1 %v20769_v31 }
 0xda5   : > { %20782 = vmatpush3.bf16.msra.mxu0 %v20781_v6  ;;  %20771 = vmatprep.subr.bf16.mxu1 %v21875_v58 }
 0xda6   : > { %20783 = vmatprep.subr.bf16.mxu0 %v21875_v58  ;;  %20484 = vmatprep.mubr.msk.f32.mxu1 %vm21876_vm0, %v26535_v7 }
 0xda7   : > { %20503 = vmatprep.mubr.msk.f32.mxu0 %vm21876_vm0, %v26535_v7 }
 0xda8   : > { %20773 = vmatpush3.bf16.msra.mxu1 %v20772_v19 }
 0xda9   : > { %20785 = vmatpush3.bf16.msra.mxu0 %v20784_v14  ;;  %20774 = vmatprep.subr.bf16.mxu1 %v21875_v58 }
 0xdaa   : > { %20786 = vmatprep.subr.bf16.mxu0 %v21875_v58 }
 0xdac   : > { %20776 = vmatpush3.bf16.msra.mxu1 %v20775_v50 }
 0xdad   : > { %20788 = vmatpush3.bf16.msra.mxu0 %v20787_v62  ;;  %20777 = vmatprep.subr.bf16.mxu1 %v21875_v58 }
 0xdae   : > { %20789 = vmatprep.subr.bf16.mxu0 %v21875_v58 }
 0xdb0   : > { %20779 = vmatpush3.bf16.msra.mxu1 %v20778_v54 }
 0xdb1   : > { %20791 = vmatpush3.bf16.msra.mxu0 %v20790_v32  ;;  %20792 = vmatprep.subr.bf16.mxu1 %v21875_v58 }
 0xdb3   : > { %20485 = vmatmul.mubr.msk.f32.vlgmr.msra.gmra.mrb[114].mxu1 %vm15475_vm2, %v15978_v42 }
 0xdb4   : > { %20504 = vmatmul.mubr.msk.f32.vlgmr.msra.gmra.mrb[118].mxu0 %vm15475_vm2, %v16062_v56  ;;  %20794 = vmatpush3.bf16.msra.mxu1 %v20793_v3 }
 0xdb5   : > { %20522 = vmatprep.mubr.msk.f32.mxu1 %vm21876_vm0, %v26535_v7  ;;  %20795 = vmatprep.subr.bf16.mxu1 %v21875_v58  ;;  %v17540_v7 = vld [vmem:[%s26652_s21 + $0x238] sm:$0xff] }
 0xdb6   : > { %v20802_v27 = vpack.c.bf16 %v17540_v7, %v17539_v63 }
 0xdb8   : > { %20797 = vmatpush3.bf16.msra.mxu1 %v20796_v4 }
 0xdb9   : > { %20798 = vmatprep.subr.bf16.mxu1 %v21875_v58 }
 0xdbc   : > { %20800 = vmatpush3.bf16.msra.mxu1 %v20799_v15 }
 0xdbd   : > { %20801 = vmatprep.subr.bf16.mxu1 %v21875_v58 }
 0xdc0   : > { %20803 = vmatpush3.bf16.msra.mxu1 %v20802_v27 }
 0xdc3   : > { %20523 = vmatmul.mubr.msk.f32.vlgmr.msra.gmra.mrb[116].mxu1 %vm15475_vm2, %v16146_v44 }
 0xe56   : > { %v15565_v40 = vpop.f32.mrb[108].mxu1 }
 0xe57   : > { %v15638_v25 = vpop.f32.mrb[112].mxu0  ;;  %v20372_v29 = vpop.f32.mrb[109].mxu1 }
 0xe58   : > { %v15639_v51 = vadd.f32 %v15638_v25, %v15565_v40  ;;  %v20391_v53 = vpop.f32.mrb[113].mxu0 }
 0xe66   : > { %v15721_v24 = vpop.f32.mrb[110].mxu1 }
 0xe67   : > { %v15805_v21 = vpop.f32.mrb[114].mxu0  ;;  %v15725_v38 = vadd.f32 %v15721_v24, %v15639_v51  ;;  %v20410_v8 = vpop.f32.mrb[111].mxu1 }
 0xe68   : > { %v20429_v59 = vpop.f32.mrb[115].mxu0 }
 0xe69   : > { %v15809_v34 = vadd.f32 %v15805_v21, %v15725_v38 }
 0xe76   : > { %v15889_v33 = vpop.f32.mrb[112].mxu1 }
 0xe77   : > { %v15973_v28 = vpop.f32.mrb[116].mxu0  ;;  %v15893_v30 = vadd.f32 %v15889_v33, %v15809_v34  ;;  %v20448_v58 = vpop.f32.mrb[113].mxu1 }
 0xe78   : > { %v20467_v36 = vpop.f32.mrb[117].mxu0 }
 0xe79   : > { %v15977_v61 = vadd.f32 %v15973_v28, %v15893_v30 }
 0xe86   : > { %v16057_v48 = vpop.f32.mrb[114].mxu1 }
 0xe87   : > { %v16141_v60 = vpop.f32.mrb[118].mxu0  ;;  %v16061_v23 = vadd.f32 %v16057_v48, %v15977_v61  ;;  %v20486_v26 = vpop.f32.mrb[115].mxu1 }
 0xe88   : > { %v20505_v10 = vpop.f32.mrb[119].mxu0 }
 0xe89   : > { %v16145_v11 = vadd.f32 %v16141_v60, %v16061_v23 }
 0xe96   : > { %v16225_v39 = vpop.f32.mrb[116].mxu1 }
 0xe97   : > { %v16229_v17 = vadd.f32 %v16225_v39, %v16145_v11  ;;  %v20524_v45 = vpop.f32.mrb[117].mxu1 }
 0xe99   : > { %v16237_v31 = vadd.f32 %v17542_v35, %v16229_v17 }
 0xe9b   : > { %v16238_v6 = vmax.f32 %v16237_v31, 0.0 }
 0xe9d   : > { %16239 = vst.msk [vmem:[%s737_s15] sm:$0xff] %vm15475_vm2, %v16238_v6 }
 0xe9e PF: > { %s26656_s20 = sld [smem:[#allocation21_spill]] }
 0xea4   : > { %s34_s1 = sadd.s32 1, %s26656_s20  }
 0xea5   : > { %p31_p6 = scmp.ge.s32.totalorder %s34_s1, 4  }
 0xea7   :  { %33 = sbr.rel (!%p31_p6) target bundleno = 13 (0xd), region = 307 }
 0xeae   :  { %16307 = vsyncpa [#allocation11], 1 }
 0xeaf   :  { %16309 = vsyncpa [#allocation11 + $0x1], 1 }
 0xeb0   :  { %16310 = vsyncpa [#allocation13], 1 }
 0xeb1   :  { %16311 = vsyncpa [#allocation16], 1 }

</bundles_post_ra>
